<compile_context>
chip_gen: v6e
topology: v6e:2x2x1
jax: 0.10.0
libtpu: 0.0.40
codegen_flags: <defaults>
</compile_context>

<pallas_src>
import functools

import jax
import jax.numpy as jnp
from jax.experimental import pallas as pl
from jax.experimental.pallas import tpu as pltpu

MAX_TM = 4096          # lane tile for the M (= N*oD*oH*oW) dimension
NEG_SLOPE = 0.2
BN_EPS = 1e-5


def _round_up(x, m):
    return ((x + m - 1) // m) * m


# ----------------------------- Pallas kernels ------------------------------

def _conv_bias_kernel(w_ref, p_ref, b_ref, y_ref, *, lrelu):
    """y^T tile = W(Cout,K) @ P(K,TM) + b, optionally fused LeakyReLU(0.2)."""
    acc = jnp.dot(w_ref[...], p_ref[...], preferred_element_type=jnp.float32)
    acc = acc + b_ref[...]                       # (Cout,1) broadcast over lanes
    if lrelu:
        acc = jnp.where(acc >= 0, acc, NEG_SLOPE * acc)
    y_ref[...] = acc.astype(y_ref.dtype)


def _conv_stats_kernel(w_ref, p_ref, y_ref, ssum_ref, ssq_ref):
    """Bias-free conv matmul + per-tile per-channel sum / sum-of-squares."""
    acc = jnp.dot(w_ref[...], p_ref[...], preferred_element_type=jnp.float32)
    y_ref[...] = acc.astype(y_ref.dtype)
    ssum_ref[...] = jnp.sum(acc, axis=1, keepdims=True).reshape(ssum_ref.shape)
    ssq_ref[...] = jnp.sum(acc * acc, axis=1, keepdims=True).reshape(ssq_ref.shape)


def _bn_lrelu_kernel(y_ref, sc_ref, sh_ref, o_ref):
    v = y_ref[...].astype(jnp.float32) * sc_ref[...] + sh_ref[...]
    o_ref[...] = jnp.where(v >= 0, v, NEG_SLOPE * v).astype(o_ref.dtype)


# ------------------------------ wrappers ------------------------------------

def _tile_m(patches):
    """Pick a layer-adaptive lane tile and pad M to a multiple of it."""
    m = patches.shape[1]
    tm = min(MAX_TM, _round_up(m, 128))
    mp = _round_up(m, tm)
    if mp != m:
        patches = jnp.pad(patches, ((0, 0), (0, mp - m)))
    return patches, m, mp, tm


def conv_matmul_bias(w2d, patches, b, *, lrelu, out_dtype):
    """w2d:(Cout,K) bf16, patches:(K,M) bf16, b:(Cout,) f32 -> (Cout,M)."""
    cout, k = w2d.shape
    patches, m, mp, tm = _tile_m(patches)
    cost = pl.CostEstimate(
        flops=2 * mp * k * cout, transcendentals=0,
        bytes_accessed=k * mp * 2 + cout * k * 2
        + cout * mp * jnp.dtype(out_dtype).itemsize)
    y = pl.pallas_call(
        functools.partial(_conv_bias_kernel, lrelu=lrelu),
        out_shape=jax.ShapeDtypeStruct((cout, mp), out_dtype),
        grid=(mp // tm,),
        in_specs=[
            pl.BlockSpec((cout, k), lambda i: (0, 0)),
            pl.BlockSpec((k, tm), lambda i: (0, i)),
            pl.BlockSpec((cout, 1), lambda i: (0, 0)),
        ],
        out_specs=pl.BlockSpec((cout, tm), lambda i: (0, i)),
        compiler_params=pltpu.CompilerParams(dimension_semantics=("parallel",)),
        cost_estimate=cost,
    )(w2d, patches, b.reshape(cout, 1).astype(jnp.float32))
    return y[:, :m]


def conv_matmul_stats(w2d, patches, *, out_dtype):
    """Bias-free conv matmul with fused per-tile BN partial sums.

    Pad columns are exact zeros (no bias), so they contribute 0 to the partial
    sums; dividing by the true M keeps the batch statistics exact.
    """
    cout, k = w2d.shape
    patches, m, mp, tm = _tile_m(patches)
    g = mp // tm
    cost = pl.CostEstimate(
        flops=2 * mp * k * cout + 3 * cout * mp, transcendentals=0,
        bytes_accessed=k * mp * 2 + cout * k * 2
        + cout * mp * jnp.dtype(out_dtype).itemsize + 2 * g * cout * 4)
    y, ssum, ssq = pl.pallas_call(
        _conv_stats_kernel,
        out_shape=(jax.ShapeDtypeStruct((cout, mp), out_dtype),
                   jax.ShapeDtypeStruct((g, cout, 1), jnp.float32),
                   jax.ShapeDtypeStruct((g, cout, 1), jnp.float32)),
        grid=(g,),
        in_specs=[
            pl.BlockSpec((cout, k), lambda i: (0, 0)),
            pl.BlockSpec((k, tm), lambda i: (0, i)),
        ],
        out_specs=(pl.BlockSpec((cout, tm), lambda i: (0, i)),
                   pl.BlockSpec((1, cout, 1), lambda i: (i, 0, 0)),
                   pl.BlockSpec((1, cout, 1), lambda i: (i, 0, 0))),
        compiler_params=pltpu.CompilerParams(dimension_semantics=("parallel",)),
        cost_estimate=cost,
    )(w2d, patches)
    return y, ssum, ssq, m, tm


def bn_lrelu_apply(y_pad, scale, shift, tm, *, out_dtype):
    """leaky_relu(y*scale + shift, 0.2) on the lane-dense (Cout, Mp) layout."""
    cout, mp = y_pad.shape
    cost = pl.CostEstimate(
        flops=3 * cout * mp, transcendentals=0,
        bytes_accessed=cout * mp * (y_pad.dtype.itemsize
                                    + jnp.dtype(out_dtype).itemsize))
    return pl.pallas_call(
        _bn_lrelu_kernel,
        out_shape=jax.ShapeDtypeStruct((cout, mp), out_dtype),
        grid=(mp // tm,),
        in_specs=[
            pl.BlockSpec((cout, tm), lambda i: (0, i)),
            pl.BlockSpec((cout, 1), lambda i: (0, 0)),
            pl.BlockSpec((cout, 1), lambda i: (0, 0)),
        ],
        out_specs=pl.BlockSpec((cout, tm), lambda i: (0, i)),
        compiler_params=pltpu.CompilerParams(dimension_semantics=("parallel",)),
        cost_estimate=cost,
    )(y_pad, scale.reshape(cout, 1), shift.reshape(cout, 1))


def im2col_cm(x_cm, k, stride, pad):
    """x_cm:(C,N,D,H,W) -> patches^T (C*k^3, N*od*oh*ow); K-order = (C,kd,kh,kw).

    The stack-axis placement yields the (K, M) layout the kernel wants directly
    (no big transpose), and the M-order (N,od,oh,ow) is exactly the next
    layer's channels-major input layout -> no inter-layer relayout.
    """
    c, n, d, h, w = x_cm.shape
    if pad:
        x_cm = jnp.pad(x_cm, ((0, 0), (0, 0), (pad, pad), (pad, pad), (pad, pad)))
    od = (d + 2 * pad - k) // stride + 1
    oh = (h + 2 * pad - k) // stride + 1
    ow = (w + 2 * pad - k) // stride + 1
    cols = []
    for kd in range(k):
        for kh in range(k):
            for kw in range(k):
                cols.append(x_cm[:, :,
                                 kd:kd + stride * od:stride,
                                 kh:kh + stride * oh:stride,
                                 kw:kw + stride * ow:stride])
    p = jnp.stack(cols, axis=1)                       # (C, k^3, N, od, oh, ow)
    return p.reshape(c * k * k * k, n * od * oh * ow), (od, oh, ow)
# TODO(synk): patch extraction still materializes (K, M) via XLA; fully fusing
# the 64 shifted-slice loads into the matmul kernel (memory_space=pl.ANY +
# manual DMA) would remove one more HBM round trip of the patch matrix.


def conv_layer(x_cm, w, b, stride, pad, *, lrelu, out_dtype):
    """Conv3d (+bias, optional LeakyReLU) on channels-major activations."""
    cout, cin, k = w.shape[0], w.shape[1], w.shape[2]
    n = x_cm.shape[1]
    patches, (od, oh, ow) = im2col_cm(x_cm.astype(jnp.bfloat16), k, stride, pad)
    w2d = w.reshape(cout, cin * k * k * k).astype(jnp.bfloat16)
    y = conv_matmul_bias(w2d, patches, b, lrelu=lrelu, out_dtype=out_dtype)
    return y.reshape(cout, n, od, oh, ow)


def conv_bn_lrelu_layer(x_cm, w, gamma, beta, stride, pad, eps=BN_EPS):
    """Conv3d -> BatchNorm3d (training-mode batch stats) -> LeakyReLU(0.2).

    Conv bias is intentionally dropped: BN's mean subtraction cancels a
    per-channel constant exactly, so conv(x)+b and conv(x) give identical
    BN outputs.
    """
    cout, cin, k = w.shape[0], w.shape[1], w.shape[2]
    n = x_cm.shape[1]
    patches, (od, oh, ow) = im2col_cm(x_cm.astype(jnp.bfloat16), k, stride, pad)
    w2d = w.reshape(cout, cin * k * k * k).astype(jnp.bfloat16)
    y_pad, ssum, ssq, m, tm = conv_matmul_stats(w2d, patches,
                                                out_dtype=jnp.bfloat16)
    # Tiny cross-tile reduction of the fused partial sums (done in JAX glue).
    mean = jnp.sum(ssum, axis=0)[:, 0] / m            # (Cout,)
    ex2 = jnp.sum(ssq, axis=0)[:, 0] / m
    var = ex2 - mean * mean                           # biased var (training BN)
    scale = gamma / jnp.sqrt(var + eps)
    shift = beta - mean * scale
    out = bn_lrelu_apply(y_pad, scale, shift, tm, out_dtype=jnp.bfloat16)
    return out[:, :m].reshape(cout, n, od, oh, ow)


# --------------------------- model definition -------------------------------

def init_params(key, channel=32, out_class=1):
    c8, c4, c2 = channel // 8, channel // 4, channel // 2
    conv_defs = [(c8, 1), (c4, c8), (c2, c4), (channel, c2), (out_class, channel)]
    params = {}
    for i, (co, ci) in enumerate(conv_defs, start=1):
        key, kw, kb = jax.random.split(key, 3)
        fan_in = ci * 4 * 4 * 4
        bound = 1.0 / jnp.sqrt(float(fan_in))
        params[f"w{i}"] = jax.random.uniform(kw, (co, ci, 4, 4, 4), jnp.float32,
                                             -bound, bound)
        params[f"b{i}"] = jax.random.uniform(kb, (co,), jnp.float32, -bound, bound)
    for i, c in [(2, c4), (3, c2), (4, channel)]:
        params[f"gamma{i}"] = jnp.ones((c,), jnp.float32)
        params[f"beta{i}"] = jnp.zeros((c,), jnp.float32)
    return params


@jax.jit
def discriminator_forward(params, x):
    """x: (N, 1, D, H, W) NCDHW -> logits (N, out_class, 1, 1, 1)."""
    x_cm = jnp.transpose(x, (1, 0, 2, 3, 4))          # channels-major (C,N,D,H,W)
    h1 = conv_layer(x_cm, params["w1"], params["b1"], 2, 1,
                    lrelu=True, out_dtype=jnp.bfloat16)
    h2 = conv_bn_lrelu_layer(h1, params["w2"], params["gamma2"], params["beta2"], 2, 1)
    h3 = conv_bn_lrelu_layer(h2, params["w3"], params["gamma3"], params["beta3"], 2, 1)
    h4 = conv_bn_lrelu_layer(h3, params["w4"], params["gamma4"], params["beta4"], 2, 1)
    h5 = conv_layer(h4, params["w5"], params["b5"], 1, 0,
                    lrelu=False, out_dtype=jnp.float32)
    return jnp.transpose(h5, (1, 0, 2, 3, 4))         # back to NCDHW


if __name__ == "__main__":
    key = jax.random.PRNGKey(0)
    kx, kp = jax.random.split(key)
    # Small channel count; spatial must be 64 so conv5 (k=4, no pad) sees a 4^3 map.
    channel, out_class, batch = 32, 1, 2
    x = jax.random.normal(kx, (batch, 1, 64, 64, 64), jnp.float32)
    params = init_params(kp, channel=channel, out_class=out_class)

    out = discriminator_forward(params, x)
    out = jax.block_until_ready(out)

    assert out.shape == (batch, out_class, 1, 1, 1), out.shape
    assert out.dtype == jnp.float32
    print("KERNEL_OK")
</pallas_src>

<mosaic_0001>
module attributes {stable_mosaic.version = 11 : i64} {
  func.func @_conv_bias_kernel(%arg0: i32, %arg1: memref<4x64xbf16, #tpu.memory_space<vmem>>, %arg2: memref<64x4096xbf16, #tpu.memory_space<vmem>>, %arg3: memref<4x1xf32, #tpu.memory_space<vmem>>, %arg4: memref<4x4096xbf16, #tpu.memory_space<vmem>>) attributes {dimension_semantics = [#tpu.dimension_semantics<parallel>], iteration_bounds = array<i64: 16>, scalar_prefetch = 0 : i64, scratch_operands = 0 : i64, tpu.core_type = #tpu.core_type<tc>, window_params = [{pipeline_mode = #tpu.pipeline_mode<synchronous>, transform_indices = @transform_0, window_bounds = array<i64: 4, 64>}, {transform_indices = @transform_1, window_bounds = array<i64: 64, 4096>}, {pipeline_mode = #tpu.pipeline_mode<synchronous>, transform_indices = @transform_2, window_bounds = array<i64: 4, 1>}, {transform_indices = @transform_3, window_bounds = array<i64: 4, 4096>}]} {
    %c0 = arith.constant 0 : index
    %c0_0 = arith.constant 0 : index
    %0 = vector.load %arg1[%c0, %c0_0] : memref<4x64xbf16, #tpu.memory_space<vmem>>, vector<4x64xbf16>
    %c0_1 = arith.constant 0 : index
    %c0_2 = arith.constant 0 : index
    %1 = vector.load %arg2[%c0_1, %c0_2] : memref<64x4096xbf16, #tpu.memory_space<vmem>>, vector<64x4096xbf16>
    %cst = arith.constant dense<0.000000e+00> : vector<4x4096xf32>
    %2 = tpu.matmul %0, %1, %cst {dimension_numbers = #tpu.dot_dimension_numbers<[1], [0], [0], [1], [0, 0, 1, 1], [], []>} : vector<4x64xbf16>, vector<64x4096xbf16>, vector<4x4096xf32> -> vector<4x4096xf32>
    %c0_3 = arith.constant 0 : index
    %c0_4 = arith.constant 0 : index
    %3 = vector.load %arg3[%c0_3, %c0_4] : memref<4x1xf32, #tpu.memory_space<vmem>>, vector<4x1xf32>
    %4 = vector.broadcast %3 : vector<4x1xf32> to vector<4x4096xf32>
    %5 = arith.addf %2, %4 : vector<4x4096xf32>
    %cst_5 = arith.constant 0.000000e+00 : f32
    %6 = vector.broadcast %cst_5 : f32 to vector<4x4096xf32>
    %7 = arith.cmpf oge, %5, %6 : vector<4x4096xf32>
    %cst_6 = arith.constant 2.000000e-01 : f32
    %8 = vector.broadcast %cst_6 : f32 to vector<4x4096xf32>
    %9 = arith.mulf %8, %5 : vector<4x4096xf32>
    %10 = arith.select %7, %5, %9 : vector<4x4096xi1>, vector<4x4096xf32>
    %11 = arith.truncf %10 : vector<4x4096xf32> to vector<4x4096xbf16>
    %c0_7 = arith.constant 0 : index
    %c0_8 = arith.constant 0 : index
    %12 = vector.load %arg4[%c0_7, %c0_8] : memref<4x4096xbf16, #tpu.memory_space<vmem>>, vector<4x4096xbf16>
    tpu.vector_store %arg4[%c0_7, %c0_8], %11 {strides = array<i32>} : memref<4x4096xbf16, #tpu.memory_space<vmem>>, vector<4x4096xbf16>,
    return
  }
  func.func @transform_0(%arg0: i32) -> (i32, i32) {
    %c0_i32 = arith.constant 0 : i32
    %c0_i32_0 = arith.constant 0 : i32
    %c0_i32_1 = arith.constant 0 : i32
    return %c0_i32, %c0_i32_0 : i32, i32
  }
  func.func @transform_1(%arg0: i32) -> (i32, i32) {
    %c0_i32 = arith.constant 0 : i32
    %c0_i32_0 = arith.constant 0 : i32
    return %c0_i32, %arg0 : i32, i32
  }
  func.func @transform_2(%arg0: i32) -> (i32, i32) {
    %c0_i32 = arith.constant 0 : i32
    %c0_i32_0 = arith.constant 0 : i32
    %c0_i32_1 = arith.constant 0 : i32
    return %c0_i32, %c0_i32_0 : i32, i32
  }
  func.func @transform_3(%arg0: i32) -> (i32, i32) {
    %c0_i32 = arith.constant 0 : i32
    %c0_i32_0 = arith.constant 0 : i32
    return %c0_i32, %arg0 : i32, i32
  }
}

module attributes {stable_mosaic.version = 11 : i64} {
  func.func @_conv_stats_kernel(%arg0: i32, %arg1: memref<8x256xbf16, #tpu.memory_space<vmem>>, %arg2: memref<256x4096xbf16, #tpu.memory_space<vmem>>, %arg3: memref<8x4096xbf16, #tpu.memory_space<vmem>>, %arg4: memref<1x8x1xf32, #tpu.memory_space<vmem>>, %arg5: memref<1x8x1xf32, #tpu.memory_space<vmem>>) attributes {dimension_semantics = [#tpu.dimension_semantics<parallel>], iteration_bounds = array<i64: 2>, scalar_prefetch = 0 : i64, scratch_operands = 0 : i64, tpu.core_type = #tpu.core_type<tc>, window_params = [{pipeline_mode = #tpu.pipeline_mode<synchronous>, transform_indices = @transform_0, window_bounds = array<i64: 8, 256>}, {transform_indices = @transform_1, window_bounds = array<i64: 256, 4096>}, {transform_indices = @transform_2, window_bounds = array<i64: 8, 4096>}, {transform_indices = @transform_3, window_bounds = array<i64: 1, 8, 1>}, {transform_indices = @transform_4, window_bounds = array<i64: 1, 8, 1>}]} {
    %c0 = arith.constant 0 : index
    %c0_0 = arith.constant 0 : index
    %0 = vector.load %arg1[%c0, %c0_0] : memref<8x256xbf16, #tpu.memory_space<vmem>>, vector<8x256xbf16>
    %c0_1 = arith.constant 0 : index
    %c0_2 = arith.constant 0 : index
    %1 = vector.load %arg2[%c0_1, %c0_2] : memref<256x4096xbf16, #tpu.memory_space<vmem>>, vector<256x4096xbf16>
    %cst = arith.constant dense<0.000000e+00> : vector<8x4096xf32>
    %2 = tpu.matmul %0, %1, %cst {dimension_numbers = #tpu.dot_dimension_numbers<[1], [0], [0], [1], [0, 0, 1, 1], [], []>} : vector<8x256xbf16>, vector<256x4096xbf16>, vector<8x4096xf32> -> vector<8x4096xf32>
    %3 = arith.truncf %2 : vector<8x4096xf32> to vector<8x4096xbf16>
    %c0_3 = arith.constant 0 : index
    %c0_4 = arith.constant 0 : index
    %4 = vector.load %arg3[%c0_3, %c0_4] : memref<8x4096xbf16, #tpu.memory_space<vmem>>, vector<8x4096xbf16>
    tpu.vector_store %arg3[%c0_3, %c0_4], %3 {strides = array<i32>} : memref<8x4096xbf16, #tpu.memory_space<vmem>>, vector<8x4096xbf16>,
    %cst_5 = arith.constant dense<0.000000e+00> : vector<8xf32>
    %5 = vector.multi_reduction <add>, %2, %cst_5 [1] : vector<8x4096xf32> to vector<8xf32>
    %6 = vector.shape_cast %5 : vector<8xf32> to vector<8x1xf32>
    %7 = vector.shape_cast %6 : vector<8x1xf32> to vector<1x8x1xf32>
    %c0_6 = arith.constant 0 : index
    %c0_7 = arith.constant 0 : index
    %c0_8 = arith.constant 0 : index
    %8 = vector.load %arg4[%c0_6, %c0_7, %c0_8] : memref<1x8x1xf32, #tpu.memory_space<vmem>>, vector<1x8x1xf32>
    tpu.vector_store %arg4[%c0_6, %c0_7, %c0_8], %7 {strides = array<i32>} : memref<1x8x1xf32, #tpu.memory_space<vmem>>, vector<1x8x1xf32>,
    %9 = arith.mulf %2, %2 : vector<8x4096xf32>
    %cst_9 = arith.constant dense<0.000000e+00> : vector<8xf32>
    %10 = vector.multi_reduction <add>, %9, %cst_9 [1] : vector<8x4096xf32> to vector<8xf32>
    %11 = vector.shape_cast %10 : vector<8xf32> to vector<8x1xf32>
    %12 = vector.shape_cast %11 : vector<8x1xf32> to vector<1x8x1xf32>
    %c0_10 = arith.constant 0 : index
    %c0_11 = arith.constant 0 : index
    %c0_12 = arith.constant 0 : index
    %13 = vector.load %arg5[%c0_10, %c0_11, %c0_12] : memref<1x8x1xf32, #tpu.memory_space<vmem>>, vector<1x8x1xf32>
    tpu.vector_store %arg5[%c0_10, %c0_11, %c0_12], %12 {strides = array<i32>} : memref<1x8x1xf32, #tpu.memory_space<vmem>>, vector<1x8x1xf32>,
    return
  }
  func.func @transform_0(%arg0: i32) -> (i32, i32) {
    %c0_i32 = arith.constant 0 : i32
    %c0_i32_0 = arith.constant 0 : i32
    %c0_i32_1 = arith.constant 0 : i32
    return %c0_i32, %c0_i32_0 : i32, i32
  }
  func.func @transform_1(%arg0: i32) -> (i32, i32) {
    %c0_i32 = arith.constant 0 : i32
    %c0_i32_0 = arith.constant 0 : i32
    return %c0_i32, %arg0 : i32, i32
  }
  func.func @transform_2(%arg0: i32) -> (i32, i32) {
    %c0_i32 = arith.constant 0 : i32
    %c0_i32_0 = arith.constant 0 : i32
    return %c0_i32, %arg0 : i32, i32
  }
  func.func @transform_3(%arg0: i32) -> (i32, i32, i32) {
    %c0_i32 = arith.constant 0 : i32
    %c0_i32_0 = arith.constant 0 : i32
    %c0_i32_1 = arith.constant 0 : i32
    return %arg0, %c0_i32, %c0_i32_0 : i32, i32, i32
  }
  func.func @transform_4(%arg0: i32) -> (i32, i32, i32) {
    %c0_i32 = arith.constant 0 : i32
    %c0_i32_0 = arith.constant 0 : i32
    %c0_i32_1 = arith.constant 0 : i32
    return %arg0, %c0_i32, %c0_i32_0 : i32, i32, i32
  }
}

module attributes {stable_mosaic.version = 11 : i64} {
  func.func @_bn_lrelu_kernel(%arg0: i32, %arg1: memref<8x4096xbf16, #tpu.memory_space<vmem>>, %arg2: memref<8x1xf32, #tpu.memory_space<vmem>>, %arg3: memref<8x1xf32, #tpu.memory_space<vmem>>, %arg4: memref<8x4096xbf16, #tpu.memory_space<vmem>>) attributes {dimension_semantics = [#tpu.dimension_semantics<parallel>], iteration_bounds = array<i64: 2>, scalar_prefetch = 0 : i64, scratch_operands = 0 : i64, tpu.core_type = #tpu.core_type<tc>, window_params = [{transform_indices = @transform_0, window_bounds = array<i64: 8, 4096>}, {pipeline_mode = #tpu.pipeline_mode<synchronous>, transform_indices = @transform_1, window_bounds = array<i64: 8, 1>}, {pipeline_mode = #tpu.pipeline_mode<synchronous>, transform_indices = @transform_2, window_bounds = array<i64: 8, 1>}, {transform_indices = @transform_3, window_bounds = array<i64: 8, 4096>}]} {
    %c0 = arith.constant 0 : index
    %c0_0 = arith.constant 0 : index
    %0 = vector.load %arg1[%c0, %c0_0] : memref<8x4096xbf16, #tpu.memory_space<vmem>>, vector<8x4096xbf16>
    %1 = arith.extf %0 : vector<8x4096xbf16> to vector<8x4096xf32>
    %c0_1 = arith.constant 0 : index
    %c0_2 = arith.constant 0 : index
    %2 = vector.load %arg2[%c0_1, %c0_2] : memref<8x1xf32, #tpu.memory_space<vmem>>, vector<8x1xf32>
    %3 = vector.broadcast %2 : vector<8x1xf32> to vector<8x4096xf32>
    %4 = arith.mulf %1, %3 : vector<8x4096xf32>
    %c0_3 = arith.constant 0 : index
    %c0_4 = arith.constant 0 : index
    %5 = vector.load %arg3[%c0_3, %c0_4] : memref<8x1xf32, #tpu.memory_space<vmem>>, vector<8x1xf32>
    %6 = vector.broadcast %5 : vector<8x1xf32> to vector<8x4096xf32>
    %7 = arith.addf %4, %6 : vector<8x4096xf32>
    %cst = arith.constant 0.000000e+00 : f32
    %8 = vector.broadcast %cst : f32 to vector<8x4096xf32>
    %9 = arith.cmpf oge, %7, %8 : vector<8x4096xf32>
    %cst_5 = arith.constant 2.000000e-01 : f32
    %10 = vector.broadcast %cst_5 : f32 to vector<8x4096xf32>
    %11 = arith.mulf %10, %7 : vector<8x4096xf32>
    %12 = arith.select %9, %7, %11 : vector<8x4096xi1>, vector<8x4096xf32>
    %13 = arith.truncf %12 : vector<8x4096xf32> to vector<8x4096xbf16>
    %c0_6 = arith.constant 0 : index
    %c0_7 = arith.constant 0 : index
    %14 = vector.load %arg4[%c0_6, %c0_7] : memref<8x4096xbf16, #tpu.memory_space<vmem>>, vector<8x4096xbf16>
    tpu.vector_store %arg4[%c0_6, %c0_7], %13 {strides = array<i32>} : memref<8x4096xbf16, #tpu.memory_space<vmem>>, vector<8x4096xbf16>,
    return
  }
  func.func @transform_0(%arg0: i32) -> (i32, i32) {
    %c0_i32 = arith.constant 0 : i32
    %c0_i32_0 = arith.constant 0 : i32
    return %c0_i32, %arg0 : i32, i32
  }
  func.func @transform_1(%arg0: i32) -> (i32, i32) {
    %c0_i32 = arith.constant 0 : i32
    %c0_i32_0 = arith.constant 0 : i32
    %c0_i32_1 = arith.constant 0 : i32
    return %c0_i32, %c0_i32_0 : i32, i32
  }
  func.func @transform_2(%arg0: i32) -> (i32, i32) {
    %c0_i32 = arith.constant 0 : i32
    %c0_i32_0 = arith.constant 0 : i32
    %c0_i32_1 = arith.constant 0 : i32
    return %c0_i32, %c0_i32_0 : i32, i32
  }
  func.func @transform_3(%arg0: i32) -> (i32, i32) {
    %c0_i32 = arith.constant 0 : i32
    %c0_i32_0 = arith.constant 0 : i32
    return %c0_i32, %arg0 : i32, i32
  }
}

module attributes {stable_mosaic.version = 11 : i64} {
  func.func @_conv_stats_kernel(%arg0: i32, %arg1: memref<16x512xbf16, #tpu.memory_space<vmem>>, %arg2: memref<512x1024xbf16, #tpu.memory_space<vmem>>, %arg3: memref<16x1024xbf16, #tpu.memory_space<vmem>>, %arg4: memref<1x16x1xf32, #tpu.memory_space<vmem>>, %arg5: memref<1x16x1xf32, #tpu.memory_space<vmem>>) attributes {dimension_semantics = [#tpu.dimension_semantics<parallel>], iteration_bounds = array<i64: 1>, scalar_prefetch = 0 : i64, scratch_operands = 0 : i64, tpu.core_type = #tpu.core_type<tc>, window_params = [{pipeline_mode = #tpu.pipeline_mode<synchronous>, transform_indices = @transform_0, window_bounds = array<i64: 16, 512>}, {transform_indices = @transform_1, window_bounds = array<i64: 512, 1024>}, {transform_indices = @transform_2, window_bounds = array<i64: 16, 1024>}, {transform_indices = @transform_3, window_bounds = array<i64: 1, 16, 1>}, {transform_indices = @transform_4, window_bounds = array<i64: 1, 16, 1>}]} {
    %c0 = arith.constant 0 : index
    %c0_0 = arith.constant 0 : index
    %0 = vector.load %arg1[%c0, %c0_0] : memref<16x512xbf16, #tpu.memory_space<vmem>>, vector<16x512xbf16>
    %c0_1 = arith.constant 0 : index
    %c0_2 = arith.constant 0 : index
    %1 = vector.load %arg2[%c0_1, %c0_2] : memref<512x1024xbf16, #tpu.memory_space<vmem>>, vector<512x1024xbf16>
    %cst = arith.constant dense<0.000000e+00> : vector<16x1024xf32>
    %2 = tpu.matmul %0, %1, %cst {dimension_numbers = #tpu.dot_dimension_numbers<[1], [0], [0], [1], [0, 0, 1, 1], [], []>} : vector<16x512xbf16>, vector<512x1024xbf16>, vector<16x1024xf32> -> vector<16x1024xf32>
    %3 = arith.truncf %2 : vector<16x1024xf32> to vector<16x1024xbf16>
    %c0_3 = arith.constant 0 : index
    %c0_4 = arith.constant 0 : index
    %4 = vector.load %arg3[%c0_3, %c0_4] : memref<16x1024xbf16, #tpu.memory_space<vmem>>, vector<16x1024xbf16>
    tpu.vector_store %arg3[%c0_3, %c0_4], %3 {strides = array<i32>} : memref<16x1024xbf16, #tpu.memory_space<vmem>>, vector<16x1024xbf16>,
    %cst_5 = arith.constant dense<0.000000e+00> : vector<16xf32>
    %5 = vector.multi_reduction <add>, %2, %cst_5 [1] : vector<16x1024xf32> to vector<16xf32>
    %6 = vector.shape_cast %5 : vector<16xf32> to vector<16x1xf32>
    %7 = vector.shape_cast %6 : vector<16x1xf32> to vector<1x16x1xf32>
    %c0_6 = arith.constant 0 : index
    %c0_7 = arith.constant 0 : index
    %c0_8 = arith.constant 0 : index
    %8 = vector.load %arg4[%c0_6, %c0_7, %c0_8] : memref<1x16x1xf32, #tpu.memory_space<vmem>>, vector<1x16x1xf32>
    tpu.vector_store %arg4[%c0_6, %c0_7, %c0_8], %7 {strides = array<i32>} : memref<1x16x1xf32, #tpu.memory_space<vmem>>, vector<1x16x1xf32>,
    %9 = arith.mulf %2, %2 : vector<16x1024xf32>
    %cst_9 = arith.constant dense<0.000000e+00> : vector<16xf32>
    %10 = vector.multi_reduction <add>, %9, %cst_9 [1] : vector<16x1024xf32> to vector<16xf32>
    %11 = vector.shape_cast %10 : vector<16xf32> to vector<16x1xf32>
    %12 = vector.shape_cast %11 : vector<16x1xf32> to vector<1x16x1xf32>
    %c0_10 = arith.constant 0 : index
    %c0_11 = arith.constant 0 : index
    %c0_12 = arith.constant 0 : index
    %13 = vector.load %arg5[%c0_10, %c0_11, %c0_12] : memref<1x16x1xf32, #tpu.memory_space<vmem>>, vector<1x16x1xf32>
    tpu.vector_store %arg5[%c0_10, %c0_11, %c0_12], %12 {strides = array<i32>} : memref<1x16x1xf32, #tpu.memory_space<vmem>>, vector<1x16x1xf32>,
    return
  }
  func.func @transform_0(%arg0: i32) -> (i32, i32) {
    %c0_i32 = arith.constant 0 : i32
    %c0_i32_0 = arith.constant 0 : i32
    %c0_i32_1 = arith.constant 0 : i32
    return %c0_i32, %c0_i32_0 : i32, i32
  }
  func.func @transform_1(%arg0: i32) -> (i32, i32) {
    %c0_i32 = arith.constant 0 : i32
    %c0_i32_0 = arith.constant 0 : i32
    return %c0_i32, %arg0 : i32, i32
  }
  func.func @transform_2(%arg0: i32) -> (i32, i32) {
    %c0_i32 = arith.constant 0 : i32
    %c0_i32_0 = arith.constant 0 : i32
    return %c0_i32, %arg0 : i32, i32
  }
  func.func @transform_3(%arg0: i32) -> (i32, i32, i32) {
    %c0_i32 = arith.constant 0 : i32
    %c0_i32_0 = arith.constant 0 : i32
    %c0_i32_1 = arith.constant 0 : i32
    return %arg0, %c0_i32, %c0_i32_0 : i32, i32, i32
  }
  func.func @transform_4(%arg0: i32) -> (i32, i32, i32) {
    %c0_i32 = arith.constant 0 : i32
    %c0_i32_0 = arith.constant 0 : i32
    %c0_i32_1 = arith.constant 0 : i32
    return %arg0, %c0_i32, %c0_i32_0 : i32, i32, i32
  }
}

module attributes {stable_mosaic.version = 11 : i64} {
  func.func @_bn_lrelu_kernel(%arg0: i32, %arg1: memref<16x1024xbf16, #tpu.memory_space<vmem>>, %arg2: memref<16x1xf32, #tpu.memory_space<vmem>>, %arg3: memref<16x1xf32, #tpu.memory_space<vmem>>, %arg4: memref<16x1024xbf16, #tpu.memory_space<vmem>>) attributes {dimension_semantics = [#tpu.dimension_semantics<parallel>], iteration_bounds = array<i64: 1>, scalar_prefetch = 0 : i64, scratch_operands = 0 : i64, tpu.core_type = #tpu.core_type<tc>, window_params = [{transform_indices = @transform_0, window_bounds = array<i64: 16, 1024>}, {pipeline_mode = #tpu.pipeline_mode<synchronous>, transform_indices = @transform_1, window_bounds = array<i64: 16, 1>}, {pipeline_mode = #tpu.pipeline_mode<synchronous>, transform_indices = @transform_2, window_bounds = array<i64: 16, 1>}, {transform_indices = @transform_3, window_bounds = array<i64: 16, 1024>}]} {
    %c0 = arith.constant 0 : index
    %c0_0 = arith.constant 0 : index
    %0 = vector.load %arg1[%c0, %c0_0] : memref<16x1024xbf16, #tpu.memory_space<vmem>>, vector<16x1024xbf16>
    %1 = arith.extf %0 : vector<16x1024xbf16> to vector<16x1024xf32>
    %c0_1 = arith.constant 0 : index
    %c0_2 = arith.constant 0 : index
    %2 = vector.load %arg2[%c0_1, %c0_2] : memref<16x1xf32, #tpu.memory_space<vmem>>, vector<16x1xf32>
    %3 = vector.broadcast %2 : vector<16x1xf32> to vector<16x1024xf32>
    %4 = arith.mulf %1, %3 : vector<16x1024xf32>
    %c0_3 = arith.constant 0 : index
    %c0_4 = arith.constant 0 : index
    %5 = vector.load %arg3[%c0_3, %c0_4] : memref<16x1xf32, #tpu.memory_space<vmem>>, vector<16x1xf32>
    %6 = vector.broadcast %5 : vector<16x1xf32> to vector<16x1024xf32>
    %7 = arith.addf %4, %6 : vector<16x1024xf32>
    %cst = arith.constant 0.000000e+00 : f32
    %8 = vector.broadcast %cst : f32 to vector<16x1024xf32>
    %9 = arith.cmpf oge, %7, %8 : vector<16x1024xf32>
    %cst_5 = arith.constant 2.000000e-01 : f32
    %10 = vector.broadcast %cst_5 : f32 to vector<16x1024xf32>
    %11 = arith.mulf %10, %7 : vector<16x1024xf32>
    %12 = arith.select %9, %7, %11 : vector<16x1024xi1>, vector<16x1024xf32>
    %13 = arith.truncf %12 : vector<16x1024xf32> to vector<16x1024xbf16>
    %c0_6 = arith.constant 0 : index
    %c0_7 = arith.constant 0 : index
    %14 = vector.load %arg4[%c0_6, %c0_7] : memref<16x1024xbf16, #tpu.memory_space<vmem>>, vector<16x1024xbf16>
    tpu.vector_store %arg4[%c0_6, %c0_7], %13 {strides = array<i32>} : memref<16x1024xbf16, #tpu.memory_space<vmem>>, vector<16x1024xbf16>,
    return
  }
  func.func @transform_0(%arg0: i32) -> (i32, i32) {
    %c0_i32 = arith.constant 0 : i32
    %c0_i32_0 = arith.constant 0 : i32
    return %c0_i32, %arg0 : i32, i32
  }
  func.func @transform_1(%arg0: i32) -> (i32, i32) {
    %c0_i32 = arith.constant 0 : i32
    %c0_i32_0 = arith.constant 0 : i32
    %c0_i32_1 = arith.constant 0 : i32
    return %c0_i32, %c0_i32_0 : i32, i32
  }
  func.func @transform_2(%arg0: i32) -> (i32, i32) {
    %c0_i32 = arith.constant 0 : i32
    %c0_i32_0 = arith.constant 0 : i32
    %c0_i32_1 = arith.constant 0 : i32
    return %c0_i32, %c0_i32_0 : i32, i32
  }
  func.func @transform_3(%arg0: i32) -> (i32, i32) {
    %c0_i32 = arith.constant 0 : i32
    %c0_i32_0 = arith.constant 0 : i32
    return %c0_i32, %arg0 : i32, i32
  }
}

module attributes {stable_mosaic.version = 11 : i64} {
  func.func @_conv_stats_kernel(%arg0: i32, %arg1: memref<32x1024xbf16, #tpu.memory_space<vmem>>, %arg2: memref<1024x128xbf16, #tpu.memory_space<vmem>>, %arg3: memref<32x128xbf16, #tpu.memory_space<vmem>>, %arg4: memref<1x32x1xf32, #tpu.memory_space<vmem>>, %arg5: memref<1x32x1xf32, #tpu.memory_space<vmem>>) attributes {dimension_semantics = [#tpu.dimension_semantics<parallel>], iteration_bounds = array<i64: 1>, scalar_prefetch = 0 : i64, scratch_operands = 0 : i64, tpu.core_type = #tpu.core_type<tc>, window_params = [{pipeline_mode = #tpu.pipeline_mode<synchronous>, transform_indices = @transform_0, window_bounds = array<i64: 32, 1024>}, {transform_indices = @transform_1, window_bounds = array<i64: 1024, 128>}, {transform_indices = @transform_2, window_bounds = array<i64: 32, 128>}, {transform_indices = @transform_3, window_bounds = array<i64: 1, 32, 1>}, {transform_indices = @transform_4, window_bounds = array<i64: 1, 32, 1>}]} {
    %c0 = arith.constant 0 : index
    %c0_0 = arith.constant 0 : index
    %0 = vector.load %arg1[%c0, %c0_0] : memref<32x1024xbf16, #tpu.memory_space<vmem>>, vector<32x1024xbf16>
    %c0_1 = arith.constant 0 : index
    %c0_2 = arith.constant 0 : index
    %1 = vector.load %arg2[%c0_1, %c0_2] : memref<1024x128xbf16, #tpu.memory_space<vmem>>, vector<1024x128xbf16>
    %cst = arith.constant dense<0.000000e+00> : vector<32x128xf32>
    %2 = tpu.matmul %0, %1, %cst {dimension_numbers = #tpu.dot_dimension_numbers<[1], [0], [0], [1], [0, 0, 1, 1], [], []>} : vector<32x1024xbf16>, vector<1024x128xbf16>, vector<32x128xf32> -> vector<32x128xf32>
    %3 = arith.truncf %2 : vector<32x128xf32> to vector<32x128xbf16>
    %c0_3 = arith.constant 0 : index
    %c0_4 = arith.constant 0 : index
    %4 = vector.load %arg3[%c0_3, %c0_4] : memref<32x128xbf16, #tpu.memory_space<vmem>>, vector<32x128xbf16>
    tpu.vector_store %arg3[%c0_3, %c0_4], %3 {strides = array<i32>} : memref<32x128xbf16, #tpu.memory_space<vmem>>, vector<32x128xbf16>,
    %cst_5 = arith.constant dense<0.000000e+00> : vector<32xf32>
    %5 = vector.multi_reduction <add>, %2, %cst_5 [1] : vector<32x128xf32> to vector<32xf32>
    %6 = vector.shape_cast %5 : vector<32xf32> to vector<32x1xf32>
    %7 = vector.shape_cast %6 : vector<32x1xf32> to vector<1x32x1xf32>
    %c0_6 = arith.constant 0 : index
    %c0_7 = arith.constant 0 : index
    %c0_8 = arith.constant 0 : index
    %8 = vector.load %arg4[%c0_6, %c0_7, %c0_8] : memref<1x32x1xf32, #tpu.memory_space<vmem>>, vector<1x32x1xf32>
    tpu.vector_store %arg4[%c0_6, %c0_7, %c0_8], %7 {strides = array<i32>} : memref<1x32x1xf32, #tpu.memory_space<vmem>>, vector<1x32x1xf32>,
    %9 = arith.mulf %2, %2 : vector<32x128xf32>
    %cst_9 = arith.constant dense<0.000000e+00> : vector<32xf32>
    %10 = vector.multi_reduction <add>, %9, %cst_9 [1] : vector<32x128xf32> to vector<32xf32>
    %11 = vector.shape_cast %10 : vector<32xf32> to vector<32x1xf32>
    %12 = vector.shape_cast %11 : vector<32x1xf32> to vector<1x32x1xf32>
    %c0_10 = arith.constant 0 : index
    %c0_11 = arith.constant 0 : index
    %c0_12 = arith.constant 0 : index
    %13 = vector.load %arg5[%c0_10, %c0_11, %c0_12] : memref<1x32x1xf32, #tpu.memory_space<vmem>>, vector<1x32x1xf32>
    tpu.vector_store %arg5[%c0_10, %c0_11, %c0_12], %12 {strides = array<i32>} : memref<1x32x1xf32, #tpu.memory_space<vmem>>, vector<1x32x1xf32>,
    return
  }
  func.func @transform_0(%arg0: i32) -> (i32, i32) {
    %c0_i32 = arith.constant 0 : i32
    %c0_i32_0 = arith.constant 0 : i32
    %c0_i32_1 = arith.constant 0 : i32
    return %c0_i32, %c0_i32_0 : i32, i32
  }
  func.func @transform_1(%arg0: i32) -> (i32, i32) {
    %c0_i32 = arith.constant 0 : i32
    %c0_i32_0 = arith.constant 0 : i32
    return %c0_i32, %arg0 : i32, i32
  }
  func.func @transform_2(%arg0: i32) -> (i32, i32) {
    %c0_i32 = arith.constant 0 : i32
    %c0_i32_0 = arith.constant 0 : i32
    return %c0_i32, %arg0 : i32, i32
  }
  func.func @transform_3(%arg0: i32) -> (i32, i32, i32) {
    %c0_i32 = arith.constant 0 : i32
    %c0_i32_0 = arith.constant 0 : i32
    %c0_i32_1 = arith.constant 0 : i32
    return %arg0, %c0_i32, %c0_i32_0 : i32, i32, i32
  }
  func.func @transform_4(%arg0: i32) -> (i32, i32, i32) {
    %c0_i32 = arith.constant 0 : i32
    %c0_i32_0 = arith.constant 0 : i32
    %c0_i32_1 = arith.constant 0 : i32
    return %arg0, %c0_i32, %c0_i32_0 : i32, i32, i32
  }
}

module attributes {stable_mosaic.version = 11 : i64} {
  func.func @_bn_lrelu_kernel(%arg0: i32, %arg1: memref<32x128xbf16, #tpu.memory_space<vmem>>, %arg2: memref<32x1xf32, #tpu.memory_space<vmem>>, %arg3: memref<32x1xf32, #tpu.memory_space<vmem>>, %arg4: memref<32x128xbf16, #tpu.memory_space<vmem>>) attributes {dimension_semantics = [#tpu.dimension_semantics<parallel>], iteration_bounds = array<i64: 1>, scalar_prefetch = 0 : i64, scratch_operands = 0 : i64, tpu.core_type = #tpu.core_type<tc>, window_params = [{transform_indices = @transform_0, window_bounds = array<i64: 32, 128>}, {pipeline_mode = #tpu.pipeline_mode<synchronous>, transform_indices = @transform_1, window_bounds = array<i64: 32, 1>}, {pipeline_mode = #tpu.pipeline_mode<synchronous>, transform_indices = @transform_2, window_bounds = array<i64: 32, 1>}, {transform_indices = @transform_3, window_bounds = array<i64: 32, 128>}]} {
    %c0 = arith.constant 0 : index
    %c0_0 = arith.constant 0 : index
    %0 = vector.load %arg1[%c0, %c0_0] : memref<32x128xbf16, #tpu.memory_space<vmem>>, vector<32x128xbf16>
    %1 = arith.extf %0 : vector<32x128xbf16> to vector<32x128xf32>
    %c0_1 = arith.constant 0 : index
    %c0_2 = arith.constant 0 : index
    %2 = vector.load %arg2[%c0_1, %c0_2] : memref<32x1xf32, #tpu.memory_space<vmem>>, vector<32x1xf32>
    %3 = vector.broadcast %2 : vector<32x1xf32> to vector<32x128xf32>
    %4 = arith.mulf %1, %3 : vector<32x128xf32>
    %c0_3 = arith.constant 0 : index
    %c0_4 = arith.constant 0 : index
    %5 = vector.load %arg3[%c0_3, %c0_4] : memref<32x1xf32, #tpu.memory_space<vmem>>, vector<32x1xf32>
    %6 = vector.broadcast %5 : vector<32x1xf32> to vector<32x128xf32>
    %7 = arith.addf %4, %6 : vector<32x128xf32>
    %cst = arith.constant 0.000000e+00 : f32
    %8 = vector.broadcast %cst : f32 to vector<32x128xf32>
    %9 = arith.cmpf oge, %7, %8 : vector<32x128xf32>
    %cst_5 = arith.constant 2.000000e-01 : f32
    %10 = vector.broadcast %cst_5 : f32 to vector<32x128xf32>
    %11 = arith.mulf %10, %7 : vector<32x128xf32>
    %12 = arith.select %9, %7, %11 : vector<32x128xi1>, vector<32x128xf32>
    %13 = arith.truncf %12 : vector<32x128xf32> to vector<32x128xbf16>
    %c0_6 = arith.constant 0 : index
    %c0_7 = arith.constant 0 : index
    %14 = vector.load %arg4[%c0_6, %c0_7] : memref<32x128xbf16, #tpu.memory_space<vmem>>, vector<32x128xbf16>
    tpu.vector_store %arg4[%c0_6, %c0_7], %13 {strides = array<i32>} : memref<32x128xbf16, #tpu.memory_space<vmem>>, vector<32x128xbf16>,
    return
  }
  func.func @transform_0(%arg0: i32) -> (i32, i32) {
    %c0_i32 = arith.constant 0 : i32
    %c0_i32_0 = arith.constant 0 : i32
    return %c0_i32, %arg0 : i32, i32
  }
  func.func @transform_1(%arg0: i32) -> (i32, i32) {
    %c0_i32 = arith.constant 0 : i32
    %c0_i32_0 = arith.constant 0 : i32
    %c0_i32_1 = arith.constant 0 : i32
    return %c0_i32, %c0_i32_0 : i32, i32
  }
  func.func @transform_2(%arg0: i32) -> (i32, i32) {
    %c0_i32 = arith.constant 0 : i32
    %c0_i32_0 = arith.constant 0 : i32
    %c0_i32_1 = arith.constant 0 : i32
    return %c0_i32, %c0_i32_0 : i32, i32
  }
  func.func @transform_3(%arg0: i32) -> (i32, i32) {
    %c0_i32 = arith.constant 0 : i32
    %c0_i32_0 = arith.constant 0 : i32
    return %c0_i32, %arg0 : i32, i32
  }
}

module attributes {stable_mosaic.version = 11 : i64} {
  func.func @_conv_bias_kernel(%arg0: i32, %arg1: memref<1x2048xbf16, #tpu.memory_space<vmem>>, %arg2: memref<2048x128xbf16, #tpu.memory_space<vmem>>, %arg3: memref<1x1xf32, #tpu.memory_space<vmem>>, %arg4: memref<1x128xf32, #tpu.memory_space<vmem>>) attributes {dimension_semantics = [#tpu.dimension_semantics<parallel>], iteration_bounds = array<i64: 1>, scalar_prefetch = 0 : i64, scratch_operands = 0 : i64, tpu.core_type = #tpu.core_type<tc>, window_params = [{pipeline_mode = #tpu.pipeline_mode<synchronous>, transform_indices = @transform_0, window_bounds = array<i64: 1, 2048>}, {transform_indices = @transform_1, window_bounds = array<i64: 2048, 128>}, {pipeline_mode = #tpu.pipeline_mode<synchronous>, transform_indices = @transform_2, window_bounds = array<i64: 1, 1>}, {transform_indices = @transform_3, window_bounds = array<i64: 1, 128>}]} {
    %c0 = arith.constant 0 : index
    %c0_0 = arith.constant 0 : index
    %0 = vector.load %arg1[%c0, %c0_0] : memref<1x2048xbf16, #tpu.memory_space<vmem>>, vector<1x2048xbf16>
    %c0_1 = arith.constant 0 : index
    %c0_2 = arith.constant 0 : index
    %1 = vector.load %arg2[%c0_1, %c0_2] : memref<2048x128xbf16, #tpu.memory_space<vmem>>, vector<2048x128xbf16>
    %cst = arith.constant dense<0.000000e+00> : vector<1x128xf32>
    %2 = tpu.matmul %0, %1, %cst {dimension_numbers = #tpu.dot_dimension_numbers<[1], [0], [0], [1], [0, 0, 1, 1], [], []>} : vector<1x2048xbf16>, vector<2048x128xbf16>, vector<1x128xf32> -> vector<1x128xf32>
    %c0_3 = arith.constant 0 : index
    %c0_4 = arith.constant 0 : index
    %3 = vector.load %arg3[%c0_3, %c0_4] : memref<1x1xf32, #tpu.memory_space<vmem>>, vector<1x1xf32>
    %4 = vector.broadcast %3 : vector<1x1xf32> to vector<1x128xf32>
    %5 = arith.addf %2, %4 : vector<1x128xf32>
    %c0_5 = arith.constant 0 : index
    %c0_6 = arith.constant 0 : index
    %6 = vector.load %arg4[%c0_5, %c0_6] : memref<1x128xf32, #tpu.memory_space<vmem>>, vector<1x128xf32>
    tpu.vector_store %arg4[%c0_5, %c0_6], %5 {strides = array<i32>} : memref<1x128xf32, #tpu.memory_space<vmem>>, vector<1x128xf32>,
    return
  }
  func.func @transform_0(%arg0: i32) -> (i32, i32) {
    %c0_i32 = arith.constant 0 : i32
    %c0_i32_0 = arith.constant 0 : i32
    %c0_i32_1 = arith.constant 0 : i32
    return %c0_i32, %c0_i32_0 : i32, i32
  }
  func.func @transform_1(%arg0: i32) -> (i32, i32) {
    %c0_i32 = arith.constant 0 : i32
    %c0_i32_0 = arith.constant 0 : i32
    return %c0_i32, %arg0 : i32, i32
  }
  func.func @transform_2(%arg0: i32) -> (i32, i32) {
    %c0_i32 = arith.constant 0 : i32
    %c0_i32_0 = arith.constant 0 : i32
    %c0_i32_1 = arith.constant 0 : i32
    return %c0_i32, %c0_i32_0 : i32, i32
  }
  func.func @transform_3(%arg0: i32) -> (i32, i32) {
    %c0_i32 = arith.constant 0 : i32
    %c0_i32_0 = arith.constant 0 : i32
    return %c0_i32, %arg0 : i32, i32
  }
}

</mosaic_0001>

<bundles_post_ra>
// kernel: discriminator_forward.8
= control target key start
LH: loop header
LB: loop body
LE: loop exit
PB: predicated region body
PF: predicated region fallthrough
CT: control target
= control target key end

     0   :  { %s2504_s12 = smov 0   ;;  %s2506_s13 = smov 0   ;;  %s3066_s0 = inlined_call_operand.vmem [shape: bf16[4,64], index: 0, kind: input, shape index: {}]   ;;  %s3067_s1 = inlined_call_operand.vmem [shape: bf16[64,65536], index: 1, kind: input, shape index: {}]   ;;  %s3068_s2 = inlined_call_operand.vmem [shape: f32[4,1], index: 2, kind: input, shape index: {}]   ;;  %s3069_s3 = inlined_call_operand.vmem [shape: bf16[4,65536], index: 3, kind: output, shape index: {}]  }
   0x1   :  { %s2508_s14 = smov 0  }
   0x2 LB: > { %s2257_s15 = sadd.s32 4294967295, %s2480_s14   ;;  %s2521_s16 = sadd.s32 1, %s2480_s14   ;;  %s2480_s14 = sphi %s2508_s14, %s3072_s14   ;;  %s2476_s13 = sphi %s2506_s13, %s3071_s13   ;;  %s2472_s12 = sphi %s2504_s12, %s3070_s12  }
   0x3   : > { %s38_s17 = ssub.s32 %s2480_s14, %s2521_s16  ;;  %s41_s18 = sadd.s32 1, %s2476_s13 }
   0x4   : > { %p39_p0 = scmp.eq.s32.totalorder %s38_s17, 0  ;;  %p48_p1 = scmp.ne.s32.totalorder %s2476_s13, %s2472_s12 }
   0x5   : > { %p49_p2 = scmp.eq.s32.totalorder %s2480_s14, 0  ;;  %p2260_p4 = scmp.ge.s32.totalorder %s2480_s14, 16 }
   0x6   : > { %s2530_s19 = scalar_select %p39_p0, %s2476_s13, %s41_s18  }
   0x7   : > { %p50_p3 = por %p49_p2, %p48_p1  ;;  %127 = sbr.rel (%p2260_p4) target bundleno = 80 (0x50), region = 24 }
   0xc   : > { %130 = sbr.rel (!%p50_p3) target bundleno = 80 (0x50), region = 28  ;;  %s132_s20 = sand.u32 (%p50_p3), 1, %s2476_s13  }
   0xd   : > { %s2430_s21 = sshll.u32 (%p50_p3), %s2480_s14, 7  ;;  %s2261_s22 = sshll.u32 (%p50_p3), %s132_s20, 10 }
   0xe   : > { %s2538_s25 = scalar_lea.vmem (%p50_p3), %s3067_s1, %s2430_s21  ;;  %s2543_s26 = scalar_lea.vmem (%p50_p3), [#allocation2], %s2261_s22 }
   0xf   : > { %v150_v0 = vld [vmem:[%s2538_s25] sm:$0xff] (%p50_p3)  ;;  %v152_v1 = vld [vmem:[%s2538_s25 + $0x8] sm:$0xff] (%p50_p3)  ;;  %v154_v2 = vld [vmem:[%s2538_s25 + $0x10] sm:$0xff] (%p50_p3) }
  0x10   : > { %151 = vst [vmem:[%s2543_s26] sm:$0xff] (%p50_p3), %v150_v0  ;;  %153 = vst [vmem:[%s2543_s26 + $0x8] sm:$0xff] (%p50_p3), %v152_v1  ;;  %v156_v3 = vld [vmem:[%s2538_s25 + $0x18] sm:$0xff] (%p50_p3)  ;;  %v158_v4 = vld [vmem:[%s2538_s25 + $0x20] sm:$0xff] (%p50_p3) }
  0x11   : > { %155 = vst [vmem:[%s2543_s26 + $0x10] sm:$0xff] %v154_v2  ;;  %v160_v5 = vld [vmem:[%s2538_s25 + $0x28] sm:$0xff]  ;;  %157 = vst [vmem:[%s2543_s26 + $0x18] sm:$0xff] %v156_v3  ;;  %v162_v6 = vld [vmem:[%s2538_s25 + $0x30] sm:$0xff] }
  0x12   : > { %159 = vst [vmem:[%s2543_s26 + $0x20] sm:$0xff] %v158_v4  ;;  %161 = vst [vmem:[%s2543_s26 + $0x28] sm:$0xff] %v160_v5  ;;  %v164_v7 = vld [vmem:[%s2538_s25 + $0x38] sm:$0xff]  ;;  %v166_v8 = vld [vmem:[%s2538_s25 + $0x40] sm:$0xff] }
  0x13   : > { %163 = vst [vmem:[%s2543_s26 + $0x30] sm:$0xff] %v162_v6  ;;  %165 = vst [vmem:[%s2543_s26 + $0x38] sm:$0xff] %v164_v7  ;;  %v168_v9 = vld [vmem:[%s2538_s25 + $0x48] sm:$0xff]  ;;  %v170_v10 = vld [vmem:[%s2538_s25 + $0x50] sm:$0xff] }
  0x14   : > { %167 = vst [vmem:[%s2543_s26 + $0x40] sm:$0xff] %v166_v8  ;;  %v172_v11 = vld [vmem:[%s2538_s25 + $0x58] sm:$0xff]  ;;  %169 = vst [vmem:[%s2543_s26 + $0x48] sm:$0xff] %v168_v9  ;;  %v174_v12 = vld [vmem:[%s2538_s25 + $0x60] sm:$0xff] }
  0x15   : > { %171 = vst [vmem:[%s2543_s26 + $0x50] sm:$0xff] %v170_v10  ;;  %173 = vst [vmem:[%s2543_s26 + $0x58] sm:$0xff] %v172_v11  ;;  %v176_v13 = vld [vmem:[%s2538_s25 + $0x68] sm:$0xff]  ;;  %v178_v14 = vld [vmem:[%s2538_s25 + $0x70] sm:$0xff] }
  0x16   : > { %175 = vst [vmem:[%s2543_s26 + $0x60] sm:$0xff] %v174_v12  ;;  %177 = vst [vmem:[%s2543_s26 + $0x68] sm:$0xff] %v176_v13  ;;  %v180_v15 = vld [vmem:[%s2538_s25 + $0x78] sm:$0xff]  ;;  %v182_v16 = vld [vmem:[%s2538_s25 + $0x800] sm:$0xff] }
  0x17   : > { %179 = vst [vmem:[%s2543_s26 + $0x70] sm:$0xff] %v178_v14  ;;  %v184_v17 = vld [vmem:[%s2538_s25 + $0x808] sm:$0xff]  ;;  %181 = vst [vmem:[%s2543_s26 + $0x78] sm:$0xff] %v180_v15  ;;  %v186_v18 = vld [vmem:[%s2538_s25 + $0x810] sm:$0xff] }
  0x18   : > { %183 = vst [vmem:[%s2543_s26 + $0x80] sm:$0xff] %v182_v16  ;;  %185 = vst [vmem:[%s2543_s26 + $0x88] sm:$0xff] %v184_v17  ;;  %v188_v19 = vld [vmem:[%s2538_s25 + $0x818] sm:$0xff]  ;;  %v190_v20 = vld [vmem:[%s2538_s25 + $0x820] sm:$0xff] }
  0x19   : > { %187 = vst [vmem:[%s2543_s26 + $0x90] sm:$0xff] %v186_v18  ;;  %189 = vst [vmem:[%s2543_s26 + $0x98] sm:$0xff] %v188_v19  ;;  %v192_v21 = vld [vmem:[%s2538_s25 + $0x828] sm:$0xff]  ;;  %v194_v22 = vld [vmem:[%s2538_s25 + $0x830] sm:$0xff] }
  0x1a   : > { %191 = vst [vmem:[%s2543_s26 + $0xa0] sm:$0xff] %v190_v20  ;;  %v196_v23 = vld [vmem:[%s2538_s25 + $0x838] sm:$0xff]  ;;  %193 = vst [vmem:[%s2543_s26 + $0xa8] sm:$0xff] %v192_v21  ;;  %v198_v24 = vld [vmem:[%s2538_s25 + $0x840] sm:$0xff] }
  0x1b   : > { %195 = vst [vmem:[%s2543_s26 + $0xb0] sm:$0xff] %v194_v22  ;;  %197 = vst [vmem:[%s2543_s26 + $0xb8] sm:$0xff] %v196_v23  ;;  %v200_v25 = vld [vmem:[%s2538_s25 + $0x848] sm:$0xff]  ;;  %v202_v26 = vld [vmem:[%s2538_s25 + $0x850] sm:$0xff] }
  0x1c   : > { %199 = vst [vmem:[%s2543_s26 + $0xc0] sm:$0xff] %v198_v24  ;;  %201 = vst [vmem:[%s2543_s26 + $0xc8] sm:$0xff] %v200_v25  ;;  %v204_v27 = vld [vmem:[%s2538_s25 + $0x858] sm:$0xff]  ;;  %v206_v28 = vld [vmem:[%s2538_s25 + $0x860] sm:$0xff] }
  0x1d   : > { %203 = vst [vmem:[%s2543_s26 + $0xd0] sm:$0xff] %v202_v26  ;;  %v208_v29 = vld [vmem:[%s2538_s25 + $0x868] sm:$0xff]  ;;  %205 = vst [vmem:[%s2543_s26 + $0xd8] sm:$0xff] %v204_v27  ;;  %v210_v30 = vld [vmem:[%s2538_s25 + $0x870] sm:$0xff] }
  0x1e   : > { %207 = vst [vmem:[%s2543_s26 + $0xe0] sm:$0xff] %v206_v28  ;;  %209 = vst [vmem:[%s2543_s26 + $0xe8] sm:$0xff] %v208_v29  ;;  %v212_v31 = vld [vmem:[%s2538_s25 + $0x878] sm:$0xff]  ;;  %v214_v32 = vld [vmem:[%s2538_s25 + $0x1000] sm:$0xff] }
  0x1f   : > { %211 = vst [vmem:[%s2543_s26 + $0xf0] sm:$0xff] %v210_v30  ;;  %213 = vst [vmem:[%s2543_s26 + $0xf8] sm:$0xff] %v212_v31  ;;  %v216_v33 = vld [vmem:[%s2538_s25 + $0x1008] sm:$0xff]  ;;  %v218_v34 = vld [vmem:[%s2538_s25 + $0x1010] sm:$0xff] }
  0x20   : > { %215 = vst [vmem:[%s2543_s26 + $0x100] sm:$0xff] %v214_v32  ;;  %v220_v35 = vld [vmem:[%s2538_s25 + $0x1018] sm:$0xff]  ;;  %217 = vst [vmem:[%s2543_s26 + $0x108] sm:$0xff] %v216_v33  ;;  %v222_v36 = vld [vmem:[%s2538_s25 + $0x1020] sm:$0xff] }
  0x21   : > { %219 = vst [vmem:[%s2543_s26 + $0x110] sm:$0xff] %v218_v34  ;;  %221 = vst [vmem:[%s2543_s26 + $0x118] sm:$0xff] %v220_v35  ;;  %v224_v37 = vld [vmem:[%s2538_s25 + $0x1028] sm:$0xff]  ;;  %v226_v38 = vld [vmem:[%s2538_s25 + $0x1030] sm:$0xff] }
  0x22   : > { %223 = vst [vmem:[%s2543_s26 + $0x120] sm:$0xff] %v222_v36  ;;  %225 = vst [vmem:[%s2543_s26 + $0x128] sm:$0xff] %v224_v37  ;;  %v228_v39 = vld [vmem:[%s2538_s25 + $0x1038] sm:$0xff]  ;;  %v230_v40 = vld [vmem:[%s2538_s25 + $0x1040] sm:$0xff] }
  0x23   : > { %227 = vst [vmem:[%s2543_s26 + $0x130] sm:$0xff] %v226_v38  ;;  %v232_v41 = vld [vmem:[%s2538_s25 + $0x1048] sm:$0xff]  ;;  %229 = vst [vmem:[%s2543_s26 + $0x138] sm:$0xff] %v228_v39  ;;  %v234_v42 = vld [vmem:[%s2538_s25 + $0x1050] sm:$0xff] }
  0x24   : > { %231 = vst [vmem:[%s2543_s26 + $0x140] sm:$0xff] %v230_v40  ;;  %233 = vst [vmem:[%s2543_s26 + $0x148] sm:$0xff] %v232_v41  ;;  %v236_v43 = vld [vmem:[%s2538_s25 + $0x1058] sm:$0xff]  ;;  %v238_v44 = vld [vmem:[%s2538_s25 + $0x1060] sm:$0xff] }
  0x25   : > { %235 = vst [vmem:[%s2543_s26 + $0x150] sm:$0xff] %v234_v42  ;;  %237 = vst [vmem:[%s2543_s26 + $0x158] sm:$0xff] %v236_v43  ;;  %v240_v45 = vld [vmem:[%s2538_s25 + $0x1068] sm:$0xff]  ;;  %v242_v46 = vld [vmem:[%s2538_s25 + $0x1070] sm:$0xff] }
  0x26   : > { %239 = vst [vmem:[%s2543_s26 + $0x160] sm:$0xff] %v238_v44  ;;  %v244_v47 = vld [vmem:[%s2538_s25 + $0x1078] sm:$0xff]  ;;  %241 = vst [vmem:[%s2543_s26 + $0x168] sm:$0xff] %v240_v45  ;;  %v246_v48 = vld [vmem:[%s2538_s25 + $0x1800] sm:$0xff] }
  0x27   : > { %243 = vst [vmem:[%s2543_s26 + $0x170] sm:$0xff] %v242_v46  ;;  %245 = vst [vmem:[%s2543_s26 + $0x178] sm:$0xff] %v244_v47  ;;  %v248_v49 = vld [vmem:[%s2538_s25 + $0x1808] sm:$0xff]  ;;  %v250_v50 = vld [vmem:[%s2538_s25 + $0x1810] sm:$0xff] }
  0x28   : > { %247 = vst [vmem:[%s2543_s26 + $0x180] sm:$0xff] %v246_v48  ;;  %249 = vst [vmem:[%s2543_s26 + $0x188] sm:$0xff] %v248_v49  ;;  %v252_v51 = vld [vmem:[%s2538_s25 + $0x1818] sm:$0xff]  ;;  %v254_v52 = vld [vmem:[%s2538_s25 + $0x1820] sm:$0xff] }
  0x29   : > { %251 = vst [vmem:[%s2543_s26 + $0x190] sm:$0xff] %v250_v50  ;;  %v256_v53 = vld [vmem:[%s2538_s25 + $0x1828] sm:$0xff]  ;;  %253 = vst [vmem:[%s2543_s26 + $0x198] sm:$0xff] %v252_v51  ;;  %v258_v54 = vld [vmem:[%s2538_s25 + $0x1830] sm:$0xff] }
  0x2a   : > { %255 = vst [vmem:[%s2543_s26 + $0x1a0] sm:$0xff] %v254_v52  ;;  %257 = vst [vmem:[%s2543_s26 + $0x1a8] sm:$0xff] %v256_v53  ;;  %v260_v55 = vld [vmem:[%s2538_s25 + $0x1838] sm:$0xff]  ;;  %v262_v56 = vld [vmem:[%s2538_s25 + $0x1840] sm:$0xff] }
  0x2b   : > { %259 = vst [vmem:[%s2543_s26 + $0x1b0] sm:$0xff] %v258_v54  ;;  %261 = vst [vmem:[%s2543_s26 + $0x1b8] sm:$0xff] %v260_v55  ;;  %v264_v57 = vld [vmem:[%s2538_s25 + $0x1848] sm:$0xff]  ;;  %v266_v58 = vld [vmem:[%s2538_s25 + $0x1850] sm:$0xff] }
  0x2c   : > { %263 = vst [vmem:[%s2543_s26 + $0x1c0] sm:$0xff] %v262_v56  ;;  %v268_v59 = vld [vmem:[%s2538_s25 + $0x1858] sm:$0xff]  ;;  %265 = vst [vmem:[%s2543_s26 + $0x1c8] sm:$0xff] %v264_v57  ;;  %v270_v60 = vld [vmem:[%s2538_s25 + $0x1860] sm:$0xff] }
  0x2d   : > { %267 = vst [vmem:[%s2543_s26 + $0x1d0] sm:$0xff] %v266_v58  ;;  %269 = vst [vmem:[%s2543_s26 + $0x1d8] sm:$0xff] %v268_v59  ;;  %v272_v61 = vld [vmem:[%s2538_s25 + $0x1868] sm:$0xff]  ;;  %v274_v62 = vld [vmem:[%s2538_s25 + $0x1870] sm:$0xff] }
  0x2e   : > { %271 = vst [vmem:[%s2543_s26 + $0x1e0] sm:$0xff] %v270_v60  ;;  %273 = vst [vmem:[%s2543_s26 + $0x1e8] sm:$0xff] %v272_v61  ;;  %v276_v63 = vld [vmem:[%s2538_s25 + $0x1878] sm:$0xff]  ;;  %v278_v0 = vld [vmem:[%s2538_s25 + $0x2000] sm:$0xff] }
  0x2f   : > { %275 = vst [vmem:[%s2543_s26 + $0x1f0] sm:$0xff] %v274_v62  ;;  %v280_v1 = vld [vmem:[%s2538_s25 + $0x2008] sm:$0xff]  ;;  %277 = vst [vmem:[%s2543_s26 + $0x1f8] sm:$0xff] %v276_v63  ;;  %v282_v2 = vld [vmem:[%s2538_s25 + $0x2010] sm:$0xff] }
  0x30   : > { %279 = vst [vmem:[%s2543_s26 + $0x200] sm:$0xff] %v278_v0  ;;  %281 = vst [vmem:[%s2543_s26 + $0x208] sm:$0xff] %v280_v1  ;;  %v284_v3 = vld [vmem:[%s2538_s25 + $0x2018] sm:$0xff]  ;;  %v286_v4 = vld [vmem:[%s2538_s25 + $0x2020] sm:$0xff] }
  0x31   : > { %283 = vst [vmem:[%s2543_s26 + $0x210] sm:$0xff] %v282_v2  ;;  %285 = vst [vmem:[%s2543_s26 + $0x218] sm:$0xff] %v284_v3  ;;  %v288_v5 = vld [vmem:[%s2538_s25 + $0x2028] sm:$0xff]  ;;  %v290_v6 = vld [vmem:[%s2538_s25 + $0x2030] sm:$0xff] }
  0x32   : > { %287 = vst [vmem:[%s2543_s26 + $0x220] sm:$0xff] %v286_v4  ;;  %v292_v7 = vld [vmem:[%s2538_s25 + $0x2038] sm:$0xff]  ;;  %289 = vst [vmem:[%s2543_s26 + $0x228] sm:$0xff] %v288_v5  ;;  %v294_v8 = vld [vmem:[%s2538_s25 + $0x2040] sm:$0xff] }
  0x33   : > { %291 = vst [vmem:[%s2543_s26 + $0x230] sm:$0xff] %v290_v6  ;;  %293 = vst [vmem:[%s2543_s26 + $0x238] sm:$0xff] %v292_v7  ;;  %v296_v9 = vld [vmem:[%s2538_s25 + $0x2048] sm:$0xff]  ;;  %v298_v10 = vld [vmem:[%s2538_s25 + $0x2050] sm:$0xff] }
  0x34   : > { %295 = vst [vmem:[%s2543_s26 + $0x240] sm:$0xff] %v294_v8  ;;  %297 = vst [vmem:[%s2543_s26 + $0x248] sm:$0xff] %v296_v9  ;;  %v300_v11 = vld [vmem:[%s2538_s25 + $0x2058] sm:$0xff]  ;;  %v302_v12 = vld [vmem:[%s2538_s25 + $0x2060] sm:$0xff] }
  0x35   : > { %299 = vst [vmem:[%s2543_s26 + $0x250] sm:$0xff] %v298_v10  ;;  %v304_v13 = vld [vmem:[%s2538_s25 + $0x2068] sm:$0xff]  ;;  %301 = vst [vmem:[%s2543_s26 + $0x258] sm:$0xff] %v300_v11  ;;  %v306_v14 = vld [vmem:[%s2538_s25 + $0x2070] sm:$0xff] }
  0x36   : > { %303 = vst [vmem:[%s2543_s26 + $0x260] sm:$0xff] %v302_v12  ;;  %305 = vst [vmem:[%s2543_s26 + $0x268] sm:$0xff] %v304_v13  ;;  %v308_v15 = vld [vmem:[%s2538_s25 + $0x2078] sm:$0xff]  ;;  %v310_v16 = vld [vmem:[%s2538_s25 + $0x2800] sm:$0xff] }
  0x37   : > { %307 = vst [vmem:[%s2543_s26 + $0x270] sm:$0xff] %v306_v14  ;;  %309 = vst [vmem:[%s2543_s26 + $0x278] sm:$0xff] %v308_v15  ;;  %v312_v17 = vld [vmem:[%s2538_s25 + $0x2808] sm:$0xff]  ;;  %v314_v18 = vld [vmem:[%s2538_s25 + $0x2810] sm:$0xff] }
  0x38   : > { %311 = vst [vmem:[%s2543_s26 + $0x280] sm:$0xff] %v310_v16  ;;  %v316_v19 = vld [vmem:[%s2538_s25 + $0x2818] sm:$0xff]  ;;  %313 = vst [vmem:[%s2543_s26 + $0x288] sm:$0xff] %v312_v17  ;;  %v318_v20 = vld [vmem:[%s2538_s25 + $0x2820] sm:$0xff] }
  0x39   : > { %315 = vst [vmem:[%s2543_s26 + $0x290] sm:$0xff] %v314_v18  ;;  %317 = vst [vmem:[%s2543_s26 + $0x298] sm:$0xff] %v316_v19  ;;  %v320_v21 = vld [vmem:[%s2538_s25 + $0x2828] sm:$0xff]  ;;  %v322_v22 = vld [vmem:[%s2538_s25 + $0x2830] sm:$0xff] }
  0x3a   : > { %319 = vst [vmem:[%s2543_s26 + $0x2a0] sm:$0xff] %v318_v20  ;;  %321 = vst [vmem:[%s2543_s26 + $0x2a8] sm:$0xff] %v320_v21  ;;  %v324_v23 = vld [vmem:[%s2538_s25 + $0x2838] sm:$0xff]  ;;  %v326_v24 = vld [vmem:[%s2538_s25 + $0x2840] sm:$0xff] }
  0x3b   : > { %323 = vst [vmem:[%s2543_s26 + $0x2b0] sm:$0xff] %v322_v22  ;;  %v328_v25 = vld [vmem:[%s2538_s25 + $0x2848] sm:$0xff]  ;;  %325 = vst [vmem:[%s2543_s26 + $0x2b8] sm:$0xff] %v324_v23  ;;  %v330_v26 = vld [vmem:[%s2538_s25 + $0x2850] sm:$0xff] }
  0x3c   : > { %327 = vst [vmem:[%s2543_s26 + $0x2c0] sm:$0xff] %v326_v24  ;;  %329 = vst [vmem:[%s2543_s26 + $0x2c8] sm:$0xff] %v328_v25  ;;  %v332_v27 = vld [vmem:[%s2538_s25 + $0x2858] sm:$0xff]  ;;  %v334_v28 = vld [vmem:[%s2538_s25 + $0x2860] sm:$0xff] }
  0x3d   : > { %331 = vst [vmem:[%s2543_s26 + $0x2d0] sm:$0xff] %v330_v26  ;;  %333 = vst [vmem:[%s2543_s26 + $0x2d8] sm:$0xff] %v332_v27  ;;  %v336_v29 = vld [vmem:[%s2538_s25 + $0x2868] sm:$0xff]  ;;  %v338_v30 = vld [vmem:[%s2538_s25 + $0x2870] sm:$0xff] }
  0x3e   : > { %335 = vst [vmem:[%s2543_s26 + $0x2e0] sm:$0xff] %v334_v28  ;;  %v340_v31 = vld [vmem:[%s2538_s25 + $0x2878] sm:$0xff]  ;;  %337 = vst [vmem:[%s2543_s26 + $0x2e8] sm:$0xff] %v336_v29  ;;  %v342_v32 = vld [vmem:[%s2538_s25 + $0x3000] sm:$0xff] }
  0x3f   : > { %339 = vst [vmem:[%s2543_s26 + $0x2f0] sm:$0xff] %v338_v30  ;;  %341 = vst [vmem:[%s2543_s26 + $0x2f8] sm:$0xff] %v340_v31  ;;  %v344_v33 = vld [vmem:[%s2538_s25 + $0x3008] sm:$0xff]  ;;  %v346_v34 = vld [vmem:[%s2538_s25 + $0x3010] sm:$0xff] }
  0x40   : > { %343 = vst [vmem:[%s2543_s26 + $0x300] sm:$0xff] %v342_v32  ;;  %345 = vst [vmem:[%s2543_s26 + $0x308] sm:$0xff] %v344_v33  ;;  %v348_v35 = vld [vmem:[%s2538_s25 + $0x3018] sm:$0xff]  ;;  %v350_v36 = vld [vmem:[%s2538_s25 + $0x3020] sm:$0xff] }
  0x41   : > { %347 = vst [vmem:[%s2543_s26 + $0x310] sm:$0xff] %v346_v34  ;;  %v352_v37 = vld [vmem:[%s2538_s25 + $0x3028] sm:$0xff]  ;;  %349 = vst [vmem:[%s2543_s26 + $0x318] sm:$0xff] %v348_v35  ;;  %v354_v38 = vld [vmem:[%s2538_s25 + $0x3030] sm:$0xff] }
  0x42   : > { %351 = vst [vmem:[%s2543_s26 + $0x320] sm:$0xff] %v350_v36  ;;  %353 = vst [vmem:[%s2543_s26 + $0x328] sm:$0xff] %v352_v37  ;;  %v356_v39 = vld [vmem:[%s2538_s25 + $0x3038] sm:$0xff]  ;;  %v358_v40 = vld [vmem:[%s2538_s25 + $0x3040] sm:$0xff] }
  0x43   : > { %355 = vst [vmem:[%s2543_s26 + $0x330] sm:$0xff] %v354_v38  ;;  %357 = vst [vmem:[%s2543_s26 + $0x338] sm:$0xff] %v356_v39  ;;  %v360_v41 = vld [vmem:[%s2538_s25 + $0x3048] sm:$0xff]  ;;  %v362_v42 = vld [vmem:[%s2538_s25 + $0x3050] sm:$0xff] }
  0x44   : > { %359 = vst [vmem:[%s2543_s26 + $0x340] sm:$0xff] %v358_v40  ;;  %v364_v43 = vld [vmem:[%s2538_s25 + $0x3058] sm:$0xff]  ;;  %361 = vst [vmem:[%s2543_s26 + $0x348] sm:$0xff] %v360_v41  ;;  %v366_v44 = vld [vmem:[%s2538_s25 + $0x3060] sm:$0xff] }
  0x45   : > { %363 = vst [vmem:[%s2543_s26 + $0x350] sm:$0xff] %v362_v42  ;;  %365 = vst [vmem:[%s2543_s26 + $0x358] sm:$0xff] %v364_v43  ;;  %v368_v45 = vld [vmem:[%s2538_s25 + $0x3068] sm:$0xff]  ;;  %v370_v46 = vld [vmem:[%s2538_s25 + $0x3070] sm:$0xff] }
  0x46   : > { %367 = vst [vmem:[%s2543_s26 + $0x360] sm:$0xff] %v366_v44  ;;  %369 = vst [vmem:[%s2543_s26 + $0x368] sm:$0xff] %v368_v45  ;;  %v372_v47 = vld [vmem:[%s2538_s25 + $0x3078] sm:$0xff]  ;;  %v374_v48 = vld [vmem:[%s2538_s25 + $0x3800] sm:$0xff] }
  0x47   : > { %371 = vst [vmem:[%s2543_s26 + $0x370] sm:$0xff] %v370_v46  ;;  %v376_v49 = vld [vmem:[%s2538_s25 + $0x3808] sm:$0xff]  ;;  %373 = vst [vmem:[%s2543_s26 + $0x378] sm:$0xff] %v372_v47  ;;  %v378_v50 = vld [vmem:[%s2538_s25 + $0x3810] sm:$0xff] }
  0x48   : > { %375 = vst [vmem:[%s2543_s26 + $0x380] sm:$0xff] %v374_v48  ;;  %377 = vst [vmem:[%s2543_s26 + $0x388] sm:$0xff] %v376_v49  ;;  %v380_v51 = vld [vmem:[%s2538_s25 + $0x3818] sm:$0xff]  ;;  %v382_v52 = vld [vmem:[%s2538_s25 + $0x3820] sm:$0xff] }
  0x49   : > { %379 = vst [vmem:[%s2543_s26 + $0x390] sm:$0xff] %v378_v50  ;;  %381 = vst [vmem:[%s2543_s26 + $0x398] sm:$0xff] %v380_v51  ;;  %v384_v53 = vld [vmem:[%s2538_s25 + $0x3828] sm:$0xff]  ;;  %v386_v54 = vld [vmem:[%s2538_s25 + $0x3830] sm:$0xff] }
  0x4a   : > { %383 = vst [vmem:[%s2543_s26 + $0x3a0] sm:$0xff] %v382_v52  ;;  %v388_v55 = vld [vmem:[%s2538_s25 + $0x3838] sm:$0xff]  ;;  %385 = vst [vmem:[%s2543_s26 + $0x3a8] sm:$0xff] %v384_v53  ;;  %v390_v56 = vld [vmem:[%s2538_s25 + $0x3840] sm:$0xff] }
  0x4b   : > { %387 = vst [vmem:[%s2543_s26 + $0x3b0] sm:$0xff] %v386_v54  ;;  %389 = vst [vmem:[%s2543_s26 + $0x3b8] sm:$0xff] %v388_v55  ;;  %v392_v57 = vld [vmem:[%s2538_s25 + $0x3848] sm:$0xff]  ;;  %v394_v58 = vld [vmem:[%s2538_s25 + $0x3850] sm:$0xff] }
  0x4c   : > { %391 = vst [vmem:[%s2543_s26 + $0x3c0] sm:$0xff] %v390_v56  ;;  %393 = vst [vmem:[%s2543_s26 + $0x3c8] sm:$0xff] %v392_v57  ;;  %v396_v59 = vld [vmem:[%s2538_s25 + $0x3858] sm:$0xff]  ;;  %v398_v60 = vld [vmem:[%s2538_s25 + $0x3860] sm:$0xff] }
  0x4d   : > { %395 = vst [vmem:[%s2543_s26 + $0x3d0] sm:$0xff] %v394_v58  ;;  %v400_v61 = vld [vmem:[%s2538_s25 + $0x3868] sm:$0xff]  ;;  %397 = vst [vmem:[%s2543_s26 + $0x3d8] sm:$0xff] %v396_v59  ;;  %v402_v62 = vld [vmem:[%s2538_s25 + $0x3870] sm:$0xff] }
  0x4e   : > { %399 = vst [vmem:[%s2543_s26 + $0x3e0] sm:$0xff] %v398_v60  ;;  %401 = vst [vmem:[%s2543_s26 + $0x3e8] sm:$0xff] %v400_v61  ;;  %v404_v63 = vld [vmem:[%s2538_s25 + $0x3878] sm:$0xff] }
  0x4f   : > { %403 = vst [vmem:[%s2543_s26 + $0x3f0] sm:$0xff] %v402_v62  ;;  %405 = vst [vmem:[%s2543_s26 + $0x3f8] sm:$0xff] %v404_v63 }
  0x50 PF: > { %p2264_p5 = scmp.ge.s32.totalorder %s2480_s14, 1  ;;  %p410_p6 = scmp.lt.s32.totalorder %s2480_s14, 17 }
  0x52   : > { %p411_p7 = pnand %p2264_p5, %p410_p6 }
  0x53   : > { %s417_s27 = sand.u32 (!%p411_p7), 1, %s2472_s12   ;;  %s2266_s7 = sshll.u32 (!%p411_p7), %s2257_s15, 5 }
  0x54   : > { %414 = sbr.rel (%p411_p7) target bundleno = 429 (0x1ad), region = 51  ;;  %s2265_s28 = sshll.u32 (!%p411_p7), %s417_s27, 10 }
  0x55   : > { %s2807_s4 = scalar_lea.vmem (!%p411_p7), [#allocation2], %s2265_s28  ;;  %p442_p8 = scmp.lt.s32.totalorder (!%p411_p7), %s2266_s7, 511 }
  0x59   : > { %v2482_v0 = vmov 0   ;;  %v577_v1 = vld [vmem:[%s3068_s2] sm:$0xf]  ;;  %v546_v4 = vld [vmem:[%s2807_s4 + $0x308] sm:$0xff]  ;;  %v547_v32 = vld [vmem:[%s2807_s4 + $0x310] sm:$0xff]  ;;  %vm1223_vm0 = vcmask 523264  }
  0x5a   : > { %1259 = vmatprep.mubr.bf16.mxu0 %v2482_v0  ;;  %1300 = vmatprep.mubr.bf16.mxu1 %v2482_v0  ;;  %v545_v2 = vld [vmem:[%s2807_s4 + $0x300] sm:$0xff]  ;;  %v562_v6 = vld [vmem:[%s2807_s4 + $0x388] sm:$0xff]  ;;  %v563_v33 = vld [vmem:[%s2807_s4 + $0x390] sm:$0xff]  ;;  %s3074_s7 = smov (!%p442_p8, %s2266_s7), 511 }
  0x5b   : > { %2457 = vset.pattern.permute.xlu0 %v2482_v0  ;;  %v561_v3 = vld [vmem:[%s2807_s4 + $0x380] sm:$0xff]  ;;  %v2367_v10 = vcombine.high %v546_v4, %v562_v6  ;;  %v2366_v11 = vcombine.low %v546_v4, %v562_v6  ;;  %v514_v13 = vld [vmem:[%s2807_s4 + $0x208] sm:$0xff]  ;;  %v548_v34 = vld [vmem:[%s2807_s4 + $0x318] sm:$0xff]  ;;  %v2369_v38 = vcombine.high %v547_v32, %v563_v33  ;;  %v2368_v45 = vcombine.low %v547_v32, %v563_v33  ;;  %s2267_s8 = sshll.u32 %s3074_s7, 1 }
  0x5c   : > { %580 = vperm.xlu0 %2457, %v577_v1   ;;  %v2365_v5 = vcombine.high %v545_v2, %v561_v3  ;;  %v2364_v7 = vcombine.low %v545_v2, %v561_v3  ;;  %v513_v8 = vld [vmem:[%s2807_s4 + $0x200] sm:$0xff]  ;;  %v530_v14 = vld [vmem:[%s2807_s4 + $0x288] sm:$0xff]  ;;  %v564_v35 = vld [vmem:[%s2807_s4 + $0x398] sm:$0xff]  ;;  %s3004_s11 = scalar_lea.vmem %s3069_s3, %s2267_s8 }
  0x5d   : > { %v529_v9 = vld [vmem:[%s2807_s4 + $0x280] sm:$0xff]  ;;  %v2335_v16 = vcombine.high %v514_v13, %v530_v14  ;;  %v482_v18 = vld [vmem:[%s2807_s4 + $0x108] sm:$0xff]  ;;  %1276 = vmatprep.subr.bf16.mxu1 %v2367_v10  ;;  %v2334_v21 = vcombine.low %v514_v13, %v530_v14  ;;  %v2371_v39 = vcombine.high %v548_v34, %v564_v35  ;;  %v515_v40 = vld [vmem:[%s2807_s4 + $0x210] sm:$0xff]  ;;  %v2370_v46 = vcombine.low %v548_v34, %v564_v35 }
  0x5e   : > { %v2333_v12 = vcombine.high %v513_v8, %v529_v9  ;;  %v481_v15 = vld [vmem:[%s2807_s4 + $0x100] sm:$0xff]  ;;  %1235 = vmatprep.subr.bf16.mxu0 %v2365_v5  ;;  %v498_v19 = vld [vmem:[%s2807_s4 + $0x188] sm:$0xff]  ;;  %v2332_v20 = vcombine.low %v513_v8, %v529_v9  ;;  %1277 = vmatpush1.bf16.msra.mxu1 %v2366_v11  ;;  %v531_v41 = vld [vmem:[%s2807_s4 + $0x290] sm:$0xff] }
  0x5f   : > { %v497_v17 = vld [vmem:[%s2807_s4 + $0x180] sm:$0xff]  ;;  %1236 = vmatpush1.bf16.msra.mxu0 %v2364_v7  ;;  %1278 = vmatprep.subr.bf16.mxu1 %v2335_v16  ;;  %v2303_v23 = vcombine.high %v482_v18, %v498_v19  ;;  %v450_v26 = vld [vmem:[%s2807_s4 + $0x8] sm:$0xff]  ;;  %v2302_v29 = vcombine.low %v482_v18, %v498_v19  ;;  %v516_v42 = vld [vmem:[%s2807_s4 + $0x218] sm:$0xff]  ;;  %v2337_v47 = vcombine.high %v515_v40, %v531_v41 }
  0x60   : > { %1237 = vmatprep.subr.bf16.mxu0 %v2333_v12  ;;  %v2301_v22 = vcombine.high %v481_v15, %v497_v17  ;;  %v449_v24 = vld [vmem:[%s2807_s4] sm:$0xff]  ;;  %v466_v27 = vld [vmem:[%s2807_s4 + $0x88] sm:$0xff]  ;;  %v2300_v28 = vcombine.low %v481_v15, %v497_v17  ;;  %v532_v43 = vld [vmem:[%s2807_s4 + $0x298] sm:$0xff]  ;;  %v2336_v53 = vcombine.low %v515_v40, %v531_v41 }
  0x61   : > { %v465_v25 = vld [vmem:[%s2807_s4 + $0x80] sm:$0xff]  ;;  %v2271_v31 = vcombine.high %v450_v26, %v466_v27  ;;  %v2270_v37 = vcombine.low %v450_v26, %v466_v27  ;;  %v2339_v48 = vcombine.high %v516_v42, %v532_v43  ;;  %v483_v49 = vld [vmem:[%s2807_s4 + $0x110] sm:$0xff]  ;;  %v484_v51 = vld [vmem:[%s2807_s4 + $0x118] sm:$0xff]  ;;  %v2338_v54 = vcombine.low %v516_v42, %v532_v43 }
  0x62   : > { %1279 = vmatpush1.bf16.msra.mxu1 %v2334_v21  ;;  %v2269_v30 = vcombine.high %v449_v24, %v465_v25  ;;  %v2268_v36 = vcombine.low %v449_v24, %v465_v25  ;;  %v2836_v44 = vld [vmem:[%s3066_s0] sm:$0x3]  ;;  %v499_v50 = vld [vmem:[%s2807_s4 + $0x190] sm:$0xff]  ;;  %v500_v52 = vld [vmem:[%s2807_s4 + $0x198] sm:$0xff] }
  0x63   : > { %1238 = vmatpush1.bf16.msra.mxu0 %v2332_v20  ;;  %1280 = vmatprep.subr.bf16.mxu1 %v2303_v23  ;;  %v2305_v55 = vcombine.high %v483_v49, %v499_v50  ;;  %v2307_v56 = vcombine.high %v484_v51, %v500_v52  ;;  %v451_v57 = vld [vmem:[%s2807_s4 + $0x10] sm:$0xff]  ;;  %v452_v59 = vld [vmem:[%s2807_s4 + $0x18] sm:$0xff]  ;;  %v2304_v61 = vcombine.low %v483_v49, %v499_v50  ;;  %v549_v2 = vld [vmem:[%s2807_s4 + $0x320] sm:$0xff] }
  0x64   : > { %1239 = vmatprep.subr.bf16.mxu0 %v2301_v22  ;;  %v467_v58 = vld [vmem:[%s2807_s4 + $0x90] sm:$0xff]  ;;  %v468_v60 = vld [vmem:[%s2807_s4 + $0x98] sm:$0xff]  ;;  %v2306_v62 = vcombine.low %v484_v51, %v500_v52  ;;  %v565_v3 = vld [vmem:[%s2807_s4 + $0x3a0] sm:$0xff] }
  0x65   : > { %v2273_v63 = vcombine.high %v451_v57, %v467_v58  ;;  %v2275_v1 = vcombine.high %v452_v59, %v468_v60  ;;  %v550_v4 = vld [vmem:[%s2807_s4 + $0x328] sm:$0xff]  ;;  %v2272_v6 = vcombine.low %v451_v57, %v467_v58  ;;  %v2274_v7 = vcombine.low %v452_v59, %v468_v60  ;;  %v517_v10 = vld [vmem:[%s2807_s4 + $0x220] sm:$0xff]  ;;  %v551_v34 = vld [vmem:[%s2807_s4 + $0x330] sm:$0xff] }
  0x66   : > { %1281 = vmatpush1.bf16.msra.mxu1 %v2302_v29  ;;  %v566_v5 = vld [vmem:[%s2807_s4 + $0x3a8] sm:$0xff]  ;;  %v2373_v8 = vcombine.high %v549_v2, %v565_v3  ;;  %v533_v11 = vld [vmem:[%s2807_s4 + $0x2a0] sm:$0xff]  ;;  %v2372_v14 = vcombine.low %v549_v2, %v565_v3  ;;  %v567_v35 = vld [vmem:[%s2807_s4 + $0x3b0] sm:$0xff] }
  0x67   : > { %1240 = vmatpush1.bf16.msra.mxu0 %v2300_v28  ;;  %1282 = vmatprep.subr.bf16.mxu1 %v2271_v31  ;;  %v2375_v9 = vcombine.high %v550_v4, %v566_v5  ;;  %v518_v12 = vld [vmem:[%s2807_s4 + $0x228] sm:$0xff]  ;;  %v2374_v15 = vcombine.low %v550_v4, %v566_v5  ;;  %v2341_v16 = vcombine.high %v517_v10, %v533_v11  ;;  %v485_v18 = vld [vmem:[%s2807_s4 + $0x120] sm:$0xff]  ;;  %v519_v42 = vld [vmem:[%s2807_s4 + $0x230] sm:$0xff] }
  0x68   : > { %1241 = vmatprep.subr.bf16.mxu0 %v2269_v30  ;;  %v534_v13 = vld [vmem:[%s2807_s4 + $0x2a8] sm:$0xff]  ;;  %v501_v19 = vld [vmem:[%s2807_s4 + $0x1a0] sm:$0xff]  ;;  %v2340_v22 = vcombine.low %v517_v10, %v533_v11  ;;  %v2377_v40 = vcombine.high %v551_v34, %v567_v35  ;;  %v535_v43 = vld [vmem:[%s2807_s4 + $0x2b0] sm:$0xff] }
  0x69   : > { %v2343_v17 = vcombine.high %v518_v12, %v534_v13  ;;  %v486_v20 = vld [vmem:[%s2807_s4 + $0x128] sm:$0xff]  ;;  %v2342_v23 = vcombine.low %v518_v12, %v534_v13  ;;  %v2309_v24 = vcombine.high %v485_v18, %v501_v19  ;;  %v453_v26 = vld [vmem:[%s2807_s4 + $0x20] sm:$0xff]  ;;  %v2308_v30 = vcombine.low %v485_v18, %v501_v19  ;;  %v487_v51 = vld [vmem:[%s2807_s4 + $0x130] sm:$0xff] }
  0x6a   : > { %1283 = vmatpush1.bf16.msra.mxu1 %v2270_v37  ;;  %v502_v21 = vld [vmem:[%s2807_s4 + $0x1a8] sm:$0xff]  ;;  %v469_v27 = vld [vmem:[%s2807_s4 + $0xa0] sm:$0xff]  ;;  %v568_v37 = vld [vmem:[%s2807_s4 + $0x3b8] sm:$0xff]  ;;  %v2345_v49 = vcombine.high %v519_v42, %v535_v43 }
  0x6b   : > { %1242 = vmatpush1.bf16.msra.mxu0 %v2268_v36  ;;  %1358 = vmatprep.subr.bf16.mxu1 %v2371_v39  ;;  %v2311_v25 = vcombine.high %v486_v20, %v502_v21  ;;  %v454_v28 = vld [vmem:[%s2807_s4 + $0x28] sm:$0xff]  ;;  %v2310_v31 = vcombine.low %v486_v20, %v502_v21  ;;  %v2277_v32 = vcombine.high %v453_v26, %v469_v27  ;;  %v552_v36 = vld [vmem:[%s2807_s4 + $0x338] sm:$0xff]  ;;  %v503_v52 = vld [vmem:[%s2807_s4 + $0x1b0] sm:$0xff] }
  0x6c   : > { %1317 = vmatprep.subr.bf16.mxu0 %v2369_v38  ;;  %v470_v29 = vld [vmem:[%s2807_s4 + $0xa8] sm:$0xff]  ;;  %v2276_v38 = vcombine.low %v453_v26, %v469_v27  ;;  %v2379_v41 = vcombine.high %v552_v36, %v568_v37  ;;  %v2313_v57 = vcombine.high %v487_v51, %v503_v52  ;;  %v455_v59 = vld [vmem:[%s2807_s4 + $0x30] sm:$0xff]  ;;  %v553_v4 = vld [vmem:[%s2807_s4 + $0x340] sm:$0xff] }
  0x6d   : > { %2397 = vmatmul.mubr.msk.bf16.vlgmr.msra.gmra.mxu1 %vm1223_vm0, %v2836_v44  ;;  %v2279_v33 = vcombine.high %v454_v28, %v470_v29  ;;  %v2278_v39 = vcombine.low %v454_v28, %v470_v29  ;;  %v471_v60 = vld [vmem:[%s2807_s4 + $0xb0] sm:$0xff]  ;;  %v569_v5 = vld [vmem:[%s2807_s4 + $0x3c0] sm:$0xff] }
  0x6e   : > { %2396 = vmatmul.mubr.msk.bf16.vlgmr.msra.gmra.mxu0 %vm1223_vm0, %v2836_v44  ;;  %1359 = vmatpush1.bf16.msra.mxu1 %v2370_v46  ;;  %v536_v46 = vld [vmem:[%s2807_s4 + $0x2b8] sm:$0xff]  ;;  %v2281_v2 = vcombine.high %v455_v59, %v471_v60  ;;  %v2381_v10 = vcombine.high %v553_v4, %v569_v5  ;;  %v521_v12 = vld [vmem:[%s2807_s4 + $0x240] sm:$0xff] }
  0x6f   : > { %1318 = vmatpush1.bf16.msra.mxu0 %v2368_v45  ;;  %1360 = vmatprep.subr.bf16.mxu1 %v2339_v48  ;;  %v520_v45 = vld [vmem:[%s2807_s4 + $0x238] sm:$0xff]  ;;  %v2378_v48 = vcombine.low %v552_v36, %v568_v37  ;;  %v537_v13 = vld [vmem:[%s2807_s4 + $0x2c0] sm:$0xff]  ;;  %v555_v36 = vld [vmem:[%s2807_s4 + $0x350] sm:$0xff] }
  0x70   : > { %1319 = vmatprep.subr.bf16.mxu0 %v2337_v47  ;;  %1341 = vmatprep.mubr.bf16.mxu0 %v2482_v0  ;;  %v2376_v47 = vcombine.low %v551_v34, %v567_v35  ;;  %v2347_v50 = vcombine.high %v520_v45, %v536_v46  ;;  %v2349_v18 = vcombine.high %v521_v12, %v537_v13  ;;  %v489_v20 = vld [vmem:[%s2807_s4 + $0x140] sm:$0xff]  ;;  %v571_v37 = vld [vmem:[%s2807_s4 + $0x3d0] sm:$0xff] }
  0x71   : > { %1382 = vmatprep.mubr.bf16.mxu1 %v2482_v0  ;;  %v505_v21 = vld [vmem:[%s2807_s4 + $0x1c0] sm:$0xff] }
  0x72   : > { %1361 = vmatpush1.bf16.msra.mxu1 %v2338_v54  ;;  %v504_v54 = vld [vmem:[%s2807_s4 + $0x1b8] sm:$0xff]  ;;  %v2317_v26 = vcombine.high %v489_v20, %v505_v21  ;;  %v457_v28 = vld [vmem:[%s2807_s4 + $0x40] sm:$0xff] }
  0x73   : > { %1320 = vmatpush1.bf16.msra.mxu0 %v2336_v53  ;;  %1362 = vmatprep.subr.bf16.mxu1 %v2307_v56  ;;  %v488_v53 = vld [vmem:[%s2807_s4 + $0x138] sm:$0xff]  ;;  %v2346_v56 = vcombine.low %v520_v45, %v536_v46  ;;  %v473_v29 = vld [vmem:[%s2807_s4 + $0xc0] sm:$0xff]  ;;  %v523_v45 = vld [vmem:[%s2807_s4 + $0x250] sm:$0xff] }
  0x74   : > { %1321 = vmatprep.subr.bf16.mxu0 %v2305_v55  ;;  %v2344_v55 = vcombine.low %v519_v42, %v535_v43  ;;  %v2315_v58 = vcombine.high %v488_v53, %v504_v54  ;;  %v2285_v34 = vcombine.high %v457_v28, %v473_v29  ;;  %v2385_v42 = vcombine.high %v555_v36, %v571_v37  ;;  %v539_v46 = vld [vmem:[%s2807_s4 + $0x2d0] sm:$0xff] }
  0x76   : > { %1363 = vmatpush1.bf16.msra.mxu1 %v2306_v62  ;;  %v472_v62 = vld [vmem:[%s2807_s4 + $0xb8] sm:$0xff] }
  0x77   : > { %1322 = vmatpush1.bf16.msra.mxu0 %v2304_v61  ;;  %1364 = vmatprep.subr.bf16.mxu1 %v2275_v1  ;;  %v456_v61 = vld [vmem:[%s2807_s4 + $0x38] sm:$0xff]  ;;  %v2314_v1 = vcombine.low %v488_v53, %v504_v54  ;;  %v491_v53 = vld [vmem:[%s2807_s4 + $0x150] sm:$0xff] }
  0x78   : > { %1323 = vmatprep.subr.bf16.mxu0 %v2273_v63  ;;  %v2312_v63 = vcombine.low %v487_v51, %v503_v52  ;;  %v2283_v3 = vcombine.high %v456_v61, %v472_v62  ;;  %v2353_v51 = vcombine.high %v523_v45, %v539_v46  ;;  %v507_v54 = vld [vmem:[%s2807_s4 + $0x1d0] sm:$0xff] }
  0x7a   : > { %1365 = vmatpush1.bf16.msra.mxu1 %v2274_v7  ;;  %v570_v7 = vld [vmem:[%s2807_s4 + $0x3c8] sm:$0xff] }
  0x7b   : > { %1324 = vmatpush1.bf16.msra.mxu0 %v2272_v6  ;;  %1440 = vmatprep.subr.bf16.mxu1 %v2375_v9  ;;  %v554_v6 = vld [vmem:[%s2807_s4 + $0x348] sm:$0xff]  ;;  %v2282_v9 = vcombine.low %v456_v61, %v472_v62  ;;  %v459_v61 = vld [vmem:[%s2807_s4 + $0x50] sm:$0xff] }
  0x7c   : > { %1399 = vmatprep.subr.bf16.mxu0 %v2373_v8  ;;  %v2280_v8 = vcombine.low %v455_v59, %v471_v60  ;;  %v2383_v11 = vcombine.high %v554_v6, %v570_v7  ;;  %v2321_v59 = vcombine.high %v491_v53, %v507_v54  ;;  %v475_v62 = vld [vmem:[%s2807_s4 + $0xd0] sm:$0xff] }
  0x7d   : > { %2399 = vmatmul.mubr.msk.bf16.vlgmr.msra.gmra.mxu1 %vm1223_vm0, %v2836_v44 }
  0x7e   : > { %2398 = vmatmul.mubr.msk.bf16.vlgmr.msra.gmra.mxu0 %vm1223_vm0, %v2836_v44  ;;  %1441 = vmatpush1.bf16.msra.mxu1 %v2374_v15  ;;  %v538_v15 = vld [vmem:[%s2807_s4 + $0x2c8] sm:$0xff] }
  0x7f   : > { %1400 = vmatpush1.bf16.msra.mxu0 %v2372_v14  ;;  %1442 = vmatprep.subr.bf16.mxu1 %v2343_v17  ;;  %v522_v14 = vld [vmem:[%s2807_s4 + $0x248] sm:$0xff]  ;;  %v2382_v17 = vcombine.low %v554_v6, %v570_v7  ;;  %v557_v6 = vld [vmem:[%s2807_s4 + $0x360] sm:$0xff] }
  0x80   : > { %1401 = vmatprep.subr.bf16.mxu0 %v2341_v16  ;;  %1423 = vmatprep.mubr.bf16.mxu0 %v2482_v0  ;;  %v2380_v16 = vcombine.low %v553_v4, %v569_v5  ;;  %v2351_v19 = vcombine.high %v522_v14, %v538_v15  ;;  %v2289_v4 = vcombine.high %v459_v61, %v475_v62  ;;  %v573_v7 = vld [vmem:[%s2807_s4 + $0x3e0] sm:$0xff] }
  0x81   : > { %1464 = vmatprep.mubr.bf16.mxu1 %v2482_v0 }
  0x82   : > { %1443 = vmatpush1.bf16.msra.mxu1 %v2342_v23  ;;  %v506_v23 = vld [vmem:[%s2807_s4 + $0x1c8] sm:$0xff] }
  0x83   : > { %1402 = vmatpush1.bf16.msra.mxu0 %v2340_v22  ;;  %1444 = vmatprep.subr.bf16.mxu1 %v2311_v25  ;;  %v490_v22 = vld [vmem:[%s2807_s4 + $0x148] sm:$0xff]  ;;  %v2350_v25 = vcombine.low %v522_v14, %v538_v15  ;;  %v525_v14 = vld [vmem:[%s2807_s4 + $0x260] sm:$0xff] }
  0x84   : > { %1403 = vmatprep.subr.bf16.mxu0 %v2309_v24  ;;  %v2348_v24 = vcombine.low %v521_v12, %v537_v13  ;;  %v2319_v27 = vcombine.high %v490_v22, %v506_v23  ;;  %v2389_v12 = vcombine.high %v557_v6, %v573_v7  ;;  %v541_v15 = vld [vmem:[%s2807_s4 + $0x2e0] sm:$0xff] }
  0x86   : > { %1445 = vmatpush1.bf16.msra.mxu1 %v2310_v31  ;;  %v474_v31 = vld [vmem:[%s2807_s4 + $0xc8] sm:$0xff] }
  0x87   : > { %1404 = vmatpush1.bf16.msra.mxu0 %v2308_v30  ;;  %1446 = vmatprep.subr.bf16.mxu1 %v2279_v33  ;;  %v458_v30 = vld [vmem:[%s2807_s4 + $0x48] sm:$0xff]  ;;  %v2318_v33 = vcombine.low %v490_v22, %v506_v23  ;;  %v493_v22 = vld [vmem:[%s2807_s4 + $0x160] sm:$0xff] }
  0x88   : > { %1405 = vmatprep.subr.bf16.mxu0 %v2277_v32  ;;  %v2316_v32 = vcombine.low %v489_v20, %v505_v21  ;;  %v2287_v35 = vcombine.high %v458_v30, %v474_v31  ;;  %v2357_v20 = vcombine.high %v525_v14, %v541_v15  ;;  %v509_v23 = vld [vmem:[%s2807_s4 + $0x1e0] sm:$0xff] }
  0x8a   : > { %1447 = vmatpush1.bf16.msra.mxu1 %v2278_v39  ;;  %v572_v39 = vld [vmem:[%s2807_s4 + $0x3d8] sm:$0xff] }
  0x8b   : > { %1406 = vmatpush1.bf16.msra.mxu0 %v2276_v38  ;;  %1522 = vmatprep.subr.bf16.mxu1 %v2379_v41  ;;  %v556_v38 = vld [vmem:[%s2807_s4 + $0x358] sm:$0xff]  ;;  %v2286_v41 = vcombine.low %v458_v30, %v474_v31  ;;  %v461_v30 = vld [vmem:[%s2807_s4 + $0x60] sm:$0xff] }
  0x8c   : > { %1481 = vmatprep.subr.bf16.mxu0 %v2377_v40  ;;  %v2284_v40 = vcombine.low %v457_v28, %v473_v29  ;;  %v2387_v43 = vcombine.high %v556_v38, %v572_v39  ;;  %v2325_v28 = vcombine.high %v493_v22, %v509_v23  ;;  %v477_v31 = vld [vmem:[%s2807_s4 + $0xe0] sm:$0xff] }
  0x8d   : > { %2401 = vmatmul.mubr.msk.bf16.vlgmr.msra.gmra.mxu1 %vm1223_vm0, %v2836_v44 }
  0x8e   : > { %2400 = vmatmul.mubr.msk.bf16.vlgmr.msra.gmra.mxu0 %vm1223_vm0, %v2836_v44  ;;  %1523 = vmatpush1.bf16.msra.mxu1 %v2378_v48  ;;  %v540_v48 = vld [vmem:[%s2807_s4 + $0x2d8] sm:$0xff] }
  0x8f   : > { %1482 = vmatpush1.bf16.msra.mxu0 %v2376_v47  ;;  %1524 = vmatprep.subr.bf16.mxu1 %v2347_v50  ;;  %v524_v47 = vld [vmem:[%s2807_s4 + $0x258] sm:$0xff]  ;;  %v2386_v50 = vcombine.low %v556_v38, %v572_v39  ;;  %v559_v38 = vld [vmem:[%s2807_s4 + $0x370] sm:$0xff] }
  0x90   : > { %1483 = vmatprep.subr.bf16.mxu0 %v2345_v49  ;;  %1505 = vmatprep.mubr.bf16.mxu0 %v2482_v0  ;;  %v2384_v49 = vcombine.low %v555_v36, %v571_v37  ;;  %v2355_v52 = vcombine.high %v524_v47, %v540_v48  ;;  %v2293_v36 = vcombine.high %v461_v30, %v477_v31  ;;  %v575_v39 = vld [vmem:[%s2807_s4 + $0x3f0] sm:$0xff] }
  0x91   : > { %1546 = vmatprep.mubr.bf16.mxu1 %v2482_v0 }
  0x92   : > { %1525 = vmatpush1.bf16.msra.mxu1 %v2346_v56  ;;  %v508_v56 = vld [vmem:[%s2807_s4 + $0x1d8] sm:$0xff] }
  0x93   : > { %1484 = vmatpush1.bf16.msra.mxu0 %v2344_v55  ;;  %1526 = vmatprep.subr.bf16.mxu1 %v2315_v58  ;;  %v492_v55 = vld [vmem:[%s2807_s4 + $0x158] sm:$0xff]  ;;  %v2354_v58 = vcombine.low %v524_v47, %v540_v48  ;;  %v527_v47 = vld [vmem:[%s2807_s4 + $0x270] sm:$0xff] }
  0x94   : > { %1485 = vmatprep.subr.bf16.mxu0 %v2313_v57  ;;  %v2352_v57 = vcombine.low %v523_v45, %v539_v46  ;;  %v2323_v60 = vcombine.high %v492_v55, %v508_v56  ;;  %v2393_v45 = vcombine.high %v559_v38, %v575_v39  ;;  %v543_v48 = vld [vmem:[%s2807_s4 + $0x2f0] sm:$0xff] }
  0x96   : > { %1527 = vmatpush1.bf16.msra.mxu1 %v2314_v1  ;;  %v476_v1 = vld [vmem:[%s2807_s4 + $0xd8] sm:$0xff] }
  0x97   : > { %1486 = vmatpush1.bf16.msra.mxu0 %v2312_v63  ;;  %1528 = vmatprep.subr.bf16.mxu1 %v2283_v3  ;;  %v460_v63 = vld [vmem:[%s2807_s4 + $0x58] sm:$0xff]  ;;  %v2322_v3 = vcombine.low %v492_v55, %v508_v56  ;;  %v495_v55 = vld [vmem:[%s2807_s4 + $0x170] sm:$0xff] }
  0x98   : > { %1487 = vmatprep.subr.bf16.mxu0 %v2281_v2  ;;  %v2320_v2 = vcombine.low %v491_v53, %v507_v54  ;;  %v2291_v5 = vcombine.high %v460_v63, %v476_v1  ;;  %v2361_v53 = vcombine.high %v527_v47, %v543_v48  ;;  %v511_v56 = vld [vmem:[%s2807_s4 + $0x1f0] sm:$0xff] }
  0x9a   : > { %1529 = vmatpush1.bf16.msra.mxu1 %v2282_v9  ;;  %v574_v9 = vld [vmem:[%s2807_s4 + $0x3e8] sm:$0xff] }
  0x9b   : > { %1488 = vmatpush1.bf16.msra.mxu0 %v2280_v8  ;;  %1604 = vmatprep.subr.bf16.mxu1 %v2383_v11  ;;  %v558_v8 = vld [vmem:[%s2807_s4 + $0x368] sm:$0xff]  ;;  %v2290_v11 = vcombine.low %v460_v63, %v476_v1  ;;  %v463_v63 = vld [vmem:[%s2807_s4 + $0x70] sm:$0xff] }
  0x9c   : > { %1563 = vmatprep.subr.bf16.mxu0 %v2381_v10  ;;  %v2288_v10 = vcombine.low %v459_v61, %v475_v62  ;;  %v2391_v13 = vcombine.high %v558_v8, %v574_v9  ;;  %v2329_v61 = vcombine.high %v495_v55, %v511_v56  ;;  %v479_v1 = vld [vmem:[%s2807_s4 + $0xf0] sm:$0xff] }
  0x9d   : > { %2403 = vmatmul.mubr.msk.bf16.vlgmr.msra.gmra.mxu1 %vm1223_vm0, %v2836_v44 }
  0x9e   : > { %2402 = vmatmul.mubr.msk.bf16.vlgmr.msra.gmra.mxu0 %vm1223_vm0, %v2836_v44  ;;  %1605 = vmatpush1.bf16.msra.mxu1 %v2382_v17  ;;  %v542_v17 = vld [vmem:[%s2807_s4 + $0x2e8] sm:$0xff] }
  0x9f   : > { %1564 = vmatpush1.bf16.msra.mxu0 %v2380_v16  ;;  %1606 = vmatprep.subr.bf16.mxu1 %v2351_v19  ;;  %v526_v16 = vld [vmem:[%s2807_s4 + $0x268] sm:$0xff]  ;;  %v2390_v19 = vcombine.low %v558_v8, %v574_v9  ;;  %v2296_v8 = vcombine.low %v463_v63, %v479_v1 }
  0xa0   : > { %1565 = vmatprep.subr.bf16.mxu0 %v2349_v18  ;;  %1587 = vmatprep.mubr.bf16.mxu0 %v2482_v0  ;;  %v2388_v18 = vcombine.low %v557_v6, %v573_v7  ;;  %v2359_v21 = vcombine.high %v526_v16, %v542_v17  ;;  %v2297_v6 = vcombine.high %v463_v63, %v479_v1 }
  0xa1   : > { %1628 = vmatprep.mubr.bf16.mxu1 %v2482_v0 }
  0xa2   : > { %1607 = vmatpush1.bf16.msra.mxu1 %v2350_v25  ;;  %v510_v25 = vld [vmem:[%s2807_s4 + $0x1e8] sm:$0xff] }
  0xa3   : > { %1566 = vmatpush1.bf16.msra.mxu0 %v2348_v24  ;;  %1608 = vmatprep.subr.bf16.mxu1 %v2319_v27  ;;  %v494_v24 = vld [vmem:[%s2807_s4 + $0x168] sm:$0xff]  ;;  %v2358_v27 = vcombine.low %v526_v16, %v542_v17 }
  0xa4   : > { %1567 = vmatprep.subr.bf16.mxu0 %v2317_v26  ;;  %v2356_v26 = vcombine.low %v525_v14, %v541_v15  ;;  %v2327_v29 = vcombine.high %v494_v24, %v510_v25 }
  0xa6   : > { %1609 = vmatpush1.bf16.msra.mxu1 %v2318_v33  ;;  %v478_v33 = vld [vmem:[%s2807_s4 + $0xe8] sm:$0xff] }
  0xa7   : > { %1568 = vmatpush1.bf16.msra.mxu0 %v2316_v32  ;;  %1610 = vmatprep.subr.bf16.mxu1 %v2287_v35  ;;  %v462_v32 = vld [vmem:[%s2807_s4 + $0x68] sm:$0xff]  ;;  %v2326_v35 = vcombine.low %v494_v24, %v510_v25 }
  0xa8   : > { %1569 = vmatprep.subr.bf16.mxu0 %v2285_v34  ;;  %v2324_v34 = vcombine.low %v493_v22, %v509_v23  ;;  %v2295_v37 = vcombine.high %v462_v32, %v478_v33 }
  0xaa   : > { %1611 = vmatpush1.bf16.msra.mxu1 %v2286_v41  ;;  %v576_v41 = vld [vmem:[%s2807_s4 + $0x3f8] sm:$0xff] }
  0xab   : > { %1570 = vmatpush1.bf16.msra.mxu0 %v2284_v40  ;;  %1686 = vmatprep.subr.bf16.mxu1 %v2387_v43  ;;  %v560_v40 = vld [vmem:[%s2807_s4 + $0x378] sm:$0xff]  ;;  %v2294_v43 = vcombine.low %v462_v32, %v478_v33 }
  0xac   : > { %1645 = vmatprep.subr.bf16.mxu0 %v2385_v42  ;;  %v2292_v42 = vcombine.low %v461_v30, %v477_v31  ;;  %v2395_v46 = vcombine.high %v560_v40, %v576_v41 }
  0xad   : > { %2405 = vmatmul.mubr.msk.bf16.vlgmr.msra.gmra.mxu1 %vm1223_vm0, %v2836_v44 }
  0xae   : > { %2404 = vmatmul.mubr.msk.bf16.vlgmr.msra.gmra.mxu0 %vm1223_vm0, %v2836_v44  ;;  %1687 = vmatpush1.bf16.msra.mxu1 %v2386_v50  ;;  %v544_v50 = vld [vmem:[%s2807_s4 + $0x2f8] sm:$0xff] }
  0xaf   : > { %1646 = vmatpush1.bf16.msra.mxu0 %v2384_v49  ;;  %1688 = vmatprep.subr.bf16.mxu1 %v2355_v52  ;;  %v528_v49 = vld [vmem:[%s2807_s4 + $0x278] sm:$0xff]  ;;  %v2394_v52 = vcombine.low %v560_v40, %v576_v41 }
  0xb0   : > { %1647 = vmatprep.subr.bf16.mxu0 %v2353_v51  ;;  %1669 = vmatprep.mubr.bf16.mxu0 %v2482_v0  ;;  %v2392_v51 = vcombine.low %v559_v38, %v575_v39  ;;  %v2363_v54 = vcombine.high %v528_v49, %v544_v50 }
  0xb1   : > { %1710 = vmatprep.mubr.bf16.mxu1 %v2482_v0 }
  0xb2   : > { %1689 = vmatpush1.bf16.msra.mxu1 %v2354_v58  ;;  %v512_v58 = vld [vmem:[%s2807_s4 + $0x1f8] sm:$0xff] }
  0xb3   : > { %1648 = vmatpush1.bf16.msra.mxu0 %v2352_v57  ;;  %1690 = vmatprep.subr.bf16.mxu1 %v2323_v60  ;;  %v496_v57 = vld [vmem:[%s2807_s4 + $0x178] sm:$0xff]  ;;  %v2362_v60 = vcombine.low %v528_v49, %v544_v50 }
  0xb4   : > { %1649 = vmatprep.subr.bf16.mxu0 %v2321_v59  ;;  %v2360_v59 = vcombine.low %v527_v47, %v543_v48  ;;  %v2331_v62 = vcombine.high %v496_v57, %v512_v58 }
  0xb6   : > { %1691 = vmatpush1.bf16.msra.mxu1 %v2322_v3  ;;  %v480_v3 = vld [vmem:[%s2807_s4 + $0xf8] sm:$0xff] }
  0xb7   : > { %1650 = vmatpush1.bf16.msra.mxu0 %v2320_v2  ;;  %1692 = vmatprep.subr.bf16.mxu1 %v2291_v5  ;;  %v464_v2 = vld [vmem:[%s2807_s4 + $0x78] sm:$0xff]  ;;  %v2330_v5 = vcombine.low %v496_v57, %v512_v58 }
  0xb8   : > { %1651 = vmatprep.subr.bf16.mxu0 %v2289_v4  ;;  %v2328_v4 = vcombine.low %v495_v55, %v511_v56  ;;  %v2299_v7 = vcombine.high %v464_v2, %v480_v3  ;;  %v2298_v9 = vcombine.low %v464_v2, %v480_v3 }
  0xba   : > { %1693 = vmatpush1.bf16.msra.mxu1 %v2290_v11 }
  0xbb   : > { %1652 = vmatpush1.bf16.msra.mxu0 %v2288_v10  ;;  %1768 = vmatprep.subr.bf16.mxu1 %v2391_v13  ;;  %v2483_v10 = vmov 1983009808  }
  0xbc   : > { %1727 = vmatprep.subr.bf16.mxu0 %v2389_v12  ;;  %v2046_v11 = vunpack.c.l.s4 %v2483_v10  ;;  %v2048_v12 = vlaneseq }
  0xbd   : > { %2407 = vmatmul.mubr.msk.bf16.vlgmr.msra.gmra.mxu1 %vm1223_vm0, %v2836_v44 }
  0xbe   : > { %2406 = vmatmul.mubr.msk.bf16.vlgmr.msra.gmra.mxu0 %vm1223_vm0, %v2836_v44  ;;  %1769 = vmatpush1.bf16.msra.mxu1 %v2390_v19  ;;  %v2049_v19 = vshrl.u32 %v2048_v12, 7 }
  0xbf   : > { %1728 = vmatpush1.bf16.msra.mxu0 %v2388_v18  ;;  %1770 = vmatprep.subr.bf16.mxu1 %v2359_v21  ;;  %v2047_v18 = vunpack.c.0.s8 %v2046_v11 }
  0xc0   : > { %1729 = vmatprep.subr.bf16.mxu0 %v2357_v20  ;;  %1751 = vmatprep.mubr.bf16.mxu0 %v2482_v0 }
  0xc1   : > { %1792 = vmatprep.mubr.bf16.mxu1 %v2482_v0 }
  0xc2   : > { %1771 = vmatpush1.bf16.msra.mxu1 %v2358_v27  ;;  %v2997_v27 = vsub.s32 %v2047_v18, %v2049_v19 }
  0xc3   : > { %1730 = vmatpush1.bf16.msra.mxu0 %v2356_v26  ;;  %1772 = vmatprep.subr.bf16.mxu1 %v2327_v29 }
  0xc4   : > { %1731 = vmatprep.subr.bf16.mxu0 %v2325_v28 }
  0xc6   : > { %1773 = vmatpush1.bf16.msra.mxu1 %v2326_v35 }
  0xc7   : > { %1732 = vmatpush1.bf16.msra.mxu0 %v2324_v34  ;;  %1774 = vmatprep.subr.bf16.mxu1 %v2295_v37 }
  0xc8   : > { %1733 = vmatprep.subr.bf16.mxu0 %v2293_v36 }
  0xca   : > { %1775 = vmatpush1.bf16.msra.mxu1 %v2294_v43 }
  0xcb   : > { %1734 = vmatpush1.bf16.msra.mxu0 %v2292_v42  ;;  %1850 = vmatprep.subr.bf16.mxu1 %v2395_v46 }
  0xcc   : > { %1809 = vmatprep.subr.bf16.mxu0 %v2393_v45 }
  0xcd   : > { %2409 = vmatmul.mubr.msk.bf16.vlgmr.msra.gmra.mxu1 %vm1223_vm0, %v2836_v44 }
  0xce   : > { %2408 = vmatmul.mubr.msk.bf16.vlgmr.msra.gmra.mxu0 %vm1223_vm0, %v2836_v44  ;;  %1851 = vmatpush1.bf16.msra.mxu1 %v2394_v52 }
  0xcf   : > { %1810 = vmatpush1.bf16.msra.mxu0 %v2392_v51  ;;  %1852 = vmatprep.subr.bf16.mxu1 %v2363_v54 }
  0xd0   : > { %1811 = vmatprep.subr.bf16.mxu0 %v2361_v53  ;;  %1833 = vmatprep.mubr.bf16.mxu0 %v2482_v0 }
  0xd1   : > { %1874 = vmatprep.mubr.bf16.mxu1 %v2482_v0 }
  0xd2   : > { %1853 = vmatpush1.bf16.msra.mxu1 %v2362_v60 }
  0xd3   : > { %1812 = vmatpush1.bf16.msra.mxu0 %v2360_v59  ;;  %1854 = vmatprep.subr.bf16.mxu1 %v2331_v62 }
  0xd4   : > { %1813 = vmatprep.subr.bf16.mxu0 %v2329_v61 }
  0xd6   : > { %1855 = vmatpush1.bf16.msra.mxu1 %v2330_v5 }
  0xd7   : > { %1814 = vmatpush1.bf16.msra.mxu0 %v2328_v4  ;;  %1856 = vmatprep.subr.bf16.mxu1 %v2299_v7  ;;  %v2988_v0 = vpop.permute.xlu0 %580 }
  0xd8   : > { %1815 = vmatprep.subr.bf16.mxu0 %v2297_v6 }
  0xda   : > { %1857 = vmatpush1.bf16.msra.mxu1 %v2298_v9 }
  0xdb   : > { %1816 = vmatpush1.bf16.msra.mxu0 %v2296_v8 }
  0xdd   : > { %2411 = vmatmul.mubr.msk.bf16.vlgmr.msra.gmra.mxu1 %vm1223_vm0, %v2836_v44 }
  0xde   : > { %2410 = vmatmul.mubr.msk.bf16.vlgmr.msra.gmra.mxu0 %vm1223_vm0, %v2836_v44 }
 0x12d   : > { %v1302_v15 = vpop.f32.mrf.mxu1 }
 0x12e   : > { %v1261_v13 = vpop.f32.mrf.mxu0  ;;  %v1303_v16 = vadd.f32 %v1302_v15, %v2988_v0 }
 0x12f   : > { %v1262_v14 = vadd.f32 %v1261_v13, %v2988_v0  ;;  %v1304_v21 = vpop.f32.mrf.mxu1 }
 0x130   : > { %v1263_v17 = vpop.f32.mrf.mxu0  ;;  %v1917_v22 = vmul.f32 0.2, %v1303_v16  ;;  %v1305_v23 = vadd.f32 %v1304_v21, %v2988_v0  ;;  %vm1885_vm2 = vcmp.ge.f32.partialorder %v1303_v16, 0.0 }
 0x131   : > { %v1915_v20 = vmul.f32 0.2, %v1262_v14  ;;  %v1264_v44 = vadd.f32 %v1263_v17, %v2988_v0  ;;  %vm1883_vm1 = vcmp.ge.f32.partialorder %v1262_v14, 0.0  ;;  %v1306_v26 = vpop.f32.mrf.mxu1 }
 0x132   : > { %v1265_v24 = vpop.f32.mrf.mxu0  ;;  %vm1886_vm4 = vcmp.ge.f32.partialorder %v1305_v23, 0.0  ;;  %v1918_v28 = vmul.f32 0.2, %v1305_v23  ;;  %v1949_v33 = vsel %vm1885_vm2, %v1303_v16, %v1917_v22 }
 0x133   : > { %vm1884_vm3 = vcmp.ge.f32.partialorder %v1264_v44, 0.0  ;;  %v1916_v25 = vmul.f32 0.2, %v1264_v44  ;;  %v1947_v30 = vsel %vm1883_vm1, %v1262_v14, %v1915_v20  ;;  %v1307_v32 = vpop.f32.mrf.mxu1 }
 0x134   : > { %v1266_v29 = vpop.f32.mrf.mxu0  ;;  %v1950_v35 = vsel %vm1886_vm4, %v1305_v23, %v1918_v28 }
 0x135   : > { %v1948_v31 = vsel %vm1884_vm3, %v1264_v44, %v1916_v25  ;;  %v2413_v36 = vpack.c.bf16 %v1950_v35, %v1949_v33 }
 0x136   : > { %v2412_v34 = vpack.c.bf16 %v1948_v31, %v1947_v30 }
 0x137   : > { %v2058_v38 = vrot.slane %v2413_v36, %v2997_v27 }
 0x138   : > { %v2051_v37 = vrot.slane %v2412_v34, %v2997_v27 }
 0x13a   : > { %v2059_v39 = vcombine.low %v2051_v37, %v2058_v38 }
 0x13c   : > { %2187 = vst [vmem:[%s3004_s11] sm:$0xff] %v2059_v39 }
 0x13d   : > { %v1384_v42 = vpop.f32.mrf.mxu1 }
 0x13e   : > { %v1343_v40 = vpop.f32.mrf.mxu0  ;;  %v1385_v43 = vadd.f32 %v1384_v42, %v2988_v0 }
 0x13f   : > { %v1344_v41 = vadd.f32 %v1343_v40, %v2988_v0  ;;  %v1386_v48 = vpop.f32.mrf.mxu1 }
 0x140   : > { %v1345_v45 = vpop.f32.mrf.mxu0  ;;  %v1921_v49 = vmul.f32 0.2, %v1385_v43  ;;  %v1387_v50 = vadd.f32 %v1386_v48, %v2988_v0  ;;  %vm1889_vm6 = vcmp.ge.f32.partialorder %v1385_v43, 0.0 }
 0x141   : > { %v1919_v46 = vmul.f32 0.2, %v1344_v41  ;;  %v1346_v47 = vadd.f32 %v1345_v45, %v2988_v0  ;;  %vm1887_vm5 = vcmp.ge.f32.partialorder %v1344_v41, 0.0  ;;  %v1388_v53 = vpop.f32.mrf.mxu1 }
 0x142   : > { %v1347_v51 = vpop.f32.mrf.mxu0  ;;  %vm1890_vm8 = vcmp.ge.f32.partialorder %v1387_v50, 0.0  ;;  %v1922_v54 = vmul.f32 0.2, %v1387_v50  ;;  %v1953_v59 = vsel %vm1889_vm6, %v1385_v43, %v1921_v49 }
 0x143   : > { %vm1888_vm7 = vcmp.ge.f32.partialorder %v1346_v47, 0.0  ;;  %v1920_v52 = vmul.f32 0.2, %v1346_v47  ;;  %v1951_v56 = vsel %vm1887_vm5, %v1344_v41, %v1919_v46  ;;  %v1389_v58 = vpop.f32.mrf.mxu1 }
 0x144   : > { %v1348_v55 = vpop.f32.mrf.mxu0  ;;  %v1954_v61 = vsel %vm1890_vm8, %v1387_v50, %v1922_v54 }
 0x145   : > { %v1952_v57 = vsel %vm1888_vm7, %v1346_v47, %v1920_v52  ;;  %v2415_v62 = vpack.c.bf16 %v1954_v61, %v1953_v59 }
 0x146   : > { %v2414_v60 = vpack.c.bf16 %v1952_v57, %v1951_v56 }
 0x147   : > { %v2075_v1 = vrot.slane %v2415_v62, %v2997_v27 }
 0x148   : > { %v2068_v63 = vrot.slane %v2414_v60, %v2997_v27 }
 0x14a   : > { %v2076_v2 = vcombine.low %v2068_v63, %v2075_v1 }
 0x14c   : > { %2188 = vst [vmem:[%s3004_s11 + $0x8] sm:$0xff] %v2076_v2 }
 0x14d   : > { %v1466_v5 = vpop.f32.mrf.mxu1 }
 0x14e   : > { %v1425_v3 = vpop.f32.mrf.mxu0  ;;  %v1467_v6 = vadd.f32 %v1466_v5, %v2988_v0 }
 0x14f   : > { %v1426_v4 = vadd.f32 %v1425_v3, %v2988_v0  ;;  %v1468_v10 = vpop.f32.mrf.mxu1 }
 0x150   : > { %v1427_v7 = vpop.f32.mrf.mxu0  ;;  %v1925_v11 = vmul.f32 0.2, %v1467_v6  ;;  %v1469_v12 = vadd.f32 %v1468_v10, %v2988_v0  ;;  %vm1893_vm10 = vcmp.ge.f32.partialorder %v1467_v6, 0.0 }
 0x151   : > { %v1923_v8 = vmul.f32 0.2, %v1426_v4  ;;  %v1428_v9 = vadd.f32 %v1427_v7, %v2988_v0  ;;  %vm1891_vm9 = vcmp.ge.f32.partialorder %v1426_v4, 0.0  ;;  %v1470_v15 = vpop.f32.mrf.mxu1 }
 0x152   : > { %v1429_v13 = vpop.f32.mrf.mxu0  ;;  %vm1894_vm12 = vcmp.ge.f32.partialorder %v1469_v12, 0.0  ;;  %v1926_v16 = vmul.f32 0.2, %v1469_v12  ;;  %v1957_v44 = vsel %vm1893_vm10, %v1467_v6, %v1925_v11 }
 0x153   : > { %vm1892_vm11 = vcmp.ge.f32.partialorder %v1428_v9, 0.0  ;;  %v1924_v14 = vmul.f32 0.2, %v1428_v9  ;;  %v1955_v18 = vsel %vm1891_vm9, %v1426_v4, %v1923_v8  ;;  %v1471_v20 = vpop.f32.mrf.mxu1 }
 0x154   : > { %v1430_v17 = vpop.f32.mrf.mxu0  ;;  %v1958_v22 = vsel %vm1894_vm12, %v1469_v12, %v1926_v16 }
 0x155   : > { %v1956_v19 = vsel %vm1892_vm11, %v1428_v9, %v1924_v14  ;;  %v2417_v23 = vpack.c.bf16 %v1958_v22, %v1957_v44 }
 0x156   : > { %v2416_v21 = vpack.c.bf16 %v1956_v19, %v1955_v18 }
 0x157   : > { %v2092_v25 = vrot.slane %v2417_v23, %v2997_v27 }
 0x158   : > { %v2085_v24 = vrot.slane %v2416_v21, %v2997_v27 }
 0x15a   : > { %v2093_v26 = vcombine.low %v2085_v24, %v2092_v25 }
 0x15c   : > { %2189 = vst [vmem:[%s3004_s11 + $0x10] sm:$0xff] %v2093_v26 }
 0x15d   : > { %v1548_v30 = vpop.f32.mrf.mxu1 }
 0x15e   : > { %v1507_v28 = vpop.f32.mrf.mxu0  ;;  %v1549_v31 = vadd.f32 %v1548_v30, %v2988_v0 }
 0x15f   : > { %v1508_v29 = vadd.f32 %v1507_v28, %v2988_v0  ;;  %v1550_v35 = vpop.f32.mrf.mxu1 }
 0x160   : > { %v1509_v32 = vpop.f32.mrf.mxu0  ;;  %v1929_v36 = vmul.f32 0.2, %v1549_v31  ;;  %v1551_v37 = vadd.f32 %v1550_v35, %v2988_v0  ;;  %vm1897_vm14 = vcmp.ge.f32.partialorder %v1549_v31, 0.0 }
 0x161   : > { %v1927_v33 = vmul.f32 0.2, %v1508_v29  ;;  %v1510_v34 = vadd.f32 %v1509_v32, %v2988_v0  ;;  %vm1895_vm13 = vcmp.ge.f32.partialorder %v1508_v29, 0.0  ;;  %v1552_v40 = vpop.f32.mrf.mxu1 }
 0x162   : > { %v1511_v38 = vpop.f32.mrf.mxu0  ;;  %vm1898_vm0 = vcmp.ge.f32.partialorder %v1551_v37, 0.0  ;;  %v1930_v41 = vmul.f32 0.2, %v1551_v37  ;;  %v1961_v47 = vsel %vm1897_vm14, %v1549_v31, %v1929_v36 }
 0x163   : > { %vm1896_vm15 = vcmp.ge.f32.partialorder %v1510_v34, 0.0  ;;  %v1928_v39 = vmul.f32 0.2, %v1510_v34  ;;  %v1959_v43 = vsel %vm1895_vm13, %v1508_v29, %v1927_v33  ;;  %v1553_v46 = vpop.f32.mrf.mxu1 }
 0x164   : > { %v1512_v42 = vpop.f32.mrf.mxu0  ;;  %v1962_v49 = vsel %vm1898_vm0, %v1551_v37, %v1930_v41 }
 0x165   : > { %v1960_v45 = vsel %vm1896_vm15, %v1510_v34, %v1928_v39  ;;  %v2419_v50 = vpack.c.bf16 %v1962_v49, %v1961_v47 }
 0x166   : > { %v2418_v48 = vpack.c.bf16 %v1960_v45, %v1959_v43 }
 0x167   : > { %v2109_v52 = vrot.slane %v2419_v50, %v2997_v27 }
 0x168   : > { %v2102_v51 = vrot.slane %v2418_v48, %v2997_v27 }
 0x16a   : > { %v2110_v53 = vcombine.low %v2102_v51, %v2109_v52 }
 0x16c   : > { %2190 = vst [vmem:[%s3004_s11 + $0x18] sm:$0xff] %v2110_v53 }
 0x16d   : > { %v1630_v56 = vpop.f32.mrf.mxu1 }
 0x16e   : > { %v1589_v54 = vpop.f32.mrf.mxu0  ;;  %v1631_v57 = vadd.f32 %v1630_v56, %v2988_v0 }
 0x16f   : > { %v1590_v55 = vadd.f32 %v1589_v54, %v2988_v0  ;;  %v1632_v61 = vpop.f32.mrf.mxu1 }
 0x170   : > { %v1591_v58 = vpop.f32.mrf.mxu0  ;;  %v1933_v62 = vmul.f32 0.2, %v1631_v57  ;;  %v1633_v63 = vadd.f32 %v1632_v61, %v2988_v0  ;;  %vm1901_vm2 = vcmp.ge.f32.partialorder %v1631_v57, 0.0 }
 0x171   : > { %v1931_v59 = vmul.f32 0.2, %v1590_v55  ;;  %v1592_v60 = vadd.f32 %v1591_v58, %v2988_v0  ;;  %vm1899_vm1 = vcmp.ge.f32.partialorder %v1590_v55, 0.0  ;;  %v1634_v3 = vpop.f32.mrf.mxu1 }
 0x172   : > { %v1593_v1 = vpop.f32.mrf.mxu0  ;;  %vm1902_vm4 = vcmp.ge.f32.partialorder %v1633_v63, 0.0  ;;  %v1934_v4 = vmul.f32 0.2, %v1633_v63  ;;  %v1965_v9 = vsel %vm1901_vm2, %v1631_v57, %v1933_v62 }
 0x173   : > { %vm1900_vm3 = vcmp.ge.f32.partialorder %v1592_v60, 0.0  ;;  %v1932_v2 = vmul.f32 0.2, %v1592_v60  ;;  %v1963_v6 = vsel %vm1899_vm1, %v1590_v55, %v1931_v59  ;;  %v1635_v8 = vpop.f32.mrf.mxu1 }
 0x174   : > { %v1594_v5 = vpop.f32.mrf.mxu0  ;;  %v1966_v11 = vsel %vm1902_vm4, %v1633_v63, %v1934_v4 }
 0x175   : > { %v1964_v7 = vsel %vm1900_vm3, %v1592_v60, %v1932_v2  ;;  %v2421_v12 = vpack.c.bf16 %v1966_v11, %v1965_v9 }
 0x176   : > { %v2420_v10 = vpack.c.bf16 %v1964_v7, %v1963_v6 }
 0x177   : > { %v2126_v14 = vrot.slane %v2421_v12, %v2997_v27 }
 0x178   : > { %v2119_v13 = vrot.slane %v2420_v10, %v2997_v27 }
 0x17a   : > { %v2127_v15 = vcombine.low %v2119_v13, %v2126_v14 }
 0x17c   : > { %2191 = vst [vmem:[%s3004_s11 + $0x20] sm:$0xff] %v2127_v15 }
 0x17d   : > { %v1712_v18 = vpop.f32.mrf.mxu1 }
 0x17e   : > { %v1671_v16 = vpop.f32.mrf.mxu0  ;;  %v1713_v19 = vadd.f32 %v1712_v18, %v2988_v0 }
 0x17f   : > { %v1672_v17 = vadd.f32 %v1671_v16, %v2988_v0  ;;  %v1714_v22 = vpop.f32.mrf.mxu1 }
 0x180   : > { %v1673_v20 = vpop.f32.mrf.mxu0  ;;  %v1937_v23 = vmul.f32 0.2, %v1713_v19  ;;  %v1715_v24 = vadd.f32 %v1714_v22, %v2988_v0  ;;  %vm1905_vm6 = vcmp.ge.f32.partialorder %v1713_v19, 0.0 }
 0x181   : > { %v1935_v44 = vmul.f32 0.2, %v1672_v17  ;;  %v1674_v21 = vadd.f32 %v1673_v20, %v2988_v0  ;;  %vm1903_vm5 = vcmp.ge.f32.partialorder %v1672_v17, 0.0  ;;  %v1716_v28 = vpop.f32.mrf.mxu1 }
 0x182   : > { %v1675_v25 = vpop.f32.mrf.mxu0  ;;  %vm1906_vm8 = vcmp.ge.f32.partialorder %v1715_v24, 0.0  ;;  %v1938_v29 = vmul.f32 0.2, %v1715_v24  ;;  %v1969_v34 = vsel %vm1905_vm6, %v1713_v19, %v1937_v23 }
 0x183   : > { %vm1904_vm7 = vcmp.ge.f32.partialorder %v1674_v21, 0.0  ;;  %v1936_v26 = vmul.f32 0.2, %v1674_v21  ;;  %v1967_v31 = vsel %vm1903_vm5, %v1672_v17, %v1935_v44  ;;  %v1717_v33 = vpop.f32.mrf.mxu1 }
 0x184   : > { %v1676_v30 = vpop.f32.mrf.mxu0  ;;  %v1970_v36 = vsel %vm1906_vm8, %v1715_v24, %v1938_v29 }
 0x185   : > { %v1968_v32 = vsel %vm1904_vm7, %v1674_v21, %v1936_v26  ;;  %v2423_v37 = vpack.c.bf16 %v1970_v36, %v1969_v34 }
 0x186   : > { %v2422_v35 = vpack.c.bf16 %v1968_v32, %v1967_v31 }
 0x187   : > { %v2143_v39 = vrot.slane %v2423_v37, %v2997_v27 }
 0x188   : > { %v2136_v38 = vrot.slane %v2422_v35, %v2997_v27 }
 0x18a   : > { %v2144_v40 = vcombine.low %v2136_v38, %v2143_v39 }
 0x18c   : > { %2192 = vst [vmem:[%s3004_s11 + $0x28] sm:$0xff] %v2144_v40 }
 0x18d   : > { %v1794_v43 = vpop.f32.mrf.mxu1 }
 0x18e   : > { %v1753_v41 = vpop.f32.mrf.mxu0  ;;  %v1795_v45 = vadd.f32 %v1794_v43, %v2988_v0 }
 0x18f   : > { %v1754_v42 = vadd.f32 %v1753_v41, %v2988_v0  ;;  %v1796_v49 = vpop.f32.mrf.mxu1 }
 0x190   : > { %v1755_v46 = vpop.f32.mrf.mxu0  ;;  %v1941_v50 = vmul.f32 0.2, %v1795_v45  ;;  %v1797_v51 = vadd.f32 %v1796_v49, %v2988_v0  ;;  %vm1909_vm10 = vcmp.ge.f32.partialorder %v1795_v45, 0.0 }
 0x191   : > { %v1939_v47 = vmul.f32 0.2, %v1754_v42  ;;  %v1756_v48 = vadd.f32 %v1755_v46, %v2988_v0  ;;  %vm1907_vm9 = vcmp.ge.f32.partialorder %v1754_v42, 0.0  ;;  %v1798_v54 = vpop.f32.mrf.mxu1 }
 0x192   : > { %v1757_v52 = vpop.f32.mrf.mxu0  ;;  %vm1910_vm12 = vcmp.ge.f32.partialorder %v1797_v51, 0.0  ;;  %v1942_v55 = vmul.f32 0.2, %v1797_v51  ;;  %v1973_v60 = vsel %vm1909_vm10, %v1795_v45, %v1941_v50 }
 0x193   : > { %vm1908_vm11 = vcmp.ge.f32.partialorder %v1756_v48, 0.0  ;;  %v1940_v53 = vmul.f32 0.2, %v1756_v48  ;;  %v1971_v57 = vsel %vm1907_vm9, %v1754_v42, %v1939_v47  ;;  %v1799_v59 = vpop.f32.mrf.mxu1 }
 0x194   : > { %v1758_v56 = vpop.f32.mrf.mxu0  ;;  %v1974_v62 = vsel %vm1910_vm12, %v1797_v51, %v1942_v55 }
 0x195   : > { %v1972_v58 = vsel %vm1908_vm11, %v1756_v48, %v1940_v53  ;;  %v2425_v63 = vpack.c.bf16 %v1974_v62, %v1973_v60 }
 0x196   : > { %v2424_v61 = vpack.c.bf16 %v1972_v58, %v1971_v57 }
 0x197   : > { %v2160_v2 = vrot.slane %v2425_v63, %v2997_v27 }
 0x198   : > { %v2153_v1 = vrot.slane %v2424_v61, %v2997_v27 }
 0x19a   : > { %v2161_v3 = vcombine.low %v2153_v1, %v2160_v2 }
 0x19c   : > { %2193 = vst [vmem:[%s3004_s11 + $0x30] sm:$0xff] %v2161_v3 }
 0x19d   : > { %v1876_v6 = vpop.f32.mrf.mxu1 }
 0x19e   : > { %v1835_v4 = vpop.f32.mrf.mxu0  ;;  %v1877_v7 = vadd.f32 %v1876_v6, %v2988_v0 }
 0x19f   : > { %v1836_v5 = vadd.f32 %v1835_v4, %v2988_v0  ;;  %v1878_v11 = vpop.f32.mrf.mxu1 }
 0x1a0   : > { %v1837_v8 = vpop.f32.mrf.mxu0  ;;  %v1945_v12 = vmul.f32 0.2, %v1877_v7  ;;  %v1879_v13 = vadd.f32 %v1878_v11, %v2988_v0  ;;  %vm1913_vm14 = vcmp.ge.f32.partialorder %v1877_v7, 0.0 }
 0x1a1   : > { %v1943_v9 = vmul.f32 0.2, %v1836_v5  ;;  %v1838_v10 = vadd.f32 %v1837_v8, %v2988_v0  ;;  %vm1911_vm13 = vcmp.ge.f32.partialorder %v1836_v5, 0.0  ;;  %v1880_v16 = vpop.f32.mrf.mxu1 }
 0x1a2   : > { %v1839_v14 = vpop.f32.mrf.mxu0  ;;  %vm1914_vm0 = vcmp.ge.f32.partialorder %v1879_v13, 0.0  ;;  %v1946_v17 = vmul.f32 0.2, %v1879_v13  ;;  %v1977_v21 = vsel %vm1913_vm14, %v1877_v7, %v1945_v12 }
 0x1a3   : > { %vm1912_vm15 = vcmp.ge.f32.partialorder %v1838_v10, 0.0  ;;  %v1944_v15 = vmul.f32 0.2, %v1838_v10  ;;  %v1975_v19 = vsel %vm1911_vm13, %v1836_v5, %v1943_v9  ;;  %v1881_v44 = vpop.f32.mrf.mxu1 }
 0x1a4   : > { %v1840_v18 = vpop.f32.mrf.mxu0  ;;  %v1978_v23 = vsel %vm1914_vm0, %v1879_v13, %v1946_v17 }
 0x1a5   : > { %v1976_v20 = vsel %vm1912_vm15, %v1838_v10, %v1944_v15  ;;  %v2427_v24 = vpack.c.bf16 %v1978_v23, %v1977_v21 }
 0x1a6   : > { %v2426_v22 = vpack.c.bf16 %v1976_v20, %v1975_v19 }
 0x1a7   : > { %v2177_v0 = vrot.slane %v2427_v24, %v2997_v27 }
 0x1a8   : > { %v2170_v25 = vrot.slane %v2426_v22, %v2997_v27 }
 0x1aa   : > { %v2178_v26 = vcombine.low %v2170_v25, %v2177_v0 }
 0x1ac   : > { %2194 = vst [vmem:[%s3004_s11 + $0x38] sm:$0xff] %v2178_v26 }
 0x1ad PF: > { %p10_p9 = scmp.ge.s32.totalorder %s2521_s16, 18   ;;  %s3070_s12 = smov %s2476_s13 }
 0x1ae   : > { %s3071_s13 = smov %s2530_s19  ;;  %s3072_s14 = smov %s2521_s16 }
 0x1af   :  { %12 = sbr.rel (!%p10_p9) target bundleno = 2 (0x2), region = 90 }

// kernel: discriminator_forward.9
= control target key start
LH: loop header
LB: loop body
LE: loop exit
PB: predicated region body
PF: predicated region fallthrough
CT: control target
= control target key end

     0   :  { %s6005_s15 = smov 0   ;;  %s6007_s16 = smov 0   ;;  %s7698_s0 = inlined_call_operand.vmem [shape: bf16[8,256], index: 0, kind: input, shape index: {}]   ;;  %s7699_s1 = inlined_call_operand.vmem [shape: bf16[256,8192], index: 1, kind: input, shape index: {}]   ;;  %s7700_s2 = inlined_call_operand.vmem [shape: bf16[8,8192], index: 2, kind: output, shape index: {0}]   ;;  %s7701_s3 = inlined_call_operand.vmem [shape: f32[2,8,1], index: 3, kind: output, shape index: {1}]   ;;  %s7702_s4 = inlined_call_operand.vmem [shape: f32[2,8,1], index: 4, kind: output, shape index: {2}]  }
   0x1   :  { %s6009_s17 = smov 0  }
   0x2 LB: > { %s6021_s18 = sadd.s32 4294967295, %s5978_s17   ;;  %s6024_s19 = sadd.s32 1, %s5978_s17   ;;  %s5978_s17 = sphi %s6009_s17, %s7705_s17   ;;  %s5974_s16 = sphi %s6007_s16, %s7704_s16   ;;  %s5970_s15 = sphi %s6005_s15, %s7703_s15  }
   0x3   : > { %s40_s20 = ssub.s32 %s5978_s17, %s6024_s19  ;;  %s43_s21 = sadd.s32 1, %s5974_s16 }
   0x4   : > { %p41_p0 = scmp.eq.s32.totalorder %s40_s20, 0  ;;  %p50_p1 = scmp.ne.s32.totalorder %s5974_s16, %s5970_s15 }
   0x5   : > { %p51_p2 = scmp.eq.s32.totalorder %s5978_s17, 0  ;;  %p5371_p4 = scmp.ge.s32.totalorder %s5978_s17, 2 }
   0x6   : > { %s6033_s22 = scalar_select %p41_p0, %s5974_s16, %s43_s21  }
   0x7   : > { %p52_p3 = por %p51_p2, %p50_p1  ;;  %157 = sbr.rel (%p5371_p4) target bundleno = 272 (0x110), region = 20 }
   0xc   : > { %160 = sbr.rel (!%p52_p3) target bundleno = 272 (0x110), region = 24  ;;  %s162_s23 = sand.u32 (%p52_p3), 1, %s5974_s16  }
   0xd   : > { %s5913_s24 = sshll.u32 (%p52_p3), %s5978_s17, 7  ;;  %s5372_s25 = sshll.u32 (%p52_p3), %s162_s23, 12 }
   0xe   : > { %s6041_s28 = scalar_lea.vmem (%p52_p3), %s7699_s1, %s5913_s24  ;;  %s6046_s29 = scalar_lea.vmem (%p52_p3), [#allocation2], %s5372_s25 }
   0xf   : > { %v180_v0 = vld [vmem:[%s6041_s28] sm:$0xff] (%p52_p3)  ;;  %v182_v1 = vld [vmem:[%s6041_s28 + $0x8] sm:$0xff] (%p52_p3)  ;;  %v184_v2 = vld [vmem:[%s6041_s28 + $0x10] sm:$0xff] (%p52_p3) }
  0x10   : > { %181 = vst [vmem:[%s6046_s29] sm:$0xff] (%p52_p3), %v180_v0  ;;  %183 = vst [vmem:[%s6046_s29 + $0x8] sm:$0xff] (%p52_p3), %v182_v1  ;;  %v186_v3 = vld [vmem:[%s6041_s28 + $0x18] sm:$0xff] (%p52_p3)  ;;  %v188_v4 = vld [vmem:[%s6041_s28 + $0x20] sm:$0xff] (%p52_p3) }
  0x11   : > { %185 = vst [vmem:[%s6046_s29 + $0x10] sm:$0xff] %v184_v2  ;;  %v190_v5 = vld [vmem:[%s6041_s28 + $0x28] sm:$0xff]  ;;  %187 = vst [vmem:[%s6046_s29 + $0x18] sm:$0xff] %v186_v3  ;;  %v192_v6 = vld [vmem:[%s6041_s28 + $0x30] sm:$0xff] }
  0x12   : > { %189 = vst [vmem:[%s6046_s29 + $0x20] sm:$0xff] %v188_v4  ;;  %191 = vst [vmem:[%s6046_s29 + $0x28] sm:$0xff] %v190_v5  ;;  %v194_v7 = vld [vmem:[%s6041_s28 + $0x38] sm:$0xff]  ;;  %v196_v8 = vld [vmem:[%s6041_s28 + $0x40] sm:$0xff] }
  0x13   : > { %193 = vst [vmem:[%s6046_s29 + $0x30] sm:$0xff] %v192_v6  ;;  %195 = vst [vmem:[%s6046_s29 + $0x38] sm:$0xff] %v194_v7  ;;  %v198_v9 = vld [vmem:[%s6041_s28 + $0x48] sm:$0xff]  ;;  %v200_v10 = vld [vmem:[%s6041_s28 + $0x50] sm:$0xff] }
  0x14   : > { %197 = vst [vmem:[%s6046_s29 + $0x40] sm:$0xff] %v196_v8  ;;  %v202_v11 = vld [vmem:[%s6041_s28 + $0x58] sm:$0xff]  ;;  %199 = vst [vmem:[%s6046_s29 + $0x48] sm:$0xff] %v198_v9  ;;  %v204_v12 = vld [vmem:[%s6041_s28 + $0x60] sm:$0xff] }
  0x15   : > { %201 = vst [vmem:[%s6046_s29 + $0x50] sm:$0xff] %v200_v10  ;;  %203 = vst [vmem:[%s6046_s29 + $0x58] sm:$0xff] %v202_v11  ;;  %v206_v13 = vld [vmem:[%s6041_s28 + $0x68] sm:$0xff]  ;;  %v208_v14 = vld [vmem:[%s6041_s28 + $0x70] sm:$0xff] }
  0x16   : > { %205 = vst [vmem:[%s6046_s29 + $0x60] sm:$0xff] %v204_v12  ;;  %207 = vst [vmem:[%s6046_s29 + $0x68] sm:$0xff] %v206_v13  ;;  %v210_v15 = vld [vmem:[%s6041_s28 + $0x78] sm:$0xff]  ;;  %v212_v16 = vld [vmem:[%s6041_s28 + $0x100] sm:$0xff] }
  0x17   : > { %209 = vst [vmem:[%s6046_s29 + $0x70] sm:$0xff] %v208_v14  ;;  %v214_v17 = vld [vmem:[%s6041_s28 + $0x108] sm:$0xff]  ;;  %211 = vst [vmem:[%s6046_s29 + $0x78] sm:$0xff] %v210_v15  ;;  %v216_v18 = vld [vmem:[%s6041_s28 + $0x110] sm:$0xff] }
  0x18   : > { %213 = vst [vmem:[%s6046_s29 + $0x80] sm:$0xff] %v212_v16  ;;  %215 = vst [vmem:[%s6046_s29 + $0x88] sm:$0xff] %v214_v17  ;;  %v218_v19 = vld [vmem:[%s6041_s28 + $0x118] sm:$0xff]  ;;  %v220_v20 = vld [vmem:[%s6041_s28 + $0x120] sm:$0xff] }
  0x19   : > { %217 = vst [vmem:[%s6046_s29 + $0x90] sm:$0xff] %v216_v18  ;;  %219 = vst [vmem:[%s6046_s29 + $0x98] sm:$0xff] %v218_v19  ;;  %v222_v21 = vld [vmem:[%s6041_s28 + $0x128] sm:$0xff]  ;;  %v224_v22 = vld [vmem:[%s6041_s28 + $0x130] sm:$0xff] }
  0x1a   : > { %221 = vst [vmem:[%s6046_s29 + $0xa0] sm:$0xff] %v220_v20  ;;  %v226_v23 = vld [vmem:[%s6041_s28 + $0x138] sm:$0xff]  ;;  %223 = vst [vmem:[%s6046_s29 + $0xa8] sm:$0xff] %v222_v21  ;;  %v228_v24 = vld [vmem:[%s6041_s28 + $0x140] sm:$0xff] }
  0x1b   : > { %225 = vst [vmem:[%s6046_s29 + $0xb0] sm:$0xff] %v224_v22  ;;  %227 = vst [vmem:[%s6046_s29 + $0xb8] sm:$0xff] %v226_v23  ;;  %v230_v25 = vld [vmem:[%s6041_s28 + $0x148] sm:$0xff]  ;;  %v232_v26 = vld [vmem:[%s6041_s28 + $0x150] sm:$0xff] }
  0x1c   : > { %229 = vst [vmem:[%s6046_s29 + $0xc0] sm:$0xff] %v228_v24  ;;  %231 = vst [vmem:[%s6046_s29 + $0xc8] sm:$0xff] %v230_v25  ;;  %v234_v27 = vld [vmem:[%s6041_s28 + $0x158] sm:$0xff]  ;;  %v236_v28 = vld [vmem:[%s6041_s28 + $0x160] sm:$0xff] }
  0x1d   : > { %233 = vst [vmem:[%s6046_s29 + $0xd0] sm:$0xff] %v232_v26  ;;  %v238_v29 = vld [vmem:[%s6041_s28 + $0x168] sm:$0xff]  ;;  %235 = vst [vmem:[%s6046_s29 + $0xd8] sm:$0xff] %v234_v27  ;;  %v240_v30 = vld [vmem:[%s6041_s28 + $0x170] sm:$0xff] }
  0x1e   : > { %237 = vst [vmem:[%s6046_s29 + $0xe0] sm:$0xff] %v236_v28  ;;  %239 = vst [vmem:[%s6046_s29 + $0xe8] sm:$0xff] %v238_v29  ;;  %v242_v31 = vld [vmem:[%s6041_s28 + $0x178] sm:$0xff]  ;;  %v244_v32 = vld [vmem:[%s6041_s28 + $0x200] sm:$0xff] }
  0x1f   : > { %241 = vst [vmem:[%s6046_s29 + $0xf0] sm:$0xff] %v240_v30  ;;  %243 = vst [vmem:[%s6046_s29 + $0xf8] sm:$0xff] %v242_v31  ;;  %v246_v33 = vld [vmem:[%s6041_s28 + $0x208] sm:$0xff]  ;;  %v248_v34 = vld [vmem:[%s6041_s28 + $0x210] sm:$0xff] }
  0x20   : > { %245 = vst [vmem:[%s6046_s29 + $0x100] sm:$0xff] %v244_v32  ;;  %v250_v35 = vld [vmem:[%s6041_s28 + $0x218] sm:$0xff]  ;;  %247 = vst [vmem:[%s6046_s29 + $0x108] sm:$0xff] %v246_v33  ;;  %v252_v36 = vld [vmem:[%s6041_s28 + $0x220] sm:$0xff] }
  0x21   : > { %249 = vst [vmem:[%s6046_s29 + $0x110] sm:$0xff] %v248_v34  ;;  %251 = vst [vmem:[%s6046_s29 + $0x118] sm:$0xff] %v250_v35  ;;  %v254_v37 = vld [vmem:[%s6041_s28 + $0x228] sm:$0xff]  ;;  %v256_v38 = vld [vmem:[%s6041_s28 + $0x230] sm:$0xff] }
  0x22   : > { %253 = vst [vmem:[%s6046_s29 + $0x120] sm:$0xff] %v252_v36  ;;  %255 = vst [vmem:[%s6046_s29 + $0x128] sm:$0xff] %v254_v37  ;;  %v258_v39 = vld [vmem:[%s6041_s28 + $0x238] sm:$0xff]  ;;  %v260_v40 = vld [vmem:[%s6041_s28 + $0x240] sm:$0xff] }
  0x23   : > { %257 = vst [vmem:[%s6046_s29 + $0x130] sm:$0xff] %v256_v38  ;;  %v262_v41 = vld [vmem:[%s6041_s28 + $0x248] sm:$0xff]  ;;  %259 = vst [vmem:[%s6046_s29 + $0x138] sm:$0xff] %v258_v39  ;;  %v264_v42 = vld [vmem:[%s6041_s28 + $0x250] sm:$0xff] }
  0x24   : > { %261 = vst [vmem:[%s6046_s29 + $0x140] sm:$0xff] %v260_v40  ;;  %263 = vst [vmem:[%s6046_s29 + $0x148] sm:$0xff] %v262_v41  ;;  %v266_v43 = vld [vmem:[%s6041_s28 + $0x258] sm:$0xff]  ;;  %v268_v44 = vld [vmem:[%s6041_s28 + $0x260] sm:$0xff] }
  0x25   : > { %265 = vst [vmem:[%s6046_s29 + $0x150] sm:$0xff] %v264_v42  ;;  %267 = vst [vmem:[%s6046_s29 + $0x158] sm:$0xff] %v266_v43  ;;  %v270_v45 = vld [vmem:[%s6041_s28 + $0x268] sm:$0xff]  ;;  %v272_v46 = vld [vmem:[%s6041_s28 + $0x270] sm:$0xff] }
  0x26   : > { %269 = vst [vmem:[%s6046_s29 + $0x160] sm:$0xff] %v268_v44  ;;  %v274_v47 = vld [vmem:[%s6041_s28 + $0x278] sm:$0xff]  ;;  %271 = vst [vmem:[%s6046_s29 + $0x168] sm:$0xff] %v270_v45  ;;  %v276_v48 = vld [vmem:[%s6041_s28 + $0x300] sm:$0xff] }
  0x27   : > { %273 = vst [vmem:[%s6046_s29 + $0x170] sm:$0xff] %v272_v46  ;;  %275 = vst [vmem:[%s6046_s29 + $0x178] sm:$0xff] %v274_v47  ;;  %v278_v49 = vld [vmem:[%s6041_s28 + $0x308] sm:$0xff]  ;;  %v280_v50 = vld [vmem:[%s6041_s28 + $0x310] sm:$0xff] }
  0x28   : > { %277 = vst [vmem:[%s6046_s29 + $0x180] sm:$0xff] %v276_v48  ;;  %279 = vst [vmem:[%s6046_s29 + $0x188] sm:$0xff] %v278_v49  ;;  %v282_v51 = vld [vmem:[%s6041_s28 + $0x318] sm:$0xff]  ;;  %v284_v52 = vld [vmem:[%s6041_s28 + $0x320] sm:$0xff] }
  0x29   : > { %281 = vst [vmem:[%s6046_s29 + $0x190] sm:$0xff] %v280_v50  ;;  %v286_v53 = vld [vmem:[%s6041_s28 + $0x328] sm:$0xff]  ;;  %283 = vst [vmem:[%s6046_s29 + $0x198] sm:$0xff] %v282_v51  ;;  %v288_v54 = vld [vmem:[%s6041_s28 + $0x330] sm:$0xff] }
  0x2a   : > { %285 = vst [vmem:[%s6046_s29 + $0x1a0] sm:$0xff] %v284_v52  ;;  %287 = vst [vmem:[%s6046_s29 + $0x1a8] sm:$0xff] %v286_v53  ;;  %v290_v55 = vld [vmem:[%s6041_s28 + $0x338] sm:$0xff]  ;;  %v292_v56 = vld [vmem:[%s6041_s28 + $0x340] sm:$0xff] }
  0x2b   : > { %289 = vst [vmem:[%s6046_s29 + $0x1b0] sm:$0xff] %v288_v54  ;;  %291 = vst [vmem:[%s6046_s29 + $0x1b8] sm:$0xff] %v290_v55  ;;  %v294_v57 = vld [vmem:[%s6041_s28 + $0x348] sm:$0xff]  ;;  %v296_v58 = vld [vmem:[%s6041_s28 + $0x350] sm:$0xff] }
  0x2c   : > { %293 = vst [vmem:[%s6046_s29 + $0x1c0] sm:$0xff] %v292_v56  ;;  %v298_v59 = vld [vmem:[%s6041_s28 + $0x358] sm:$0xff]  ;;  %295 = vst [vmem:[%s6046_s29 + $0x1c8] sm:$0xff] %v294_v57  ;;  %v300_v60 = vld [vmem:[%s6041_s28 + $0x360] sm:$0xff] }
  0x2d   : > { %297 = vst [vmem:[%s6046_s29 + $0x1d0] sm:$0xff] %v296_v58  ;;  %299 = vst [vmem:[%s6046_s29 + $0x1d8] sm:$0xff] %v298_v59  ;;  %v302_v61 = vld [vmem:[%s6041_s28 + $0x368] sm:$0xff]  ;;  %v304_v62 = vld [vmem:[%s6041_s28 + $0x370] sm:$0xff] }
  0x2e   : > { %301 = vst [vmem:[%s6046_s29 + $0x1e0] sm:$0xff] %v300_v60  ;;  %303 = vst [vmem:[%s6046_s29 + $0x1e8] sm:$0xff] %v302_v61  ;;  %v306_v63 = vld [vmem:[%s6041_s28 + $0x378] sm:$0xff]  ;;  %v308_v0 = vld [vmem:[%s6041_s28 + $0x400] sm:$0xff] }
  0x2f   : > { %305 = vst [vmem:[%s6046_s29 + $0x1f0] sm:$0xff] %v304_v62  ;;  %v310_v1 = vld [vmem:[%s6041_s28 + $0x408] sm:$0xff]  ;;  %307 = vst [vmem:[%s6046_s29 + $0x1f8] sm:$0xff] %v306_v63  ;;  %v312_v2 = vld [vmem:[%s6041_s28 + $0x410] sm:$0xff] }
  0x30   : > { %309 = vst [vmem:[%s6046_s29 + $0x200] sm:$0xff] %v308_v0  ;;  %311 = vst [vmem:[%s6046_s29 + $0x208] sm:$0xff] %v310_v1  ;;  %v314_v3 = vld [vmem:[%s6041_s28 + $0x418] sm:$0xff]  ;;  %v316_v4 = vld [vmem:[%s6041_s28 + $0x420] sm:$0xff] }
  0x31   : > { %313 = vst [vmem:[%s6046_s29 + $0x210] sm:$0xff] %v312_v2  ;;  %315 = vst [vmem:[%s6046_s29 + $0x218] sm:$0xff] %v314_v3  ;;  %v318_v5 = vld [vmem:[%s6041_s28 + $0x428] sm:$0xff]  ;;  %v320_v6 = vld [vmem:[%s6041_s28 + $0x430] sm:$0xff] }
  0x32   : > { %317 = vst [vmem:[%s6046_s29 + $0x220] sm:$0xff] %v316_v4  ;;  %v322_v7 = vld [vmem:[%s6041_s28 + $0x438] sm:$0xff]  ;;  %319 = vst [vmem:[%s6046_s29 + $0x228] sm:$0xff] %v318_v5  ;;  %v324_v8 = vld [vmem:[%s6041_s28 + $0x440] sm:$0xff] }
  0x33   : > { %321 = vst [vmem:[%s6046_s29 + $0x230] sm:$0xff] %v320_v6  ;;  %323 = vst [vmem:[%s6046_s29 + $0x238] sm:$0xff] %v322_v7  ;;  %v326_v9 = vld [vmem:[%s6041_s28 + $0x448] sm:$0xff]  ;;  %v328_v10 = vld [vmem:[%s6041_s28 + $0x450] sm:$0xff] }
  0x34   : > { %325 = vst [vmem:[%s6046_s29 + $0x240] sm:$0xff] %v324_v8  ;;  %327 = vst [vmem:[%s6046_s29 + $0x248] sm:$0xff] %v326_v9  ;;  %v330_v11 = vld [vmem:[%s6041_s28 + $0x458] sm:$0xff]  ;;  %v332_v12 = vld [vmem:[%s6041_s28 + $0x460] sm:$0xff] }
  0x35   : > { %329 = vst [vmem:[%s6046_s29 + $0x250] sm:$0xff] %v328_v10  ;;  %v334_v13 = vld [vmem:[%s6041_s28 + $0x468] sm:$0xff]  ;;  %331 = vst [vmem:[%s6046_s29 + $0x258] sm:$0xff] %v330_v11  ;;  %v336_v14 = vld [vmem:[%s6041_s28 + $0x470] sm:$0xff] }
  0x36   : > { %333 = vst [vmem:[%s6046_s29 + $0x260] sm:$0xff] %v332_v12  ;;  %335 = vst [vmem:[%s6046_s29 + $0x268] sm:$0xff] %v334_v13  ;;  %v338_v15 = vld [vmem:[%s6041_s28 + $0x478] sm:$0xff]  ;;  %v340_v16 = vld [vmem:[%s6041_s28 + $0x500] sm:$0xff] }
  0x37   : > { %337 = vst [vmem:[%s6046_s29 + $0x270] sm:$0xff] %v336_v14  ;;  %339 = vst [vmem:[%s6046_s29 + $0x278] sm:$0xff] %v338_v15  ;;  %v342_v17 = vld [vmem:[%s6041_s28 + $0x508] sm:$0xff]  ;;  %v344_v18 = vld [vmem:[%s6041_s28 + $0x510] sm:$0xff] }
  0x38   : > { %341 = vst [vmem:[%s6046_s29 + $0x280] sm:$0xff] %v340_v16  ;;  %v346_v19 = vld [vmem:[%s6041_s28 + $0x518] sm:$0xff]  ;;  %343 = vst [vmem:[%s6046_s29 + $0x288] sm:$0xff] %v342_v17  ;;  %v348_v20 = vld [vmem:[%s6041_s28 + $0x520] sm:$0xff] }
  0x39   : > { %345 = vst [vmem:[%s6046_s29 + $0x290] sm:$0xff] %v344_v18  ;;  %347 = vst [vmem:[%s6046_s29 + $0x298] sm:$0xff] %v346_v19  ;;  %v350_v21 = vld [vmem:[%s6041_s28 + $0x528] sm:$0xff]  ;;  %v352_v22 = vld [vmem:[%s6041_s28 + $0x530] sm:$0xff] }
  0x3a   : > { %349 = vst [vmem:[%s6046_s29 + $0x2a0] sm:$0xff] %v348_v20  ;;  %351 = vst [vmem:[%s6046_s29 + $0x2a8] sm:$0xff] %v350_v21  ;;  %v354_v23 = vld [vmem:[%s6041_s28 + $0x538] sm:$0xff]  ;;  %v356_v24 = vld [vmem:[%s6041_s28 + $0x540] sm:$0xff] }
  0x3b   : > { %353 = vst [vmem:[%s6046_s29 + $0x2b0] sm:$0xff] %v352_v22  ;;  %v358_v25 = vld [vmem:[%s6041_s28 + $0x548] sm:$0xff]  ;;  %355 = vst [vmem:[%s6046_s29 + $0x2b8] sm:$0xff] %v354_v23  ;;  %v360_v26 = vld [vmem:[%s6041_s28 + $0x550] sm:$0xff] }
  0x3c   : > { %357 = vst [vmem:[%s6046_s29 + $0x2c0] sm:$0xff] %v356_v24  ;;  %359 = vst [vmem:[%s6046_s29 + $0x2c8] sm:$0xff] %v358_v25  ;;  %v362_v27 = vld [vmem:[%s6041_s28 + $0x558] sm:$0xff]  ;;  %v364_v28 = vld [vmem:[%s6041_s28 + $0x560] sm:$0xff] }
  0x3d   : > { %361 = vst [vmem:[%s6046_s29 + $0x2d0] sm:$0xff] %v360_v26  ;;  %363 = vst [vmem:[%s6046_s29 + $0x2d8] sm:$0xff] %v362_v27  ;;  %v366_v29 = vld [vmem:[%s6041_s28 + $0x568] sm:$0xff]  ;;  %v368_v30 = vld [vmem:[%s6041_s28 + $0x570] sm:$0xff] }
  0x3e   : > { %365 = vst [vmem:[%s6046_s29 + $0x2e0] sm:$0xff] %v364_v28  ;;  %v370_v31 = vld [vmem:[%s6041_s28 + $0x578] sm:$0xff]  ;;  %367 = vst [vmem:[%s6046_s29 + $0x2e8] sm:$0xff] %v366_v29  ;;  %v372_v32 = vld [vmem:[%s6041_s28 + $0x600] sm:$0xff] }
  0x3f   : > { %369 = vst [vmem:[%s6046_s29 + $0x2f0] sm:$0xff] %v368_v30  ;;  %371 = vst [vmem:[%s6046_s29 + $0x2f8] sm:$0xff] %v370_v31  ;;  %v374_v33 = vld [vmem:[%s6041_s28 + $0x608] sm:$0xff]  ;;  %v376_v34 = vld [vmem:[%s6041_s28 + $0x610] sm:$0xff] }
  0x40   : > { %373 = vst [vmem:[%s6046_s29 + $0x300] sm:$0xff] %v372_v32  ;;  %375 = vst [vmem:[%s6046_s29 + $0x308] sm:$0xff] %v374_v33  ;;  %v378_v35 = vld [vmem:[%s6041_s28 + $0x618] sm:$0xff]  ;;  %v380_v36 = vld [vmem:[%s6041_s28 + $0x620] sm:$0xff] }
  0x41   : > { %377 = vst [vmem:[%s6046_s29 + $0x310] sm:$0xff] %v376_v34  ;;  %v382_v37 = vld [vmem:[%s6041_s28 + $0x628] sm:$0xff]  ;;  %379 = vst [vmem:[%s6046_s29 + $0x318] sm:$0xff] %v378_v35  ;;  %v384_v38 = vld [vmem:[%s6041_s28 + $0x630] sm:$0xff] }
  0x42   : > { %381 = vst [vmem:[%s6046_s29 + $0x320] sm:$0xff] %v380_v36  ;;  %383 = vst [vmem:[%s6046_s29 + $0x328] sm:$0xff] %v382_v37  ;;  %v386_v39 = vld [vmem:[%s6041_s28 + $0x638] sm:$0xff]  ;;  %v388_v40 = vld [vmem:[%s6041_s28 + $0x640] sm:$0xff] }
  0x43   : > { %385 = vst [vmem:[%s6046_s29 + $0x330] sm:$0xff] %v384_v38  ;;  %387 = vst [vmem:[%s6046_s29 + $0x338] sm:$0xff] %v386_v39  ;;  %v390_v41 = vld [vmem:[%s6041_s28 + $0x648] sm:$0xff]  ;;  %v392_v42 = vld [vmem:[%s6041_s28 + $0x650] sm:$0xff] }
  0x44   : > { %389 = vst [vmem:[%s6046_s29 + $0x340] sm:$0xff] %v388_v40  ;;  %v394_v43 = vld [vmem:[%s6041_s28 + $0x658] sm:$0xff]  ;;  %391 = vst [vmem:[%s6046_s29 + $0x348] sm:$0xff] %v390_v41  ;;  %v396_v44 = vld [vmem:[%s6041_s28 + $0x660] sm:$0xff] }
  0x45   : > { %393 = vst [vmem:[%s6046_s29 + $0x350] sm:$0xff] %v392_v42  ;;  %395 = vst [vmem:[%s6046_s29 + $0x358] sm:$0xff] %v394_v43  ;;  %v398_v45 = vld [vmem:[%s6041_s28 + $0x668] sm:$0xff]  ;;  %v400_v46 = vld [vmem:[%s6041_s28 + $0x670] sm:$0xff] }
  0x46   : > { %397 = vst [vmem:[%s6046_s29 + $0x360] sm:$0xff] %v396_v44  ;;  %399 = vst [vmem:[%s6046_s29 + $0x368] sm:$0xff] %v398_v45  ;;  %v402_v47 = vld [vmem:[%s6041_s28 + $0x678] sm:$0xff]  ;;  %v404_v48 = vld [vmem:[%s6041_s28 + $0x700] sm:$0xff] }
  0x47   : > { %401 = vst [vmem:[%s6046_s29 + $0x370] sm:$0xff] %v400_v46  ;;  %v406_v49 = vld [vmem:[%s6041_s28 + $0x708] sm:$0xff]  ;;  %403 = vst [vmem:[%s6046_s29 + $0x378] sm:$0xff] %v402_v47  ;;  %v408_v50 = vld [vmem:[%s6041_s28 + $0x710] sm:$0xff] }
  0x48   : > { %405 = vst [vmem:[%s6046_s29 + $0x380] sm:$0xff] %v404_v48  ;;  %407 = vst [vmem:[%s6046_s29 + $0x388] sm:$0xff] %v406_v49  ;;  %v410_v51 = vld [vmem:[%s6041_s28 + $0x718] sm:$0xff]  ;;  %v412_v52 = vld [vmem:[%s6041_s28 + $0x720] sm:$0xff] }
  0x49   : > { %409 = vst [vmem:[%s6046_s29 + $0x390] sm:$0xff] %v408_v50  ;;  %411 = vst [vmem:[%s6046_s29 + $0x398] sm:$0xff] %v410_v51  ;;  %v414_v53 = vld [vmem:[%s6041_s28 + $0x728] sm:$0xff]  ;;  %v416_v54 = vld [vmem:[%s6041_s28 + $0x730] sm:$0xff] }
  0x4a   : > { %413 = vst [vmem:[%s6046_s29 + $0x3a0] sm:$0xff] %v412_v52  ;;  %v418_v55 = vld [vmem:[%s6041_s28 + $0x738] sm:$0xff]  ;;  %415 = vst [vmem:[%s6046_s29 + $0x3a8] sm:$0xff] %v414_v53  ;;  %v420_v56 = vld [vmem:[%s6041_s28 + $0x740] sm:$0xff] }
  0x4b   : > { %417 = vst [vmem:[%s6046_s29 + $0x3b0] sm:$0xff] %v416_v54  ;;  %419 = vst [vmem:[%s6046_s29 + $0x3b8] sm:$0xff] %v418_v55  ;;  %v422_v57 = vld [vmem:[%s6041_s28 + $0x748] sm:$0xff]  ;;  %v424_v58 = vld [vmem:[%s6041_s28 + $0x750] sm:$0xff] }
  0x4c   : > { %421 = vst [vmem:[%s6046_s29 + $0x3c0] sm:$0xff] %v420_v56  ;;  %423 = vst [vmem:[%s6046_s29 + $0x3c8] sm:$0xff] %v422_v57  ;;  %v426_v59 = vld [vmem:[%s6041_s28 + $0x758] sm:$0xff]  ;;  %v428_v60 = vld [vmem:[%s6041_s28 + $0x760] sm:$0xff] }
  0x4d   : > { %425 = vst [vmem:[%s6046_s29 + $0x3d0] sm:$0xff] %v424_v58  ;;  %v430_v61 = vld [vmem:[%s6041_s28 + $0x768] sm:$0xff]  ;;  %427 = vst [vmem:[%s6046_s29 + $0x3d8] sm:$0xff] %v426_v59  ;;  %v432_v62 = vld [vmem:[%s6041_s28 + $0x770] sm:$0xff] }
  0x4e   : > { %429 = vst [vmem:[%s6046_s29 + $0x3e0] sm:$0xff] %v428_v60  ;;  %431 = vst [vmem:[%s6046_s29 + $0x3e8] sm:$0xff] %v430_v61  ;;  %v434_v63 = vld [vmem:[%s6041_s28 + $0x778] sm:$0xff]  ;;  %v436_v0 = vld [vmem:[%s6041_s28 + $0x800] sm:$0xff] }
  0x4f   : > { %433 = vst [vmem:[%s6046_s29 + $0x3f0] sm:$0xff] %v432_v62  ;;  %435 = vst [vmem:[%s6046_s29 + $0x3f8] sm:$0xff] %v434_v63  ;;  %v438_v1 = vld [vmem:[%s6041_s28 + $0x808] sm:$0xff]  ;;  %v440_v2 = vld [vmem:[%s6041_s28 + $0x810] sm:$0xff] }
  0x50   : > { %437 = vst [vmem:[%s6046_s29 + $0x400] sm:$0xff] %v436_v0  ;;  %v442_v3 = vld [vmem:[%s6041_s28 + $0x818] sm:$0xff]  ;;  %439 = vst [vmem:[%s6046_s29 + $0x408] sm:$0xff] %v438_v1  ;;  %v444_v4 = vld [vmem:[%s6041_s28 + $0x820] sm:$0xff] }
  0x51   : > { %441 = vst [vmem:[%s6046_s29 + $0x410] sm:$0xff] %v440_v2  ;;  %443 = vst [vmem:[%s6046_s29 + $0x418] sm:$0xff] %v442_v3  ;;  %v446_v5 = vld [vmem:[%s6041_s28 + $0x828] sm:$0xff]  ;;  %v448_v6 = vld [vmem:[%s6041_s28 + $0x830] sm:$0xff] }
  0x52   : > { %445 = vst [vmem:[%s6046_s29 + $0x420] sm:$0xff] %v444_v4  ;;  %447 = vst [vmem:[%s6046_s29 + $0x428] sm:$0xff] %v446_v5  ;;  %v450_v7 = vld [vmem:[%s6041_s28 + $0x838] sm:$0xff]  ;;  %v452_v8 = vld [vmem:[%s6041_s28 + $0x840] sm:$0xff] }
  0x53   : > { %449 = vst [vmem:[%s6046_s29 + $0x430] sm:$0xff] %v448_v6  ;;  %v454_v9 = vld [vmem:[%s6041_s28 + $0x848] sm:$0xff]  ;;  %451 = vst [vmem:[%s6046_s29 + $0x438] sm:$0xff] %v450_v7  ;;  %v456_v10 = vld [vmem:[%s6041_s28 + $0x850] sm:$0xff] }
  0x54   : > { %453 = vst [vmem:[%s6046_s29 + $0x440] sm:$0xff] %v452_v8  ;;  %455 = vst [vmem:[%s6046_s29 + $0x448] sm:$0xff] %v454_v9  ;;  %v458_v11 = vld [vmem:[%s6041_s28 + $0x858] sm:$0xff]  ;;  %v460_v12 = vld [vmem:[%s6041_s28 + $0x860] sm:$0xff] }
  0x55   : > { %457 = vst [vmem:[%s6046_s29 + $0x450] sm:$0xff] %v456_v10  ;;  %459 = vst [vmem:[%s6046_s29 + $0x458] sm:$0xff] %v458_v11  ;;  %v462_v13 = vld [vmem:[%s6041_s28 + $0x868] sm:$0xff]  ;;  %v464_v14 = vld [vmem:[%s6041_s28 + $0x870] sm:$0xff] }
  0x56   : > { %461 = vst [vmem:[%s6046_s29 + $0x460] sm:$0xff] %v460_v12  ;;  %v466_v15 = vld [vmem:[%s6041_s28 + $0x878] sm:$0xff]  ;;  %463 = vst [vmem:[%s6046_s29 + $0x468] sm:$0xff] %v462_v13  ;;  %v468_v16 = vld [vmem:[%s6041_s28 + $0x900] sm:$0xff] }
  0x57   : > { %465 = vst [vmem:[%s6046_s29 + $0x470] sm:$0xff] %v464_v14  ;;  %467 = vst [vmem:[%s6046_s29 + $0x478] sm:$0xff] %v466_v15  ;;  %v470_v17 = vld [vmem:[%s6041_s28 + $0x908] sm:$0xff]  ;;  %v472_v18 = vld [vmem:[%s6041_s28 + $0x910] sm:$0xff] }
  0x58   : > { %469 = vst [vmem:[%s6046_s29 + $0x480] sm:$0xff] %v468_v16  ;;  %471 = vst [vmem:[%s6046_s29 + $0x488] sm:$0xff] %v470_v17  ;;  %v474_v19 = vld [vmem:[%s6041_s28 + $0x918] sm:$0xff]  ;;  %v476_v20 = vld [vmem:[%s6041_s28 + $0x920] sm:$0xff] }
  0x59   : > { %473 = vst [vmem:[%s6046_s29 + $0x490] sm:$0xff] %v472_v18  ;;  %v478_v21 = vld [vmem:[%s6041_s28 + $0x928] sm:$0xff]  ;;  %475 = vst [vmem:[%s6046_s29 + $0x498] sm:$0xff] %v474_v19  ;;  %v480_v22 = vld [vmem:[%s6041_s28 + $0x930] sm:$0xff] }
  0x5a   : > { %477 = vst [vmem:[%s6046_s29 + $0x4a0] sm:$0xff] %v476_v20  ;;  %479 = vst [vmem:[%s6046_s29 + $0x4a8] sm:$0xff] %v478_v21  ;;  %v482_v23 = vld [vmem:[%s6041_s28 + $0x938] sm:$0xff]  ;;  %v484_v24 = vld [vmem:[%s6041_s28 + $0x940] sm:$0xff] }
  0x5b   : > { %481 = vst [vmem:[%s6046_s29 + $0x4b0] sm:$0xff] %v480_v22  ;;  %483 = vst [vmem:[%s6046_s29 + $0x4b8] sm:$0xff] %v482_v23  ;;  %v486_v25 = vld [vmem:[%s6041_s28 + $0x948] sm:$0xff]  ;;  %v488_v26 = vld [vmem:[%s6041_s28 + $0x950] sm:$0xff] }
  0x5c   : > { %485 = vst [vmem:[%s6046_s29 + $0x4c0] sm:$0xff] %v484_v24  ;;  %v490_v27 = vld [vmem:[%s6041_s28 + $0x958] sm:$0xff]  ;;  %487 = vst [vmem:[%s6046_s29 + $0x4c8] sm:$0xff] %v486_v25  ;;  %v492_v28 = vld [vmem:[%s6041_s28 + $0x960] sm:$0xff] }
  0x5d   : > { %489 = vst [vmem:[%s6046_s29 + $0x4d0] sm:$0xff] %v488_v26  ;;  %491 = vst [vmem:[%s6046_s29 + $0x4d8] sm:$0xff] %v490_v27  ;;  %v494_v29 = vld [vmem:[%s6041_s28 + $0x968] sm:$0xff]  ;;  %v496_v30 = vld [vmem:[%s6041_s28 + $0x970] sm:$0xff] }
  0x5e   : > { %493 = vst [vmem:[%s6046_s29 + $0x4e0] sm:$0xff] %v492_v28  ;;  %495 = vst [vmem:[%s6046_s29 + $0x4e8] sm:$0xff] %v494_v29  ;;  %v498_v31 = vld [vmem:[%s6041_s28 + $0x978] sm:$0xff]  ;;  %v500_v32 = vld [vmem:[%s6041_s28 + $0xa00] sm:$0xff] }
  0x5f   : > { %497 = vst [vmem:[%s6046_s29 + $0x4f0] sm:$0xff] %v496_v30  ;;  %v502_v33 = vld [vmem:[%s6041_s28 + $0xa08] sm:$0xff]  ;;  %499 = vst [vmem:[%s6046_s29 + $0x4f8] sm:$0xff] %v498_v31  ;;  %v504_v34 = vld [vmem:[%s6041_s28 + $0xa10] sm:$0xff] }
  0x60   : > { %501 = vst [vmem:[%s6046_s29 + $0x500] sm:$0xff] %v500_v32  ;;  %503 = vst [vmem:[%s6046_s29 + $0x508] sm:$0xff] %v502_v33  ;;  %v506_v35 = vld [vmem:[%s6041_s28 + $0xa18] sm:$0xff]  ;;  %v508_v36 = vld [vmem:[%s6041_s28 + $0xa20] sm:$0xff] }
  0x61   : > { %505 = vst [vmem:[%s6046_s29 + $0x510] sm:$0xff] %v504_v34  ;;  %507 = vst [vmem:[%s6046_s29 + $0x518] sm:$0xff] %v506_v35  ;;  %v510_v37 = vld [vmem:[%s6041_s28 + $0xa28] sm:$0xff]  ;;  %v512_v38 = vld [vmem:[%s6041_s28 + $0xa30] sm:$0xff] }
  0x62   : > { %509 = vst [vmem:[%s6046_s29 + $0x520] sm:$0xff] %v508_v36  ;;  %v514_v39 = vld [vmem:[%s6041_s28 + $0xa38] sm:$0xff]  ;;  %511 = vst [vmem:[%s6046_s29 + $0x528] sm:$0xff] %v510_v37  ;;  %v516_v40 = vld [vmem:[%s6041_s28 + $0xa40] sm:$0xff] }
  0x63   : > { %513 = vst [vmem:[%s6046_s29 + $0x530] sm:$0xff] %v512_v38  ;;  %515 = vst [vmem:[%s6046_s29 + $0x538] sm:$0xff] %v514_v39  ;;  %v518_v41 = vld [vmem:[%s6041_s28 + $0xa48] sm:$0xff]  ;;  %v520_v42 = vld [vmem:[%s6041_s28 + $0xa50] sm:$0xff] }
  0x64   : > { %517 = vst [vmem:[%s6046_s29 + $0x540] sm:$0xff] %v516_v40  ;;  %519 = vst [vmem:[%s6046_s29 + $0x548] sm:$0xff] %v518_v41  ;;  %v522_v43 = vld [vmem:[%s6041_s28 + $0xa58] sm:$0xff]  ;;  %v524_v44 = vld [vmem:[%s6041_s28 + $0xa60] sm:$0xff] }
  0x65   : > { %521 = vst [vmem:[%s6046_s29 + $0x550] sm:$0xff] %v520_v42  ;;  %v526_v45 = vld [vmem:[%s6041_s28 + $0xa68] sm:$0xff]  ;;  %523 = vst [vmem:[%s6046_s29 + $0x558] sm:$0xff] %v522_v43  ;;  %v528_v46 = vld [vmem:[%s6041_s28 + $0xa70] sm:$0xff] }
  0x66   : > { %525 = vst [vmem:[%s6046_s29 + $0x560] sm:$0xff] %v524_v44  ;;  %527 = vst [vmem:[%s6046_s29 + $0x568] sm:$0xff] %v526_v45  ;;  %v530_v47 = vld [vmem:[%s6041_s28 + $0xa78] sm:$0xff]  ;;  %v532_v48 = vld [vmem:[%s6041_s28 + $0xb00] sm:$0xff] }
  0x67   : > { %529 = vst [vmem:[%s6046_s29 + $0x570] sm:$0xff] %v528_v46  ;;  %531 = vst [vmem:[%s6046_s29 + $0x578] sm:$0xff] %v530_v47  ;;  %v534_v49 = vld [vmem:[%s6041_s28 + $0xb08] sm:$0xff]  ;;  %v536_v50 = vld [vmem:[%s6041_s28 + $0xb10] sm:$0xff] }
  0x68   : > { %533 = vst [vmem:[%s6046_s29 + $0x580] sm:$0xff] %v532_v48  ;;  %v538_v51 = vld [vmem:[%s6041_s28 + $0xb18] sm:$0xff]  ;;  %535 = vst [vmem:[%s6046_s29 + $0x588] sm:$0xff] %v534_v49  ;;  %v540_v52 = vld [vmem:[%s6041_s28 + $0xb20] sm:$0xff] }
  0x69   : > { %537 = vst [vmem:[%s6046_s29 + $0x590] sm:$0xff] %v536_v50  ;;  %539 = vst [vmem:[%s6046_s29 + $0x598] sm:$0xff] %v538_v51  ;;  %v542_v53 = vld [vmem:[%s6041_s28 + $0xb28] sm:$0xff]  ;;  %v544_v54 = vld [vmem:[%s6041_s28 + $0xb30] sm:$0xff] }
  0x6a   : > { %541 = vst [vmem:[%s6046_s29 + $0x5a0] sm:$0xff] %v540_v52  ;;  %543 = vst [vmem:[%s6046_s29 + $0x5a8] sm:$0xff] %v542_v53  ;;  %v546_v55 = vld [vmem:[%s6041_s28 + $0xb38] sm:$0xff]  ;;  %v548_v56 = vld [vmem:[%s6041_s28 + $0xb40] sm:$0xff] }
  0x6b   : > { %545 = vst [vmem:[%s6046_s29 + $0x5b0] sm:$0xff] %v544_v54  ;;  %v550_v57 = vld [vmem:[%s6041_s28 + $0xb48] sm:$0xff]  ;;  %547 = vst [vmem:[%s6046_s29 + $0x5b8] sm:$0xff] %v546_v55  ;;  %v552_v58 = vld [vmem:[%s6041_s28 + $0xb50] sm:$0xff] }
  0x6c   : > { %549 = vst [vmem:[%s6046_s29 + $0x5c0] sm:$0xff] %v548_v56  ;;  %551 = vst [vmem:[%s6046_s29 + $0x5c8] sm:$0xff] %v550_v57  ;;  %v554_v59 = vld [vmem:[%s6041_s28 + $0xb58] sm:$0xff]  ;;  %v556_v60 = vld [vmem:[%s6041_s28 + $0xb60] sm:$0xff] }
  0x6d   : > { %553 = vst [vmem:[%s6046_s29 + $0x5d0] sm:$0xff] %v552_v58  ;;  %555 = vst [vmem:[%s6046_s29 + $0x5d8] sm:$0xff] %v554_v59  ;;  %v558_v61 = vld [vmem:[%s6041_s28 + $0xb68] sm:$0xff]  ;;  %v560_v62 = vld [vmem:[%s6041_s28 + $0xb70] sm:$0xff] }
  0x6e   : > { %557 = vst [vmem:[%s6046_s29 + $0x5e0] sm:$0xff] %v556_v60  ;;  %v562_v63 = vld [vmem:[%s6041_s28 + $0xb78] sm:$0xff]  ;;  %559 = vst [vmem:[%s6046_s29 + $0x5e8] sm:$0xff] %v558_v61  ;;  %v564_v0 = vld [vmem:[%s6041_s28 + $0xc00] sm:$0xff] }
  0x6f   : > { %561 = vst [vmem:[%s6046_s29 + $0x5f0] sm:$0xff] %v560_v62  ;;  %563 = vst [vmem:[%s6046_s29 + $0x5f8] sm:$0xff] %v562_v63  ;;  %v566_v1 = vld [vmem:[%s6041_s28 + $0xc08] sm:$0xff]  ;;  %v568_v2 = vld [vmem:[%s6041_s28 + $0xc10] sm:$0xff] }
  0x70   : > { %565 = vst [vmem:[%s6046_s29 + $0x600] sm:$0xff] %v564_v0  ;;  %567 = vst [vmem:[%s6046_s29 + $0x608] sm:$0xff] %v566_v1  ;;  %v570_v3 = vld [vmem:[%s6041_s28 + $0xc18] sm:$0xff]  ;;  %v572_v4 = vld [vmem:[%s6041_s28 + $0xc20] sm:$0xff] }
  0x71   : > { %569 = vst [vmem:[%s6046_s29 + $0x610] sm:$0xff] %v568_v2  ;;  %v574_v5 = vld [vmem:[%s6041_s28 + $0xc28] sm:$0xff]  ;;  %571 = vst [vmem:[%s6046_s29 + $0x618] sm:$0xff] %v570_v3  ;;  %v576_v6 = vld [vmem:[%s6041_s28 + $0xc30] sm:$0xff] }
  0x72   : > { %573 = vst [vmem:[%s6046_s29 + $0x620] sm:$0xff] %v572_v4  ;;  %575 = vst [vmem:[%s6046_s29 + $0x628] sm:$0xff] %v574_v5  ;;  %v578_v7 = vld [vmem:[%s6041_s28 + $0xc38] sm:$0xff]  ;;  %v580_v8 = vld [vmem:[%s6041_s28 + $0xc40] sm:$0xff] }
  0x73   : > { %577 = vst [vmem:[%s6046_s29 + $0x630] sm:$0xff] %v576_v6  ;;  %579 = vst [vmem:[%s6046_s29 + $0x638] sm:$0xff] %v578_v7  ;;  %v582_v9 = vld [vmem:[%s6041_s28 + $0xc48] sm:$0xff]  ;;  %v584_v10 = vld [vmem:[%s6041_s28 + $0xc50] sm:$0xff] }
  0x74   : > { %581 = vst [vmem:[%s6046_s29 + $0x640] sm:$0xff] %v580_v8  ;;  %v586_v11 = vld [vmem:[%s6041_s28 + $0xc58] sm:$0xff]  ;;  %583 = vst [vmem:[%s6046_s29 + $0x648] sm:$0xff] %v582_v9  ;;  %v588_v12 = vld [vmem:[%s6041_s28 + $0xc60] sm:$0xff] }
  0x75   : > { %585 = vst [vmem:[%s6046_s29 + $0x650] sm:$0xff] %v584_v10  ;;  %587 = vst [vmem:[%s6046_s29 + $0x658] sm:$0xff] %v586_v11  ;;  %v590_v13 = vld [vmem:[%s6041_s28 + $0xc68] sm:$0xff]  ;;  %v592_v14 = vld [vmem:[%s6041_s28 + $0xc70] sm:$0xff] }
  0x76   : > { %589 = vst [vmem:[%s6046_s29 + $0x660] sm:$0xff] %v588_v12  ;;  %591 = vst [vmem:[%s6046_s29 + $0x668] sm:$0xff] %v590_v13  ;;  %v594_v15 = vld [vmem:[%s6041_s28 + $0xc78] sm:$0xff]  ;;  %v596_v16 = vld [vmem:[%s6041_s28 + $0xd00] sm:$0xff] }
  0x77   : > { %593 = vst [vmem:[%s6046_s29 + $0x670] sm:$0xff] %v592_v14  ;;  %v598_v17 = vld [vmem:[%s6041_s28 + $0xd08] sm:$0xff]  ;;  %595 = vst [vmem:[%s6046_s29 + $0x678] sm:$0xff] %v594_v15  ;;  %v600_v18 = vld [vmem:[%s6041_s28 + $0xd10] sm:$0xff] }
  0x78   : > { %597 = vst [vmem:[%s6046_s29 + $0x680] sm:$0xff] %v596_v16  ;;  %599 = vst [vmem:[%s6046_s29 + $0x688] sm:$0xff] %v598_v17  ;;  %v602_v19 = vld [vmem:[%s6041_s28 + $0xd18] sm:$0xff]  ;;  %v604_v20 = vld [vmem:[%s6041_s28 + $0xd20] sm:$0xff] }
  0x79   : > { %601 = vst [vmem:[%s6046_s29 + $0x690] sm:$0xff] %v600_v18  ;;  %603 = vst [vmem:[%s6046_s29 + $0x698] sm:$0xff] %v602_v19  ;;  %v606_v21 = vld [vmem:[%s6041_s28 + $0xd28] sm:$0xff]  ;;  %v608_v22 = vld [vmem:[%s6041_s28 + $0xd30] sm:$0xff] }
  0x7a   : > { %605 = vst [vmem:[%s6046_s29 + $0x6a0] sm:$0xff] %v604_v20  ;;  %v610_v23 = vld [vmem:[%s6041_s28 + $0xd38] sm:$0xff]  ;;  %607 = vst [vmem:[%s6046_s29 + $0x6a8] sm:$0xff] %v606_v21  ;;  %v612_v24 = vld [vmem:[%s6041_s28 + $0xd40] sm:$0xff] }
  0x7b   : > { %609 = vst [vmem:[%s6046_s29 + $0x6b0] sm:$0xff] %v608_v22  ;;  %611 = vst [vmem:[%s6046_s29 + $0x6b8] sm:$0xff] %v610_v23  ;;  %v614_v25 = vld [vmem:[%s6041_s28 + $0xd48] sm:$0xff]  ;;  %v616_v26 = vld [vmem:[%s6041_s28 + $0xd50] sm:$0xff] }
  0x7c   : > { %613 = vst [vmem:[%s6046_s29 + $0x6c0] sm:$0xff] %v612_v24  ;;  %615 = vst [vmem:[%s6046_s29 + $0x6c8] sm:$0xff] %v614_v25  ;;  %v618_v27 = vld [vmem:[%s6041_s28 + $0xd58] sm:$0xff]  ;;  %v620_v28 = vld [vmem:[%s6041_s28 + $0xd60] sm:$0xff] }
  0x7d   : > { %617 = vst [vmem:[%s6046_s29 + $0x6d0] sm:$0xff] %v616_v26  ;;  %v622_v29 = vld [vmem:[%s6041_s28 + $0xd68] sm:$0xff]  ;;  %619 = vst [vmem:[%s6046_s29 + $0x6d8] sm:$0xff] %v618_v27  ;;  %v624_v30 = vld [vmem:[%s6041_s28 + $0xd70] sm:$0xff] }
  0x7e   : > { %621 = vst [vmem:[%s6046_s29 + $0x6e0] sm:$0xff] %v620_v28  ;;  %623 = vst [vmem:[%s6046_s29 + $0x6e8] sm:$0xff] %v622_v29  ;;  %v626_v31 = vld [vmem:[%s6041_s28 + $0xd78] sm:$0xff]  ;;  %v628_v32 = vld [vmem:[%s6041_s28 + $0xe00] sm:$0xff] }
  0x7f   : > { %625 = vst [vmem:[%s6046_s29 + $0x6f0] sm:$0xff] %v624_v30  ;;  %627 = vst [vmem:[%s6046_s29 + $0x6f8] sm:$0xff] %v626_v31  ;;  %v630_v33 = vld [vmem:[%s6041_s28 + $0xe08] sm:$0xff]  ;;  %v632_v34 = vld [vmem:[%s6041_s28 + $0xe10] sm:$0xff] }
  0x80   : > { %629 = vst [vmem:[%s6046_s29 + $0x700] sm:$0xff] %v628_v32  ;;  %v634_v35 = vld [vmem:[%s6041_s28 + $0xe18] sm:$0xff]  ;;  %631 = vst [vmem:[%s6046_s29 + $0x708] sm:$0xff] %v630_v33  ;;  %v636_v36 = vld [vmem:[%s6041_s28 + $0xe20] sm:$0xff] }
  0x81   : > { %633 = vst [vmem:[%s6046_s29 + $0x710] sm:$0xff] %v632_v34  ;;  %635 = vst [vmem:[%s6046_s29 + $0x718] sm:$0xff] %v634_v35  ;;  %v638_v37 = vld [vmem:[%s6041_s28 + $0xe28] sm:$0xff]  ;;  %v640_v38 = vld [vmem:[%s6041_s28 + $0xe30] sm:$0xff] }
  0x82   : > { %637 = vst [vmem:[%s6046_s29 + $0x720] sm:$0xff] %v636_v36  ;;  %639 = vst [vmem:[%s6046_s29 + $0x728] sm:$0xff] %v638_v37  ;;  %v642_v39 = vld [vmem:[%s6041_s28 + $0xe38] sm:$0xff]  ;;  %v644_v40 = vld [vmem:[%s6041_s28 + $0xe40] sm:$0xff] }
  0x83   : > { %641 = vst [vmem:[%s6046_s29 + $0x730] sm:$0xff] %v640_v38  ;;  %v646_v41 = vld [vmem:[%s6041_s28 + $0xe48] sm:$0xff]  ;;  %643 = vst [vmem:[%s6046_s29 + $0x738] sm:$0xff] %v642_v39  ;;  %v648_v42 = vld [vmem:[%s6041_s28 + $0xe50] sm:$0xff] }
  0x84   : > { %645 = vst [vmem:[%s6046_s29 + $0x740] sm:$0xff] %v644_v40  ;;  %647 = vst [vmem:[%s6046_s29 + $0x748] sm:$0xff] %v646_v41  ;;  %v650_v43 = vld [vmem:[%s6041_s28 + $0xe58] sm:$0xff]  ;;  %v652_v44 = vld [vmem:[%s6041_s28 + $0xe60] sm:$0xff] }
  0x85   : > { %649 = vst [vmem:[%s6046_s29 + $0x750] sm:$0xff] %v648_v42  ;;  %651 = vst [vmem:[%s6046_s29 + $0x758] sm:$0xff] %v650_v43  ;;  %v654_v45 = vld [vmem:[%s6041_s28 + $0xe68] sm:$0xff]  ;;  %v656_v46 = vld [vmem:[%s6041_s28 + $0xe70] sm:$0xff] }
  0x86   : > { %653 = vst [vmem:[%s6046_s29 + $0x760] sm:$0xff] %v652_v44  ;;  %v658_v47 = vld [vmem:[%s6041_s28 + $0xe78] sm:$0xff]  ;;  %655 = vst [vmem:[%s6046_s29 + $0x768] sm:$0xff] %v654_v45  ;;  %v660_v48 = vld [vmem:[%s6041_s28 + $0xf00] sm:$0xff] }
  0x87   : > { %657 = vst [vmem:[%s6046_s29 + $0x770] sm:$0xff] %v656_v46  ;;  %659 = vst [vmem:[%s6046_s29 + $0x778] sm:$0xff] %v658_v47  ;;  %v662_v49 = vld [vmem:[%s6041_s28 + $0xf08] sm:$0xff]  ;;  %v664_v50 = vld [vmem:[%s6041_s28 + $0xf10] sm:$0xff] }
  0x88   : > { %661 = vst [vmem:[%s6046_s29 + $0x780] sm:$0xff] %v660_v48  ;;  %663 = vst [vmem:[%s6046_s29 + $0x788] sm:$0xff] %v662_v49  ;;  %v666_v51 = vld [vmem:[%s6041_s28 + $0xf18] sm:$0xff]  ;;  %v668_v52 = vld [vmem:[%s6041_s28 + $0xf20] sm:$0xff] }
  0x89   : > { %665 = vst [vmem:[%s6046_s29 + $0x790] sm:$0xff] %v664_v50  ;;  %v670_v53 = vld [vmem:[%s6041_s28 + $0xf28] sm:$0xff]  ;;  %667 = vst [vmem:[%s6046_s29 + $0x798] sm:$0xff] %v666_v51  ;;  %v672_v54 = vld [vmem:[%s6041_s28 + $0xf30] sm:$0xff] }
  0x8a   : > { %669 = vst [vmem:[%s6046_s29 + $0x7a0] sm:$0xff] %v668_v52  ;;  %671 = vst [vmem:[%s6046_s29 + $0x7a8] sm:$0xff] %v670_v53  ;;  %v674_v55 = vld [vmem:[%s6041_s28 + $0xf38] sm:$0xff]  ;;  %v676_v56 = vld [vmem:[%s6041_s28 + $0xf40] sm:$0xff] }
  0x8b   : > { %673 = vst [vmem:[%s6046_s29 + $0x7b0] sm:$0xff] %v672_v54  ;;  %675 = vst [vmem:[%s6046_s29 + $0x7b8] sm:$0xff] %v674_v55  ;;  %v678_v57 = vld [vmem:[%s6041_s28 + $0xf48] sm:$0xff]  ;;  %v680_v58 = vld [vmem:[%s6041_s28 + $0xf50] sm:$0xff] }
  0x8c   : > { %677 = vst [vmem:[%s6046_s29 + $0x7c0] sm:$0xff] %v676_v56  ;;  %v682_v59 = vld [vmem:[%s6041_s28 + $0xf58] sm:$0xff]  ;;  %679 = vst [vmem:[%s6046_s29 + $0x7c8] sm:$0xff] %v678_v57  ;;  %v684_v60 = vld [vmem:[%s6041_s28 + $0xf60] sm:$0xff] }
  0x8d   : > { %681 = vst [vmem:[%s6046_s29 + $0x7d0] sm:$0xff] %v680_v58  ;;  %683 = vst [vmem:[%s6046_s29 + $0x7d8] sm:$0xff] %v682_v59  ;;  %v686_v61 = vld [vmem:[%s6041_s28 + $0xf68] sm:$0xff]  ;;  %v688_v62 = vld [vmem:[%s6041_s28 + $0xf70] sm:$0xff] }
  0x8e   : > { %685 = vst [vmem:[%s6046_s29 + $0x7e0] sm:$0xff] %v684_v60  ;;  %687 = vst [vmem:[%s6046_s29 + $0x7e8] sm:$0xff] %v686_v61  ;;  %v690_v63 = vld [vmem:[%s6041_s28 + $0xf78] sm:$0xff]  ;;  %v692_v0 = vld [vmem:[%s6041_s28 + $0x1000] sm:$0xff] }
  0x8f   : > { %689 = vst [vmem:[%s6046_s29 + $0x7f0] sm:$0xff] %v688_v62  ;;  %v694_v1 = vld [vmem:[%s6041_s28 + $0x1008] sm:$0xff]  ;;  %691 = vst [vmem:[%s6046_s29 + $0x7f8] sm:$0xff] %v690_v63  ;;  %v696_v2 = vld [vmem:[%s6041_s28 + $0x1010] sm:$0xff] }
  0x90   : > { %693 = vst [vmem:[%s6046_s29 + $0x800] sm:$0xff] %v692_v0  ;;  %695 = vst [vmem:[%s6046_s29 + $0x808] sm:$0xff] %v694_v1  ;;  %v698_v3 = vld [vmem:[%s6041_s28 + $0x1018] sm:$0xff]  ;;  %v700_v4 = vld [vmem:[%s6041_s28 + $0x1020] sm:$0xff] }
  0x91   : > { %697 = vst [vmem:[%s6046_s29 + $0x810] sm:$0xff] %v696_v2  ;;  %699 = vst [vmem:[%s6046_s29 + $0x818] sm:$0xff] %v698_v3  ;;  %v702_v5 = vld [vmem:[%s6041_s28 + $0x1028] sm:$0xff]  ;;  %v704_v6 = vld [vmem:[%s6041_s28 + $0x1030] sm:$0xff] }
  0x92   : > { %701 = vst [vmem:[%s6046_s29 + $0x820] sm:$0xff] %v700_v4  ;;  %v706_v7 = vld [vmem:[%s6041_s28 + $0x1038] sm:$0xff]  ;;  %703 = vst [vmem:[%s6046_s29 + $0x828] sm:$0xff] %v702_v5  ;;  %v708_v8 = vld [vmem:[%s6041_s28 + $0x1040] sm:$0xff] }
  0x93   : > { %705 = vst [vmem:[%s6046_s29 + $0x830] sm:$0xff] %v704_v6  ;;  %707 = vst [vmem:[%s6046_s29 + $0x838] sm:$0xff] %v706_v7  ;;  %v710_v9 = vld [vmem:[%s6041_s28 + $0x1048] sm:$0xff]  ;;  %v712_v10 = vld [vmem:[%s6041_s28 + $0x1050] sm:$0xff] }
  0x94   : > { %709 = vst [vmem:[%s6046_s29 + $0x840] sm:$0xff] %v708_v8  ;;  %711 = vst [vmem:[%s6046_s29 + $0x848] sm:$0xff] %v710_v9  ;;  %v714_v11 = vld [vmem:[%s6041_s28 + $0x1058] sm:$0xff]  ;;  %v716_v12 = vld [vmem:[%s6041_s28 + $0x1060] sm:$0xff] }
  0x95   : > { %713 = vst [vmem:[%s6046_s29 + $0x850] sm:$0xff] %v712_v10  ;;  %v718_v13 = vld [vmem:[%s6041_s28 + $0x1068] sm:$0xff]  ;;  %715 = vst [vmem:[%s6046_s29 + $0x858] sm:$0xff] %v714_v11  ;;  %v720_v14 = vld [vmem:[%s6041_s28 + $0x1070] sm:$0xff] }
  0x96   : > { %717 = vst [vmem:[%s6046_s29 + $0x860] sm:$0xff] %v716_v12  ;;  %719 = vst [vmem:[%s6046_s29 + $0x868] sm:$0xff] %v718_v13  ;;  %v722_v15 = vld [vmem:[%s6041_s28 + $0x1078] sm:$0xff]  ;;  %v724_v16 = vld [vmem:[%s6041_s28 + $0x1100] sm:$0xff] }
  0x97   : > { %721 = vst [vmem:[%s6046_s29 + $0x870] sm:$0xff] %v720_v14  ;;  %723 = vst [vmem:[%s6046_s29 + $0x878] sm:$0xff] %v722_v15  ;;  %v726_v17 = vld [vmem:[%s6041_s28 + $0x1108] sm:$0xff]  ;;  %v728_v18 = vld [vmem:[%s6041_s28 + $0x1110] sm:$0xff] }
  0x98   : > { %725 = vst [vmem:[%s6046_s29 + $0x880] sm:$0xff] %v724_v16  ;;  %v730_v19 = vld [vmem:[%s6041_s28 + $0x1118] sm:$0xff]  ;;  %727 = vst [vmem:[%s6046_s29 + $0x888] sm:$0xff] %v726_v17  ;;  %v732_v20 = vld [vmem:[%s6041_s28 + $0x1120] sm:$0xff] }
  0x99   : > { %729 = vst [vmem:[%s6046_s29 + $0x890] sm:$0xff] %v728_v18  ;;  %731 = vst [vmem:[%s6046_s29 + $0x898] sm:$0xff] %v730_v19  ;;  %v734_v21 = vld [vmem:[%s6041_s28 + $0x1128] sm:$0xff]  ;;  %v736_v22 = vld [vmem:[%s6041_s28 + $0x1130] sm:$0xff] }
  0x9a   : > { %733 = vst [vmem:[%s6046_s29 + $0x8a0] sm:$0xff] %v732_v20  ;;  %735 = vst [vmem:[%s6046_s29 + $0x8a8] sm:$0xff] %v734_v21  ;;  %v738_v23 = vld [vmem:[%s6041_s28 + $0x1138] sm:$0xff]  ;;  %v740_v24 = vld [vmem:[%s6041_s28 + $0x1140] sm:$0xff] }
  0x9b   : > { %737 = vst [vmem:[%s6046_s29 + $0x8b0] sm:$0xff] %v736_v22  ;;  %v742_v25 = vld [vmem:[%s6041_s28 + $0x1148] sm:$0xff]  ;;  %739 = vst [vmem:[%s6046_s29 + $0x8b8] sm:$0xff] %v738_v23  ;;  %v744_v26 = vld [vmem:[%s6041_s28 + $0x1150] sm:$0xff] }
  0x9c   : > { %741 = vst [vmem:[%s6046_s29 + $0x8c0] sm:$0xff] %v740_v24  ;;  %743 = vst [vmem:[%s6046_s29 + $0x8c8] sm:$0xff] %v742_v25  ;;  %v746_v27 = vld [vmem:[%s6041_s28 + $0x1158] sm:$0xff]  ;;  %v748_v28 = vld [vmem:[%s6041_s28 + $0x1160] sm:$0xff] }
  0x9d   : > { %745 = vst [vmem:[%s6046_s29 + $0x8d0] sm:$0xff] %v744_v26  ;;  %747 = vst [vmem:[%s6046_s29 + $0x8d8] sm:$0xff] %v746_v27  ;;  %v750_v29 = vld [vmem:[%s6041_s28 + $0x1168] sm:$0xff]  ;;  %v752_v30 = vld [vmem:[%s6041_s28 + $0x1170] sm:$0xff] }
  0x9e   : > { %749 = vst [vmem:[%s6046_s29 + $0x8e0] sm:$0xff] %v748_v28  ;;  %v754_v31 = vld [vmem:[%s6041_s28 + $0x1178] sm:$0xff]  ;;  %751 = vst [vmem:[%s6046_s29 + $0x8e8] sm:$0xff] %v750_v29  ;;  %v756_v32 = vld [vmem:[%s6041_s28 + $0x1200] sm:$0xff] }
  0x9f   : > { %753 = vst [vmem:[%s6046_s29 + $0x8f0] sm:$0xff] %v752_v30  ;;  %755 = vst [vmem:[%s6046_s29 + $0x8f8] sm:$0xff] %v754_v31  ;;  %v758_v33 = vld [vmem:[%s6041_s28 + $0x1208] sm:$0xff]  ;;  %v760_v34 = vld [vmem:[%s6041_s28 + $0x1210] sm:$0xff] }
  0xa0   : > { %757 = vst [vmem:[%s6046_s29 + $0x900] sm:$0xff] %v756_v32  ;;  %759 = vst [vmem:[%s6046_s29 + $0x908] sm:$0xff] %v758_v33  ;;  %v762_v35 = vld [vmem:[%s6041_s28 + $0x1218] sm:$0xff]  ;;  %v764_v36 = vld [vmem:[%s6041_s28 + $0x1220] sm:$0xff] }
  0xa1   : > { %761 = vst [vmem:[%s6046_s29 + $0x910] sm:$0xff] %v760_v34  ;;  %v766_v37 = vld [vmem:[%s6041_s28 + $0x1228] sm:$0xff]  ;;  %763 = vst [vmem:[%s6046_s29 + $0x918] sm:$0xff] %v762_v35  ;;  %v768_v38 = vld [vmem:[%s6041_s28 + $0x1230] sm:$0xff] }
  0xa2   : > { %765 = vst [vmem:[%s6046_s29 + $0x920] sm:$0xff] %v764_v36  ;;  %767 = vst [vmem:[%s6046_s29 + $0x928] sm:$0xff] %v766_v37  ;;  %v770_v39 = vld [vmem:[%s6041_s28 + $0x1238] sm:$0xff]  ;;  %v772_v40 = vld [vmem:[%s6041_s28 + $0x1240] sm:$0xff] }
  0xa3   : > { %769 = vst [vmem:[%s6046_s29 + $0x930] sm:$0xff] %v768_v38  ;;  %771 = vst [vmem:[%s6046_s29 + $0x938] sm:$0xff] %v770_v39  ;;  %v774_v41 = vld [vmem:[%s6041_s28 + $0x1248] sm:$0xff]  ;;  %v776_v42 = vld [vmem:[%s6041_s28 + $0x1250] sm:$0xff] }
  0xa4   : > { %773 = vst [vmem:[%s6046_s29 + $0x940] sm:$0xff] %v772_v40  ;;  %v778_v43 = vld [vmem:[%s6041_s28 + $0x1258] sm:$0xff]  ;;  %775 = vst [vmem:[%s6046_s29 + $0x948] sm:$0xff] %v774_v41  ;;  %v780_v44 = vld [vmem:[%s6041_s28 + $0x1260] sm:$0xff] }
  0xa5   : > { %777 = vst [vmem:[%s6046_s29 + $0x950] sm:$0xff] %v776_v42  ;;  %779 = vst [vmem:[%s6046_s29 + $0x958] sm:$0xff] %v778_v43  ;;  %v782_v45 = vld [vmem:[%s6041_s28 + $0x1268] sm:$0xff]  ;;  %v784_v46 = vld [vmem:[%s6041_s28 + $0x1270] sm:$0xff] }
  0xa6   : > { %781 = vst [vmem:[%s6046_s29 + $0x960] sm:$0xff] %v780_v44  ;;  %783 = vst [vmem:[%s6046_s29 + $0x968] sm:$0xff] %v782_v45  ;;  %v786_v47 = vld [vmem:[%s6041_s28 + $0x1278] sm:$0xff]  ;;  %v788_v48 = vld [vmem:[%s6041_s28 + $0x1300] sm:$0xff] }
  0xa7   : > { %785 = vst [vmem:[%s6046_s29 + $0x970] sm:$0xff] %v784_v46  ;;  %v790_v49 = vld [vmem:[%s6041_s28 + $0x1308] sm:$0xff]  ;;  %787 = vst [vmem:[%s6046_s29 + $0x978] sm:$0xff] %v786_v47  ;;  %v792_v50 = vld [vmem:[%s6041_s28 + $0x1310] sm:$0xff] }
  0xa8   : > { %789 = vst [vmem:[%s6046_s29 + $0x980] sm:$0xff] %v788_v48  ;;  %791 = vst [vmem:[%s6046_s29 + $0x988] sm:$0xff] %v790_v49  ;;  %v794_v51 = vld [vmem:[%s6041_s28 + $0x1318] sm:$0xff]  ;;  %v796_v52 = vld [vmem:[%s6041_s28 + $0x1320] sm:$0xff] }
  0xa9   : > { %793 = vst [vmem:[%s6046_s29 + $0x990] sm:$0xff] %v792_v50  ;;  %795 = vst [vmem:[%s6046_s29 + $0x998] sm:$0xff] %v794_v51  ;;  %v798_v53 = vld [vmem:[%s6041_s28 + $0x1328] sm:$0xff]  ;;  %v800_v54 = vld [vmem:[%s6041_s28 + $0x1330] sm:$0xff] }
  0xaa   : > { %797 = vst [vmem:[%s6046_s29 + $0x9a0] sm:$0xff] %v796_v52  ;;  %v802_v55 = vld [vmem:[%s6041_s28 + $0x1338] sm:$0xff]  ;;  %799 = vst [vmem:[%s6046_s29 + $0x9a8] sm:$0xff] %v798_v53  ;;  %v804_v56 = vld [vmem:[%s6041_s28 + $0x1340] sm:$0xff] }
  0xab   : > { %801 = vst [vmem:[%s6046_s29 + $0x9b0] sm:$0xff] %v800_v54  ;;  %803 = vst [vmem:[%s6046_s29 + $0x9b8] sm:$0xff] %v802_v55  ;;  %v806_v57 = vld [vmem:[%s6041_s28 + $0x1348] sm:$0xff]  ;;  %v808_v58 = vld [vmem:[%s6041_s28 + $0x1350] sm:$0xff] }
  0xac   : > { %805 = vst [vmem:[%s6046_s29 + $0x9c0] sm:$0xff] %v804_v56  ;;  %807 = vst [vmem:[%s6046_s29 + $0x9c8] sm:$0xff] %v806_v57  ;;  %v810_v59 = vld [vmem:[%s6041_s28 + $0x1358] sm:$0xff]  ;;  %v812_v60 = vld [vmem:[%s6041_s28 + $0x1360] sm:$0xff] }
  0xad   : > { %809 = vst [vmem:[%s6046_s29 + $0x9d0] sm:$0xff] %v808_v58  ;;  %v814_v61 = vld [vmem:[%s6041_s28 + $0x1368] sm:$0xff]  ;;  %811 = vst [vmem:[%s6046_s29 + $0x9d8] sm:$0xff] %v810_v59  ;;  %v816_v62 = vld [vmem:[%s6041_s28 + $0x1370] sm:$0xff] }
  0xae   : > { %813 = vst [vmem:[%s6046_s29 + $0x9e0] sm:$0xff] %v812_v60  ;;  %815 = vst [vmem:[%s6046_s29 + $0x9e8] sm:$0xff] %v814_v61  ;;  %v818_v63 = vld [vmem:[%s6041_s28 + $0x1378] sm:$0xff]  ;;  %v820_v0 = vld [vmem:[%s6041_s28 + $0x1400] sm:$0xff] }
  0xaf   : > { %817 = vst [vmem:[%s6046_s29 + $0x9f0] sm:$0xff] %v816_v62  ;;  %819 = vst [vmem:[%s6046_s29 + $0x9f8] sm:$0xff] %v818_v63  ;;  %v822_v1 = vld [vmem:[%s6041_s28 + $0x1408] sm:$0xff]  ;;  %v824_v2 = vld [vmem:[%s6041_s28 + $0x1410] sm:$0xff] }
  0xb0   : > { %821 = vst [vmem:[%s6046_s29 + $0xa00] sm:$0xff] %v820_v0  ;;  %v826_v3 = vld [vmem:[%s6041_s28 + $0x1418] sm:$0xff]  ;;  %823 = vst [vmem:[%s6046_s29 + $0xa08] sm:$0xff] %v822_v1  ;;  %v828_v4 = vld [vmem:[%s6041_s28 + $0x1420] sm:$0xff] }
  0xb1   : > { %825 = vst [vmem:[%s6046_s29 + $0xa10] sm:$0xff] %v824_v2  ;;  %827 = vst [vmem:[%s6046_s29 + $0xa18] sm:$0xff] %v826_v3  ;;  %v830_v5 = vld [vmem:[%s6041_s28 + $0x1428] sm:$0xff]  ;;  %v832_v6 = vld [vmem:[%s6041_s28 + $0x1430] sm:$0xff] }
  0xb2   : > { %829 = vst [vmem:[%s6046_s29 + $0xa20] sm:$0xff] %v828_v4  ;;  %831 = vst [vmem:[%s6046_s29 + $0xa28] sm:$0xff] %v830_v5  ;;  %v834_v7 = vld [vmem:[%s6041_s28 + $0x1438] sm:$0xff]  ;;  %v836_v8 = vld [vmem:[%s6041_s28 + $0x1440] sm:$0xff] }
  0xb3   : > { %833 = vst [vmem:[%s6046_s29 + $0xa30] sm:$0xff] %v832_v6  ;;  %v838_v9 = vld [vmem:[%s6041_s28 + $0x1448] sm:$0xff]  ;;  %835 = vst [vmem:[%s6046_s29 + $0xa38] sm:$0xff] %v834_v7  ;;  %v840_v10 = vld [vmem:[%s6041_s28 + $0x1450] sm:$0xff] }
  0xb4   : > { %837 = vst [vmem:[%s6046_s29 + $0xa40] sm:$0xff] %v836_v8  ;;  %839 = vst [vmem:[%s6046_s29 + $0xa48] sm:$0xff] %v838_v9  ;;  %v842_v11 = vld [vmem:[%s6041_s28 + $0x1458] sm:$0xff]  ;;  %v844_v12 = vld [vmem:[%s6041_s28 + $0x1460] sm:$0xff] }
  0xb5   : > { %841 = vst [vmem:[%s6046_s29 + $0xa50] sm:$0xff] %v840_v10  ;;  %843 = vst [vmem:[%s6046_s29 + $0xa58] sm:$0xff] %v842_v11  ;;  %v846_v13 = vld [vmem:[%s6041_s28 + $0x1468] sm:$0xff]  ;;  %v848_v14 = vld [vmem:[%s6041_s28 + $0x1470] sm:$0xff] }
  0xb6   : > { %845 = vst [vmem:[%s6046_s29 + $0xa60] sm:$0xff] %v844_v12  ;;  %v850_v15 = vld [vmem:[%s6041_s28 + $0x1478] sm:$0xff]  ;;  %847 = vst [vmem:[%s6046_s29 + $0xa68] sm:$0xff] %v846_v13  ;;  %v852_v16 = vld [vmem:[%s6041_s28 + $0x1500] sm:$0xff] }
  0xb7   : > { %849 = vst [vmem:[%s6046_s29 + $0xa70] sm:$0xff] %v848_v14  ;;  %851 = vst [vmem:[%s6046_s29 + $0xa78] sm:$0xff] %v850_v15  ;;  %v854_v17 = vld [vmem:[%s6041_s28 + $0x1508] sm:$0xff]  ;;  %v856_v18 = vld [vmem:[%s6041_s28 + $0x1510] sm:$0xff] }
  0xb8   : > { %853 = vst [vmem:[%s6046_s29 + $0xa80] sm:$0xff] %v852_v16  ;;  %855 = vst [vmem:[%s6046_s29 + $0xa88] sm:$0xff] %v854_v17  ;;  %v858_v19 = vld [vmem:[%s6041_s28 + $0x1518] sm:$0xff]  ;;  %v860_v20 = vld [vmem:[%s6041_s28 + $0x1520] sm:$0xff] }
  0xb9   : > { %857 = vst [vmem:[%s6046_s29 + $0xa90] sm:$0xff] %v856_v18  ;;  %v862_v21 = vld [vmem:[%s6041_s28 + $0x1528] sm:$0xff]  ;;  %859 = vst [vmem:[%s6046_s29 + $0xa98] sm:$0xff] %v858_v19  ;;  %v864_v22 = vld [vmem:[%s6041_s28 + $0x1530] sm:$0xff] }
  0xba   : > { %861 = vst [vmem:[%s6046_s29 + $0xaa0] sm:$0xff] %v860_v20  ;;  %863 = vst [vmem:[%s6046_s29 + $0xaa8] sm:$0xff] %v862_v21  ;;  %v866_v23 = vld [vmem:[%s6041_s28 + $0x1538] sm:$0xff]  ;;  %v868_v24 = vld [vmem:[%s6041_s28 + $0x1540] sm:$0xff] }
  0xbb   : > { %865 = vst [vmem:[%s6046_s29 + $0xab0] sm:$0xff] %v864_v22  ;;  %867 = vst [vmem:[%s6046_s29 + $0xab8] sm:$0xff] %v866_v23  ;;  %v870_v25 = vld [vmem:[%s6041_s28 + $0x1548] sm:$0xff]  ;;  %v872_v26 = vld [vmem:[%s6041_s28 + $0x1550] sm:$0xff] }
  0xbc   : > { %869 = vst [vmem:[%s6046_s29 + $0xac0] sm:$0xff] %v868_v24  ;;  %v874_v27 = vld [vmem:[%s6041_s28 + $0x1558] sm:$0xff]  ;;  %871 = vst [vmem:[%s6046_s29 + $0xac8] sm:$0xff] %v870_v25  ;;  %v876_v28 = vld [vmem:[%s6041_s28 + $0x1560] sm:$0xff] }
  0xbd   : > { %873 = vst [vmem:[%s6046_s29 + $0xad0] sm:$0xff] %v872_v26  ;;  %875 = vst [vmem:[%s6046_s29 + $0xad8] sm:$0xff] %v874_v27  ;;  %v878_v29 = vld [vmem:[%s6041_s28 + $0x1568] sm:$0xff]  ;;  %v880_v30 = vld [vmem:[%s6041_s28 + $0x1570] sm:$0xff] }
  0xbe   : > { %877 = vst [vmem:[%s6046_s29 + $0xae0] sm:$0xff] %v876_v28  ;;  %879 = vst [vmem:[%s6046_s29 + $0xae8] sm:$0xff] %v878_v29  ;;  %v882_v31 = vld [vmem:[%s6041_s28 + $0x1578] sm:$0xff]  ;;  %v884_v32 = vld [vmem:[%s6041_s28 + $0x1600] sm:$0xff] }
  0xbf   : > { %881 = vst [vmem:[%s6046_s29 + $0xaf0] sm:$0xff] %v880_v30  ;;  %v886_v33 = vld [vmem:[%s6041_s28 + $0x1608] sm:$0xff]  ;;  %883 = vst [vmem:[%s6046_s29 + $0xaf8] sm:$0xff] %v882_v31  ;;  %v888_v34 = vld [vmem:[%s6041_s28 + $0x1610] sm:$0xff] }
  0xc0   : > { %885 = vst [vmem:[%s6046_s29 + $0xb00] sm:$0xff] %v884_v32  ;;  %887 = vst [vmem:[%s6046_s29 + $0xb08] sm:$0xff] %v886_v33  ;;  %v890_v35 = vld [vmem:[%s6041_s28 + $0x1618] sm:$0xff]  ;;  %v892_v36 = vld [vmem:[%s6041_s28 + $0x1620] sm:$0xff] }
  0xc1   : > { %889 = vst [vmem:[%s6046_s29 + $0xb10] sm:$0xff] %v888_v34  ;;  %891 = vst [vmem:[%s6046_s29 + $0xb18] sm:$0xff] %v890_v35  ;;  %v894_v37 = vld [vmem:[%s6041_s28 + $0x1628] sm:$0xff]  ;;  %v896_v38 = vld [vmem:[%s6041_s28 + $0x1630] sm:$0xff] }
  0xc2   : > { %893 = vst [vmem:[%s6046_s29 + $0xb20] sm:$0xff] %v892_v36  ;;  %v898_v39 = vld [vmem:[%s6041_s28 + $0x1638] sm:$0xff]  ;;  %895 = vst [vmem:[%s6046_s29 + $0xb28] sm:$0xff] %v894_v37  ;;  %v900_v40 = vld [vmem:[%s6041_s28 + $0x1640] sm:$0xff] }
  0xc3   : > { %897 = vst [vmem:[%s6046_s29 + $0xb30] sm:$0xff] %v896_v38  ;;  %899 = vst [vmem:[%s6046_s29 + $0xb38] sm:$0xff] %v898_v39  ;;  %v902_v41 = vld [vmem:[%s6041_s28 + $0x1648] sm:$0xff]  ;;  %v904_v42 = vld [vmem:[%s6041_s28 + $0x1650] sm:$0xff] }
  0xc4   : > { %901 = vst [vmem:[%s6046_s29 + $0xb40] sm:$0xff] %v900_v40  ;;  %903 = vst [vmem:[%s6046_s29 + $0xb48] sm:$0xff] %v902_v41  ;;  %v906_v43 = vld [vmem:[%s6041_s28 + $0x1658] sm:$0xff]  ;;  %v908_v44 = vld [vmem:[%s6041_s28 + $0x1660] sm:$0xff] }
  0xc5   : > { %905 = vst [vmem:[%s6046_s29 + $0xb50] sm:$0xff] %v904_v42  ;;  %v910_v45 = vld [vmem:[%s6041_s28 + $0x1668] sm:$0xff]  ;;  %907 = vst [vmem:[%s6046_s29 + $0xb58] sm:$0xff] %v906_v43  ;;  %v912_v46 = vld [vmem:[%s6041_s28 + $0x1670] sm:$0xff] }
  0xc6   : > { %909 = vst [vmem:[%s6046_s29 + $0xb60] sm:$0xff] %v908_v44  ;;  %911 = vst [vmem:[%s6046_s29 + $0xb68] sm:$0xff] %v910_v45  ;;  %v914_v47 = vld [vmem:[%s6041_s28 + $0x1678] sm:$0xff]  ;;  %v916_v48 = vld [vmem:[%s6041_s28 + $0x1700] sm:$0xff] }
  0xc7   : > { %913 = vst [vmem:[%s6046_s29 + $0xb70] sm:$0xff] %v912_v46  ;;  %915 = vst [vmem:[%s6046_s29 + $0xb78] sm:$0xff] %v914_v47  ;;  %v918_v49 = vld [vmem:[%s6041_s28 + $0x1708] sm:$0xff]  ;;  %v920_v50 = vld [vmem:[%s6041_s28 + $0x1710] sm:$0xff] }
  0xc8   : > { %917 = vst [vmem:[%s6046_s29 + $0xb80] sm:$0xff] %v916_v48  ;;  %v922_v51 = vld [vmem:[%s6041_s28 + $0x1718] sm:$0xff]  ;;  %919 = vst [vmem:[%s6046_s29 + $0xb88] sm:$0xff] %v918_v49  ;;  %v924_v52 = vld [vmem:[%s6041_s28 + $0x1720] sm:$0xff] }
  0xc9   : > { %921 = vst [vmem:[%s6046_s29 + $0xb90] sm:$0xff] %v920_v50  ;;  %923 = vst [vmem:[%s6046_s29 + $0xb98] sm:$0xff] %v922_v51  ;;  %v926_v53 = vld [vmem:[%s6041_s28 + $0x1728] sm:$0xff]  ;;  %v928_v54 = vld [vmem:[%s6041_s28 + $0x1730] sm:$0xff] }
  0xca   : > { %925 = vst [vmem:[%s6046_s29 + $0xba0] sm:$0xff] %v924_v52  ;;  %927 = vst [vmem:[%s6046_s29 + $0xba8] sm:$0xff] %v926_v53  ;;  %v930_v55 = vld [vmem:[%s6041_s28 + $0x1738] sm:$0xff]  ;;  %v932_v56 = vld [vmem:[%s6041_s28 + $0x1740] sm:$0xff] }
  0xcb   : > { %929 = vst [vmem:[%s6046_s29 + $0xbb0] sm:$0xff] %v928_v54  ;;  %v934_v57 = vld [vmem:[%s6041_s28 + $0x1748] sm:$0xff]  ;;  %931 = vst [vmem:[%s6046_s29 + $0xbb8] sm:$0xff] %v930_v55  ;;  %v936_v58 = vld [vmem:[%s6041_s28 + $0x1750] sm:$0xff] }
  0xcc   : > { %933 = vst [vmem:[%s6046_s29 + $0xbc0] sm:$0xff] %v932_v56  ;;  %935 = vst [vmem:[%s6046_s29 + $0xbc8] sm:$0xff] %v934_v57  ;;  %v938_v59 = vld [vmem:[%s6041_s28 + $0x1758] sm:$0xff]  ;;  %v940_v60 = vld [vmem:[%s6041_s28 + $0x1760] sm:$0xff] }
  0xcd   : > { %937 = vst [vmem:[%s6046_s29 + $0xbd0] sm:$0xff] %v936_v58  ;;  %939 = vst [vmem:[%s6046_s29 + $0xbd8] sm:$0xff] %v938_v59  ;;  %v942_v61 = vld [vmem:[%s6041_s28 + $0x1768] sm:$0xff]  ;;  %v944_v62 = vld [vmem:[%s6041_s28 + $0x1770] sm:$0xff] }
  0xce   : > { %941 = vst [vmem:[%s6046_s29 + $0xbe0] sm:$0xff] %v940_v60  ;;  %v946_v63 = vld [vmem:[%s6041_s28 + $0x1778] sm:$0xff]  ;;  %943 = vst [vmem:[%s6046_s29 + $0xbe8] sm:$0xff] %v942_v61  ;;  %v948_v0 = vld [vmem:[%s6041_s28 + $0x1800] sm:$0xff] }
  0xcf   : > { %945 = vst [vmem:[%s6046_s29 + $0xbf0] sm:$0xff] %v944_v62  ;;  %947 = vst [vmem:[%s6046_s29 + $0xbf8] sm:$0xff] %v946_v63  ;;  %v950_v1 = vld [vmem:[%s6041_s28 + $0x1808] sm:$0xff]  ;;  %v952_v2 = vld [vmem:[%s6041_s28 + $0x1810] sm:$0xff] }
  0xd0   : > { %949 = vst [vmem:[%s6046_s29 + $0xc00] sm:$0xff] %v948_v0  ;;  %951 = vst [vmem:[%s6046_s29 + $0xc08] sm:$0xff] %v950_v1  ;;  %v954_v3 = vld [vmem:[%s6041_s28 + $0x1818] sm:$0xff]  ;;  %v956_v4 = vld [vmem:[%s6041_s28 + $0x1820] sm:$0xff] }
  0xd1   : > { %953 = vst [vmem:[%s6046_s29 + $0xc10] sm:$0xff] %v952_v2  ;;  %v958_v5 = vld [vmem:[%s6041_s28 + $0x1828] sm:$0xff]  ;;  %955 = vst [vmem:[%s6046_s29 + $0xc18] sm:$0xff] %v954_v3  ;;  %v960_v6 = vld [vmem:[%s6041_s28 + $0x1830] sm:$0xff] }
  0xd2   : > { %957 = vst [vmem:[%s6046_s29 + $0xc20] sm:$0xff] %v956_v4  ;;  %959 = vst [vmem:[%s6046_s29 + $0xc28] sm:$0xff] %v958_v5  ;;  %v962_v7 = vld [vmem:[%s6041_s28 + $0x1838] sm:$0xff]  ;;  %v964_v8 = vld [vmem:[%s6041_s28 + $0x1840] sm:$0xff] }
  0xd3   : > { %961 = vst [vmem:[%s6046_s29 + $0xc30] sm:$0xff] %v960_v6  ;;  %963 = vst [vmem:[%s6046_s29 + $0xc38] sm:$0xff] %v962_v7  ;;  %v966_v9 = vld [vmem:[%s6041_s28 + $0x1848] sm:$0xff]  ;;  %v968_v10 = vld [vmem:[%s6041_s28 + $0x1850] sm:$0xff] }
  0xd4   : > { %965 = vst [vmem:[%s6046_s29 + $0xc40] sm:$0xff] %v964_v8  ;;  %v970_v11 = vld [vmem:[%s6041_s28 + $0x1858] sm:$0xff]  ;;  %967 = vst [vmem:[%s6046_s29 + $0xc48] sm:$0xff] %v966_v9  ;;  %v972_v12 = vld [vmem:[%s6041_s28 + $0x1860] sm:$0xff] }
  0xd5   : > { %969 = vst [vmem:[%s6046_s29 + $0xc50] sm:$0xff] %v968_v10  ;;  %971 = vst [vmem:[%s6046_s29 + $0xc58] sm:$0xff] %v970_v11  ;;  %v974_v13 = vld [vmem:[%s6041_s28 + $0x1868] sm:$0xff]  ;;  %v976_v14 = vld [vmem:[%s6041_s28 + $0x1870] sm:$0xff] }
  0xd6   : > { %973 = vst [vmem:[%s6046_s29 + $0xc60] sm:$0xff] %v972_v12  ;;  %975 = vst [vmem:[%s6046_s29 + $0xc68] sm:$0xff] %v974_v13  ;;  %v978_v15 = vld [vmem:[%s6041_s28 + $0x1878] sm:$0xff]  ;;  %v980_v16 = vld [vmem:[%s6041_s28 + $0x1900] sm:$0xff] }
  0xd7   : > { %977 = vst [vmem:[%s6046_s29 + $0xc70] sm:$0xff] %v976_v14  ;;  %v982_v17 = vld [vmem:[%s6041_s28 + $0x1908] sm:$0xff]  ;;  %979 = vst [vmem:[%s6046_s29 + $0xc78] sm:$0xff] %v978_v15  ;;  %v984_v18 = vld [vmem:[%s6041_s28 + $0x1910] sm:$0xff] }
  0xd8   : > { %981 = vst [vmem:[%s6046_s29 + $0xc80] sm:$0xff] %v980_v16  ;;  %983 = vst [vmem:[%s6046_s29 + $0xc88] sm:$0xff] %v982_v17  ;;  %v986_v19 = vld [vmem:[%s6041_s28 + $0x1918] sm:$0xff]  ;;  %v988_v20 = vld [vmem:[%s6041_s28 + $0x1920] sm:$0xff] }
  0xd9   : > { %985 = vst [vmem:[%s6046_s29 + $0xc90] sm:$0xff] %v984_v18  ;;  %987 = vst [vmem:[%s6046_s29 + $0xc98] sm:$0xff] %v986_v19  ;;  %v990_v21 = vld [vmem:[%s6041_s28 + $0x1928] sm:$0xff]  ;;  %v992_v22 = vld [vmem:[%s6041_s28 + $0x1930] sm:$0xff] }
  0xda   : > { %989 = vst [vmem:[%s6046_s29 + $0xca0] sm:$0xff] %v988_v20  ;;  %v994_v23 = vld [vmem:[%s6041_s28 + $0x1938] sm:$0xff]  ;;  %991 = vst [vmem:[%s6046_s29 + $0xca8] sm:$0xff] %v990_v21  ;;  %v996_v24 = vld [vmem:[%s6041_s28 + $0x1940] sm:$0xff] }
  0xdb   : > { %993 = vst [vmem:[%s6046_s29 + $0xcb0] sm:$0xff] %v992_v22  ;;  %995 = vst [vmem:[%s6046_s29 + $0xcb8] sm:$0xff] %v994_v23  ;;  %v998_v25 = vld [vmem:[%s6041_s28 + $0x1948] sm:$0xff]  ;;  %v1000_v26 = vld [vmem:[%s6041_s28 + $0x1950] sm:$0xff] }
  0xdc   : > { %997 = vst [vmem:[%s6046_s29 + $0xcc0] sm:$0xff] %v996_v24  ;;  %999 = vst [vmem:[%s6046_s29 + $0xcc8] sm:$0xff] %v998_v25  ;;  %v1002_v27 = vld [vmem:[%s6041_s28 + $0x1958] sm:$0xff]  ;;  %v1004_v28 = vld [vmem:[%s6041_s28 + $0x1960] sm:$0xff] }
  0xdd   : > { %1001 = vst [vmem:[%s6046_s29 + $0xcd0] sm:$0xff] %v1000_v26  ;;  %v1006_v29 = vld [vmem:[%s6041_s28 + $0x1968] sm:$0xff]  ;;  %1003 = vst [vmem:[%s6046_s29 + $0xcd8] sm:$0xff] %v1002_v27  ;;  %v1008_v30 = vld [vmem:[%s6041_s28 + $0x1970] sm:$0xff] }
  0xde   : > { %1005 = vst [vmem:[%s6046_s29 + $0xce0] sm:$0xff] %v1004_v28  ;;  %1007 = vst [vmem:[%s6046_s29 + $0xce8] sm:$0xff] %v1006_v29  ;;  %v1010_v31 = vld [vmem:[%s6041_s28 + $0x1978] sm:$0xff]  ;;  %v1012_v32 = vld [vmem:[%s6041_s28 + $0x1a00] sm:$0xff] }
  0xdf   : > { %1009 = vst [vmem:[%s6046_s29 + $0xcf0] sm:$0xff] %v1008_v30  ;;  %1011 = vst [vmem:[%s6046_s29 + $0xcf8] sm:$0xff] %v1010_v31  ;;  %v1014_v33 = vld [vmem:[%s6041_s28 + $0x1a08] sm:$0xff]  ;;  %v1016_v34 = vld [vmem:[%s6041_s28 + $0x1a10] sm:$0xff] }
  0xe0   : > { %1013 = vst [vmem:[%s6046_s29 + $0xd00] sm:$0xff] %v1012_v32  ;;  %v1018_v35 = vld [vmem:[%s6041_s28 + $0x1a18] sm:$0xff]  ;;  %1015 = vst [vmem:[%s6046_s29 + $0xd08] sm:$0xff] %v1014_v33  ;;  %v1020_v36 = vld [vmem:[%s6041_s28 + $0x1a20] sm:$0xff] }
  0xe1   : > { %1017 = vst [vmem:[%s6046_s29 + $0xd10] sm:$0xff] %v1016_v34  ;;  %1019 = vst [vmem:[%s6046_s29 + $0xd18] sm:$0xff] %v1018_v35  ;;  %v1022_v37 = vld [vmem:[%s6041_s28 + $0x1a28] sm:$0xff]  ;;  %v1024_v38 = vld [vmem:[%s6041_s28 + $0x1a30] sm:$0xff] }
  0xe2   : > { %1021 = vst [vmem:[%s6046_s29 + $0xd20] sm:$0xff] %v1020_v36  ;;  %1023 = vst [vmem:[%s6046_s29 + $0xd28] sm:$0xff] %v1022_v37  ;;  %v1026_v39 = vld [vmem:[%s6041_s28 + $0x1a38] sm:$0xff]  ;;  %v1028_v40 = vld [vmem:[%s6041_s28 + $0x1a40] sm:$0xff] }
  0xe3   : > { %1025 = vst [vmem:[%s6046_s29 + $0xd30] sm:$0xff] %v1024_v38  ;;  %v1030_v41 = vld [vmem:[%s6041_s28 + $0x1a48] sm:$0xff]  ;;  %1027 = vst [vmem:[%s6046_s29 + $0xd38] sm:$0xff] %v1026_v39  ;;  %v1032_v42 = vld [vmem:[%s6041_s28 + $0x1a50] sm:$0xff] }
  0xe4   : > { %1029 = vst [vmem:[%s6046_s29 + $0xd40] sm:$0xff] %v1028_v40  ;;  %1031 = vst [vmem:[%s6046_s29 + $0xd48] sm:$0xff] %v1030_v41  ;;  %v1034_v43 = vld [vmem:[%s6041_s28 + $0x1a58] sm:$0xff]  ;;  %v1036_v44 = vld [vmem:[%s6041_s28 + $0x1a60] sm:$0xff] }
  0xe5   : > { %1033 = vst [vmem:[%s6046_s29 + $0xd50] sm:$0xff] %v1032_v42  ;;  %1035 = vst [vmem:[%s6046_s29 + $0xd58] sm:$0xff] %v1034_v43  ;;  %v1038_v45 = vld [vmem:[%s6041_s28 + $0x1a68] sm:$0xff]  ;;  %v1040_v46 = vld [vmem:[%s6041_s28 + $0x1a70] sm:$0xff] }
  0xe6   : > { %1037 = vst [vmem:[%s6046_s29 + $0xd60] sm:$0xff] %v1036_v44  ;;  %v1042_v47 = vld [vmem:[%s6041_s28 + $0x1a78] sm:$0xff]  ;;  %1039 = vst [vmem:[%s6046_s29 + $0xd68] sm:$0xff] %v1038_v45  ;;  %v1044_v48 = vld [vmem:[%s6041_s28 + $0x1b00] sm:$0xff] }
  0xe7   : > { %1041 = vst [vmem:[%s6046_s29 + $0xd70] sm:$0xff] %v1040_v46  ;;  %1043 = vst [vmem:[%s6046_s29 + $0xd78] sm:$0xff] %v1042_v47  ;;  %v1046_v49 = vld [vmem:[%s6041_s28 + $0x1b08] sm:$0xff]  ;;  %v1048_v50 = vld [vmem:[%s6041_s28 + $0x1b10] sm:$0xff] }
  0xe8   : > { %1045 = vst [vmem:[%s6046_s29 + $0xd80] sm:$0xff] %v1044_v48  ;;  %1047 = vst [vmem:[%s6046_s29 + $0xd88] sm:$0xff] %v1046_v49  ;;  %v1050_v51 = vld [vmem:[%s6041_s28 + $0x1b18] sm:$0xff]  ;;  %v1052_v52 = vld [vmem:[%s6041_s28 + $0x1b20] sm:$0xff] }
  0xe9   : > { %1049 = vst [vmem:[%s6046_s29 + $0xd90] sm:$0xff] %v1048_v50  ;;  %v1054_v53 = vld [vmem:[%s6041_s28 + $0x1b28] sm:$0xff]  ;;  %1051 = vst [vmem:[%s6046_s29 + $0xd98] sm:$0xff] %v1050_v51  ;;  %v1056_v54 = vld [vmem:[%s6041_s28 + $0x1b30] sm:$0xff] }
  0xea   : > { %1053 = vst [vmem:[%s6046_s29 + $0xda0] sm:$0xff] %v1052_v52  ;;  %1055 = vst [vmem:[%s6046_s29 + $0xda8] sm:$0xff] %v1054_v53  ;;  %v1058_v55 = vld [vmem:[%s6041_s28 + $0x1b38] sm:$0xff]  ;;  %v1060_v56 = vld [vmem:[%s6041_s28 + $0x1b40] sm:$0xff] }
  0xeb   : > { %1057 = vst [vmem:[%s6046_s29 + $0xdb0] sm:$0xff] %v1056_v54  ;;  %1059 = vst [vmem:[%s6046_s29 + $0xdb8] sm:$0xff] %v1058_v55  ;;  %v1062_v57 = vld [vmem:[%s6041_s28 + $0x1b48] sm:$0xff]  ;;  %v1064_v58 = vld [vmem:[%s6041_s28 + $0x1b50] sm:$0xff] }
  0xec   : > { %1061 = vst [vmem:[%s6046_s29 + $0xdc0] sm:$0xff] %v1060_v56  ;;  %v1066_v59 = vld [vmem:[%s6041_s28 + $0x1b58] sm:$0xff]  ;;  %1063 = vst [vmem:[%s6046_s29 + $0xdc8] sm:$0xff] %v1062_v57  ;;  %v1068_v60 = vld [vmem:[%s6041_s28 + $0x1b60] sm:$0xff] }
  0xed   : > { %1065 = vst [vmem:[%s6046_s29 + $0xdd0] sm:$0xff] %v1064_v58  ;;  %1067 = vst [vmem:[%s6046_s29 + $0xdd8] sm:$0xff] %v1066_v59  ;;  %v1070_v61 = vld [vmem:[%s6041_s28 + $0x1b68] sm:$0xff]  ;;  %v1072_v62 = vld [vmem:[%s6041_s28 + $0x1b70] sm:$0xff] }
  0xee   : > { %1069 = vst [vmem:[%s6046_s29 + $0xde0] sm:$0xff] %v1068_v60  ;;  %1071 = vst [vmem:[%s6046_s29 + $0xde8] sm:$0xff] %v1070_v61  ;;  %v1074_v63 = vld [vmem:[%s6041_s28 + $0x1b78] sm:$0xff]  ;;  %v1076_v0 = vld [vmem:[%s6041_s28 + $0x1c00] sm:$0xff] }
  0xef   : > { %1073 = vst [vmem:[%s6046_s29 + $0xdf0] sm:$0xff] %v1072_v62  ;;  %v1078_v1 = vld [vmem:[%s6041_s28 + $0x1c08] sm:$0xff]  ;;  %1075 = vst [vmem:[%s6046_s29 + $0xdf8] sm:$0xff] %v1074_v63  ;;  %v1080_v2 = vld [vmem:[%s6041_s28 + $0x1c10] sm:$0xff] }
  0xf0   : > { %1077 = vst [vmem:[%s6046_s29 + $0xe00] sm:$0xff] %v1076_v0  ;;  %1079 = vst [vmem:[%s6046_s29 + $0xe08] sm:$0xff] %v1078_v1  ;;  %v1082_v3 = vld [vmem:[%s6041_s28 + $0x1c18] sm:$0xff]  ;;  %v1084_v4 = vld [vmem:[%s6041_s28 + $0x1c20] sm:$0xff] }
  0xf1   : > { %1081 = vst [vmem:[%s6046_s29 + $0xe10] sm:$0xff] %v1080_v2  ;;  %1083 = vst [vmem:[%s6046_s29 + $0xe18] sm:$0xff] %v1082_v3  ;;  %v1086_v5 = vld [vmem:[%s6041_s28 + $0x1c28] sm:$0xff]  ;;  %v1088_v6 = vld [vmem:[%s6041_s28 + $0x1c30] sm:$0xff] }
  0xf2   : > { %1085 = vst [vmem:[%s6046_s29 + $0xe20] sm:$0xff] %v1084_v4  ;;  %v1090_v7 = vld [vmem:[%s6041_s28 + $0x1c38] sm:$0xff]  ;;  %1087 = vst [vmem:[%s6046_s29 + $0xe28] sm:$0xff] %v1086_v5  ;;  %v1092_v8 = vld [vmem:[%s6041_s28 + $0x1c40] sm:$0xff] }
  0xf3   : > { %1089 = vst [vmem:[%s6046_s29 + $0xe30] sm:$0xff] %v1088_v6  ;;  %1091 = vst [vmem:[%s6046_s29 + $0xe38] sm:$0xff] %v1090_v7  ;;  %v1094_v9 = vld [vmem:[%s6041_s28 + $0x1c48] sm:$0xff]  ;;  %v1096_v10 = vld [vmem:[%s6041_s28 + $0x1c50] sm:$0xff] }
  0xf4   : > { %1093 = vst [vmem:[%s6046_s29 + $0xe40] sm:$0xff] %v1092_v8  ;;  %1095 = vst [vmem:[%s6046_s29 + $0xe48] sm:$0xff] %v1094_v9  ;;  %v1098_v11 = vld [vmem:[%s6041_s28 + $0x1c58] sm:$0xff]  ;;  %v1100_v12 = vld [vmem:[%s6041_s28 + $0x1c60] sm:$0xff] }
  0xf5   : > { %1097 = vst [vmem:[%s6046_s29 + $0xe50] sm:$0xff] %v1096_v10  ;;  %v1102_v13 = vld [vmem:[%s6041_s28 + $0x1c68] sm:$0xff]  ;;  %1099 = vst [vmem:[%s6046_s29 + $0xe58] sm:$0xff] %v1098_v11  ;;  %v1104_v14 = vld [vmem:[%s6041_s28 + $0x1c70] sm:$0xff] }
  0xf6   : > { %1101 = vst [vmem:[%s6046_s29 + $0xe60] sm:$0xff] %v1100_v12  ;;  %1103 = vst [vmem:[%s6046_s29 + $0xe68] sm:$0xff] %v1102_v13  ;;  %v1106_v15 = vld [vmem:[%s6041_s28 + $0x1c78] sm:$0xff]  ;;  %v1108_v16 = vld [vmem:[%s6041_s28 + $0x1d00] sm:$0xff] }
  0xf7   : > { %1105 = vst [vmem:[%s6046_s29 + $0xe70] sm:$0xff] %v1104_v14  ;;  %1107 = vst [vmem:[%s6046_s29 + $0xe78] sm:$0xff] %v1106_v15  ;;  %v1110_v17 = vld [vmem:[%s6041_s28 + $0x1d08] sm:$0xff]  ;;  %v1112_v18 = vld [vmem:[%s6041_s28 + $0x1d10] sm:$0xff] }
  0xf8   : > { %1109 = vst [vmem:[%s6046_s29 + $0xe80] sm:$0xff] %v1108_v16  ;;  %v1114_v19 = vld [vmem:[%s6041_s28 + $0x1d18] sm:$0xff]  ;;  %1111 = vst [vmem:[%s6046_s29 + $0xe88] sm:$0xff] %v1110_v17  ;;  %v1116_v20 = vld [vmem:[%s6041_s28 + $0x1d20] sm:$0xff] }
  0xf9   : > { %1113 = vst [vmem:[%s6046_s29 + $0xe90] sm:$0xff] %v1112_v18  ;;  %1115 = vst [vmem:[%s6046_s29 + $0xe98] sm:$0xff] %v1114_v19  ;;  %v1118_v21 = vld [vmem:[%s6041_s28 + $0x1d28] sm:$0xff]  ;;  %v1120_v22 = vld [vmem:[%s6041_s28 + $0x1d30] sm:$0xff] }
  0xfa   : > { %1117 = vst [vmem:[%s6046_s29 + $0xea0] sm:$0xff] %v1116_v20  ;;  %1119 = vst [vmem:[%s6046_s29 + $0xea8] sm:$0xff] %v1118_v21  ;;  %v1122_v23 = vld [vmem:[%s6041_s28 + $0x1d38] sm:$0xff]  ;;  %v1124_v24 = vld [vmem:[%s6041_s28 + $0x1d40] sm:$0xff] }
  0xfb   : > { %1121 = vst [vmem:[%s6046_s29 + $0xeb0] sm:$0xff] %v1120_v22  ;;  %v1126_v25 = vld [vmem:[%s6041_s28 + $0x1d48] sm:$0xff]  ;;  %1123 = vst [vmem:[%s6046_s29 + $0xeb8] sm:$0xff] %v1122_v23  ;;  %v1128_v26 = vld [vmem:[%s6041_s28 + $0x1d50] sm:$0xff] }
  0xfc   : > { %1125 = vst [vmem:[%s6046_s29 + $0xec0] sm:$0xff] %v1124_v24  ;;  %1127 = vst [vmem:[%s6046_s29 + $0xec8] sm:$0xff] %v1126_v25  ;;  %v1130_v27 = vld [vmem:[%s6041_s28 + $0x1d58] sm:$0xff]  ;;  %v1132_v28 = vld [vmem:[%s6041_s28 + $0x1d60] sm:$0xff] }
  0xfd   : > { %1129 = vst [vmem:[%s6046_s29 + $0xed0] sm:$0xff] %v1128_v26  ;;  %1131 = vst [vmem:[%s6046_s29 + $0xed8] sm:$0xff] %v1130_v27  ;;  %v1134_v29 = vld [vmem:[%s6041_s28 + $0x1d68] sm:$0xff]  ;;  %v1136_v30 = vld [vmem:[%s6041_s28 + $0x1d70] sm:$0xff] }
  0xfe   : > { %1133 = vst [vmem:[%s6046_s29 + $0xee0] sm:$0xff] %v1132_v28  ;;  %v1138_v31 = vld [vmem:[%s6041_s28 + $0x1d78] sm:$0xff]  ;;  %1135 = vst [vmem:[%s6046_s29 + $0xee8] sm:$0xff] %v1134_v29  ;;  %v1140_v32 = vld [vmem:[%s6041_s28 + $0x1e00] sm:$0xff] }
  0xff   : > { %1137 = vst [vmem:[%s6046_s29 + $0xef0] sm:$0xff] %v1136_v30  ;;  %1139 = vst [vmem:[%s6046_s29 + $0xef8] sm:$0xff] %v1138_v31  ;;  %v1142_v33 = vld [vmem:[%s6041_s28 + $0x1e08] sm:$0xff]  ;;  %v1144_v34 = vld [vmem:[%s6041_s28 + $0x1e10] sm:$0xff] }
 0x100   : > { %1141 = vst [vmem:[%s6046_s29 + $0xf00] sm:$0xff] %v1140_v32  ;;  %1143 = vst [vmem:[%s6046_s29 + $0xf08] sm:$0xff] %v1142_v33  ;;  %v1146_v35 = vld [vmem:[%s6041_s28 + $0x1e18] sm:$0xff]  ;;  %v1148_v36 = vld [vmem:[%s6041_s28 + $0x1e20] sm:$0xff] }
 0x101   : > { %1145 = vst [vmem:[%s6046_s29 + $0xf10] sm:$0xff] %v1144_v34  ;;  %v1150_v37 = vld [vmem:[%s6041_s28 + $0x1e28] sm:$0xff]  ;;  %1147 = vst [vmem:[%s6046_s29 + $0xf18] sm:$0xff] %v1146_v35  ;;  %v1152_v38 = vld [vmem:[%s6041_s28 + $0x1e30] sm:$0xff] }
 0x102   : > { %1149 = vst [vmem:[%s6046_s29 + $0xf20] sm:$0xff] %v1148_v36  ;;  %1151 = vst [vmem:[%s6046_s29 + $0xf28] sm:$0xff] %v1150_v37  ;;  %v1154_v39 = vld [vmem:[%s6041_s28 + $0x1e38] sm:$0xff]  ;;  %v1156_v40 = vld [vmem:[%s6041_s28 + $0x1e40] sm:$0xff] }
 0x103   : > { %1153 = vst [vmem:[%s6046_s29 + $0xf30] sm:$0xff] %v1152_v38  ;;  %1155 = vst [vmem:[%s6046_s29 + $0xf38] sm:$0xff] %v1154_v39  ;;  %v1158_v41 = vld [vmem:[%s6041_s28 + $0x1e48] sm:$0xff]  ;;  %v1160_v42 = vld [vmem:[%s6041_s28 + $0x1e50] sm:$0xff] }
 0x104   : > { %1157 = vst [vmem:[%s6046_s29 + $0xf40] sm:$0xff] %v1156_v40  ;;  %v1162_v43 = vld [vmem:[%s6041_s28 + $0x1e58] sm:$0xff]  ;;  %1159 = vst [vmem:[%s6046_s29 + $0xf48] sm:$0xff] %v1158_v41  ;;  %v1164_v44 = vld [vmem:[%s6041_s28 + $0x1e60] sm:$0xff] }
 0x105   : > { %1161 = vst [vmem:[%s6046_s29 + $0xf50] sm:$0xff] %v1160_v42  ;;  %1163 = vst [vmem:[%s6046_s29 + $0xf58] sm:$0xff] %v1162_v43  ;;  %v1166_v45 = vld [vmem:[%s6041_s28 + $0x1e68] sm:$0xff]  ;;  %v1168_v46 = vld [vmem:[%s6041_s28 + $0x1e70] sm:$0xff] }
 0x106   : > { %1165 = vst [vmem:[%s6046_s29 + $0xf60] sm:$0xff] %v1164_v44  ;;  %1167 = vst [vmem:[%s6046_s29 + $0xf68] sm:$0xff] %v1166_v45  ;;  %v1170_v47 = vld [vmem:[%s6041_s28 + $0x1e78] sm:$0xff]  ;;  %v1172_v48 = vld [vmem:[%s6041_s28 + $0x1f00] sm:$0xff] }
 0x107   : > { %1169 = vst [vmem:[%s6046_s29 + $0xf70] sm:$0xff] %v1168_v46  ;;  %v1174_v49 = vld [vmem:[%s6041_s28 + $0x1f08] sm:$0xff]  ;;  %1171 = vst [vmem:[%s6046_s29 + $0xf78] sm:$0xff] %v1170_v47  ;;  %v1176_v50 = vld [vmem:[%s6041_s28 + $0x1f10] sm:$0xff] }
 0x108   : > { %1173 = vst [vmem:[%s6046_s29 + $0xf80] sm:$0xff] %v1172_v48  ;;  %1175 = vst [vmem:[%s6046_s29 + $0xf88] sm:$0xff] %v1174_v49  ;;  %v1178_v51 = vld [vmem:[%s6041_s28 + $0x1f18] sm:$0xff]  ;;  %v1180_v52 = vld [vmem:[%s6041_s28 + $0x1f20] sm:$0xff] }
 0x109   : > { %1177 = vst [vmem:[%s6046_s29 + $0xf90] sm:$0xff] %v1176_v50  ;;  %1179 = vst [vmem:[%s6046_s29 + $0xf98] sm:$0xff] %v1178_v51  ;;  %v1182_v53 = vld [vmem:[%s6041_s28 + $0x1f28] sm:$0xff]  ;;  %v1184_v54 = vld [vmem:[%s6041_s28 + $0x1f30] sm:$0xff] }
 0x10a   : > { %1181 = vst [vmem:[%s6046_s29 + $0xfa0] sm:$0xff] %v1180_v52  ;;  %v1186_v55 = vld [vmem:[%s6041_s28 + $0x1f38] sm:$0xff]  ;;  %1183 = vst [vmem:[%s6046_s29 + $0xfa8] sm:$0xff] %v1182_v53  ;;  %v1188_v56 = vld [vmem:[%s6041_s28 + $0x1f40] sm:$0xff] }
 0x10b   : > { %1185 = vst [vmem:[%s6046_s29 + $0xfb0] sm:$0xff] %v1184_v54  ;;  %1187 = vst [vmem:[%s6046_s29 + $0xfb8] sm:$0xff] %v1186_v55  ;;  %v1190_v57 = vld [vmem:[%s6041_s28 + $0x1f48] sm:$0xff]  ;;  %v1192_v58 = vld [vmem:[%s6041_s28 + $0x1f50] sm:$0xff] }
 0x10c   : > { %1189 = vst [vmem:[%s6046_s29 + $0xfc0] sm:$0xff] %v1188_v56  ;;  %1191 = vst [vmem:[%s6046_s29 + $0xfc8] sm:$0xff] %v1190_v57  ;;  %v1194_v59 = vld [vmem:[%s6041_s28 + $0x1f58] sm:$0xff]  ;;  %v1196_v60 = vld [vmem:[%s6041_s28 + $0x1f60] sm:$0xff] }
 0x10d   : > { %1193 = vst [vmem:[%s6046_s29 + $0xfd0] sm:$0xff] %v1192_v58  ;;  %v1198_v61 = vld [vmem:[%s6041_s28 + $0x1f68] sm:$0xff]  ;;  %1195 = vst [vmem:[%s6046_s29 + $0xfd8] sm:$0xff] %v1194_v59  ;;  %v1200_v62 = vld [vmem:[%s6041_s28 + $0x1f70] sm:$0xff] }
 0x10e   : > { %1197 = vst [vmem:[%s6046_s29 + $0xfe0] sm:$0xff] %v1196_v60  ;;  %1199 = vst [vmem:[%s6046_s29 + $0xfe8] sm:$0xff] %v1198_v61  ;;  %v1202_v63 = vld [vmem:[%s6041_s28 + $0x1f78] sm:$0xff] }
 0x10f   : > { %1201 = vst [vmem:[%s6046_s29 + $0xff0] sm:$0xff] %v1200_v62  ;;  %1203 = vst [vmem:[%s6046_s29 + $0xff8] sm:$0xff] %v1202_v63 }
 0x110 PF: > { %p5375_p5 = scmp.ge.s32.totalorder %s5978_s17, 1  ;;  %p1208_p6 = scmp.lt.s32.totalorder %s5978_s17, 3 }
 0x112   : > { %p1209_p7 = pnand %p5375_p5, %p1208_p6 }
 0x113   : > { %s1215_s30 = sand.u32 (!%p1209_p7), 1, %s5970_s15   ;;  %s5377_s9 = sshll.u32 (!%p1209_p7), %s6021_s18, 5 }
 0x114   : > { %1212 = sbr.rel (%p1209_p7) target bundleno = 1142 (0x476), region = 47  ;;  %s5376_s7 = sshll.u32 (!%p1209_p7), %s1215_s30, 12 }
 0x115   : > { %s7081_s8 = scalar_lea.vmem (!%p1209_p7), [#allocation2], %s5376_s7  ;;  %p1250_p8 = scmp.lt.s32.totalorder (!%p1209_p7), %s5377_s9, 63 }
 0x116   : > { %p1255_p9 = scmp.lt.s32.totalorder (!%p1209_p7), %s6021_s18, 1 }
 0x119   : > { %v7075_v0 = vld [vmem:[%s7698_s0] sm:$0xff]  ;;  %v1489_v4 = vld [vmem:[%s7081_s8 + $0x708] sm:$0xff]  ;;  %s7707_s9 = smov (!%p1250_p8, %s5377_s9), 63  ;;  %s7709_s18 = smov (!%p1255_p9, %s6021_s18), 1  ;;  %vm5176_vm0 = vcmask 7168  }
 0x11a   : > { %v7079_v1 = vcombine.high %v7075_v0, %v7075_v0  ;;  %v1488_v2 = vld [vmem:[%s7081_s8 + $0x700] sm:$0xff]  ;;  %v1505_v6 = vld [vmem:[%s7081_s8 + $0x788] sm:$0xff]  ;;  %s5378_s10 = sshll.u32 %s7707_s9, 2  ;;  %s5379_s14 = sshll.u32 %s7709_s18, 3 }
 0x11b   : > { %v1504_v3 = vld [vmem:[%s7081_s8 + $0x780] sm:$0xff]  ;;  %v5610_v10 = vcombine.high %v1489_v4, %v1505_v6  ;;  %v5609_v11 = vcombine.low %v1489_v4, %v1505_v6  ;;  %v1457_v13 = vld [vmem:[%s7081_s8 + $0x608] sm:$0xff]  ;;  %s7378_s13 = scalar_lea.vmem %s7700_s2, %s5378_s10  ;;  %s1258_s20 = scalar_lea.vmem %s7701_s3, %s5379_s14 }
 0x11c   : > { %4375 = vmatprep.mubr.bf16.mxu0 %v7079_v1  ;;  %4416 = vmatprep.mubr.bf16.mxu1 %v7079_v1  ;;  %v5608_v5 = vcombine.high %v1488_v2, %v1504_v3  ;;  %v5607_v7 = vcombine.low %v1488_v2, %v1504_v3  ;;  %v1456_v8 = vld [vmem:[%s7081_s8 + $0x600] sm:$0xff]  ;;  %v1473_v14 = vld [vmem:[%s7081_s8 + $0x688] sm:$0xff]  ;;  %s1262_s24 = scalar_lea.vmem %s7702_s4, %s5379_s14 }
 0x11d   : > { %v1472_v9 = vld [vmem:[%s7081_s8 + $0x680] sm:$0xff]  ;;  %v5578_v16 = vcombine.high %v1457_v13, %v1473_v14  ;;  %v1425_v18 = vld [vmem:[%s7081_s8 + $0x508] sm:$0xff]  ;;  %4384 = vmatprep.subr.bf16.mxu1 %v5610_v10  ;;  %v5577_v21 = vcombine.low %v1457_v13, %v1473_v14 }
 0x11e   : > { %v5576_v12 = vcombine.high %v1456_v8, %v1472_v9  ;;  %v1424_v15 = vld [vmem:[%s7081_s8 + $0x500] sm:$0xff]  ;;  %4343 = vmatprep.subr.bf16.mxu0 %v5608_v5  ;;  %v1441_v19 = vld [vmem:[%s7081_s8 + $0x588] sm:$0xff]  ;;  %v5575_v20 = vcombine.low %v1456_v8, %v1472_v9  ;;  %4385 = vmatpush1.bf16.msra.mxu1 %v5609_v11 }
 0x11f   : > { %v1440_v17 = vld [vmem:[%s7081_s8 + $0x580] sm:$0xff]  ;;  %4344 = vmatpush1.bf16.msra.mxu0 %v5607_v7  ;;  %4386 = vmatprep.subr.bf16.mxu1 %v5578_v16  ;;  %v5546_v23 = vcombine.high %v1425_v18, %v1441_v19  ;;  %v1393_v26 = vld [vmem:[%s7081_s8 + $0x408] sm:$0xff]  ;;  %v5545_v29 = vcombine.low %v1425_v18, %v1441_v19 }
 0x120   : > { %4345 = vmatprep.subr.bf16.mxu0 %v5576_v12  ;;  %v5544_v22 = vcombine.high %v1424_v15, %v1440_v17  ;;  %v1392_v24 = vld [vmem:[%s7081_s8 + $0x400] sm:$0xff]  ;;  %v1409_v27 = vld [vmem:[%s7081_s8 + $0x488] sm:$0xff]  ;;  %v5543_v28 = vcombine.low %v1424_v15, %v1440_v17 }
 0x121   : > { %v1408_v25 = vld [vmem:[%s7081_s8 + $0x480] sm:$0xff]  ;;  %v5514_v31 = vcombine.high %v1393_v26, %v1409_v27  ;;  %v1361_v34 = vld [vmem:[%s7081_s8 + $0x308] sm:$0xff]  ;;  %v5513_v37 = vcombine.low %v1393_v26, %v1409_v27 }
 0x122   : > { %4387 = vmatpush1.bf16.msra.mxu1 %v5577_v21  ;;  %v5512_v30 = vcombine.high %v1392_v24, %v1408_v25  ;;  %v1360_v32 = vld [vmem:[%s7081_s8 + $0x300] sm:$0xff]  ;;  %v1377_v35 = vld [vmem:[%s7081_s8 + $0x388] sm:$0xff]  ;;  %v5511_v36 = vcombine.low %v1392_v24, %v1408_v25 }
 0x123   : > { %4346 = vmatpush1.bf16.msra.mxu0 %v5575_v20  ;;  %4388 = vmatprep.subr.bf16.mxu1 %v5546_v23  ;;  %v1376_v33 = vld [vmem:[%s7081_s8 + $0x380] sm:$0xff]  ;;  %v5482_v39 = vcombine.high %v1361_v34, %v1377_v35  ;;  %v1329_v42 = vld [vmem:[%s7081_s8 + $0x208] sm:$0xff]  ;;  %v5481_v45 = vcombine.low %v1361_v34, %v1377_v35 }
 0x124   : > { %4347 = vmatprep.subr.bf16.mxu0 %v5544_v22  ;;  %v5480_v38 = vcombine.high %v1360_v32, %v1376_v33  ;;  %v1328_v40 = vld [vmem:[%s7081_s8 + $0x200] sm:$0xff]  ;;  %v1345_v43 = vld [vmem:[%s7081_s8 + $0x288] sm:$0xff]  ;;  %v5479_v44 = vcombine.low %v1360_v32, %v1376_v33 }
 0x125   : > { %v1344_v41 = vld [vmem:[%s7081_s8 + $0x280] sm:$0xff]  ;;  %v5450_v47 = vcombine.high %v1329_v42, %v1345_v43  ;;  %v1297_v50 = vld [vmem:[%s7081_s8 + $0x108] sm:$0xff]  ;;  %v5449_v53 = vcombine.low %v1329_v42, %v1345_v43 }
 0x126   : > { %4389 = vmatpush1.bf16.msra.mxu1 %v5545_v29  ;;  %v5448_v46 = vcombine.high %v1328_v40, %v1344_v41  ;;  %v1296_v48 = vld [vmem:[%s7081_s8 + $0x100] sm:$0xff]  ;;  %v1313_v51 = vld [vmem:[%s7081_s8 + $0x188] sm:$0xff]  ;;  %v5447_v52 = vcombine.low %v1328_v40, %v1344_v41 }
 0x127   : > { %4348 = vmatpush1.bf16.msra.mxu0 %v5543_v28  ;;  %4390 = vmatprep.subr.bf16.mxu1 %v5514_v31  ;;  %v1312_v49 = vld [vmem:[%s7081_s8 + $0x180] sm:$0xff]  ;;  %v5418_v55 = vcombine.high %v1297_v50, %v1313_v51  ;;  %v1265_v58 = vld [vmem:[%s7081_s8 + $0x8] sm:$0xff]  ;;  %v5417_v61 = vcombine.low %v1297_v50, %v1313_v51 }
 0x128   : > { %4349 = vmatprep.subr.bf16.mxu0 %v5512_v30  ;;  %v5416_v54 = vcombine.high %v1296_v48, %v1312_v49  ;;  %v1264_v56 = vld [vmem:[%s7081_s8] sm:$0xff]  ;;  %v1281_v59 = vld [vmem:[%s7081_s8 + $0x88] sm:$0xff]  ;;  %v5415_v60 = vcombine.low %v1296_v48, %v1312_v49 }
 0x129   : > { %v1280_v57 = vld [vmem:[%s7081_s8 + $0x80] sm:$0xff]  ;;  %v5386_v63 = vcombine.high %v1265_v58, %v1281_v59  ;;  %v1745_v4 = vld [vmem:[%s7081_s8 + $0xf08] sm:$0xff]  ;;  %v5385_v7 = vcombine.low %v1265_v58, %v1281_v59 }
 0x12a   : > { %4391 = vmatpush1.bf16.msra.mxu1 %v5513_v37  ;;  %v5384_v62 = vcombine.high %v1264_v56, %v1280_v57  ;;  %v1744_v2 = vld [vmem:[%s7081_s8 + $0xf00] sm:$0xff]  ;;  %v1761_v5 = vld [vmem:[%s7081_s8 + $0xf88] sm:$0xff]  ;;  %v5383_v6 = vcombine.low %v1264_v56, %v1280_v57 }
 0x12b   : > { %4350 = vmatpush1.bf16.msra.mxu0 %v5511_v36  ;;  %4392 = vmatprep.subr.bf16.mxu1 %v5482_v39  ;;  %v1760_v3 = vld [vmem:[%s7081_s8 + $0xf80] sm:$0xff]  ;;  %v5866_v9 = vcombine.high %v1745_v4, %v1761_v5  ;;  %v1713_v12 = vld [vmem:[%s7081_s8 + $0xe08] sm:$0xff]  ;;  %v5865_v15 = vcombine.low %v1745_v4, %v1761_v5  ;;  %v1490_v4 = vld [vmem:[%s7081_s8 + $0x710] sm:$0xff] }
 0x12c   : > { %4351 = vmatprep.subr.bf16.mxu0 %v5480_v38  ;;  %v5864_v8 = vcombine.high %v1744_v2, %v1760_v3  ;;  %v1712_v10 = vld [vmem:[%s7081_s8 + $0xe00] sm:$0xff]  ;;  %v1729_v13 = vld [vmem:[%s7081_s8 + $0xe88] sm:$0xff]  ;;  %v5863_v14 = vcombine.low %v1744_v2, %v1760_v3  ;;  %v1506_v5 = vld [vmem:[%s7081_s8 + $0x790] sm:$0xff] }
 0x12d   : > { %v1728_v11 = vld [vmem:[%s7081_s8 + $0xe80] sm:$0xff]  ;;  %v5834_v17 = vcombine.high %v1713_v12, %v1729_v13  ;;  %v1681_v20 = vld [vmem:[%s7081_s8 + $0xd08] sm:$0xff]  ;;  %v5833_v23 = vcombine.low %v1713_v12, %v1729_v13  ;;  %v1458_v12 = vld [vmem:[%s7081_s8 + $0x610] sm:$0xff] }
 0x12e   : > { %4393 = vmatpush1.bf16.msra.mxu1 %v5481_v45  ;;  %v5832_v16 = vcombine.high %v1712_v10, %v1728_v11  ;;  %v1680_v18 = vld [vmem:[%s7081_s8 + $0xd00] sm:$0xff]  ;;  %v1697_v21 = vld [vmem:[%s7081_s8 + $0xd88] sm:$0xff]  ;;  %v5831_v22 = vcombine.low %v1712_v10, %v1728_v11  ;;  %v5612_v10 = vcombine.high %v1490_v4, %v1506_v5  ;;  %v1474_v13 = vld [vmem:[%s7081_s8 + $0x690] sm:$0xff] }
 0x12f   : > { %4352 = vmatpush1.bf16.msra.mxu0 %v5479_v44  ;;  %4394 = vmatprep.subr.bf16.mxu1 %v5450_v47  ;;  %v1696_v19 = vld [vmem:[%s7081_s8 + $0xd80] sm:$0xff]  ;;  %v5802_v25 = vcombine.high %v1681_v20, %v1697_v21  ;;  %v1649_v28 = vld [vmem:[%s7081_s8 + $0xc08] sm:$0xff]  ;;  %v5801_v31 = vcombine.low %v1681_v20, %v1697_v21  ;;  %v1426_v21 = vld [vmem:[%s7081_s8 + $0x510] sm:$0xff] }
 0x130   : > { %4353 = vmatprep.subr.bf16.mxu0 %v5448_v46  ;;  %v5800_v24 = vcombine.high %v1680_v18, %v1696_v19  ;;  %v1648_v26 = vld [vmem:[%s7081_s8 + $0xc00] sm:$0xff]  ;;  %v1665_v29 = vld [vmem:[%s7081_s8 + $0xc88] sm:$0xff]  ;;  %v5799_v30 = vcombine.low %v1680_v18, %v1696_v19  ;;  %v5580_v19 = vcombine.high %v1458_v12, %v1474_v13 }
 0x131   : > { %v1664_v27 = vld [vmem:[%s7081_s8 + $0xc80] sm:$0xff]  ;;  %v5770_v33 = vcombine.high %v1649_v28, %v1665_v29  ;;  %v1617_v36 = vld [vmem:[%s7081_s8 + $0xb08] sm:$0xff]  ;;  %v5769_v39 = vcombine.low %v1649_v28, %v1665_v29  ;;  %v1394_v28 = vld [vmem:[%s7081_s8 + $0x410] sm:$0xff] }
 0x132   : > { %4395 = vmatpush1.bf16.msra.mxu1 %v5449_v53  ;;  %v5768_v32 = vcombine.high %v1648_v26, %v1664_v27  ;;  %v1616_v34 = vld [vmem:[%s7081_s8 + $0xb00] sm:$0xff]  ;;  %v1633_v37 = vld [vmem:[%s7081_s8 + $0xb88] sm:$0xff]  ;;  %v5767_v38 = vcombine.low %v1648_v26, %v1664_v27  ;;  %v1410_v29 = vld [vmem:[%s7081_s8 + $0x490] sm:$0xff] }
 0x133   : > { %4354 = vmatpush1.bf16.msra.mxu0 %v5447_v52  ;;  %4396 = vmatprep.subr.bf16.mxu1 %v5418_v55  ;;  %v1632_v35 = vld [vmem:[%s7081_s8 + $0xb80] sm:$0xff]  ;;  %v5738_v41 = vcombine.high %v1617_v36, %v1633_v37  ;;  %v1585_v44 = vld [vmem:[%s7081_s8 + $0xa08] sm:$0xff]  ;;  %v5737_v47 = vcombine.low %v1617_v36, %v1633_v37  ;;  %v1362_v36 = vld [vmem:[%s7081_s8 + $0x310] sm:$0xff] }
 0x134   : > { %4355 = vmatprep.subr.bf16.mxu0 %v5416_v54  ;;  %v5736_v40 = vcombine.high %v1616_v34, %v1632_v35  ;;  %v1584_v42 = vld [vmem:[%s7081_s8 + $0xa00] sm:$0xff]  ;;  %v1601_v45 = vld [vmem:[%s7081_s8 + $0xa88] sm:$0xff]  ;;  %v5735_v46 = vcombine.low %v1616_v34, %v1632_v35  ;;  %v5516_v34 = vcombine.high %v1394_v28, %v1410_v29  ;;  %v1378_v37 = vld [vmem:[%s7081_s8 + $0x390] sm:$0xff] }
 0x135   : > { %v1600_v43 = vld [vmem:[%s7081_s8 + $0xa80] sm:$0xff]  ;;  %v5706_v49 = vcombine.high %v1585_v44, %v1601_v45  ;;  %v1553_v52 = vld [vmem:[%s7081_s8 + $0x908] sm:$0xff]  ;;  %v5705_v55 = vcombine.low %v1585_v44, %v1601_v45  ;;  %v1330_v44 = vld [vmem:[%s7081_s8 + $0x210] sm:$0xff] }
 0x136   : > { %4397 = vmatpush1.bf16.msra.mxu1 %v5417_v61  ;;  %v5704_v48 = vcombine.high %v1584_v42, %v1600_v43  ;;  %v1552_v50 = vld [vmem:[%s7081_s8 + $0x900] sm:$0xff]  ;;  %v1569_v53 = vld [vmem:[%s7081_s8 + $0x988] sm:$0xff]  ;;  %v5703_v54 = vcombine.low %v1584_v42, %v1600_v43  ;;  %v5484_v42 = vcombine.high %v1362_v36, %v1378_v37  ;;  %v1346_v45 = vld [vmem:[%s7081_s8 + $0x290] sm:$0xff] }
 0x137   : > { %4356 = vmatpush1.bf16.msra.mxu0 %v5415_v60  ;;  %4398 = vmatprep.subr.bf16.mxu1 %v5386_v63  ;;  %v1568_v51 = vld [vmem:[%s7081_s8 + $0x980] sm:$0xff]  ;;  %v5674_v57 = vcombine.high %v1553_v52, %v1569_v53  ;;  %v1521_v60 = vld [vmem:[%s7081_s8 + $0x808] sm:$0xff]  ;;  %v5673_v63 = vcombine.low %v1553_v52, %v1569_v53  ;;  %v1298_v52 = vld [vmem:[%s7081_s8 + $0x110] sm:$0xff] }
 0x138   : > { %4357 = vmatprep.subr.bf16.mxu0 %v5384_v62  ;;  %v5672_v56 = vcombine.high %v1552_v50, %v1568_v51  ;;  %v1520_v58 = vld [vmem:[%s7081_s8 + $0x800] sm:$0xff]  ;;  %v1537_v61 = vld [vmem:[%s7081_s8 + $0x888] sm:$0xff]  ;;  %v5671_v62 = vcombine.low %v1552_v50, %v1568_v51  ;;  %v5452_v50 = vcombine.high %v1330_v44, %v1346_v45  ;;  %v1314_v53 = vld [vmem:[%s7081_s8 + $0x190] sm:$0xff] }
 0x139   : > { %v1536_v59 = vld [vmem:[%s7081_s8 + $0x880] sm:$0xff]  ;;  %v5642_v3 = vcombine.high %v1521_v60, %v1537_v61 }
 0x13a   : > { %4399 = vmatpush1.bf16.msra.mxu1 %v5385_v7  ;;  %v5640_v2 = vcombine.high %v1520_v58, %v1536_v59  ;;  %v1507_v7 = vld [vmem:[%s7081_s8 + $0x798] sm:$0xff] }
 0x13b   : > { %4358 = vmatpush1.bf16.msra.mxu0 %v5383_v6  ;;  %4400 = vmatprep.subr.bf16.mxu1 %v5866_v9  ;;  %v1491_v6 = vld [vmem:[%s7081_s8 + $0x718] sm:$0xff]  ;;  %v5641_v9 = vcombine.low %v1521_v60, %v1537_v61  ;;  %v1266_v60 = vld [vmem:[%s7081_s8 + $0x10] sm:$0xff] }
 0x13c   : > { %4359 = vmatprep.subr.bf16.mxu0 %v5864_v8  ;;  %v5639_v8 = vcombine.low %v1520_v58, %v1536_v59  ;;  %v5614_v11 = vcombine.high %v1491_v6, %v1507_v7  ;;  %v5613_v18 = vcombine.low %v1491_v6, %v1507_v7  ;;  %v5420_v58 = vcombine.high %v1298_v52, %v1314_v53  ;;  %v1282_v61 = vld [vmem:[%s7081_s8 + $0x90] sm:$0xff] }
 0x13d   : > { %v1746_v6 = vld [vmem:[%s7081_s8 + $0xf10] sm:$0xff] }
 0x13e   : > { %4401 = vmatpush2.bf16.msra.mxu1 %v5865_v15  ;;  %v1459_v15 = vld [vmem:[%s7081_s8 + $0x618] sm:$0xff]  ;;  %v1762_v7 = vld [vmem:[%s7081_s8 + $0xf90] sm:$0xff] }
 0x13f   : > { %4360 = vmatpush2.bf16.msra.mxu0 %v5863_v14  ;;  %4402 = vmatprep.subr.bf16.mxu1 %v5834_v17  ;;  %v7157_v14 = vcombine.low %v7075_v0, %v7075_v0  ;;  %v5611_v17 = vcombine.low %v1490_v4, %v1506_v5  ;;  %v1427_v0 = vld [vmem:[%s7081_s8 + $0x518] sm:$0xff]  ;;  %v5388_v4 = vcombine.high %v1266_v60, %v1282_v61 }
 0x140   : > { %4361 = vmatprep.subr.bf16.mxu0 %v5832_v16  ;;  %v1475_v16 = vld [vmem:[%s7081_s8 + $0x698] sm:$0xff] }
 0x141   : > { %v5582_v20 = vcombine.high %v1459_v15, %v1475_v16 }
 0x142   : > { %4403 = vmatpush2.bf16.msra.mxu1 %v5833_v23  ;;  %v1443_v23 = vld [vmem:[%s7081_s8 + $0x598] sm:$0xff] }
 0x143   : > { %4362 = vmatpush2.bf16.msra.mxu0 %v5831_v22  ;;  %4404 = vmatprep.subr.bf16.mxu1 %v5802_v25  ;;  %v1442_v22 = vld [vmem:[%s7081_s8 + $0x590] sm:$0xff]  ;;  %v5581_v25 = vcombine.low %v1459_v15, %v1475_v16  ;;  %v5550_v27 = vcombine.high %v1427_v0, %v1443_v23 }
 0x144   : > { %4363 = vmatprep.subr.bf16.mxu0 %v5800_v24  ;;  %v5579_v24 = vcombine.low %v1458_v12, %v1474_v13  ;;  %v5548_v26 = vcombine.high %v1426_v21, %v1442_v22  ;;  %v5868_v12 = vcombine.high %v1746_v6, %v1762_v7  ;;  %v1714_v15 = vld [vmem:[%s7081_s8 + $0xe10] sm:$0xff] }
 0x145   : > { %v1730_v16 = vld [vmem:[%s7081_s8 + $0xe90] sm:$0xff] }
 0x146   : > { %4405 = vmatpush2.bf16.msra.mxu1 %v5801_v31  ;;  %v1411_v31 = vld [vmem:[%s7081_s8 + $0x498] sm:$0xff] }
 0x147   : > { %4364 = vmatpush2.bf16.msra.mxu0 %v5799_v30  ;;  %4406 = vmatprep.subr.bf16.mxu1 %v5770_v33  ;;  %v1395_v30 = vld [vmem:[%s7081_s8 + $0x418] sm:$0xff]  ;;  %v5549_v33 = vcombine.low %v1427_v0, %v1443_v23  ;;  %v1682_v0 = vld [vmem:[%s7081_s8 + $0xd10] sm:$0xff] }
 0x148   : > { %4365 = vmatprep.subr.bf16.mxu0 %v5768_v32  ;;  %v5547_v32 = vcombine.low %v1426_v21, %v1442_v22  ;;  %v5518_v35 = vcombine.high %v1395_v30, %v1411_v31  ;;  %v5836_v21 = vcombine.high %v1714_v15, %v1730_v16  ;;  %v1698_v23 = vld [vmem:[%s7081_s8 + $0xd90] sm:$0xff] }
 0x14a   : > { %4407 = vmatpush2.bf16.msra.mxu1 %v5769_v39  ;;  %v1379_v39 = vld [vmem:[%s7081_s8 + $0x398] sm:$0xff] }
 0x14b   : > { %4366 = vmatpush2.bf16.msra.mxu0 %v5767_v38  ;;  %4408 = vmatprep.subr.bf16.mxu1 %v5738_v41  ;;  %v1363_v38 = vld [vmem:[%s7081_s8 + $0x318] sm:$0xff]  ;;  %v5517_v41 = vcombine.low %v1395_v30, %v1411_v31  ;;  %v1650_v30 = vld [vmem:[%s7081_s8 + $0xc10] sm:$0xff] }
 0x14c   : > { %4367 = vmatprep.subr.bf16.mxu0 %v5736_v40  ;;  %v5515_v40 = vcombine.low %v1394_v28, %v1410_v29  ;;  %v5486_v43 = vcombine.high %v1363_v38, %v1379_v39  ;;  %v5804_v28 = vcombine.high %v1682_v0, %v1698_v23  ;;  %v1666_v31 = vld [vmem:[%s7081_s8 + $0xc90] sm:$0xff] }
 0x14e   : > { %4409 = vmatpush2.bf16.msra.mxu1 %v5737_v47  ;;  %v1347_v47 = vld [vmem:[%s7081_s8 + $0x298] sm:$0xff] }
 0x14f   : > { %4368 = vmatpush2.bf16.msra.mxu0 %v5735_v46  ;;  %4410 = vmatprep.subr.bf16.mxu1 %v5706_v49  ;;  %v1331_v46 = vld [vmem:[%s7081_s8 + $0x218] sm:$0xff]  ;;  %v5485_v49 = vcombine.low %v1363_v38, %v1379_v39  ;;  %v1618_v38 = vld [vmem:[%s7081_s8 + $0xb10] sm:$0xff] }
 0x150   : > { %4369 = vmatprep.subr.bf16.mxu0 %v5704_v48  ;;  %v5483_v48 = vcombine.low %v1362_v36, %v1378_v37  ;;  %v5454_v51 = vcombine.high %v1331_v46, %v1347_v47  ;;  %v5772_v36 = vcombine.high %v1650_v30, %v1666_v31  ;;  %v1634_v39 = vld [vmem:[%s7081_s8 + $0xb90] sm:$0xff] }
 0x152   : > { %4411 = vmatpush2.bf16.msra.mxu1 %v5705_v55  ;;  %v1315_v55 = vld [vmem:[%s7081_s8 + $0x198] sm:$0xff] }
 0x153   : > { %4370 = vmatpush2.bf16.msra.mxu0 %v5703_v54  ;;  %4412 = vmatprep.subr.bf16.mxu1 %v5674_v57  ;;  %v1299_v54 = vld [vmem:[%s7081_s8 + $0x118] sm:$0xff]  ;;  %v5453_v57 = vcombine.low %v1331_v46, %v1347_v47  ;;  %v1586_v46 = vld [vmem:[%s7081_s8 + $0xa10] sm:$0xff] }
 0x154   : > { %4371 = vmatprep.subr.bf16.mxu0 %v5672_v56  ;;  %v5451_v56 = vcombine.low %v1330_v44, %v1346_v45  ;;  %v5422_v59 = vcombine.high %v1299_v54, %v1315_v55  ;;  %v5740_v44 = vcombine.high %v1618_v38, %v1634_v39  ;;  %v1602_v47 = vld [vmem:[%s7081_s8 + $0xa90] sm:$0xff] }
 0x156   : > { %4413 = vmatpush2.bf16.msra.mxu1 %v5673_v63  ;;  %v1283_v63 = vld [vmem:[%s7081_s8 + $0x98] sm:$0xff] }
 0x157   : > { %4372 = vmatpush2.bf16.msra.mxu0 %v5671_v62  ;;  %4414 = vmatprep.subr.bf16.mxu1 %v5642_v3  ;;  %v1267_v62 = vld [vmem:[%s7081_s8 + $0x18] sm:$0xff]  ;;  %v5421_v3 = vcombine.low %v1299_v54, %v1315_v55  ;;  %v1554_v54 = vld [vmem:[%s7081_s8 + $0x910] sm:$0xff] }
 0x158   : > { %4373 = vmatprep.subr.bf16.mxu0 %v5640_v2  ;;  %v5419_v2 = vcombine.low %v1298_v52, %v1314_v53  ;;  %v5390_v5 = vcombine.high %v1267_v62, %v1283_v63  ;;  %v5708_v52 = vcombine.high %v1586_v46, %v1602_v47  ;;  %v1570_v55 = vld [vmem:[%s7081_s8 + $0x990] sm:$0xff] }
 0x15a   : > { %4415 = vmatpush2.bf16.msra.mxu1 %v5641_v9  ;;  %v1763_v9 = vld [vmem:[%s7081_s8 + $0xf98] sm:$0xff] }
 0x15b   : > { %4374 = vmatpush2.bf16.msra.mxu0 %v5639_v8  ;;  %4466 = vmatprep.subr.bf16.mxu1 %v5614_v11  ;;  %v1747_v8 = vld [vmem:[%s7081_s8 + $0xf18] sm:$0xff]  ;;  %v5389_v11 = vcombine.low %v1267_v62, %v1283_v63  ;;  %v1522_v62 = vld [vmem:[%s7081_s8 + $0x810] sm:$0xff] }
 0x15c   : > { %4425 = vmatprep.subr.bf16.mxu0 %v5612_v10  ;;  %v5387_v10 = vcombine.low %v1266_v60, %v1282_v61  ;;  %v5870_v13 = vcombine.high %v1747_v8, %v1763_v9  ;;  %v5676_v60 = vcombine.high %v1554_v54, %v1570_v55  ;;  %v1538_v63 = vld [vmem:[%s7081_s8 + $0x890] sm:$0xff] }
 0x15d   : > { %4417 = vmatmul.mubr.bf16.vlgmr.msra.gmra.mxu1 %v7157_v14 }
 0x15e   : > { %4376 = vmatmul.mubr.bf16.vlgmr.msra.gmra.mxu0 %v7157_v14  ;;  %4467 = vmatpush1.bf16.msra.mxu1 %v5613_v18  ;;  %v1731_v18 = vld [vmem:[%s7081_s8 + $0xe98] sm:$0xff] }
 0x15f   : > { %4426 = vmatpush1.bf16.msra.mxu0 %v5611_v17  ;;  %4468 = vmatprep.subr.bf16.mxu1 %v5582_v20  ;;  %v1715_v17 = vld [vmem:[%s7081_s8 + $0xe18] sm:$0xff]  ;;  %v5869_v20 = vcombine.low %v1747_v8, %v1763_v9  ;;  %v1492_v8 = vld [vmem:[%s7081_s8 + $0x720] sm:$0xff] }
 0x160   : > { %4427 = vmatprep.subr.bf16.mxu0 %v5580_v19  ;;  %4457 = vmatprep.mubr.bf16.mxu0 %v7079_v1  ;;  %v5867_v19 = vcombine.low %v1746_v6, %v1762_v7  ;;  %v5838_v22 = vcombine.high %v1715_v17, %v1731_v18  ;;  %v5644_v6 = vcombine.high %v1522_v62, %v1538_v63  ;;  %v1508_v9 = vld [vmem:[%s7081_s8 + $0x7a0] sm:$0xff] }
 0x161   : > { %4498 = vmatprep.mubr.bf16.mxu1 %v7079_v1 }
 0x162   : > { %4469 = vmatpush1.bf16.msra.mxu1 %v5581_v25  ;;  %v1699_v25 = vld [vmem:[%s7081_s8 + $0xd98] sm:$0xff] }
 0x163   : > { %4428 = vmatpush1.bf16.msra.mxu0 %v5579_v24  ;;  %4470 = vmatprep.subr.bf16.mxu1 %v5550_v27  ;;  %v1683_v24 = vld [vmem:[%s7081_s8 + $0xd18] sm:$0xff]  ;;  %v5837_v27 = vcombine.low %v1715_v17, %v1731_v18  ;;  %v1460_v17 = vld [vmem:[%s7081_s8 + $0x620] sm:$0xff] }
 0x164   : > { %4429 = vmatprep.subr.bf16.mxu0 %v5548_v26  ;;  %v5835_v26 = vcombine.low %v1714_v15, %v1730_v16  ;;  %v5806_v29 = vcombine.high %v1683_v24, %v1699_v25  ;;  %v5616_v15 = vcombine.high %v1492_v8, %v1508_v9  ;;  %v1476_v18 = vld [vmem:[%s7081_s8 + $0x6a0] sm:$0xff] }
 0x166   : > { %4471 = vmatpush1.bf16.msra.mxu1 %v5549_v33  ;;  %v1667_v33 = vld [vmem:[%s7081_s8 + $0xc98] sm:$0xff] }
 0x167   : > { %4430 = vmatpush1.bf16.msra.mxu0 %v5547_v32  ;;  %4472 = vmatprep.subr.bf16.mxu1 %v5518_v35  ;;  %v1651_v32 = vld [vmem:[%s7081_s8 + $0xc18] sm:$0xff]  ;;  %v5805_v35 = vcombine.low %v1683_v24, %v1699_v25  ;;  %v1428_v24 = vld [vmem:[%s7081_s8 + $0x520] sm:$0xff] }
 0x168   : > { %4431 = vmatprep.subr.bf16.mxu0 %v5516_v34  ;;  %v5803_v34 = vcombine.low %v1682_v0, %v1698_v23  ;;  %v5774_v37 = vcombine.high %v1651_v32, %v1667_v33  ;;  %v5584_v0 = vcombine.high %v1460_v17, %v1476_v18  ;;  %v1444_v25 = vld [vmem:[%s7081_s8 + $0x5a0] sm:$0xff] }
 0x16a   : > { %4473 = vmatpush1.bf16.msra.mxu1 %v5517_v41  ;;  %v1635_v41 = vld [vmem:[%s7081_s8 + $0xb98] sm:$0xff] }
 0x16b   : > { %4432 = vmatpush1.bf16.msra.mxu0 %v5515_v40  ;;  %4474 = vmatprep.subr.bf16.mxu1 %v5486_v43  ;;  %v1619_v40 = vld [vmem:[%s7081_s8 + $0xb18] sm:$0xff]  ;;  %v5773_v43 = vcombine.low %v1651_v32, %v1667_v33  ;;  %v1396_v32 = vld [vmem:[%s7081_s8 + $0x420] sm:$0xff] }
 0x16c   : > { %4433 = vmatprep.subr.bf16.mxu0 %v5484_v42  ;;  %v5771_v42 = vcombine.low %v1650_v30, %v1666_v31  ;;  %v5742_v45 = vcombine.high %v1619_v40, %v1635_v41  ;;  %v5552_v30 = vcombine.high %v1428_v24, %v1444_v25  ;;  %v1412_v33 = vld [vmem:[%s7081_s8 + $0x4a0] sm:$0xff] }
 0x16e   : > { %4475 = vmatpush1.bf16.msra.mxu1 %v5485_v49  ;;  %v1603_v49 = vld [vmem:[%s7081_s8 + $0xa98] sm:$0xff] }
 0x16f   : > { %4434 = vmatpush1.bf16.msra.mxu0 %v5483_v48  ;;  %4476 = vmatprep.subr.bf16.mxu1 %v5454_v51  ;;  %v1587_v48 = vld [vmem:[%s7081_s8 + $0xa18] sm:$0xff]  ;;  %v5741_v51 = vcombine.low %v1619_v40, %v1635_v41  ;;  %v1364_v40 = vld [vmem:[%s7081_s8 + $0x320] sm:$0xff] }
 0x170   : > { %4435 = vmatprep.subr.bf16.mxu0 %v5452_v50  ;;  %v5739_v50 = vcombine.low %v1618_v38, %v1634_v39  ;;  %v5710_v53 = vcombine.high %v1587_v48, %v1603_v49  ;;  %v5520_v38 = vcombine.high %v1396_v32, %v1412_v33  ;;  %v1380_v41 = vld [vmem:[%s7081_s8 + $0x3a0] sm:$0xff] }
 0x172   : > { %4477 = vmatpush1.bf16.msra.mxu1 %v5453_v57  ;;  %v1571_v57 = vld [vmem:[%s7081_s8 + $0x998] sm:$0xff] }
 0x173   : > { %4436 = vmatpush1.bf16.msra.mxu0 %v5451_v56  ;;  %4478 = vmatprep.subr.bf16.mxu1 %v5422_v59  ;;  %v1555_v56 = vld [vmem:[%s7081_s8 + $0x918] sm:$0xff]  ;;  %v5709_v59 = vcombine.low %v1587_v48, %v1603_v49  ;;  %v1332_v48 = vld [vmem:[%s7081_s8 + $0x220] sm:$0xff] }
 0x174   : > { %4437 = vmatprep.subr.bf16.mxu0 %v5420_v58  ;;  %v5707_v58 = vcombine.low %v1586_v46, %v1602_v47  ;;  %v5678_v61 = vcombine.high %v1555_v56, %v1571_v57  ;;  %v5488_v46 = vcombine.high %v1364_v40, %v1380_v41  ;;  %v1348_v49 = vld [vmem:[%s7081_s8 + $0x2a0] sm:$0xff] }
 0x176   : > { %4479 = vmatpush1.bf16.msra.mxu1 %v5421_v3  ;;  %v1539_v3 = vld [vmem:[%s7081_s8 + $0x898] sm:$0xff] }
 0x177   : > { %4438 = vmatpush1.bf16.msra.mxu0 %v5419_v2  ;;  %4480 = vmatprep.subr.bf16.mxu1 %v5390_v5  ;;  %v1523_v2 = vld [vmem:[%s7081_s8 + $0x818] sm:$0xff]  ;;  %v5677_v5 = vcombine.low %v1555_v56, %v1571_v57  ;;  %v1300_v56 = vld [vmem:[%s7081_s8 + $0x120] sm:$0xff] }
 0x178   : > { %4439 = vmatprep.subr.bf16.mxu0 %v5388_v4  ;;  %v5675_v4 = vcombine.low %v1554_v54, %v1570_v55  ;;  %v5646_v7 = vcombine.high %v1523_v2, %v1539_v3  ;;  %v5456_v54 = vcombine.high %v1332_v48, %v1348_v49  ;;  %v1316_v57 = vld [vmem:[%s7081_s8 + $0x1a0] sm:$0xff] }
 0x17a   : > { %4481 = vmatpush1.bf16.msra.mxu1 %v5389_v11  ;;  %v1509_v11 = vld [vmem:[%s7081_s8 + $0x7a8] sm:$0xff] }
 0x17b   : > { %4440 = vmatpush1.bf16.msra.mxu0 %v5387_v10  ;;  %4482 = vmatprep.subr.bf16.mxu1 %v5870_v13  ;;  %v1493_v10 = vld [vmem:[%s7081_s8 + $0x728] sm:$0xff]  ;;  %v5645_v13 = vcombine.low %v1523_v2, %v1539_v3  ;;  %v1268_v2 = vld [vmem:[%s7081_s8 + $0x20] sm:$0xff] }
 0x17c   : > { %4441 = vmatprep.subr.bf16.mxu0 %v5868_v12  ;;  %v5643_v12 = vcombine.low %v1522_v62, %v1538_v63  ;;  %v5618_v16 = vcombine.high %v1493_v10, %v1509_v11  ;;  %v5424_v62 = vcombine.high %v1300_v56, %v1316_v57  ;;  %v1284_v3 = vld [vmem:[%s7081_s8 + $0xa0] sm:$0xff] }
 0x17e   : > { %4483 = vmatpush2.bf16.msra.mxu1 %v5869_v20  ;;  %v1477_v20 = vld [vmem:[%s7081_s8 + $0x6a8] sm:$0xff] }
 0x17f   : > { %4442 = vmatpush2.bf16.msra.mxu0 %v5867_v19  ;;  %4484 = vmatprep.subr.bf16.mxu1 %v5838_v22  ;;  %v1461_v19 = vld [vmem:[%s7081_s8 + $0x628] sm:$0xff]  ;;  %v5617_v22 = vcombine.low %v1493_v10, %v1509_v11  ;;  %v1748_v10 = vld [vmem:[%s7081_s8 + $0xf20] sm:$0xff] }
 0x180   : > { %4443 = vmatprep.subr.bf16.mxu0 %v5836_v21  ;;  %v5615_v21 = vcombine.low %v1492_v8, %v1508_v9  ;;  %v5586_v23 = vcombine.high %v1461_v19, %v1477_v20  ;;  %v5392_v8 = vcombine.high %v1268_v2, %v1284_v3  ;;  %v1764_v11 = vld [vmem:[%s7081_s8 + $0xfa0] sm:$0xff] }
 0x182   : > { %4485 = vmatpush2.bf16.msra.mxu1 %v5837_v27  ;;  %v1445_v27 = vld [vmem:[%s7081_s8 + $0x5a8] sm:$0xff] }
 0x183   : > { %4444 = vmatpush2.bf16.msra.mxu0 %v5835_v26  ;;  %4486 = vmatprep.subr.bf16.mxu1 %v5806_v29  ;;  %v1429_v26 = vld [vmem:[%s7081_s8 + $0x528] sm:$0xff]  ;;  %v5585_v29 = vcombine.low %v1461_v19, %v1477_v20  ;;  %v1716_v19 = vld [vmem:[%s7081_s8 + $0xe20] sm:$0xff] }
 0x184   : > { %4445 = vmatprep.subr.bf16.mxu0 %v5804_v28  ;;  %v5583_v28 = vcombine.low %v1460_v17, %v1476_v18  ;;  %v5554_v31 = vcombine.high %v1429_v26, %v1445_v27  ;;  %v5872_v17 = vcombine.high %v1748_v10, %v1764_v11  ;;  %v1732_v20 = vld [vmem:[%s7081_s8 + $0xea0] sm:$0xff] }
 0x186   : > { %4487 = vmatpush2.bf16.msra.mxu1 %v5805_v35  ;;  %v1413_v35 = vld [vmem:[%s7081_s8 + $0x4a8] sm:$0xff] }
 0x187   : > { %4446 = vmatpush2.bf16.msra.mxu0 %v5803_v34  ;;  %4488 = vmatprep.subr.bf16.mxu1 %v5774_v37  ;;  %v1397_v34 = vld [vmem:[%s7081_s8 + $0x428] sm:$0xff]  ;;  %v5553_v37 = vcombine.low %v1429_v26, %v1445_v27  ;;  %v1684_v26 = vld [vmem:[%s7081_s8 + $0xd20] sm:$0xff] }
 0x188   : > { %4447 = vmatprep.subr.bf16.mxu0 %v5772_v36  ;;  %v5551_v36 = vcombine.low %v1428_v24, %v1444_v25  ;;  %v5522_v39 = vcombine.high %v1397_v34, %v1413_v35  ;;  %v5840_v24 = vcombine.high %v1716_v19, %v1732_v20  ;;  %v1700_v27 = vld [vmem:[%s7081_s8 + $0xda0] sm:$0xff] }
 0x18a   : > { %4489 = vmatpush2.bf16.msra.mxu1 %v5773_v43  ;;  %v1381_v43 = vld [vmem:[%s7081_s8 + $0x3a8] sm:$0xff] }
 0x18b   : > { %4448 = vmatpush2.bf16.msra.mxu0 %v5771_v42  ;;  %4490 = vmatprep.subr.bf16.mxu1 %v5742_v45  ;;  %v1365_v42 = vld [vmem:[%s7081_s8 + $0x328] sm:$0xff]  ;;  %v5521_v45 = vcombine.low %v1397_v34, %v1413_v35  ;;  %v1652_v34 = vld [vmem:[%s7081_s8 + $0xc20] sm:$0xff] }
 0x18c   : > { %4449 = vmatprep.subr.bf16.mxu0 %v5740_v44  ;;  %v5519_v44 = vcombine.low %v1396_v32, %v1412_v33  ;;  %v5490_v47 = vcombine.high %v1365_v42, %v1381_v43  ;;  %v5808_v32 = vcombine.high %v1684_v26, %v1700_v27  ;;  %v1668_v35 = vld [vmem:[%s7081_s8 + $0xca0] sm:$0xff] }
 0x18e   : > { %4491 = vmatpush2.bf16.msra.mxu1 %v5741_v51  ;;  %v1349_v51 = vld [vmem:[%s7081_s8 + $0x2a8] sm:$0xff] }
 0x18f   : > { %4450 = vmatpush2.bf16.msra.mxu0 %v5739_v50  ;;  %4492 = vmatprep.subr.bf16.mxu1 %v5710_v53  ;;  %v1333_v50 = vld [vmem:[%s7081_s8 + $0x228] sm:$0xff]  ;;  %v5489_v53 = vcombine.low %v1365_v42, %v1381_v43  ;;  %v1620_v42 = vld [vmem:[%s7081_s8 + $0xb20] sm:$0xff] }
 0x190   : > { %4451 = vmatprep.subr.bf16.mxu0 %v5708_v52  ;;  %v5487_v52 = vcombine.low %v1364_v40, %v1380_v41  ;;  %v5458_v55 = vcombine.high %v1333_v50, %v1349_v51  ;;  %v5776_v40 = vcombine.high %v1652_v34, %v1668_v35  ;;  %v1636_v43 = vld [vmem:[%s7081_s8 + $0xba0] sm:$0xff] }
 0x192   : > { %4493 = vmatpush2.bf16.msra.mxu1 %v5709_v59  ;;  %v1317_v59 = vld [vmem:[%s7081_s8 + $0x1a8] sm:$0xff] }
 0x193   : > { %4452 = vmatpush2.bf16.msra.mxu0 %v5707_v58  ;;  %4494 = vmatprep.subr.bf16.mxu1 %v5678_v61  ;;  %v1301_v58 = vld [vmem:[%s7081_s8 + $0x128] sm:$0xff]  ;;  %v5457_v61 = vcombine.low %v1333_v50, %v1349_v51  ;;  %v1588_v50 = vld [vmem:[%s7081_s8 + $0xa20] sm:$0xff] }
 0x194   : > { %4453 = vmatprep.subr.bf16.mxu0 %v5676_v60  ;;  %v5455_v60 = vcombine.low %v1332_v48, %v1348_v49  ;;  %v5426_v63 = vcombine.high %v1301_v58, %v1317_v59  ;;  %v5744_v48 = vcombine.high %v1620_v42, %v1636_v43  ;;  %v1604_v51 = vld [vmem:[%s7081_s8 + $0xaa0] sm:$0xff] }
 0x196   : > { %4495 = vmatpush2.bf16.msra.mxu1 %v5677_v5  ;;  %v1285_v5 = vld [vmem:[%s7081_s8 + $0xa8] sm:$0xff] }
 0x197   : > { %4454 = vmatpush2.bf16.msra.mxu0 %v5675_v4  ;;  %4496 = vmatprep.subr.bf16.mxu1 %v5646_v7  ;;  %v1269_v4 = vld [vmem:[%s7081_s8 + $0x28] sm:$0xff]  ;;  %v5425_v7 = vcombine.low %v1301_v58, %v1317_v59  ;;  %v1556_v58 = vld [vmem:[%s7081_s8 + $0x920] sm:$0xff] }
 0x198   : > { %4455 = vmatprep.subr.bf16.mxu0 %v5644_v6  ;;  %v5423_v6 = vcombine.low %v1300_v56, %v1316_v57  ;;  %v5394_v9 = vcombine.high %v1269_v4, %v1285_v5  ;;  %v5712_v56 = vcombine.high %v1588_v50, %v1604_v51  ;;  %v1572_v59 = vld [vmem:[%s7081_s8 + $0x9a0] sm:$0xff] }
 0x19a   : > { %4497 = vmatpush2.bf16.msra.mxu1 %v5645_v13  ;;  %v1765_v13 = vld [vmem:[%s7081_s8 + $0xfa8] sm:$0xff] }
 0x19b   : > { %4456 = vmatpush2.bf16.msra.mxu0 %v5643_v12  ;;  %4548 = vmatprep.subr.bf16.mxu1 %v5618_v16  ;;  %v1749_v12 = vld [vmem:[%s7081_s8 + $0xf28] sm:$0xff]  ;;  %v5393_v16 = vcombine.low %v1269_v4, %v1285_v5  ;;  %v1524_v4 = vld [vmem:[%s7081_s8 + $0x820] sm:$0xff] }
 0x19c   : > { %4507 = vmatprep.subr.bf16.mxu0 %v5616_v15  ;;  %v5391_v15 = vcombine.low %v1268_v2, %v1284_v3  ;;  %v5874_v18 = vcombine.high %v1749_v12, %v1765_v13  ;;  %v5680_v2 = vcombine.high %v1556_v58, %v1572_v59  ;;  %v1540_v5 = vld [vmem:[%s7081_s8 + $0x8a0] sm:$0xff] }
 0x19d   : > { %4499 = vmatmul.mubr.bf16.vlgmr.msra.gmra.mxu1 %v7157_v14 }
 0x19e   : > { %4458 = vmatmul.mubr.bf16.vlgmr.msra.gmra.mxu0 %v7157_v14  ;;  %4549 = vmatpush1.bf16.msra.mxu1 %v5617_v22  ;;  %v1733_v22 = vld [vmem:[%s7081_s8 + $0xea8] sm:$0xff] }
 0x19f   : > { %4508 = vmatpush1.bf16.msra.mxu0 %v5615_v21  ;;  %4550 = vmatprep.subr.bf16.mxu1 %v5586_v23  ;;  %v1717_v21 = vld [vmem:[%s7081_s8 + $0xe28] sm:$0xff]  ;;  %v5873_v23 = vcombine.low %v1749_v12, %v1765_v13  ;;  %v1494_v12 = vld [vmem:[%s7081_s8 + $0x730] sm:$0xff] }
 0x1a0   : > { %4509 = vmatprep.subr.bf16.mxu0 %v5584_v0  ;;  %4539 = vmatprep.mubr.bf16.mxu0 %v7079_v1  ;;  %v5871_v0 = vcombine.low %v1748_v10, %v1764_v11  ;;  %v5842_v25 = vcombine.high %v1717_v21, %v1733_v22  ;;  %v5648_v10 = vcombine.high %v1524_v4, %v1540_v5  ;;  %v1510_v13 = vld [vmem:[%s7081_s8 + $0x7b0] sm:$0xff] }
 0x1a1   : > { %4580 = vmatprep.mubr.bf16.mxu1 %v7079_v1 }
 0x1a2   : > { %4551 = vmatpush1.bf16.msra.mxu1 %v5585_v29  ;;  %v1701_v29 = vld [vmem:[%s7081_s8 + $0xda8] sm:$0xff] }
 0x1a3   : > { %4510 = vmatpush1.bf16.msra.mxu0 %v5583_v28  ;;  %4552 = vmatprep.subr.bf16.mxu1 %v5554_v31  ;;  %v1685_v28 = vld [vmem:[%s7081_s8 + $0xd28] sm:$0xff]  ;;  %v5841_v31 = vcombine.low %v1717_v21, %v1733_v22  ;;  %v1462_v21 = vld [vmem:[%s7081_s8 + $0x630] sm:$0xff] }
 0x1a4   : > { %4511 = vmatprep.subr.bf16.mxu0 %v5552_v30  ;;  %v5839_v30 = vcombine.low %v1716_v19, %v1732_v20  ;;  %v5810_v33 = vcombine.high %v1685_v28, %v1701_v29  ;;  %v5620_v19 = vcombine.high %v1494_v12, %v1510_v13  ;;  %v1478_v22 = vld [vmem:[%s7081_s8 + $0x6b0] sm:$0xff] }
 0x1a6   : > { %4553 = vmatpush1.bf16.msra.mxu1 %v5553_v37  ;;  %v1669_v37 = vld [vmem:[%s7081_s8 + $0xca8] sm:$0xff] }
 0x1a7   : > { %4512 = vmatpush1.bf16.msra.mxu0 %v5551_v36  ;;  %4554 = vmatprep.subr.bf16.mxu1 %v5522_v39  ;;  %v1653_v36 = vld [vmem:[%s7081_s8 + $0xc28] sm:$0xff]  ;;  %v5809_v39 = vcombine.low %v1685_v28, %v1701_v29  ;;  %v1430_v28 = vld [vmem:[%s7081_s8 + $0x530] sm:$0xff] }
 0x1a8   : > { %4513 = vmatprep.subr.bf16.mxu0 %v5520_v38  ;;  %v5807_v38 = vcombine.low %v1684_v26, %v1700_v27  ;;  %v5778_v41 = vcombine.high %v1653_v36, %v1669_v37  ;;  %v5588_v26 = vcombine.high %v1462_v21, %v1478_v22  ;;  %v1446_v29 = vld [vmem:[%s7081_s8 + $0x5b0] sm:$0xff] }
 0x1aa   : > { %4555 = vmatpush1.bf16.msra.mxu1 %v5521_v45  ;;  %v1637_v45 = vld [vmem:[%s7081_s8 + $0xba8] sm:$0xff] }
 0x1ab   : > { %4514 = vmatpush1.bf16.msra.mxu0 %v5519_v44  ;;  %4556 = vmatprep.subr.bf16.mxu1 %v5490_v47  ;;  %v1621_v44 = vld [vmem:[%s7081_s8 + $0xb28] sm:$0xff]  ;;  %v5777_v47 = vcombine.low %v1653_v36, %v1669_v37  ;;  %v1398_v36 = vld [vmem:[%s7081_s8 + $0x430] sm:$0xff] }
 0x1ac   : > { %4515 = vmatprep.subr.bf16.mxu0 %v5488_v46  ;;  %v5775_v46 = vcombine.low %v1652_v34, %v1668_v35  ;;  %v5746_v49 = vcombine.high %v1621_v44, %v1637_v45  ;;  %v5556_v34 = vcombine.high %v1430_v28, %v1446_v29  ;;  %v1414_v37 = vld [vmem:[%s7081_s8 + $0x4b0] sm:$0xff] }
 0x1ae   : > { %4557 = vmatpush1.bf16.msra.mxu1 %v5489_v53  ;;  %v1605_v53 = vld [vmem:[%s7081_s8 + $0xaa8] sm:$0xff] }
 0x1af   : > { %4516 = vmatpush1.bf16.msra.mxu0 %v5487_v52  ;;  %4558 = vmatprep.subr.bf16.mxu1 %v5458_v55  ;;  %v1589_v52 = vld [vmem:[%s7081_s8 + $0xa28] sm:$0xff]  ;;  %v5745_v55 = vcombine.low %v1621_v44, %v1637_v45  ;;  %v1366_v44 = vld [vmem:[%s7081_s8 + $0x330] sm:$0xff] }
 0x1b0   : > { %4517 = vmatprep.subr.bf16.mxu0 %v5456_v54  ;;  %v5743_v54 = vcombine.low %v1620_v42, %v1636_v43  ;;  %v5714_v57 = vcombine.high %v1589_v52, %v1605_v53  ;;  %v5524_v42 = vcombine.high %v1398_v36, %v1414_v37  ;;  %v1382_v45 = vld [vmem:[%s7081_s8 + $0x3b0] sm:$0xff] }
 0x1b2   : > { %4559 = vmatpush1.bf16.msra.mxu1 %v5457_v61  ;;  %v1573_v61 = vld [vmem:[%s7081_s8 + $0x9a8] sm:$0xff] }
 0x1b3   : > { %4518 = vmatpush1.bf16.msra.mxu0 %v5455_v60  ;;  %4560 = vmatprep.subr.bf16.mxu1 %v5426_v63  ;;  %v1557_v60 = vld [vmem:[%s7081_s8 + $0x928] sm:$0xff]  ;;  %v5713_v63 = vcombine.low %v1589_v52, %v1605_v53  ;;  %v1334_v52 = vld [vmem:[%s7081_s8 + $0x230] sm:$0xff] }
 0x1b4   : > { %4519 = vmatprep.subr.bf16.mxu0 %v5424_v62  ;;  %v5711_v62 = vcombine.low %v1588_v50, %v1604_v51  ;;  %v5682_v3 = vcombine.high %v1557_v60, %v1573_v61  ;;  %v5492_v50 = vcombine.high %v1366_v44, %v1382_v45  ;;  %v1350_v53 = vld [vmem:[%s7081_s8 + $0x2b0] sm:$0xff] }
 0x1b6   : > { %4561 = vmatpush1.bf16.msra.mxu1 %v5425_v7  ;;  %v1541_v7 = vld [vmem:[%s7081_s8 + $0x8a8] sm:$0xff] }
 0x1b7   : > { %4520 = vmatpush1.bf16.msra.mxu0 %v5423_v6  ;;  %4562 = vmatprep.subr.bf16.mxu1 %v5394_v9  ;;  %v1525_v6 = vld [vmem:[%s7081_s8 + $0x828] sm:$0xff]  ;;  %v5681_v9 = vcombine.low %v1557_v60, %v1573_v61  ;;  %v1302_v60 = vld [vmem:[%s7081_s8 + $0x130] sm:$0xff] }
 0x1b8   : > { %4521 = vmatprep.subr.bf16.mxu0 %v5392_v8  ;;  %v5679_v8 = vcombine.low %v1556_v58, %v1572_v59  ;;  %v5650_v11 = vcombine.high %v1525_v6, %v1541_v7  ;;  %v5460_v58 = vcombine.high %v1334_v52, %v1350_v53  ;;  %v1318_v61 = vld [vmem:[%s7081_s8 + $0x1b0] sm:$0xff] }
 0x1ba   : > { %4563 = vmatpush1.bf16.msra.mxu1 %v5393_v16  ;;  %v1511_v16 = vld [vmem:[%s7081_s8 + $0x7b8] sm:$0xff] }
 0x1bb   : > { %4522 = vmatpush1.bf16.msra.mxu0 %v5391_v15  ;;  %4564 = vmatprep.subr.bf16.mxu1 %v5874_v18  ;;  %v1495_v15 = vld [vmem:[%s7081_s8 + $0x738] sm:$0xff]  ;;  %v5649_v18 = vcombine.low %v1525_v6, %v1541_v7  ;;  %v1270_v6 = vld [vmem:[%s7081_s8 + $0x30] sm:$0xff] }
 0x1bc   : > { %4523 = vmatprep.subr.bf16.mxu0 %v5872_v17  ;;  %v5647_v17 = vcombine.low %v1524_v4, %v1540_v5  ;;  %v5622_v20 = vcombine.high %v1495_v15, %v1511_v16  ;;  %v5428_v4 = vcombine.high %v1302_v60, %v1318_v61  ;;  %v1286_v7 = vld [vmem:[%s7081_s8 + $0xb0] sm:$0xff] }
 0x1be   : > { %4565 = vmatpush2.bf16.msra.mxu1 %v5873_v23  ;;  %v1479_v23 = vld [vmem:[%s7081_s8 + $0x6b8] sm:$0xff] }
 0x1bf   : > { %4524 = vmatpush2.bf16.msra.mxu0 %v5871_v0  ;;  %4566 = vmatprep.subr.bf16.mxu1 %v5842_v25  ;;  %v1463_v0 = vld [vmem:[%s7081_s8 + $0x638] sm:$0xff]  ;;  %v5621_v25 = vcombine.low %v1495_v15, %v1511_v16  ;;  %v1750_v15 = vld [vmem:[%s7081_s8 + $0xf30] sm:$0xff] }
 0x1c0   : > { %4525 = vmatprep.subr.bf16.mxu0 %v5840_v24  ;;  %v5619_v24 = vcombine.low %v1494_v12, %v1510_v13  ;;  %v5590_v27 = vcombine.high %v1463_v0, %v1479_v23  ;;  %v5396_v12 = vcombine.high %v1270_v6, %v1286_v7  ;;  %v1766_v16 = vld [vmem:[%s7081_s8 + $0xfb0] sm:$0xff] }
 0x1c2   : > { %4567 = vmatpush2.bf16.msra.mxu1 %v5841_v31  ;;  %v1447_v31 = vld [vmem:[%s7081_s8 + $0x5b8] sm:$0xff] }
 0x1c3   : > { %4526 = vmatpush2.bf16.msra.mxu0 %v5839_v30  ;;  %4568 = vmatprep.subr.bf16.mxu1 %v5810_v33  ;;  %v1431_v30 = vld [vmem:[%s7081_s8 + $0x538] sm:$0xff]  ;;  %v5589_v33 = vcombine.low %v1463_v0, %v1479_v23  ;;  %v1718_v0 = vld [vmem:[%s7081_s8 + $0xe30] sm:$0xff] }
 0x1c4   : > { %4527 = vmatprep.subr.bf16.mxu0 %v5808_v32  ;;  %v5587_v32 = vcombine.low %v1462_v21, %v1478_v22  ;;  %v5558_v35 = vcombine.high %v1431_v30, %v1447_v31  ;;  %v5876_v21 = vcombine.high %v1750_v15, %v1766_v16  ;;  %v1734_v23 = vld [vmem:[%s7081_s8 + $0xeb0] sm:$0xff] }
 0x1c6   : > { %4569 = vmatpush2.bf16.msra.mxu1 %v5809_v39  ;;  %v1415_v39 = vld [vmem:[%s7081_s8 + $0x4b8] sm:$0xff] }
 0x1c7   : > { %4528 = vmatpush2.bf16.msra.mxu0 %v5807_v38  ;;  %4570 = vmatprep.subr.bf16.mxu1 %v5778_v41  ;;  %v1399_v38 = vld [vmem:[%s7081_s8 + $0x438] sm:$0xff]  ;;  %v5557_v41 = vcombine.low %v1431_v30, %v1447_v31  ;;  %v1686_v30 = vld [vmem:[%s7081_s8 + $0xd30] sm:$0xff] }
 0x1c8   : > { %4529 = vmatprep.subr.bf16.mxu0 %v5776_v40  ;;  %v5555_v40 = vcombine.low %v1430_v28, %v1446_v29  ;;  %v5526_v43 = vcombine.high %v1399_v38, %v1415_v39  ;;  %v5844_v28 = vcombine.high %v1718_v0, %v1734_v23  ;;  %v1702_v31 = vld [vmem:[%s7081_s8 + $0xdb0] sm:$0xff] }
 0x1ca   : > { %4571 = vmatpush2.bf16.msra.mxu1 %v5777_v47  ;;  %v1383_v47 = vld [vmem:[%s7081_s8 + $0x3b8] sm:$0xff] }
 0x1cb   : > { %4530 = vmatpush2.bf16.msra.mxu0 %v5775_v46  ;;  %4572 = vmatprep.subr.bf16.mxu1 %v5746_v49  ;;  %v1367_v46 = vld [vmem:[%s7081_s8 + $0x338] sm:$0xff]  ;;  %v5525_v49 = vcombine.low %v1399_v38, %v1415_v39  ;;  %v1654_v38 = vld [vmem:[%s7081_s8 + $0xc30] sm:$0xff] }
 0x1cc   : > { %4531 = vmatprep.subr.bf16.mxu0 %v5744_v48  ;;  %v5523_v48 = vcombine.low %v1398_v36, %v1414_v37  ;;  %v5494_v51 = vcombine.high %v1367_v46, %v1383_v47  ;;  %v5812_v36 = vcombine.high %v1686_v30, %v1702_v31  ;;  %v1670_v39 = vld [vmem:[%s7081_s8 + $0xcb0] sm:$0xff] }
 0x1ce   : > { %4573 = vmatpush2.bf16.msra.mxu1 %v5745_v55  ;;  %v1351_v55 = vld [vmem:[%s7081_s8 + $0x2b8] sm:$0xff] }
 0x1cf   : > { %4532 = vmatpush2.bf16.msra.mxu0 %v5743_v54  ;;  %4574 = vmatprep.subr.bf16.mxu1 %v5714_v57  ;;  %v1335_v54 = vld [vmem:[%s7081_s8 + $0x238] sm:$0xff]  ;;  %v5493_v57 = vcombine.low %v1367_v46, %v1383_v47  ;;  %v1622_v46 = vld [vmem:[%s7081_s8 + $0xb30] sm:$0xff] }
 0x1d0   : > { %4533 = vmatprep.subr.bf16.mxu0 %v5712_v56  ;;  %v5491_v56 = vcombine.low %v1366_v44, %v1382_v45  ;;  %v5462_v59 = vcombine.high %v1335_v54, %v1351_v55  ;;  %v5780_v44 = vcombine.high %v1654_v38, %v1670_v39  ;;  %v1638_v47 = vld [vmem:[%s7081_s8 + $0xbb0] sm:$0xff] }
 0x1d2   : > { %4575 = vmatpush2.bf16.msra.mxu1 %v5713_v63  ;;  %v1319_v63 = vld [vmem:[%s7081_s8 + $0x1b8] sm:$0xff] }
 0x1d3   : > { %4534 = vmatpush2.bf16.msra.mxu0 %v5711_v62  ;;  %4576 = vmatprep.subr.bf16.mxu1 %v5682_v3  ;;  %v1303_v62 = vld [vmem:[%s7081_s8 + $0x138] sm:$0xff]  ;;  %v5461_v3 = vcombine.low %v1335_v54, %v1351_v55  ;;  %v1590_v54 = vld [vmem:[%s7081_s8 + $0xa30] sm:$0xff] }
 0x1d4   : > { %4535 = vmatprep.subr.bf16.mxu0 %v5680_v2  ;;  %v5459_v2 = vcombine.low %v1334_v52, %v1350_v53  ;;  %v5430_v5 = vcombine.high %v1303_v62, %v1319_v63  ;;  %v5748_v52 = vcombine.high %v1622_v46, %v1638_v47  ;;  %v1606_v55 = vld [vmem:[%s7081_s8 + $0xab0] sm:$0xff] }
 0x1d6   : > { %4577 = vmatpush2.bf16.msra.mxu1 %v5681_v9  ;;  %v1287_v9 = vld [vmem:[%s7081_s8 + $0xb8] sm:$0xff] }
 0x1d7   : > { %4536 = vmatpush2.bf16.msra.mxu0 %v5679_v8  ;;  %4578 = vmatprep.subr.bf16.mxu1 %v5650_v11  ;;  %v1271_v8 = vld [vmem:[%s7081_s8 + $0x38] sm:$0xff]  ;;  %v5429_v11 = vcombine.low %v1303_v62, %v1319_v63  ;;  %v1558_v62 = vld [vmem:[%s7081_s8 + $0x930] sm:$0xff] }
 0x1d8   : > { %4537 = vmatprep.subr.bf16.mxu0 %v5648_v10  ;;  %v5427_v10 = vcombine.low %v1302_v60, %v1318_v61  ;;  %v5398_v13 = vcombine.high %v1271_v8, %v1287_v9  ;;  %v5716_v60 = vcombine.high %v1590_v54, %v1606_v55  ;;  %v1574_v63 = vld [vmem:[%s7081_s8 + $0x9b0] sm:$0xff] }
 0x1da   : > { %4579 = vmatpush2.bf16.msra.mxu1 %v5649_v18  ;;  %v1767_v18 = vld [vmem:[%s7081_s8 + $0xfb8] sm:$0xff] }
 0x1db   : > { %4538 = vmatpush2.bf16.msra.mxu0 %v5647_v17  ;;  %4630 = vmatprep.subr.bf16.mxu1 %v5622_v20  ;;  %v1751_v17 = vld [vmem:[%s7081_s8 + $0xf38] sm:$0xff]  ;;  %v5397_v20 = vcombine.low %v1271_v8, %v1287_v9  ;;  %v1526_v8 = vld [vmem:[%s7081_s8 + $0x830] sm:$0xff] }
 0x1dc   : > { %4589 = vmatprep.subr.bf16.mxu0 %v5620_v19  ;;  %v5395_v19 = vcombine.low %v1270_v6, %v1286_v7  ;;  %v5878_v22 = vcombine.high %v1751_v17, %v1767_v18  ;;  %v5684_v6 = vcombine.high %v1558_v62, %v1574_v63  ;;  %v1542_v9 = vld [vmem:[%s7081_s8 + $0x8b0] sm:$0xff] }
 0x1dd   : > { %4581 = vmatmul.mubr.bf16.vlgmr.msra.gmra.mxu1 %v7157_v14 }
 0x1de   : > { %4540 = vmatmul.mubr.bf16.vlgmr.msra.gmra.mxu0 %v7157_v14  ;;  %4631 = vmatpush1.bf16.msra.mxu1 %v5621_v25  ;;  %v1735_v25 = vld [vmem:[%s7081_s8 + $0xeb8] sm:$0xff] }
 0x1df   : > { %4590 = vmatpush1.bf16.msra.mxu0 %v5619_v24  ;;  %4632 = vmatprep.subr.bf16.mxu1 %v5590_v27  ;;  %v1719_v24 = vld [vmem:[%s7081_s8 + $0xe38] sm:$0xff]  ;;  %v5877_v27 = vcombine.low %v1751_v17, %v1767_v18  ;;  %v1496_v17 = vld [vmem:[%s7081_s8 + $0x740] sm:$0xff] }
 0x1e0   : > { %4591 = vmatprep.subr.bf16.mxu0 %v5588_v26  ;;  %4621 = vmatprep.mubr.bf16.mxu0 %v7079_v1  ;;  %v5875_v26 = vcombine.low %v1750_v15, %v1766_v16  ;;  %v5846_v29 = vcombine.high %v1719_v24, %v1735_v25  ;;  %v5652_v15 = vcombine.high %v1526_v8, %v1542_v9  ;;  %v1512_v18 = vld [vmem:[%s7081_s8 + $0x7c0] sm:$0xff] }
 0x1e1   : > { %4662 = vmatprep.mubr.bf16.mxu1 %v7079_v1 }
 0x1e2   : > { %4633 = vmatpush1.bf16.msra.mxu1 %v5589_v33  ;;  %v1703_v33 = vld [vmem:[%s7081_s8 + $0xdb8] sm:$0xff] }
 0x1e3   : > { %4592 = vmatpush1.bf16.msra.mxu0 %v5587_v32  ;;  %4634 = vmatprep.subr.bf16.mxu1 %v5558_v35  ;;  %v1687_v32 = vld [vmem:[%s7081_s8 + $0xd38] sm:$0xff]  ;;  %v5845_v35 = vcombine.low %v1719_v24, %v1735_v25  ;;  %v1464_v24 = vld [vmem:[%s7081_s8 + $0x640] sm:$0xff] }
 0x1e4   : > { %4593 = vmatprep.subr.bf16.mxu0 %v5556_v34  ;;  %v5843_v34 = vcombine.low %v1718_v0, %v1734_v23  ;;  %v5814_v37 = vcombine.high %v1687_v32, %v1703_v33  ;;  %v5624_v0 = vcombine.high %v1496_v17, %v1512_v18  ;;  %v1480_v25 = vld [vmem:[%s7081_s8 + $0x6c0] sm:$0xff] }
 0x1e6   : > { %4635 = vmatpush1.bf16.msra.mxu1 %v5557_v41  ;;  %v1671_v41 = vld [vmem:[%s7081_s8 + $0xcb8] sm:$0xff] }
 0x1e7   : > { %4594 = vmatpush1.bf16.msra.mxu0 %v5555_v40  ;;  %4636 = vmatprep.subr.bf16.mxu1 %v5526_v43  ;;  %v1655_v40 = vld [vmem:[%s7081_s8 + $0xc38] sm:$0xff]  ;;  %v5813_v43 = vcombine.low %v1687_v32, %v1703_v33  ;;  %v1448_v33 = vld [vmem:[%s7081_s8 + $0x5c0] sm:$0xff] }
 0x1e8   : > { %4595 = vmatprep.subr.bf16.mxu0 %v5524_v42  ;;  %v5811_v42 = vcombine.low %v1686_v30, %v1702_v31  ;;  %v5782_v45 = vcombine.high %v1655_v40, %v1671_v41  ;;  %v5592_v30 = vcombine.high %v1464_v24, %v1480_v25  ;;  %v1432_v31 = vld [vmem:[%s7081_s8 + $0x540] sm:$0xff] }
 0x1ea   : > { %4637 = vmatpush1.bf16.msra.mxu1 %v5525_v49  ;;  %v1639_v49 = vld [vmem:[%s7081_s8 + $0xbb8] sm:$0xff] }
 0x1eb   : > { %4596 = vmatpush1.bf16.msra.mxu0 %v5523_v48  ;;  %4638 = vmatprep.subr.bf16.mxu1 %v5494_v51  ;;  %v1623_v48 = vld [vmem:[%s7081_s8 + $0xb38] sm:$0xff]  ;;  %v5781_v51 = vcombine.low %v1655_v40, %v1671_v41 }
 0x1ec   : > { %4597 = vmatprep.subr.bf16.mxu0 %v5492_v50  ;;  %v5779_v50 = vcombine.low %v1654_v38, %v1670_v39  ;;  %v5750_v53 = vcombine.high %v1623_v48, %v1639_v49  ;;  %v5591_v39 = vcombine.low %v1464_v24, %v1480_v25  ;;  %v1305_v24 = vld [vmem:[%s7081_s8 + $0x148] sm:$0xff] }
 0x1ed   : > { %v1321_v25 = vld [vmem:[%s7081_s8 + $0x1c8] sm:$0xff] }
 0x1ee   : > { %4639 = vmatpush1.bf16.msra.mxu1 %v5493_v57  ;;  %v1607_v57 = vld [vmem:[%s7081_s8 + $0xab8] sm:$0xff] }
 0x1ef   : > { %4598 = vmatpush1.bf16.msra.mxu0 %v5491_v56  ;;  %4640 = vmatprep.subr.bf16.mxu1 %v5462_v59  ;;  %v1591_v56 = vld [vmem:[%s7081_s8 + $0xa38] sm:$0xff]  ;;  %v5749_v59 = vcombine.low %v1623_v48, %v1639_v49  ;;  %v1400_v49 = vld [vmem:[%s7081_s8 + $0x440] sm:$0xff] }
 0x1f0   : > { %4599 = vmatprep.subr.bf16.mxu0 %v5460_v58  ;;  %v5747_v58 = vcombine.low %v1622_v46, %v1638_v47  ;;  %v5718_v61 = vcombine.high %v1591_v56, %v1607_v57 }
 0x1f2   : > { %4641 = vmatpush1.bf16.msra.mxu1 %v5461_v3  ;;  %v1575_v3 = vld [vmem:[%s7081_s8 + $0x9b8] sm:$0xff] }
 0x1f3   : > { %4600 = vmatpush1.bf16.msra.mxu0 %v5459_v2  ;;  %4642 = vmatprep.subr.bf16.mxu1 %v5430_v5  ;;  %v1559_v2 = vld [vmem:[%s7081_s8 + $0x938] sm:$0xff]  ;;  %v5717_v5 = vcombine.low %v1591_v56, %v1607_v57 }
 0x1f4   : > { %4601 = vmatprep.subr.bf16.mxu0 %v5428_v4  ;;  %v5715_v4 = vcombine.low %v1590_v54, %v1606_v55  ;;  %v5686_v7 = vcombine.high %v1559_v2, %v1575_v3  ;;  %v1417_v54 = vld [vmem:[%s7081_s8 + $0x4c8] sm:$0xff] }
 0x1f6   : > { %4643 = vmatpush1.bf16.msra.mxu1 %v5429_v11  ;;  %v1543_v11 = vld [vmem:[%s7081_s8 + $0x8b8] sm:$0xff] }
 0x1f7   : > { %4602 = vmatpush1.bf16.msra.mxu0 %v5427_v10  ;;  %4644 = vmatprep.subr.bf16.mxu1 %v5398_v13  ;;  %v1527_v10 = vld [vmem:[%s7081_s8 + $0x838] sm:$0xff]  ;;  %v5685_v13 = vcombine.low %v1559_v2, %v1575_v3 }
 0x1f8   : > { %4603 = vmatprep.subr.bf16.mxu0 %v5396_v12  ;;  %v5683_v12 = vcombine.low %v1558_v62, %v1574_v63  ;;  %v5654_v16 = vcombine.high %v1527_v10, %v1543_v11 }
 0x1fa   : > { %4645 = vmatpush1.bf16.msra.mxu1 %v5397_v20  ;;  %v1513_v20 = vld [vmem:[%s7081_s8 + $0x7c8] sm:$0xff] }
 0x1fb   : > { %4604 = vmatpush1.bf16.msra.mxu0 %v5395_v19  ;;  %4646 = vmatprep.subr.bf16.mxu1 %v5878_v22  ;;  %v1497_v19 = vld [vmem:[%s7081_s8 + $0x748] sm:$0xff]  ;;  %v5653_v22 = vcombine.low %v1527_v10, %v1543_v11 }
 0x1fc   : > { %4605 = vmatprep.subr.bf16.mxu0 %v5876_v21  ;;  %v5651_v21 = vcombine.low %v1526_v8, %v1542_v9  ;;  %v5626_v23 = vcombine.high %v1497_v19, %v1513_v20  ;;  %v1385_v8 = vld [vmem:[%s7081_s8 + $0x3c8] sm:$0xff] }
 0x1fe   : > { %4647 = vmatpush2.bf16.msra.mxu1 %v5877_v27  ;;  %v1481_v27 = vld [vmem:[%s7081_s8 + $0x6c8] sm:$0xff] }
 0x1ff   : > { %4606 = vmatpush2.bf16.msra.mxu0 %v5875_v26  ;;  %4648 = vmatprep.subr.bf16.mxu1 %v5846_v29  ;;  %v1465_v26 = vld [vmem:[%s7081_s8 + $0x648] sm:$0xff]  ;;  %v5625_v29 = vcombine.low %v1497_v19, %v1513_v20 }
 0x200   : > { %4607 = vmatprep.subr.bf16.mxu0 %v5844_v28  ;;  %v5623_v28 = vcombine.low %v1496_v17, %v1512_v18  ;;  %v5594_v32 = vcombine.high %v1465_v26, %v1481_v27  ;;  %v5593_v40 = vcombine.low %v1465_v26, %v1481_v27  ;;  %v1337_v17 = vld [vmem:[%s7081_s8 + $0x248] sm:$0xff] }
 0x201   : > { %v1353_v18 = vld [vmem:[%s7081_s8 + $0x2c8] sm:$0xff] }
 0x202   : > { %4649 = vmatpush2.bf16.msra.mxu1 %v5845_v35  ;;  %v1449_v35 = vld [vmem:[%s7081_s8 + $0x5c8] sm:$0xff]  ;;  %v5465_v27 = vcombine.low %v1337_v17, %v1353_v18 }
 0x203   : > { %4608 = vmatpush2.bf16.msra.mxu0 %v5843_v34  ;;  %4650 = vmatprep.subr.bf16.mxu1 %v5814_v37  ;;  %v1433_v34 = vld [vmem:[%s7081_s8 + $0x548] sm:$0xff] }
 0x204   : > { %4609 = vmatprep.subr.bf16.mxu0 %v5812_v36 }
 0x206   : > { %4651 = vmatpush2.bf16.msra.mxu1 %v5813_v43  ;;  %v5560_v43 = vcombine.high %v1432_v31, %v1448_v33 }
 0x207   : > { %4610 = vmatpush2.bf16.msra.mxu0 %v5811_v42  ;;  %4652 = vmatprep.subr.bf16.mxu1 %v5782_v45 }
 0x208   : > { %4611 = vmatprep.subr.bf16.mxu0 %v5780_v44  ;;  %v5562_v44 = vcombine.high %v1433_v34, %v1449_v35 }
 0x20a   : > { %4653 = vmatpush2.bf16.msra.mxu1 %v5781_v51 }
 0x20b   : > { %4612 = vmatpush2.bf16.msra.mxu0 %v5779_v50  ;;  %4654 = vmatprep.subr.bf16.mxu1 %v5750_v53  ;;  %v1416_v50 = vld [vmem:[%s7081_s8 + $0x4c0] sm:$0xff]  ;;  %v1401_v53 = vld [vmem:[%s7081_s8 + $0x448] sm:$0xff] }
 0x20c   : > { %4613 = vmatprep.subr.bf16.mxu0 %v5748_v52  ;;  %v5528_v62 = vcombine.high %v1400_v49, %v1416_v50  ;;  %v5527_v10 = vcombine.low %v1400_v49, %v1416_v50  ;;  %v5529_v11 = vcombine.low %v1401_v53, %v1417_v54  ;;  %v1737_v49 = vld [vmem:[%s7081_s8 + $0xec8] sm:$0xff] }
 0x20e   : > { %4655 = vmatpush2.bf16.msra.mxu1 %v5749_v59  ;;  %v5559_v59 = vcombine.low %v1432_v31, %v1448_v33  ;;  %v1288_v31 = vld [vmem:[%s7081_s8 + $0xc0] sm:$0xff]  ;;  %v1289_v33 = vld [vmem:[%s7081_s8 + $0xc8] sm:$0xff] }
 0x20f   : > { %4614 = vmatpush2.bf16.msra.mxu0 %v5747_v58  ;;  %4656 = vmatprep.subr.bf16.mxu1 %v5718_v61  ;;  %v5561_v61 = vcombine.low %v1433_v34, %v1449_v35  ;;  %v5433_v35 = vcombine.low %v1305_v24, %v1321_v25 }
 0x210   : > { %4615 = vmatprep.subr.bf16.mxu0 %v5716_v60 }
 0x212   : > { %4657 = vmatpush2.bf16.msra.mxu1 %v5717_v5  ;;  %v1368_v5 = vld [vmem:[%s7081_s8 + $0x340] sm:$0xff] }
 0x213   : > { %4616 = vmatpush2.bf16.msra.mxu0 %v5715_v4  ;;  %4658 = vmatprep.subr.bf16.mxu1 %v5686_v7  ;;  %v5530_v4 = vcombine.high %v1401_v53, %v1417_v54  ;;  %v1369_v7 = vld [vmem:[%s7081_s8 + $0x348] sm:$0xff]  ;;  %v1688_v54 = vld [vmem:[%s7081_s8 + $0xd40] sm:$0xff] }
 0x214   : > { %4617 = vmatprep.subr.bf16.mxu0 %v5684_v6  ;;  %v1384_v6 = vld [vmem:[%s7081_s8 + $0x3c0] sm:$0xff]  ;;  %v5497_v20 = vcombine.low %v1369_v7, %v1385_v8 }
 0x215   : > { %v5495_v19 = vcombine.low %v1368_v5, %v1384_v6 }
 0x216   : > { %4659 = vmatpush2.bf16.msra.mxu1 %v5685_v13  ;;  %v5498_v13 = vcombine.high %v1369_v7, %v1385_v8 }
 0x217   : > { %4618 = vmatpush2.bf16.msra.mxu0 %v5683_v12  ;;  %4660 = vmatprep.subr.bf16.mxu1 %v5654_v16  ;;  %v5496_v12 = vcombine.high %v1368_v5, %v1384_v6  ;;  %v1352_v16 = vld [vmem:[%s7081_s8 + $0x2c0] sm:$0xff] }
 0x218   : > { %4619 = vmatprep.subr.bf16.mxu0 %v5652_v15  ;;  %v1336_v15 = vld [vmem:[%s7081_s8 + $0x240] sm:$0xff] }
 0x219   : > { %v5463_v26 = vcombine.low %v1336_v15, %v1352_v16 }
 0x21a   : > { %4661 = vmatpush2.bf16.msra.mxu1 %v5653_v22  ;;  %v5466_v22 = vcombine.high %v1337_v17, %v1353_v18 }
 0x21b   : > { %4620 = vmatpush2.bf16.msra.mxu0 %v5651_v21  ;;  %4712 = vmatprep.subr.bf16.mxu1 %v5626_v23  ;;  %v5464_v21 = vcombine.high %v1336_v15, %v1352_v16  ;;  %v1320_v23 = vld [vmem:[%s7081_s8 + $0x1c0] sm:$0xff] }
 0x21c   : > { %4671 = vmatprep.subr.bf16.mxu0 %v5624_v0  ;;  %v1304_v0 = vld [vmem:[%s7081_s8 + $0x140] sm:$0xff] }
 0x21d   : > { %v4418_v38 = vpop.f32.mrf.mxu1  ;;  %4663 = vmatmul.mubr.bf16.vlgmr.msra.gmra.mxu1 %v7157_v14  ;;  %v5431_v34 = vcombine.low %v1304_v0, %v1320_v23 }
 0x21e   : > { %v4377_v36 = vpop.f32.mrf.mxu0  ;;  %4622 = vmatmul.mubr.bf16.vlgmr.msra.gmra.mxu0 %v7157_v14  ;;  %v5180_v41 = vmul.f32 %v4418_v38, %v4418_v38  ;;  %4713 = vmatpush1.bf16.msra.mxu1 %v5625_v29  ;;  %v5434_v29 = vcombine.high %v1305_v24, %v1321_v25 }
 0x21f   : > { %v5178_v37 = vmul.f32 %v4377_v36, %v4377_v36  ;;  %4672 = vmatpush1.bf16.msra.mxu0 %v5623_v28  ;;  %v4420_v48 = vpop.f32.mrf.mxu1  ;;  %4714 = vmatprep.subr.bf16.mxu1 %v5594_v32  ;;  %v5432_v28 = vcombine.high %v1304_v0, %v1320_v23  ;;  %v1273_v32 = vld [vmem:[%s7081_s8 + $0x48] sm:$0xff] }
 0x220   : > { %v4379_v42 = vpop.f32.mrf.mxu0  ;;  %4673 = vmatprep.subr.bf16.mxu0 %v5592_v30  ;;  %4703 = vmatprep.mubr.bf16.mxu0 %v7079_v1  ;;  %v5915_v51 = vpack.c.bf16 %v4420_v48, %v4418_v38  ;;  %v5181_v57 = vmul.f32 %v4420_v48, %v4420_v48  ;;  %v1272_v30 = vld [vmem:[%s7081_s8 + $0x40] sm:$0xff] }
 0x221   : > { %v5914_v45 = vpack.c.bf16 %v4379_v42, %v4377_v36  ;;  %v5143_v46 = vadd.f32 %v4379_v42, %v4377_v36  ;;  %v5179_v47 = vmul.f32 %v4379_v42, %v4379_v42  ;;  %4744 = vmatprep.mubr.bf16.mxu1 %v7079_v1  ;;  %v4422_v58 = vpop.f32.mrf.mxu1  ;;  %v5400_v36 = vcombine.high %v1272_v30, %v1288_v31 }
 0x222   : > { %v4381_v52 = vpop.f32.mrf.mxu0  ;;  %5128 = vst [vmem:[%s7378_s13 + $0x8] sm:$0xff] %v5915_v51  ;;  %4715 = vmatpush1.bf16.msra.mxu1 %v5593_v40  ;;  %v1753_v40 = vld [vmem:[%s7081_s8 + $0xf48] sm:$0xff]  ;;  %v5399_v42 = vcombine.low %v1272_v30, %v1288_v31 }
 0x223   : > { %5127 = vst [vmem:[%s7378_s13] sm:$0xff] %v5914_v45  ;;  %v5210_v55 = vadd.f32 %v5179_v47, %v5178_v37  ;;  %v5144_v56 = vadd.f32 %v5143_v46, %v4418_v38  ;;  %4674 = vmatpush1.bf16.msra.mxu0 %v5591_v39  ;;  %v4423_v3 = vpop.f32.mrf.mxu1  ;;  %4716 = vmatprep.subr.bf16.mxu1 %v5562_v44  ;;  %v1752_v38 = vld [vmem:[%s7081_s8 + $0xf40] sm:$0xff] }
 0x224   : > { %v4382_v60 = vpop.f32.mrf.mxu0  ;;  %4675 = vmatprep.subr.bf16.mxu0 %v5560_v43  ;;  %v5402_v37 = vcombine.high %v1273_v32, %v1289_v33  ;;  %v1768_v39 = vld [vmem:[%s7081_s8 + $0xfc0] sm:$0xff]  ;;  %v5401_v43 = vcombine.low %v1273_v32, %v1289_v33  ;;  %v1657_v3 = vld [vmem:[%s7081_s8 + $0xc48] sm:$0xff] }
 0x225   : > { %v7388_v63 = vadd.f32 %v5144_v56, %v4420_v48  ;;  %v5211_v2 = vadd.f32 %v5210_v55, %v5180_v41  ;;  %v1769_v41 = vld [vmem:[%s7081_s8 + $0xfc8] sm:$0xff]  ;;  %v5880_v44 = vcombine.high %v1752_v38, %v1768_v39  ;;  %v1720_v46 = vld [vmem:[%s7081_s8 + $0xe40] sm:$0xff]  ;;  %v5879_v50 = vcombine.low %v1752_v38, %v1768_v39 }
 0x226   : > { %4717 = vmatpush1.bf16.msra.mxu1 %v5561_v61  ;;  %v5882_v45 = vcombine.high %v1753_v40, %v1769_v41  ;;  %v1736_v47 = vld [vmem:[%s7081_s8 + $0xec0] sm:$0xff]  ;;  %v1721_v48 = vld [vmem:[%s7081_s8 + $0xe48] sm:$0xff]  ;;  %v5881_v51 = vcombine.low %v1753_v40, %v1769_v41 }
 0x227   : > { %v7394_v9 = vadd.f32 %v5211_v2, %v5181_v57  ;;  %4676 = vmatpush1.bf16.msra.mxu0 %v5559_v59  ;;  %4718 = vmatprep.subr.bf16.mxu1 %v5530_v4  ;;  %v5848_v52 = vcombine.high %v1720_v46, %v1736_v47  ;;  %v5850_v53 = vcombine.high %v1721_v48, %v1737_v49  ;;  %v1704_v55 = vld [vmem:[%s7081_s8 + $0xdc0] sm:$0xff]  ;;  %v1689_v56 = vld [vmem:[%s7081_s8 + $0xd48] sm:$0xff] }
 0x228   : > { %4677 = vmatprep.subr.bf16.mxu0 %v5528_v62  ;;  %v1705_v57 = vld [vmem:[%s7081_s8 + $0xdc8] sm:$0xff]  ;;  %v5847_v58 = vcombine.low %v1720_v46, %v1736_v47  ;;  %v5849_v59 = vcombine.low %v1721_v48, %v1737_v49  ;;  %v5816_v60 = vcombine.high %v1688_v54, %v1704_v55  ;;  %v1656_v62 = vld [vmem:[%s7081_s8 + $0xc40] sm:$0xff]  ;;  %v5815_v5 = vcombine.low %v1688_v54, %v1704_v55 }
 0x229   : > { %v5818_v61 = vcombine.high %v1689_v56, %v1705_v57  ;;  %v1672_v2 = vld [vmem:[%s7081_s8 + $0xcc0] sm:$0xff]  ;;  %v1673_v4 = vld [vmem:[%s7081_s8 + $0xcc8] sm:$0xff]  ;;  %v5817_v6 = vcombine.low %v1689_v56, %v1705_v57  ;;  %v1434_v57 = vld [vmem:[%s7081_s8 + $0x550] sm:$0xff] }
 0x22a   : > { %4719 = vmatpush1.bf16.msra.mxu1 %v5529_v11  ;;  %v5784_v7 = vcombine.high %v1656_v62, %v1672_v2  ;;  %v5786_v8 = vcombine.high %v1657_v3, %v1673_v4  ;;  %v1640_v11 = vld [vmem:[%s7081_s8 + $0xbc0] sm:$0xff]  ;;  %v5783_v15 = vcombine.low %v1656_v62, %v1672_v2  ;;  %v5785_v16 = vcombine.low %v1657_v3, %v1673_v4 }
 0x22b   : > { %4678 = vmatpush1.bf16.msra.mxu0 %v5527_v10  ;;  %4720 = vmatprep.subr.bf16.mxu1 %v5498_v13  ;;  %v1624_v10 = vld [vmem:[%s7081_s8 + $0xb40] sm:$0xff]  ;;  %v1641_v13 = vld [vmem:[%s7081_s8 + $0xbc8] sm:$0xff] }
 0x22c   : > { %4679 = vmatprep.subr.bf16.mxu0 %v5496_v12  ;;  %v1625_v12 = vld [vmem:[%s7081_s8 + $0xb48] sm:$0xff]  ;;  %v5752_v17 = vcombine.high %v1624_v10, %v1640_v11  ;;  %v5751_v0 = vcombine.low %v1624_v10, %v1640_v11 }
 0x22d   : > { %v5754_v18 = vcombine.high %v1625_v12, %v1641_v13  ;;  %v5753_v23 = vcombine.low %v1625_v12, %v1641_v13 }
 0x22e   : > { %4721 = vmatpush1.bf16.msra.mxu1 %v5497_v20  ;;  %v1608_v20 = vld [vmem:[%s7081_s8 + $0xac0] sm:$0xff] }
 0x22f   : > { %4680 = vmatpush1.bf16.msra.mxu0 %v5495_v19  ;;  %4722 = vmatprep.subr.bf16.mxu1 %v5466_v22  ;;  %v1592_v19 = vld [vmem:[%s7081_s8 + $0xa40] sm:$0xff]  ;;  %v1609_v22 = vld [vmem:[%s7081_s8 + $0xac8] sm:$0xff] }
 0x230   : > { %4681 = vmatprep.subr.bf16.mxu0 %v5464_v21  ;;  %v1593_v21 = vld [vmem:[%s7081_s8 + $0xa48] sm:$0xff]  ;;  %v5720_v24 = vcombine.high %v1592_v19, %v1608_v20  ;;  %v5719_v30 = vcombine.low %v1592_v19, %v1608_v20 }
 0x231   : > { %v5722_v25 = vcombine.high %v1593_v21, %v1609_v22  ;;  %v5721_v31 = vcombine.low %v1593_v21, %v1609_v22  ;;  %v1403_v21 = vld [vmem:[%s7081_s8 + $0x458] sm:$0xff] }
 0x232   : > { %4723 = vmatpush1.bf16.msra.mxu1 %v5465_v27  ;;  %v1576_v27 = vld [vmem:[%s7081_s8 + $0x9c0] sm:$0xff]  ;;  %v1419_v22 = vld [vmem:[%s7081_s8 + $0x4d8] sm:$0xff] }
 0x233   : > { %4682 = vmatpush1.bf16.msra.mxu0 %v5463_v26  ;;  %4724 = vmatprep.subr.bf16.mxu1 %v5434_v29  ;;  %v1560_v26 = vld [vmem:[%s7081_s8 + $0x940] sm:$0xff]  ;;  %v1577_v29 = vld [vmem:[%s7081_s8 + $0x9c8] sm:$0xff] }
 0x234   : > { %4683 = vmatprep.subr.bf16.mxu0 %v5432_v28  ;;  %v1561_v28 = vld [vmem:[%s7081_s8 + $0x948] sm:$0xff]  ;;  %v5688_v32 = vcombine.high %v1560_v26, %v1576_v27  ;;  %v5687_v38 = vcombine.low %v1560_v26, %v1576_v27 }
 0x235   : > { %v5690_v33 = vcombine.high %v1561_v28, %v1577_v29  ;;  %v5689_v39 = vcombine.low %v1561_v28, %v1577_v29 }
 0x236   : > { %4725 = vmatpush1.bf16.msra.mxu1 %v5433_v35  ;;  %v1544_v35 = vld [vmem:[%s7081_s8 + $0x8c0] sm:$0xff] }
 0x237   : > { %4684 = vmatpush1.bf16.msra.mxu0 %v5431_v34  ;;  %4726 = vmatprep.subr.bf16.mxu1 %v5402_v37  ;;  %v1528_v34 = vld [vmem:[%s7081_s8 + $0x840] sm:$0xff]  ;;  %v1545_v37 = vld [vmem:[%s7081_s8 + $0x8c8] sm:$0xff] }
 0x238   : > { %4685 = vmatprep.subr.bf16.mxu0 %v5400_v36  ;;  %v1529_v36 = vld [vmem:[%s7081_s8 + $0x848] sm:$0xff]  ;;  %v5656_v40 = vcombine.high %v1528_v34, %v1544_v35  ;;  %v5655_v46 = vcombine.low %v1528_v34, %v1544_v35  ;;  %v1386_v34 = vld [vmem:[%s7081_s8 + $0x3d0] sm:$0xff]  ;;  %v1371_v35 = vld [vmem:[%s7081_s8 + $0x358] sm:$0xff] }
 0x239   : > { %v5658_v41 = vcombine.high %v1529_v36, %v1545_v37  ;;  %v5657_v47 = vcombine.low %v1529_v36, %v1545_v37  ;;  %v1387_v36 = vld [vmem:[%s7081_s8 + $0x3d8] sm:$0xff] }
 0x23a   : > { %4727 = vmatpush1.bf16.msra.mxu1 %v5401_v43  ;;  %v1514_v43 = vld [vmem:[%s7081_s8 + $0x7d0] sm:$0xff] }
 0x23b   : > { %4686 = vmatpush1.bf16.msra.mxu0 %v5399_v42  ;;  %4728 = vmatprep.subr.bf16.mxu1 %v5882_v45  ;;  %v1498_v42 = vld [vmem:[%s7081_s8 + $0x750] sm:$0xff]  ;;  %v1515_v45 = vld [vmem:[%s7081_s8 + $0x7d8] sm:$0xff] }
 0x23c   : > { %4687 = vmatprep.subr.bf16.mxu0 %v5880_v44  ;;  %v1499_v44 = vld [vmem:[%s7081_s8 + $0x758] sm:$0xff]  ;;  %v5628_v48 = vcombine.high %v1498_v42, %v1514_v43  ;;  %v5627_v54 = vcombine.low %v1498_v42, %v1514_v43  ;;  %v1338_v42 = vld [vmem:[%s7081_s8 + $0x250] sm:$0xff] }
 0x23d   : > { %v5630_v49 = vcombine.high %v1499_v44, %v1515_v45  ;;  %v5629_v55 = vcombine.low %v1499_v44, %v1515_v45  ;;  %v1354_v43 = vld [vmem:[%s7081_s8 + $0x2d0] sm:$0xff]  ;;  %v1339_v44 = vld [vmem:[%s7081_s8 + $0x258] sm:$0xff] }
 0x23e   : > { %4729 = vmatpush2.bf16.msra.mxu1 %v5881_v51  ;;  %v1482_v51 = vld [vmem:[%s7081_s8 + $0x6d0] sm:$0xff]  ;;  %v1355_v45 = vld [vmem:[%s7081_s8 + $0x2d8] sm:$0xff] }
 0x23f   : > { %4688 = vmatpush2.bf16.msra.mxu0 %v5879_v50  ;;  %4730 = vmatprep.subr.bf16.mxu1 %v5850_v53  ;;  %v1466_v50 = vld [vmem:[%s7081_s8 + $0x650] sm:$0xff]  ;;  %v1483_v53 = vld [vmem:[%s7081_s8 + $0x6d8] sm:$0xff] }
 0x240   : > { %4689 = vmatprep.subr.bf16.mxu0 %v5848_v52  ;;  %v1467_v52 = vld [vmem:[%s7081_s8 + $0x658] sm:$0xff]  ;;  %v5596_v56 = vcombine.high %v1466_v50, %v1482_v51  ;;  %v5595_v2 = vcombine.low %v1466_v50, %v1482_v51  ;;  %v1306_v50 = vld [vmem:[%s7081_s8 + $0x150] sm:$0xff] }
 0x241   : > { %v1322_v51 = vld [vmem:[%s7081_s8 + $0x1d0] sm:$0xff] }
 0x242   : > { %4731 = vmatpush2.bf16.msra.mxu1 %v5849_v59  ;;  %v1450_v59 = vld [vmem:[%s7081_s8 + $0x5d0] sm:$0xff] }
 0x243   : > { %4690 = vmatpush2.bf16.msra.mxu0 %v5847_v58  ;;  %4732 = vmatprep.subr.bf16.mxu1 %v5818_v61  ;;  %v5598_v58 = vcombine.high %v1467_v52, %v1483_v53  ;;  %v1451_v61 = vld [vmem:[%s7081_s8 + $0x5d8] sm:$0xff]  ;;  %v5564_v10 = vcombine.high %v1434_v57, %v1450_v59 }
 0x244   : > { %4691 = vmatprep.subr.bf16.mxu0 %v5816_v60  ;;  %v1435_v60 = vld [vmem:[%s7081_s8 + $0x558] sm:$0xff] }
 0x245   : > { %v5566_v11 = vcombine.high %v1435_v60, %v1451_v61  ;;  %v5565_v27 = vcombine.low %v1435_v60, %v1451_v61  ;;  %v1275_v60 = vld [vmem:[%s7081_s8 + $0x58] sm:$0xff] }
 0x246   : > { %4733 = vmatpush2.bf16.msra.mxu1 %v5817_v6  ;;  %v5597_v6 = vcombine.low %v1467_v52, %v1483_v53  ;;  %v1307_v52 = vld [vmem:[%s7081_s8 + $0x158] sm:$0xff] }
 0x247   : > { %4692 = vmatpush2.bf16.msra.mxu0 %v5815_v5  ;;  %4734 = vmatprep.subr.bf16.mxu1 %v5786_v8  ;;  %v1323_v53 = vld [vmem:[%s7081_s8 + $0x1d8] sm:$0xff] }
 0x248   : > { %4693 = vmatprep.subr.bf16.mxu0 %v5784_v7  ;;  %v1291_v61 = vld [vmem:[%s7081_s8 + $0xd8] sm:$0xff] }
 0x24a   : > { %4735 = vmatpush2.bf16.msra.mxu1 %v5785_v16 }
 0x24b   : > { %4694 = vmatpush2.bf16.msra.mxu0 %v5783_v15  ;;  %4736 = vmatprep.subr.bf16.mxu1 %v5754_v18  ;;  %v1418_v18 = vld [vmem:[%s7081_s8 + $0x4d0] sm:$0xff] }
 0x24c   : > { %4695 = vmatprep.subr.bf16.mxu0 %v5752_v17  ;;  %v1402_v17 = vld [vmem:[%s7081_s8 + $0x450] sm:$0xff] }
 0x24d   : > { %v5532_v28 = vcombine.high %v1402_v17, %v1418_v18 }
 0x24e   : > { %4737 = vmatpush2.bf16.msra.mxu1 %v5753_v23 }
 0x24f   : > { %4696 = vmatpush2.bf16.msra.mxu0 %v5751_v0  ;;  %4738 = vmatprep.subr.bf16.mxu1 %v5722_v25  ;;  %v5563_v25 = vcombine.low %v1434_v57, %v1450_v59  ;;  %v5438_v57 = vcombine.high %v1307_v52, %v1323_v53  ;;  %v1290_v59 = vld [vmem:[%s7081_s8 + $0xd0] sm:$0xff] }
 0x250   : > { %4697 = vmatprep.subr.bf16.mxu0 %v5720_v24 }
 0x252   : > { %4739 = vmatpush2.bf16.msra.mxu1 %v5721_v31 }
 0x253   : > { %4698 = vmatpush2.bf16.msra.mxu0 %v5719_v30  ;;  %4740 = vmatprep.subr.bf16.mxu1 %v5690_v33  ;;  %v1370_v33 = vld [vmem:[%s7081_s8 + $0x350] sm:$0xff] }
 0x254   : > { %4699 = vmatprep.subr.bf16.mxu0 %v5688_v32  ;;  %v5534_v32 = vcombine.high %v1403_v21, %v1419_v22 }
 0x256   : > { %4741 = vmatpush2.bf16.msra.mxu1 %v5689_v39  ;;  %v5533_v39 = vcombine.low %v1403_v21, %v1419_v22  ;;  %v1690_v22 = vld [vmem:[%s7081_s8 + $0xd50] sm:$0xff] }
 0x257   : > { %4700 = vmatpush2.bf16.msra.mxu0 %v5687_v38  ;;  %4742 = vmatprep.subr.bf16.mxu1 %v5658_v41  ;;  %v5531_v38 = vcombine.low %v1402_v17, %v1418_v18  ;;  %v5502_v41 = vcombine.high %v1371_v35, %v1387_v36  ;;  %v1739_v17 = vld [vmem:[%s7081_s8 + $0xed8] sm:$0xff] }
 0x258   : > { %4701 = vmatprep.subr.bf16.mxu0 %v5656_v40  ;;  %v5500_v40 = vcombine.high %v1370_v33, %v1386_v34 }
 0x25a   : > { %4743 = vmatpush2.bf16.msra.mxu1 %v5657_v47  ;;  %v5501_v47 = vcombine.low %v1371_v35, %v1387_v36 }
 0x25b   : > { %4702 = vmatpush2.bf16.msra.mxu0 %v5655_v46  ;;  %4794 = vmatprep.subr.bf16.mxu1 %v5630_v49  ;;  %v5499_v46 = vcombine.low %v1370_v33, %v1386_v34  ;;  %v5470_v49 = vcombine.high %v1339_v44, %v1355_v45 }
 0x25c   : > { %4753 = vmatprep.subr.bf16.mxu0 %v5628_v48  ;;  %v5468_v48 = vcombine.high %v1338_v42, %v1354_v43 }
 0x25d   : > { %v4500_v5 = vpop.f32.mrf.mxu1  ;;  %4745 = vmatmul.mubr.bf16.vlgmr.msra.gmra.mxu1 %v7157_v14 }
 0x25e   : > { %v4459_v62 = vpop.f32.mrf.mxu0  ;;  %4704 = vmatmul.mubr.bf16.vlgmr.msra.gmra.mxu0 %v7157_v14  ;;  %v5184_v7 = vmul.f32 %v4500_v5, %v4500_v5  ;;  %4795 = vmatpush1.bf16.msra.mxu1 %v5629_v55  ;;  %v5469_v55 = vcombine.low %v1339_v44, %v1355_v45 }
 0x25f   : > { %v5146_v3 = vadd.f32 %v7388_v63, %v4459_v62  ;;  %v5182_v4 = vmul.f32 %v4459_v62, %v4459_v62  ;;  %4754 = vmatpush1.bf16.msra.mxu0 %v5627_v54  ;;  %v4502_v16 = vpop.f32.mrf.mxu1  ;;  %4796 = vmatprep.subr.bf16.mxu1 %v5598_v58  ;;  %v5467_v54 = vcombine.low %v1338_v42, %v1354_v43  ;;  %v1274_v58 = vld [vmem:[%s7081_s8 + $0x50] sm:$0xff] }
 0x260   : > { %v4461_v8 = vpop.f32.mrf.mxu0  ;;  %4755 = vmatprep.subr.bf16.mxu0 %v5596_v56  ;;  %v5917_v19 = vpack.c.bf16 %v4502_v16, %v4500_v5  ;;  %4785 = vmatprep.mubr.bf16.mxu0 %v7079_v1  ;;  %v5436_v56 = vcombine.high %v1306_v50, %v1322_v51 }
 0x261   : > { %v5213_v12 = vadd.f32 %v7394_v9, %v5182_v4  ;;  %v5916_v63 = vpack.c.bf16 %v4461_v8, %v4459_v62  ;;  %v5147_v13 = vadd.f32 %v5146_v3, %v4461_v8  ;;  %v5183_v15 = vmul.f32 %v4461_v8, %v4461_v8  ;;  %4826 = vmatprep.mubr.bf16.mxu1 %v7079_v1  ;;  %v4504_v24 = vpop.f32.mrf.mxu1  ;;  %v1771_v8 = vld [vmem:[%s7081_s8 + $0xfd8] sm:$0xff] }
 0x262   : > { %v4463_v20 = vpop.f32.mrf.mxu0  ;;  %v5185_v9 = vmul.f32 %v4502_v16, %v4502_v16  ;;  %5130 = vst [vmem:[%s7378_s13 + $0x18] sm:$0xff] %v5917_v19  ;;  %4797 = vmatpush1.bf16.msra.mxu1 %v5597_v6  ;;  %v5435_v62 = vcombine.low %v1306_v50, %v1322_v51  ;;  %v5404_v3 = vcombine.high %v1274_v58, %v1290_v59  ;;  %v1770_v6 = vld [vmem:[%s7081_s8 + $0xfd0] sm:$0xff] }
 0x263   : > { %5129 = vst [vmem:[%s7378_s13 + $0x10] sm:$0xff] %v5916_v63  ;;  %v5214_v0 = vadd.f32 %v5213_v12, %v5183_v15  ;;  %v5148_v23 = vadd.f32 %v5147_v13, %v4500_v5  ;;  %4756 = vmatpush1.bf16.msra.mxu0 %v5595_v2  ;;  %v4505_v31 = vpop.f32.mrf.mxu1  ;;  %4798 = vmatprep.subr.bf16.mxu1 %v5566_v11  ;;  %v1754_v5 = vld [vmem:[%s7081_s8 + $0xf50] sm:$0xff] }
 0x264   : > { %v4464_v26 = vpop.f32.mrf.mxu0  ;;  %4757 = vmatprep.subr.bf16.mxu0 %v5564_v10  ;;  %v5437_v2 = vcombine.low %v1307_v52, %v1323_v53  ;;  %v5406_v4 = vcombine.high %v1275_v60, %v1291_v61  ;;  %v5403_v10 = vcombine.low %v1274_v58, %v1290_v59  ;;  %v5405_v11 = vcombine.low %v1275_v60, %v1291_v61  ;;  %v1722_v13 = vld [vmem:[%s7081_s8 + $0xe50] sm:$0xff]  ;;  %v1659_v31 = vld [vmem:[%s7081_s8 + $0xc58] sm:$0xff] }
 0x265   : > { %v7464_v29 = vadd.f32 %v5148_v23, %v4502_v16  ;;  %v5215_v30 = vadd.f32 %v5214_v0, %v5184_v7  ;;  %v1755_v7 = vld [vmem:[%s7081_s8 + $0xf58] sm:$0xff]  ;;  %v5884_v12 = vcombine.high %v1754_v5, %v1770_v6  ;;  %v1738_v15 = vld [vmem:[%s7081_s8 + $0xed0] sm:$0xff]  ;;  %v5883_v18 = vcombine.low %v1754_v5, %v1770_v6 }
 0x266   : > { %4799 = vmatpush1.bf16.msra.mxu1 %v5565_v27  ;;  %v5886_v63 = vcombine.high %v1755_v7, %v1771_v8  ;;  %v1723_v16 = vld [vmem:[%s7081_s8 + $0xe58] sm:$0xff]  ;;  %v5885_v19 = vcombine.low %v1755_v7, %v1771_v8  ;;  %v5852_v20 = vcombine.high %v1722_v13, %v1738_v15  ;;  %v1706_v0 = vld [vmem:[%s7081_s8 + $0xdd0] sm:$0xff]  ;;  %v5851_v24 = vcombine.low %v1722_v13, %v1738_v15 }
 0x267   : > { %v7470_v37 = vadd.f32 %v5215_v30, %v5185_v9  ;;  %4758 = vmatpush1.bf16.msra.mxu0 %v5563_v25  ;;  %4800 = vmatprep.subr.bf16.mxu1 %v5534_v32  ;;  %v5854_v21 = vcombine.high %v1723_v16, %v1739_v17  ;;  %v1691_v23 = vld [vmem:[%s7081_s8 + $0xd58] sm:$0xff]  ;;  %v5853_v25 = vcombine.low %v1723_v16, %v1739_v17  ;;  %v1674_v30 = vld [vmem:[%s7081_s8 + $0xcd0] sm:$0xff] }
 0x268   : > { %4759 = vmatprep.subr.bf16.mxu0 %v5532_v28  ;;  %v1707_v9 = vld [vmem:[%s7081_s8 + $0xdd8] sm:$0xff]  ;;  %v5820_v26 = vcombine.high %v1690_v22, %v1706_v0  ;;  %v1658_v28 = vld [vmem:[%s7081_s8 + $0xc50] sm:$0xff]  ;;  %v5819_v33 = vcombine.low %v1690_v22, %v1706_v0 }
 0x269   : > { %v5822_v27 = vcombine.high %v1691_v23, %v1707_v9  ;;  %v1675_v32 = vld [vmem:[%s7081_s8 + $0xcd8] sm:$0xff]  ;;  %v5821_v34 = vcombine.low %v1691_v23, %v1707_v9  ;;  %v5788_v35 = vcombine.high %v1658_v28, %v1674_v30  ;;  %v5787_v42 = vcombine.low %v1658_v28, %v1674_v30  ;;  %v1436_v9 = vld [vmem:[%s7081_s8 + $0x560] sm:$0xff] }
 0x26a   : > { %4801 = vmatpush1.bf16.msra.mxu1 %v5533_v39  ;;  %v5790_v36 = vcombine.high %v1659_v31, %v1675_v32  ;;  %v1642_v39 = vld [vmem:[%s7081_s8 + $0xbd0] sm:$0xff]  ;;  %v5789_v43 = vcombine.low %v1659_v31, %v1675_v32 }
 0x26b   : > { %4760 = vmatpush1.bf16.msra.mxu0 %v5531_v38  ;;  %4802 = vmatprep.subr.bf16.mxu1 %v5502_v41  ;;  %v1626_v38 = vld [vmem:[%s7081_s8 + $0xb50] sm:$0xff]  ;;  %v1643_v41 = vld [vmem:[%s7081_s8 + $0xbd8] sm:$0xff] }
 0x26c   : > { %4761 = vmatprep.subr.bf16.mxu0 %v5500_v40  ;;  %v1627_v40 = vld [vmem:[%s7081_s8 + $0xb58] sm:$0xff]  ;;  %v5756_v44 = vcombine.high %v1626_v38, %v1642_v39  ;;  %v5755_v50 = vcombine.low %v1626_v38, %v1642_v39 }
 0x26d   : > { %v5758_v45 = vcombine.high %v1627_v40, %v1643_v41  ;;  %v5757_v51 = vcombine.low %v1627_v40, %v1643_v41 }
 0x26e   : > { %4803 = vmatpush1.bf16.msra.mxu1 %v5501_v47  ;;  %v1610_v47 = vld [vmem:[%s7081_s8 + $0xad0] sm:$0xff] }
 0x26f   : > { %4762 = vmatpush1.bf16.msra.mxu0 %v5499_v46  ;;  %4804 = vmatprep.subr.bf16.mxu1 %v5470_v49  ;;  %v1594_v46 = vld [vmem:[%s7081_s8 + $0xa50] sm:$0xff]  ;;  %v1611_v49 = vld [vmem:[%s7081_s8 + $0xad8] sm:$0xff] }
 0x270   : > { %4763 = vmatprep.subr.bf16.mxu0 %v5468_v48  ;;  %v1595_v48 = vld [vmem:[%s7081_s8 + $0xa58] sm:$0xff]  ;;  %v5724_v52 = vcombine.high %v1594_v46, %v1610_v47  ;;  %v5723_v58 = vcombine.low %v1594_v46, %v1610_v47 }
 0x271   : > { %v5726_v53 = vcombine.high %v1595_v48, %v1611_v49  ;;  %v5725_v59 = vcombine.low %v1595_v48, %v1611_v49  ;;  %v1405_v48 = vld [vmem:[%s7081_s8 + $0x468] sm:$0xff] }
 0x272   : > { %4805 = vmatpush1.bf16.msra.mxu1 %v5469_v55  ;;  %v1578_v55 = vld [vmem:[%s7081_s8 + $0x9d0] sm:$0xff]  ;;  %v1421_v49 = vld [vmem:[%s7081_s8 + $0x4e8] sm:$0xff] }
 0x273   : > { %4764 = vmatpush1.bf16.msra.mxu0 %v5467_v54  ;;  %4806 = vmatprep.subr.bf16.mxu1 %v5438_v57  ;;  %v1562_v54 = vld [vmem:[%s7081_s8 + $0x950] sm:$0xff]  ;;  %v1579_v57 = vld [vmem:[%s7081_s8 + $0x9d8] sm:$0xff] }
 0x274   : > { %4765 = vmatprep.subr.bf16.mxu0 %v5436_v56  ;;  %v1563_v56 = vld [vmem:[%s7081_s8 + $0x958] sm:$0xff]  ;;  %v5692_v60 = vcombine.high %v1562_v54, %v1578_v55  ;;  %v5691_v5 = vcombine.low %v1562_v54, %v1578_v55 }
 0x275   : > { %v5694_v61 = vcombine.high %v1563_v56, %v1579_v57  ;;  %v5693_v6 = vcombine.low %v1563_v56, %v1579_v57 }
 0x276   : > { %4807 = vmatpush1.bf16.msra.mxu1 %v5437_v2  ;;  %v1546_v2 = vld [vmem:[%s7081_s8 + $0x8d0] sm:$0xff] }
 0x277   : > { %4766 = vmatpush1.bf16.msra.mxu0 %v5435_v62  ;;  %4808 = vmatprep.subr.bf16.mxu1 %v5406_v4  ;;  %v1530_v62 = vld [vmem:[%s7081_s8 + $0x850] sm:$0xff]  ;;  %v1547_v4 = vld [vmem:[%s7081_s8 + $0x8d8] sm:$0xff] }
 0x278   : > { %4767 = vmatprep.subr.bf16.mxu0 %v5404_v3  ;;  %v1531_v3 = vld [vmem:[%s7081_s8 + $0x858] sm:$0xff]  ;;  %v5660_v7 = vcombine.high %v1530_v62, %v1546_v2  ;;  %v5659_v13 = vcombine.low %v1530_v62, %v1546_v2  ;;  %v1388_v62 = vld [vmem:[%s7081_s8 + $0x3e0] sm:$0xff]  ;;  %v1373_v2 = vld [vmem:[%s7081_s8 + $0x368] sm:$0xff] }
 0x279   : > { %v5662_v8 = vcombine.high %v1531_v3, %v1547_v4  ;;  %v5661_v15 = vcombine.low %v1531_v3, %v1547_v4  ;;  %v1389_v3 = vld [vmem:[%s7081_s8 + $0x3e8] sm:$0xff] }
 0x27a   : > { %4809 = vmatpush1.bf16.msra.mxu1 %v5405_v11  ;;  %v1516_v11 = vld [vmem:[%s7081_s8 + $0x7e0] sm:$0xff] }
 0x27b   : > { %4768 = vmatpush1.bf16.msra.mxu0 %v5403_v10  ;;  %4810 = vmatprep.subr.bf16.mxu1 %v5886_v63  ;;  %v1500_v10 = vld [vmem:[%s7081_s8 + $0x760] sm:$0xff]  ;;  %v1517_v63 = vld [vmem:[%s7081_s8 + $0x7e8] sm:$0xff] }
 0x27c   : > { %4769 = vmatprep.subr.bf16.mxu0 %v5884_v12  ;;  %v1501_v12 = vld [vmem:[%s7081_s8 + $0x768] sm:$0xff]  ;;  %v5632_v16 = vcombine.high %v1500_v10, %v1516_v11  ;;  %v5631_v22 = vcombine.low %v1500_v10, %v1516_v11  ;;  %v1340_v10 = vld [vmem:[%s7081_s8 + $0x260] sm:$0xff] }
 0x27d   : > { %v5634_v17 = vcombine.high %v1501_v12, %v1517_v63  ;;  %v5633_v0 = vcombine.low %v1501_v12, %v1517_v63  ;;  %v1356_v11 = vld [vmem:[%s7081_s8 + $0x2e0] sm:$0xff]  ;;  %v1341_v12 = vld [vmem:[%s7081_s8 + $0x268] sm:$0xff] }
 0x27e   : > { %4811 = vmatpush2.bf16.msra.mxu1 %v5885_v19  ;;  %v1484_v19 = vld [vmem:[%s7081_s8 + $0x6e0] sm:$0xff]  ;;  %v1357_v63 = vld [vmem:[%s7081_s8 + $0x2e8] sm:$0xff] }
 0x27f   : > { %4770 = vmatpush2.bf16.msra.mxu0 %v5883_v18  ;;  %4812 = vmatprep.subr.bf16.mxu1 %v5854_v21  ;;  %v1468_v18 = vld [vmem:[%s7081_s8 + $0x660] sm:$0xff]  ;;  %v1485_v21 = vld [vmem:[%s7081_s8 + $0x6e8] sm:$0xff] }
 0x280   : > { %4771 = vmatprep.subr.bf16.mxu0 %v5852_v20  ;;  %v1469_v20 = vld [vmem:[%s7081_s8 + $0x668] sm:$0xff]  ;;  %v5600_v23 = vcombine.high %v1468_v18, %v1484_v19  ;;  %v5599_v30 = vcombine.low %v1468_v18, %v1484_v19  ;;  %v1308_v18 = vld [vmem:[%s7081_s8 + $0x160] sm:$0xff] }
 0x281   : > { %v1324_v19 = vld [vmem:[%s7081_s8 + $0x1e0] sm:$0xff] }
 0x282   : > { %4813 = vmatpush2.bf16.msra.mxu1 %v5853_v25  ;;  %v1452_v25 = vld [vmem:[%s7081_s8 + $0x5e0] sm:$0xff] }
 0x283   : > { %4772 = vmatpush2.bf16.msra.mxu0 %v5851_v24  ;;  %4814 = vmatprep.subr.bf16.mxu1 %v5822_v27  ;;  %v5602_v24 = vcombine.high %v1469_v20, %v1485_v21  ;;  %v1453_v27 = vld [vmem:[%s7081_s8 + $0x5e8] sm:$0xff]  ;;  %v5568_v38 = vcombine.high %v1436_v9, %v1452_v25 }
 0x284   : > { %4773 = vmatprep.subr.bf16.mxu0 %v5820_v26  ;;  %v1437_v26 = vld [vmem:[%s7081_s8 + $0x568] sm:$0xff] }
 0x285   : > { %v5570_v39 = vcombine.high %v1437_v26, %v1453_v27  ;;  %v5569_v55 = vcombine.low %v1437_v26, %v1453_v27  ;;  %v1277_v26 = vld [vmem:[%s7081_s8 + $0x68] sm:$0xff] }
 0x286   : > { %4815 = vmatpush2.bf16.msra.mxu1 %v5821_v34  ;;  %v5601_v34 = vcombine.low %v1469_v20, %v1485_v21  ;;  %v1309_v20 = vld [vmem:[%s7081_s8 + $0x168] sm:$0xff] }
 0x287   : > { %4774 = vmatpush2.bf16.msra.mxu0 %v5819_v33  ;;  %4816 = vmatprep.subr.bf16.mxu1 %v5790_v36  ;;  %v1325_v21 = vld [vmem:[%s7081_s8 + $0x1e8] sm:$0xff] }
 0x288   : > { %4775 = vmatprep.subr.bf16.mxu0 %v5788_v35  ;;  %v1293_v27 = vld [vmem:[%s7081_s8 + $0xe8] sm:$0xff] }
 0x28a   : > { %4817 = vmatpush2.bf16.msra.mxu1 %v5789_v43 }
 0x28b   : > { %4776 = vmatpush2.bf16.msra.mxu0 %v5787_v42  ;;  %4818 = vmatprep.subr.bf16.mxu1 %v5758_v45  ;;  %v1420_v45 = vld [vmem:[%s7081_s8 + $0x4e0] sm:$0xff] }
 0x28c   : > { %4777 = vmatprep.subr.bf16.mxu0 %v5756_v44  ;;  %v1404_v44 = vld [vmem:[%s7081_s8 + $0x460] sm:$0xff] }
 0x28d   : > { %v5536_v56 = vcombine.high %v1404_v44, %v1420_v45 }
 0x28e   : > { %4819 = vmatpush2.bf16.msra.mxu1 %v5757_v51 }
 0x28f   : > { %4778 = vmatpush2.bf16.msra.mxu0 %v5755_v50  ;;  %4820 = vmatprep.subr.bf16.mxu1 %v5726_v53  ;;  %v5567_v53 = vcombine.low %v1436_v9, %v1452_v25  ;;  %v5442_v9 = vcombine.high %v1309_v20, %v1325_v21  ;;  %v1292_v25 = vld [vmem:[%s7081_s8 + $0xe0] sm:$0xff] }
 0x290   : > { %4779 = vmatprep.subr.bf16.mxu0 %v5724_v52 }
 0x292   : > { %4821 = vmatpush2.bf16.msra.mxu1 %v5725_v59 }
 0x293   : > { %4780 = vmatpush2.bf16.msra.mxu0 %v5723_v58  ;;  %4822 = vmatprep.subr.bf16.mxu1 %v5694_v61  ;;  %v1372_v61 = vld [vmem:[%s7081_s8 + $0x360] sm:$0xff] }
 0x294   : > { %4781 = vmatprep.subr.bf16.mxu0 %v5692_v60  ;;  %v5538_v60 = vcombine.high %v1405_v48, %v1421_v49 }
 0x296   : > { %4823 = vmatpush2.bf16.msra.mxu1 %v5693_v6  ;;  %v5537_v6 = vcombine.low %v1405_v48, %v1421_v49  ;;  %v1692_v49 = vld [vmem:[%s7081_s8 + $0xd60] sm:$0xff] }
 0x297   : > { %4782 = vmatpush2.bf16.msra.mxu0 %v5691_v5  ;;  %4824 = vmatprep.subr.bf16.mxu1 %v5662_v8  ;;  %v5535_v5 = vcombine.low %v1404_v44, %v1420_v45  ;;  %v5506_v8 = vcombine.high %v1373_v2, %v1389_v3  ;;  %v1741_v44 = vld [vmem:[%s7081_s8 + $0xee8] sm:$0xff] }
 0x298   : > { %4783 = vmatprep.subr.bf16.mxu0 %v5660_v7  ;;  %v5504_v7 = vcombine.high %v1372_v61, %v1388_v62 }
 0x29a   : > { %4825 = vmatpush2.bf16.msra.mxu1 %v5661_v15  ;;  %v5505_v15 = vcombine.low %v1373_v2, %v1389_v3 }
 0x29b   : > { %4784 = vmatpush2.bf16.msra.mxu0 %v5659_v13  ;;  %4876 = vmatprep.subr.bf16.mxu1 %v5634_v17  ;;  %v5503_v13 = vcombine.low %v1372_v61, %v1388_v62  ;;  %v5474_v17 = vcombine.high %v1341_v12, %v1357_v63 }
 0x29c   : > { %4835 = vmatprep.subr.bf16.mxu0 %v5632_v16  ;;  %v5472_v16 = vcombine.high %v1340_v10, %v1356_v11 }
 0x29d   : > { %v4582_v33 = vpop.f32.mrf.mxu1  ;;  %4827 = vmatmul.mubr.bf16.vlgmr.msra.gmra.mxu1 %v7157_v14 }
 0x29e   : > { %v4541_v28 = vpop.f32.mrf.mxu0  ;;  %4786 = vmatmul.mubr.bf16.vlgmr.msra.gmra.mxu0 %v7157_v14  ;;  %v5188_v35 = vmul.f32 %v4582_v33, %v4582_v33  ;;  %4877 = vmatpush1.bf16.msra.mxu1 %v5633_v0  ;;  %v5473_v0 = vcombine.low %v1341_v12, %v1357_v63 }
 0x29f   : > { %v5150_v31 = vadd.f32 %v7464_v29, %v4541_v28  ;;  %v5186_v32 = vmul.f32 %v4541_v28, %v4541_v28  ;;  %4836 = vmatpush1.bf16.msra.mxu0 %v5631_v22  ;;  %v4584_v43 = vpop.f32.mrf.mxu1  ;;  %4878 = vmatprep.subr.bf16.mxu1 %v5602_v24  ;;  %v5471_v22 = vcombine.low %v1340_v10, %v1356_v11  ;;  %v1276_v24 = vld [vmem:[%s7081_s8 + $0x60] sm:$0xff] }
 0x2a0   : > { %v4543_v36 = vpop.f32.mrf.mxu0  ;;  %4837 = vmatprep.subr.bf16.mxu0 %v5600_v23  ;;  %v5919_v46 = vpack.c.bf16 %v4584_v43, %v4582_v33  ;;  %4867 = vmatprep.mubr.bf16.mxu0 %v7079_v1  ;;  %v5440_v23 = vcombine.high %v1308_v18, %v1324_v19 }
 0x2a1   : > { %v5217_v40 = vadd.f32 %v7470_v37, %v5186_v32  ;;  %v5918_v29 = vpack.c.bf16 %v4543_v36, %v4541_v28  ;;  %v5151_v41 = vadd.f32 %v5150_v31, %v4543_v36  ;;  %v5187_v42 = vmul.f32 %v4543_v36, %v4543_v36  ;;  %4908 = vmatprep.mubr.bf16.mxu1 %v7079_v1  ;;  %v4586_v52 = vpop.f32.mrf.mxu1  ;;  %v1773_v36 = vld [vmem:[%s7081_s8 + $0xfe8] sm:$0xff] }
 0x2a2   : > { %v4545_v47 = vpop.f32.mrf.mxu0  ;;  %v5189_v37 = vmul.f32 %v4584_v43, %v4584_v43  ;;  %5132 = vst [vmem:[%s7378_s13 + $0x28] sm:$0xff] %v5919_v46  ;;  %4879 = vmatpush1.bf16.msra.mxu1 %v5601_v34  ;;  %v5439_v28 = vcombine.low %v1308_v18, %v1324_v19  ;;  %v5408_v31 = vcombine.high %v1276_v24, %v1292_v25  ;;  %v1772_v34 = vld [vmem:[%s7081_s8 + $0xfe0] sm:$0xff] }
 0x2a3   : > { %5131 = vst [vmem:[%s7378_s13 + $0x20] sm:$0xff] %v5918_v29  ;;  %v5218_v50 = vadd.f32 %v5217_v40, %v5187_v42  ;;  %v5152_v51 = vadd.f32 %v5151_v41, %v4582_v33  ;;  %4838 = vmatpush1.bf16.msra.mxu0 %v5599_v30  ;;  %v4587_v59 = vpop.f32.mrf.mxu1  ;;  %4880 = vmatprep.subr.bf16.mxu1 %v5570_v39  ;;  %v1756_v33 = vld [vmem:[%s7081_s8 + $0xf60] sm:$0xff] }
 0x2a4   : > { %v4546_v54 = vpop.f32.mrf.mxu0  ;;  %4839 = vmatprep.subr.bf16.mxu0 %v5568_v38  ;;  %v5441_v30 = vcombine.low %v1309_v20, %v1325_v21  ;;  %v5410_v32 = vcombine.high %v1277_v26, %v1293_v27  ;;  %v5407_v38 = vcombine.low %v1276_v24, %v1292_v25  ;;  %v5409_v39 = vcombine.low %v1277_v26, %v1293_v27  ;;  %v1724_v41 = vld [vmem:[%s7081_s8 + $0xe60] sm:$0xff]  ;;  %v1661_v59 = vld [vmem:[%s7081_s8 + $0xc68] sm:$0xff] }
 0x2a5   : > { %v7540_v57 = vadd.f32 %v5152_v51, %v4584_v43  ;;  %v5219_v58 = vadd.f32 %v5218_v50, %v5188_v35  ;;  %v1757_v35 = vld [vmem:[%s7081_s8 + $0xf68] sm:$0xff]  ;;  %v5888_v40 = vcombine.high %v1756_v33, %v1772_v34  ;;  %v1740_v42 = vld [vmem:[%s7081_s8 + $0xee0] sm:$0xff]  ;;  %v5887_v45 = vcombine.low %v1756_v33, %v1772_v34 }
 0x2a6   : > { %4881 = vmatpush1.bf16.msra.mxu1 %v5569_v55  ;;  %v5890_v29 = vcombine.high %v1757_v35, %v1773_v36  ;;  %v1725_v43 = vld [vmem:[%s7081_s8 + $0xe68] sm:$0xff]  ;;  %v5889_v46 = vcombine.low %v1757_v35, %v1773_v36  ;;  %v5856_v47 = vcombine.high %v1724_v41, %v1740_v42  ;;  %v1708_v50 = vld [vmem:[%s7081_s8 + $0xde0] sm:$0xff]  ;;  %v5855_v52 = vcombine.low %v1724_v41, %v1740_v42 }
 0x2a7   : > { %v7546_v4 = vadd.f32 %v5219_v58, %v5189_v37  ;;  %4840 = vmatpush1.bf16.msra.mxu0 %v5567_v53  ;;  %4882 = vmatprep.subr.bf16.mxu1 %v5538_v60  ;;  %v5858_v48 = vcombine.high %v1725_v43, %v1741_v44  ;;  %v1693_v51 = vld [vmem:[%s7081_s8 + $0xd68] sm:$0xff]  ;;  %v5857_v53 = vcombine.low %v1725_v43, %v1741_v44  ;;  %v1676_v58 = vld [vmem:[%s7081_s8 + $0xce0] sm:$0xff] }
 0x2a8   : > { %4841 = vmatprep.subr.bf16.mxu0 %v5536_v56  ;;  %v1709_v37 = vld [vmem:[%s7081_s8 + $0xde8] sm:$0xff]  ;;  %v5824_v54 = vcombine.high %v1692_v49, %v1708_v50  ;;  %v1660_v56 = vld [vmem:[%s7081_s8 + $0xc60] sm:$0xff]  ;;  %v5823_v61 = vcombine.low %v1692_v49, %v1708_v50 }
 0x2a9   : > { %v5826_v55 = vcombine.high %v1693_v51, %v1709_v37  ;;  %v1677_v60 = vld [vmem:[%s7081_s8 + $0xce8] sm:$0xff]  ;;  %v5825_v62 = vcombine.low %v1693_v51, %v1709_v37  ;;  %v5792_v2 = vcombine.high %v1660_v56, %v1676_v58  ;;  %v5791_v10 = vcombine.low %v1660_v56, %v1676_v58  ;;  %v1438_v37 = vld [vmem:[%s7081_s8 + $0x570] sm:$0xff] }
 0x2aa   : > { %4883 = vmatpush1.bf16.msra.mxu1 %v5537_v6  ;;  %v5794_v3 = vcombine.high %v1661_v59, %v1677_v60  ;;  %v1644_v6 = vld [vmem:[%s7081_s8 + $0xbe0] sm:$0xff]  ;;  %v5793_v11 = vcombine.low %v1661_v59, %v1677_v60 }
 0x2ab   : > { %4842 = vmatpush1.bf16.msra.mxu0 %v5535_v5  ;;  %4884 = vmatprep.subr.bf16.mxu1 %v5506_v8  ;;  %v1628_v5 = vld [vmem:[%s7081_s8 + $0xb60] sm:$0xff]  ;;  %v1645_v8 = vld [vmem:[%s7081_s8 + $0xbe8] sm:$0xff] }
 0x2ac   : > { %4843 = vmatprep.subr.bf16.mxu0 %v5504_v7  ;;  %v1629_v7 = vld [vmem:[%s7081_s8 + $0xb68] sm:$0xff]  ;;  %v5760_v12 = vcombine.high %v1628_v5, %v1644_v6  ;;  %v5759_v18 = vcombine.low %v1628_v5, %v1644_v6 }
 0x2ad   : > { %v5762_v63 = vcombine.high %v1629_v7, %v1645_v8  ;;  %v5761_v19 = vcombine.low %v1629_v7, %v1645_v8 }
 0x2ae   : > { %4885 = vmatpush1.bf16.msra.mxu1 %v5505_v15  ;;  %v1612_v15 = vld [vmem:[%s7081_s8 + $0xae0] sm:$0xff] }
 0x2af   : > { %4844 = vmatpush1.bf16.msra.mxu0 %v5503_v13  ;;  %4886 = vmatprep.subr.bf16.mxu1 %v5474_v17  ;;  %v1596_v13 = vld [vmem:[%s7081_s8 + $0xa60] sm:$0xff]  ;;  %v1613_v17 = vld [vmem:[%s7081_s8 + $0xae8] sm:$0xff] }
 0x2b0   : > { %4845 = vmatprep.subr.bf16.mxu0 %v5472_v16  ;;  %v1597_v16 = vld [vmem:[%s7081_s8 + $0xa68] sm:$0xff]  ;;  %v5728_v20 = vcombine.high %v1596_v13, %v1612_v15  ;;  %v5727_v24 = vcombine.low %v1596_v13, %v1612_v15 }
 0x2b1   : > { %v5730_v21 = vcombine.high %v1597_v16, %v1613_v17  ;;  %v5729_v25 = vcombine.low %v1597_v16, %v1613_v17  ;;  %v1407_v16 = vld [vmem:[%s7081_s8 + $0x478] sm:$0xff] }
 0x2b2   : > { %4887 = vmatpush1.bf16.msra.mxu1 %v5473_v0  ;;  %v1580_v0 = vld [vmem:[%s7081_s8 + $0x9e0] sm:$0xff]  ;;  %v1423_v17 = vld [vmem:[%s7081_s8 + $0x4f8] sm:$0xff] }
 0x2b3   : > { %4846 = vmatpush1.bf16.msra.mxu0 %v5471_v22  ;;  %4888 = vmatprep.subr.bf16.mxu1 %v5442_v9  ;;  %v1564_v22 = vld [vmem:[%s7081_s8 + $0x960] sm:$0xff]  ;;  %v1581_v9 = vld [vmem:[%s7081_s8 + $0x9e8] sm:$0xff] }
 0x2b4   : > { %4847 = vmatprep.subr.bf16.mxu0 %v5440_v23  ;;  %v1565_v23 = vld [vmem:[%s7081_s8 + $0x968] sm:$0xff]  ;;  %v5696_v26 = vcombine.high %v1564_v22, %v1580_v0  ;;  %v5695_v33 = vcombine.low %v1564_v22, %v1580_v0 }
 0x2b5   : > { %v5698_v27 = vcombine.high %v1565_v23, %v1581_v9  ;;  %v5697_v34 = vcombine.low %v1565_v23, %v1581_v9 }
 0x2b6   : > { %4889 = vmatpush1.bf16.msra.mxu1 %v5441_v30  ;;  %v1548_v30 = vld [vmem:[%s7081_s8 + $0x8e0] sm:$0xff] }
 0x2b7   : > { %4848 = vmatpush1.bf16.msra.mxu0 %v5439_v28  ;;  %4890 = vmatprep.subr.bf16.mxu1 %v5410_v32  ;;  %v1532_v28 = vld [vmem:[%s7081_s8 + $0x860] sm:$0xff]  ;;  %v1549_v32 = vld [vmem:[%s7081_s8 + $0x8e8] sm:$0xff] }
 0x2b8   : > { %4849 = vmatprep.subr.bf16.mxu0 %v5408_v31  ;;  %v1533_v31 = vld [vmem:[%s7081_s8 + $0x868] sm:$0xff]  ;;  %v5664_v35 = vcombine.high %v1532_v28, %v1548_v30  ;;  %v5663_v41 = vcombine.low %v1532_v28, %v1548_v30  ;;  %v1375_v28 = vld [vmem:[%s7081_s8 + $0x378] sm:$0xff] }
 0x2b9   : > { %v5666_v36 = vcombine.high %v1533_v31, %v1549_v32  ;;  %v5665_v42 = vcombine.low %v1533_v31, %v1549_v32  ;;  %v1391_v30 = vld [vmem:[%s7081_s8 + $0x3f8] sm:$0xff] }
 0x2ba   : > { %4891 = vmatpush1.bf16.msra.mxu1 %v5409_v39  ;;  %v1518_v39 = vld [vmem:[%s7081_s8 + $0x7f0] sm:$0xff] }
 0x2bb   : > { %4850 = vmatpush1.bf16.msra.mxu0 %v5407_v38  ;;  %4892 = vmatprep.subr.bf16.mxu1 %v5890_v29  ;;  %v1502_v38 = vld [vmem:[%s7081_s8 + $0x770] sm:$0xff]  ;;  %v1519_v29 = vld [vmem:[%s7081_s8 + $0x7f8] sm:$0xff] }
 0x2bc   : > { %4851 = vmatprep.subr.bf16.mxu0 %v5888_v40  ;;  %v1503_v40 = vld [vmem:[%s7081_s8 + $0x778] sm:$0xff]  ;;  %v5636_v43 = vcombine.high %v1502_v38, %v1518_v39  ;;  %v5635_v49 = vcombine.low %v1502_v38, %v1518_v39  ;;  %v1358_v38 = vld [vmem:[%s7081_s8 + $0x2f0] sm:$0xff] }
 0x2bd   : > { %v5638_v44 = vcombine.high %v1503_v40, %v1519_v29  ;;  %v5637_v50 = vcombine.low %v1503_v40, %v1519_v29  ;;  %v1343_v39 = vld [vmem:[%s7081_s8 + $0x278] sm:$0xff] }
 0x2be   : > { %4893 = vmatpush2.bf16.msra.mxu1 %v5889_v46  ;;  %v1486_v46 = vld [vmem:[%s7081_s8 + $0x6f0] sm:$0xff]  ;;  %v1359_v40 = vld [vmem:[%s7081_s8 + $0x2f8] sm:$0xff] }
 0x2bf   : > { %4852 = vmatpush2.bf16.msra.mxu0 %v5887_v45  ;;  %4894 = vmatprep.subr.bf16.mxu1 %v5858_v48  ;;  %v1470_v45 = vld [vmem:[%s7081_s8 + $0x670] sm:$0xff]  ;;  %v1487_v48 = vld [vmem:[%s7081_s8 + $0x6f8] sm:$0xff] }
 0x2c0   : > { %4853 = vmatprep.subr.bf16.mxu0 %v5856_v47  ;;  %v1471_v47 = vld [vmem:[%s7081_s8 + $0x678] sm:$0xff]  ;;  %v5604_v51 = vcombine.high %v1470_v45, %v1486_v46  ;;  %v5603_v58 = vcombine.low %v1470_v45, %v1486_v46  ;;  %v1326_v45 = vld [vmem:[%s7081_s8 + $0x1f0] sm:$0xff] }
 0x2c1   : > { %v1311_v46 = vld [vmem:[%s7081_s8 + $0x178] sm:$0xff] }
 0x2c2   : > { %4895 = vmatpush2.bf16.msra.mxu1 %v5857_v53  ;;  %v1454_v53 = vld [vmem:[%s7081_s8 + $0x5f0] sm:$0xff] }
 0x2c3   : > { %4854 = vmatpush2.bf16.msra.mxu0 %v5855_v52  ;;  %4896 = vmatprep.subr.bf16.mxu1 %v5826_v55  ;;  %v5606_v52 = vcombine.high %v1471_v47, %v1487_v48  ;;  %v1455_v55 = vld [vmem:[%s7081_s8 + $0x5f8] sm:$0xff]  ;;  %v5572_v5 = vcombine.high %v1438_v37, %v1454_v53 }
 0x2c4   : > { %4855 = vmatprep.subr.bf16.mxu0 %v5824_v54  ;;  %v1439_v54 = vld [vmem:[%s7081_s8 + $0x578] sm:$0xff] }
 0x2c5   : > { %v5574_v6 = vcombine.high %v1439_v54, %v1455_v55  ;;  %v5573_v0 = vcombine.low %v1439_v54, %v1455_v55  ;;  %v1295_v54 = vld [vmem:[%s7081_s8 + $0xf8] sm:$0xff] }
 0x2c6   : > { %4897 = vmatpush2.bf16.msra.mxu1 %v5825_v62  ;;  %v5605_v62 = vcombine.low %v1471_v47, %v1487_v48  ;;  %v1327_v47 = vld [vmem:[%s7081_s8 + $0x1f8] sm:$0xff] }
 0x2c7   : > { %4856 = vmatpush2.bf16.msra.mxu0 %v5823_v61  ;;  %4898 = vmatprep.subr.bf16.mxu1 %v5794_v3 }
 0x2c8   : > { %4857 = vmatprep.subr.bf16.mxu0 %v5792_v2 }
 0x2ca   : > { %4899 = vmatpush2.bf16.msra.mxu1 %v5793_v11 }
 0x2cb   : > { %4858 = vmatpush2.bf16.msra.mxu0 %v5791_v10  ;;  %4900 = vmatprep.subr.bf16.mxu1 %v5762_v63  ;;  %v1422_v63 = vld [vmem:[%s7081_s8 + $0x4f0] sm:$0xff] }
 0x2cc   : > { %4859 = vmatprep.subr.bf16.mxu0 %v5760_v12  ;;  %v1406_v12 = vld [vmem:[%s7081_s8 + $0x470] sm:$0xff] }
 0x2cd   : > { %v5540_v23 = vcombine.high %v1406_v12, %v1422_v63  ;;  %v5539_v32 = vcombine.low %v1406_v12, %v1422_v63 }
 0x2ce   : > { %4901 = vmatpush2.bf16.msra.mxu1 %v5761_v19 }
 0x2cf   : > { %4860 = vmatpush2.bf16.msra.mxu0 %v5759_v18  ;;  %4902 = vmatprep.subr.bf16.mxu1 %v5730_v21  ;;  %v5571_v21 = vcombine.low %v1438_v37, %v1454_v53  ;;  %v1278_v37 = vld [vmem:[%s7081_s8 + $0x70] sm:$0xff]  ;;  %v1279_v53 = vld [vmem:[%s7081_s8 + $0x78] sm:$0xff] }
 0x2d0   : > { %4861 = vmatprep.subr.bf16.mxu0 %v5728_v20 }
 0x2d2   : > { %4903 = vmatpush2.bf16.msra.mxu1 %v5729_v25  ;;  %v5542_v25 = vcombine.high %v1407_v16, %v1423_v17 }
 0x2d3   : > { %4862 = vmatpush2.bf16.msra.mxu0 %v5727_v24  ;;  %4904 = vmatprep.subr.bf16.mxu1 %v5698_v27  ;;  %v1390_v27 = vld [vmem:[%s7081_s8 + $0x3f0] sm:$0xff] }
 0x2d4   : > { %4863 = vmatprep.subr.bf16.mxu0 %v5696_v26  ;;  %v1374_v26 = vld [vmem:[%s7081_s8 + $0x370] sm:$0xff] }
 0x2d5   : > { %v5507_v29 = vcombine.low %v1374_v26, %v1390_v27 }
 0x2d6   : > { %4905 = vmatpush2.bf16.msra.mxu1 %v5697_v34  ;;  %v5508_v34 = vcombine.high %v1374_v26, %v1390_v27 }
 0x2d7   : > { %4864 = vmatpush2.bf16.msra.mxu0 %v5695_v33  ;;  %4906 = vmatprep.subr.bf16.mxu1 %v5666_v36  ;;  %v5541_v33 = vcombine.low %v1407_v16, %v1423_v17  ;;  %v1342_v36 = vld [vmem:[%s7081_s8 + $0x270] sm:$0xff] }
 0x2d8   : > { %4865 = vmatprep.subr.bf16.mxu0 %v5664_v35  ;;  %v5510_v35 = vcombine.high %v1375_v28, %v1391_v30  ;;  %v5475_v48 = vcombine.low %v1342_v36, %v1358_v38  ;;  %v1694_v16 = vld [vmem:[%s7081_s8 + $0xd70] sm:$0xff] }
 0x2d9   : > { %v1710_v17 = vld [vmem:[%s7081_s8 + $0xdf0] sm:$0xff] }
 0x2da   : > { %4907 = vmatpush2.bf16.msra.mxu1 %v5665_v42  ;;  %v5476_v42 = vcombine.high %v1342_v36, %v1358_v38 }
 0x2db   : > { %4866 = vmatpush2.bf16.msra.mxu0 %v5663_v41  ;;  %4958 = vmatprep.subr.bf16.mxu1 %v5638_v44  ;;  %v5509_v41 = vcombine.low %v1375_v28, %v1391_v30  ;;  %v1310_v44 = vld [vmem:[%s7081_s8 + $0x170] sm:$0xff] }
 0x2dc   : > { %4917 = vmatprep.subr.bf16.mxu0 %v5636_v43  ;;  %v5478_v43 = vcombine.high %v1343_v39, %v1359_v40  ;;  %v5443_v55 = vcombine.low %v1310_v44, %v1326_v45  ;;  %v1630_v30 = vld [vmem:[%s7081_s8 + $0xb70] sm:$0xff] }
 0x2dd   : > { %v4664_v61 = vpop.f32.mrf.mxu1  ;;  %4909 = vmatmul.mubr.bf16.vlgmr.msra.gmra.mxu1 %v7157_v14 }
 0x2de   : > { %v4623_v56 = vpop.f32.mrf.mxu0  ;;  %4868 = vmatmul.mubr.bf16.vlgmr.msra.gmra.mxu0 %v7157_v14  ;;  %v5192_v2 = vmul.f32 %v4664_v61, %v4664_v61  ;;  %4959 = vmatpush1.bf16.msra.mxu1 %v5637_v50  ;;  %v5444_v50 = vcombine.high %v1310_v44, %v1326_v45 }
 0x2df   : > { %v5154_v59 = vadd.f32 %v7540_v57, %v4623_v56  ;;  %v5190_v60 = vmul.f32 %v4623_v56, %v4623_v56  ;;  %4918 = vmatpush1.bf16.msra.mxu0 %v5635_v49  ;;  %v4666_v11 = vpop.f32.mrf.mxu1  ;;  %4960 = vmatprep.subr.bf16.mxu1 %v5606_v52  ;;  %v5477_v49 = vcombine.low %v1343_v39, %v1359_v40  ;;  %v1294_v52 = vld [vmem:[%s7081_s8 + $0xf0] sm:$0xff] }
 0x2e0   : > { %v4625_v3 = vpop.f32.mrf.mxu0  ;;  %4919 = vmatprep.subr.bf16.mxu0 %v5604_v51  ;;  %v5921_v13 = vpack.c.bf16 %v4666_v11, %v4664_v61  ;;  %4949 = vmatprep.mubr.bf16.mxu0 %v7079_v1  ;;  %v5446_v51 = vcombine.high %v1311_v46, %v1327_v47  ;;  %v1598_v40 = vld [vmem:[%s7081_s8 + $0xa70] sm:$0xff] }
 0x2e1   : > { %v5221_v7 = vadd.f32 %v7546_v4, %v5190_v60  ;;  %v5920_v57 = vpack.c.bf16 %v4625_v3, %v4623_v56  ;;  %v5155_v8 = vadd.f32 %v5154_v59, %v4625_v3  ;;  %v5191_v10 = vmul.f32 %v4625_v3, %v4625_v3  ;;  %4990 = vmatprep.mubr.bf16.mxu1 %v7079_v1  ;;  %v4668_v20 = vpop.f32.mrf.mxu1  ;;  %v1758_v60 = vld [vmem:[%s7081_s8 + $0xf70] sm:$0xff] }
 0x2e2   : > { %v4627_v15 = vpop.f32.mrf.mxu0  ;;  %v5193_v4 = vmul.f32 %v4666_v11, %v4666_v11  ;;  %5134 = vst [vmem:[%s7378_s13 + $0x38] sm:$0xff] %v5921_v13  ;;  %4961 = vmatpush1.bf16.msra.mxu1 %v5605_v62  ;;  %v5445_v56 = vcombine.low %v1311_v46, %v1327_v47  ;;  %v5414_v59 = vcombine.high %v1279_v53, %v1295_v54  ;;  %v1759_v62 = vld [vmem:[%s7081_s8 + $0xf78] sm:$0xff]  ;;  %v1566_v47 = vld [vmem:[%s7081_s8 + $0x970] sm:$0xff] }
 0x2e3   : > { %5133 = vst [vmem:[%s7378_s13 + $0x30] sm:$0xff] %v5920_v57  ;;  %v5222_v18 = vadd.f32 %v5221_v7, %v5191_v10  ;;  %v5156_v19 = vadd.f32 %v5155_v8, %v4664_v61  ;;  %4920 = vmatpush1.bf16.msra.mxu0 %v5603_v58  ;;  %v4669_v24 = vpop.f32.mrf.mxu1  ;;  %4962 = vmatprep.subr.bf16.mxu1 %v5574_v6  ;;  %v1774_v61 = vld [vmem:[%s7081_s8 + $0xff0] sm:$0xff]  ;;  %v1727_v10 = vld [vmem:[%s7081_s8 + $0xe78] sm:$0xff] }
 0x2e4   : > { %v4628_v22 = vpop.f32.mrf.mxu0  ;;  %4921 = vmatprep.subr.bf16.mxu0 %v5572_v5  ;;  %v5412_v58 = vcombine.high %v1278_v37, %v1294_v52  ;;  %v5411_v3 = vcombine.low %v1278_v37, %v1294_v52  ;;  %v5413_v5 = vcombine.low %v1279_v53, %v1295_v54  ;;  %v5892_v6 = vcombine.high %v1758_v60, %v1774_v61  ;;  %v1726_v57 = vld [vmem:[%s7081_s8 + $0xe70] sm:$0xff]  ;;  %v1679_v24 = vld [vmem:[%s7081_s8 + $0xcf8] sm:$0xff] }
 0x2e5   : > { %v7616_v9 = vadd.f32 %v5156_v19, %v4666_v11  ;;  %v5223_v1 = vadd.f32 %v5222_v18, %v5192_v2  ;;  %v1775_v2 = vld [vmem:[%s7081_s8 + $0xff8] sm:$0xff]  ;;  %v1742_v8 = vld [vmem:[%s7081_s8 + $0xef0] sm:$0xff]  ;;  %v5891_v12 = vcombine.low %v1758_v60, %v1774_v61 }
 0x2e6   : > { %4963 = vmatpush1.bf16.msra.mxu1 %v5573_v0  ;;  %v5894_v7 = vcombine.high %v1759_v62, %v1775_v2  ;;  %v1743_v11 = vld [vmem:[%s7081_s8 + $0xef8] sm:$0xff]  ;;  %v5893_v63 = vcombine.low %v1759_v62, %v1775_v2  ;;  %v5860_v13 = vcombine.high %v1726_v57, %v1742_v8  ;;  %v1662_v0 = vld [vmem:[%s7081_s8 + $0xc70] sm:$0xff] }
 0x2e7   : > { %v7622_v31 = vadd.f32 %v5223_v1, %v5193_v4  ;;  %4922 = vmatpush1.bf16.msra.mxu0 %v5571_v21  ;;  %4964 = vmatprep.subr.bf16.mxu1 %v5542_v25  ;;  %v5862_v15 = vcombine.high %v1727_v10, %v1743_v11  ;;  %v1695_v18 = vld [vmem:[%s7081_s8 + $0xd78] sm:$0xff]  ;;  %v5859_v4 = vcombine.low %v1726_v57, %v1742_v8  ;;  %v1534_v54 = vld [vmem:[%s7081_s8 + $0x870] sm:$0xff] }
 0x2e8   : > { %4923 = vmatprep.subr.bf16.mxu0 %v5540_v23  ;;  %v1711_v19 = vld [vmem:[%s7081_s8 + $0xdf8] sm:$0xff]  ;;  %v5861_v20 = vcombine.low %v1727_v10, %v1743_v11  ;;  %v5828_v21 = vcombine.high %v1694_v16, %v1710_v17  ;;  %v1678_v23 = vld [vmem:[%s7081_s8 + $0xcf0] sm:$0xff]  ;;  %v5827_v25 = vcombine.low %v1694_v16, %v1710_v17 }
 0x2e9   : > { %v5830_v22 = vcombine.high %v1695_v18, %v1711_v19  ;;  %v1663_v1 = vld [vmem:[%s7081_s8 + $0xc78] sm:$0xff]  ;;  %v5829_v26 = vcombine.low %v1695_v18, %v1711_v19  ;;  %v5796_v27 = vcombine.high %v1662_v0, %v1678_v23 }
 0x2ea   : > { %4965 = vmatpush1.bf16.msra.mxu1 %v5541_v33  ;;  %v5798_v28 = vcombine.high %v1663_v1, %v1679_v24  ;;  %v1631_v33 = vld [vmem:[%s7081_s8 + $0xb78] sm:$0xff]  ;;  %v5797_v36 = vcombine.low %v1663_v1, %v1679_v24 }
 0x2eb   : > { %4924 = vmatpush1.bf16.msra.mxu0 %v5539_v32  ;;  %4966 = vmatprep.subr.bf16.mxu1 %v5510_v35  ;;  %v1646_v32 = vld [vmem:[%s7081_s8 + $0xbf0] sm:$0xff]  ;;  %v5795_v35 = vcombine.low %v1662_v0, %v1678_v23 }
 0x2ec   : > { %4925 = vmatprep.subr.bf16.mxu0 %v5508_v34  ;;  %v1647_v34 = vld [vmem:[%s7081_s8 + $0xbf8] sm:$0xff]  ;;  %v5764_v38 = vcombine.high %v1630_v30, %v1646_v32 }
 0x2ed   : > { %v5766_v39 = vcombine.high %v1631_v33, %v1647_v34  ;;  %v5765_v44 = vcombine.low %v1631_v33, %v1647_v34 }
 0x2ee   : > { %4967 = vmatpush1.bf16.msra.mxu1 %v5509_v41  ;;  %v1599_v41 = vld [vmem:[%s7081_s8 + $0xa78] sm:$0xff] }
 0x2ef   : > { %4926 = vmatpush1.bf16.msra.mxu0 %v5507_v29  ;;  %4968 = vmatprep.subr.bf16.mxu1 %v5478_v43  ;;  %v1614_v29 = vld [vmem:[%s7081_s8 + $0xaf0] sm:$0xff]  ;;  %v5763_v43 = vcombine.low %v1630_v30, %v1646_v32 }
 0x2f0   : > { %4927 = vmatprep.subr.bf16.mxu0 %v5476_v42  ;;  %v1615_v42 = vld [vmem:[%s7081_s8 + $0xaf8] sm:$0xff]  ;;  %v5732_v45 = vcombine.high %v1598_v40, %v1614_v29 }
 0x2f1   : > { %v5734_v46 = vcombine.high %v1599_v41, %v1615_v42  ;;  %v5733_v37 = vcombine.low %v1599_v41, %v1615_v42 }
 0x2f2   : > { %4969 = vmatpush1.bf16.msra.mxu1 %v5477_v49  ;;  %v1567_v49 = vld [vmem:[%s7081_s8 + $0x978] sm:$0xff] }
 0x2f3   : > { %4928 = vmatpush1.bf16.msra.mxu0 %v5475_v48  ;;  %4970 = vmatprep.subr.bf16.mxu1 %v5446_v51  ;;  %v1582_v48 = vld [vmem:[%s7081_s8 + $0x9f0] sm:$0xff]  ;;  %v5731_v51 = vcombine.low %v1598_v40, %v1614_v29 }
 0x2f4   : > { %4929 = vmatprep.subr.bf16.mxu0 %v5444_v50  ;;  %v1583_v50 = vld [vmem:[%s7081_s8 + $0x9f8] sm:$0xff]  ;;  %v5700_v52 = vcombine.high %v1566_v47, %v1582_v48 }
 0x2f5   : > { %v5702_v53 = vcombine.high %v1567_v49, %v1583_v50  ;;  %v5701_v60 = vcombine.low %v1567_v49, %v1583_v50 }
 0x2f6   : > { %4971 = vmatpush1.bf16.msra.mxu1 %v5445_v56  ;;  %v1535_v56 = vld [vmem:[%s7081_s8 + $0x878] sm:$0xff] }
 0x2f7   : > { %4930 = vmatpush1.bf16.msra.mxu0 %v5443_v55  ;;  %4972 = vmatprep.subr.bf16.mxu1 %v5414_v59  ;;  %v1550_v55 = vld [vmem:[%s7081_s8 + $0x8f0] sm:$0xff]  ;;  %v5699_v59 = vcombine.low %v1566_v47, %v1582_v48 }
 0x2f8   : > { %4931 = vmatprep.subr.bf16.mxu0 %v5412_v58  ;;  %v1551_v58 = vld [vmem:[%s7081_s8 + $0x8f8] sm:$0xff]  ;;  %v5668_v61 = vcombine.high %v1534_v54, %v1550_v55  ;;  %v5667_v2 = vcombine.low %v1534_v54, %v1550_v55 }
 0x2f9   : > { %v5670_v62 = vcombine.high %v1535_v56, %v1551_v58 }
 0x2fa   : > { %4973 = vmatpush1.bf16.msra.mxu1 %v5413_v5 }
 0x2fb   : > { %4932 = vmatpush1.bf16.msra.mxu0 %v5411_v3  ;;  %4974 = vmatprep.subr.bf16.mxu1 %v5894_v7  ;;  %v5669_v3 = vcombine.low %v1535_v56, %v1551_v58 }
 0x2fc   : > { %4933 = vmatprep.subr.bf16.mxu0 %v5892_v6 }
 0x2fe   : > { %4975 = vmatpush2.bf16.msra.mxu1 %v5893_v63 }
 0x2ff   : > { %4934 = vmatpush2.bf16.msra.mxu0 %v5891_v12  ;;  %4976 = vmatprep.subr.bf16.mxu1 %v5862_v15 }
 0x300   : > { %4935 = vmatprep.subr.bf16.mxu0 %v5860_v13 }
 0x302   : > { %4977 = vmatpush2.bf16.msra.mxu1 %v5861_v20 }
 0x303   : > { %4936 = vmatpush2.bf16.msra.mxu0 %v5859_v4  ;;  %4978 = vmatprep.subr.bf16.mxu1 %v5830_v22 }
 0x304   : > { %4937 = vmatprep.subr.bf16.mxu0 %v5828_v21 }
 0x306   : > { %4979 = vmatpush2.bf16.msra.mxu1 %v5829_v26 }
 0x307   : > { %4938 = vmatpush2.bf16.msra.mxu0 %v5827_v25  ;;  %4980 = vmatprep.subr.bf16.mxu1 %v5798_v28 }
 0x308   : > { %4939 = vmatprep.subr.bf16.mxu0 %v5796_v27 }
 0x30a   : > { %4981 = vmatpush2.bf16.msra.mxu1 %v5797_v36 }
 0x30b   : > { %4940 = vmatpush2.bf16.msra.mxu0 %v5795_v35  ;;  %4982 = vmatprep.subr.bf16.mxu1 %v5766_v39 }
 0x30c   : > { %4941 = vmatprep.subr.bf16.mxu0 %v5764_v38 }
 0x30e   : > { %4983 = vmatpush2.bf16.msra.mxu1 %v5765_v44 }
 0x30f   : > { %4942 = vmatpush2.bf16.msra.mxu0 %v5763_v43  ;;  %4984 = vmatprep.subr.bf16.mxu1 %v5734_v46 }
 0x310   : > { %4943 = vmatprep.subr.bf16.mxu0 %v5732_v45 }
 0x312   : > { %4985 = vmatpush2.bf16.msra.mxu1 %v5733_v37 }
 0x313   : > { %4944 = vmatpush2.bf16.msra.mxu0 %v5731_v51  ;;  %4986 = vmatprep.subr.bf16.mxu1 %v5702_v53 }
 0x314   : > { %4945 = vmatprep.subr.bf16.mxu0 %v5700_v52 }
 0x316   : > { %4987 = vmatpush2.bf16.msra.mxu1 %v5701_v60 }
 0x317   : > { %4946 = vmatpush2.bf16.msra.mxu0 %v5699_v59  ;;  %4988 = vmatprep.subr.bf16.mxu1 %v5670_v62 }
 0x318   : > { %4947 = vmatprep.subr.bf16.mxu0 %v5668_v61 }
 0x31a   : > { %4989 = vmatpush2.bf16.msra.mxu1 %v5669_v3 }
 0x31b   : > { %4948 = vmatpush2.bf16.msra.mxu0 %v5667_v2 }
 0x31d   : > { %v4746_v57 = vpop.f32.mrf.mxu1  ;;  %4991 = vmatmul.mubr.bf16.vlgmr.msra.gmra.mxu1 %v7157_v14 }
 0x31e   : > { %v4705_v5 = vpop.f32.mrf.mxu0  ;;  %4950 = vmatmul.mubr.bf16.vlgmr.msra.gmra.mxu0 %v7157_v14  ;;  %v5196_v8 = vmul.f32 %v4746_v57, %v4746_v57 }
 0x31f   : > { %v5158_v6 = vadd.f32 %v7616_v9, %v4705_v5  ;;  %v5194_v7 = vmul.f32 %v4705_v5, %v4705_v5  ;;  %v4748_v15 = vpop.f32.mrf.mxu1 }
 0x320   : > { %v4707_v10 = vpop.f32.mrf.mxu0  ;;  %v5923_v16 = vpack.c.bf16 %v4748_v15, %v4746_v57  ;;  %v5197_v4 = vmul.f32 %v4748_v15, %v4748_v15 }
 0x321   : > { %v5225_v11 = vadd.f32 %v7622_v31, %v5194_v7  ;;  %v5922_v12 = vpack.c.bf16 %v4707_v10, %v4705_v5  ;;  %v5159_v63 = vadd.f32 %v5158_v6, %v4707_v10  ;;  %v5195_v13 = vmul.f32 %v4707_v10, %v4707_v10  ;;  %v4750_v9 = vpop.f32.mrf.mxu1 }
 0x322   : > { %v4709_v17 = vpop.f32.mrf.mxu0  ;;  %5136 = vst [vmem:[%s7378_s13 + $0x48] sm:$0xff] %v5923_v16 }
 0x323   : > { %5135 = vst [vmem:[%s7378_s13 + $0x40] sm:$0xff] %v5922_v12  ;;  %v5226_v18 = vadd.f32 %v5225_v11, %v5195_v13  ;;  %v5160_v19 = vadd.f32 %v5159_v63, %v4746_v57  ;;  %v4751_v14 = vpop.f32.mrf.mxu1 }
 0x324   : > { %v4710_v20 = vpop.f32.mrf.mxu0 }
 0x325   : > { %v5161_v21 = vadd.f32 %v5160_v19, %v4748_v15  ;;  %v5227_v22 = vadd.f32 %v5226_v18, %v5196_v8 }
 0x327   : > { %v5228_v0 = vadd.f32 %v5227_v22, %v5197_v4 }
 0x35d   : > { %v4828_v24 = vpop.f32.mrf.mxu1 }
 0x35e   : > { %v4787_v23 = vpop.f32.mrf.mxu0  ;;  %v5200_v25 = vmul.f32 %v4828_v24, %v4828_v24 }
 0x35f   : > { %v5162_v31 = vadd.f32 %v5161_v21, %v4787_v23  ;;  %v5198_v1 = vmul.f32 %v4787_v23, %v4787_v23  ;;  %v4830_v33 = vpop.f32.mrf.mxu1 }
 0x360   : > { %v4789_v26 = vpop.f32.mrf.mxu0  ;;  %v5925_v34 = vpack.c.bf16 %v4830_v33, %v4828_v24  ;;  %v5201_v39 = vmul.f32 %v4830_v33, %v4830_v33 }
 0x361   : > { %v5229_v27 = vadd.f32 %v5228_v0, %v5198_v1  ;;  %v5924_v28 = vpack.c.bf16 %v4789_v26, %v4787_v23  ;;  %v5163_v30 = vadd.f32 %v5162_v31, %v4789_v26  ;;  %v5199_v32 = vmul.f32 %v4789_v26, %v4789_v26  ;;  %v4832_v40 = vpop.f32.mrf.mxu1 }
 0x362   : > { %v4791_v35 = vpop.f32.mrf.mxu0  ;;  %5138 = vst [vmem:[%s7378_s13 + $0x58] sm:$0xff] %v5925_v34 }
 0x363   : > { %5137 = vst [vmem:[%s7378_s13 + $0x50] sm:$0xff] %v5924_v28  ;;  %v5230_v36 = vadd.f32 %v5229_v27, %v5199_v32  ;;  %v5164_v38 = vadd.f32 %v5163_v30, %v4828_v24  ;;  %v4833_v43 = vpop.f32.mrf.mxu1 }
 0x364   : > { %v4792_v29 = vpop.f32.mrf.mxu0 }
 0x365   : > { %v5165_v41 = vadd.f32 %v5164_v38, %v4830_v33  ;;  %v5231_v42 = vadd.f32 %v5230_v36, %v5200_v25 }
 0x367   : > { %v5232_v44 = vadd.f32 %v5231_v42, %v5201_v39 }
 0x39d   : > { %v4910_v46 = vpop.f32.mrf.mxu1 }
 0x39e   : > { %v4869_v45 = vpop.f32.mrf.mxu0  ;;  %v5204_v60 = vmul.f32 %v4910_v46, %v4910_v46 }
 0x39f   : > { %v4912_v49 = vpop.f32.mrf.mxu1  ;;  %v5202_v54 = vmul.f32 %v4869_v45, %v4869_v45  ;;  %v5166_v55 = vadd.f32 %v5165_v41, %v4869_v45 }
 0x3a0   : > { %v4871_v47 = vpop.f32.mrf.mxu0  ;;  %v5927_v50 = vpack.c.bf16 %v4912_v49, %v4910_v46  ;;  %v5205_v2 = vmul.f32 %v4912_v49, %v4912_v49 }
 0x3a1   : > { %v5926_v48 = vpack.c.bf16 %v4871_v47, %v4869_v45  ;;  %v4914_v37 = vpop.f32.mrf.mxu1  ;;  %v5233_v56 = vadd.f32 %v5232_v44, %v5202_v54  ;;  %v5203_v58 = vmul.f32 %v4871_v47, %v4871_v47  ;;  %v5167_v59 = vadd.f32 %v5166_v55, %v4871_v47 }
 0x3a2   : > { %v4873_v51 = vpop.f32.mrf.mxu0  ;;  %5140 = vst [vmem:[%s7378_s13 + $0x68] sm:$0xff] %v5927_v50 }
 0x3a3   : > { %5139 = vst [vmem:[%s7378_s13 + $0x60] sm:$0xff] %v5926_v48  ;;  %v4915_v53 = vpop.f32.mrf.mxu1  ;;  %v5234_v61 = vadd.f32 %v5233_v56, %v5203_v58  ;;  %v5168_v62 = vadd.f32 %v5167_v59, %v4910_v46 }
 0x3a4   : > { %v4874_v52 = vpop.f32.mrf.mxu0 }
 0x3a5   : > { %v5235_v3 = vadd.f32 %v5234_v61, %v5204_v60  ;;  %v5169_v5 = vadd.f32 %v5168_v62, %v4912_v49 }
 0x3a7   : > { %v5236_v7 = vadd.f32 %v5235_v3, %v5205_v2 }
 0x3dd   : > { %v4992_v10 = vpop.f32.mrf.mxu1 }
 0x3de   : > { %v4951_v6 = vpop.f32.mrf.mxu0  ;;  %v5208_v11 = vmul.f32 %v4992_v10, %v4992_v10 }
 0x3df   : > { %v5170_v57 = vadd.f32 %v5169_v5, %v4951_v6  ;;  %v5206_v8 = vmul.f32 %v4951_v6, %v4951_v6  ;;  %v4994_v17 = vpop.f32.mrf.mxu1 }
 0x3e0   : > { %v4953_v12 = vpop.f32.mrf.mxu0  ;;  %v5929_v18 = vpack.c.bf16 %v4994_v17, %v4992_v10  ;;  %v5209_v23 = vmul.f32 %v4994_v17, %v4994_v17 }
 0x3e1   : > { %v5237_v63 = vadd.f32 %v5236_v7, %v5206_v8  ;;  %v5928_v13 = vpack.c.bf16 %v4953_v12, %v4951_v6  ;;  %v5171_v15 = vadd.f32 %v5170_v57, %v4953_v12  ;;  %v5207_v16 = vmul.f32 %v4953_v12, %v4953_v12  ;;  %v4996_v4 = vpop.f32.mrf.mxu1 }
 0x3e2   : > { %v4955_v19 = vpop.f32.mrf.mxu0  ;;  %5142 = vst [vmem:[%s7378_s13 + $0x78] sm:$0xff] %v5929_v18 }
 0x3e3   : > { %5141 = vst [vmem:[%s7378_s13 + $0x70] sm:$0xff] %v5928_v13  ;;  %v5172_v9 = vadd.f32 %v5171_v15, %v4992_v10  ;;  %v5238_v20 = vadd.f32 %v5237_v63, %v5207_v16  ;;  %v4997_v22 = vpop.f32.mrf.mxu1 }
 0x3e4   : > { %v4956_v21 = vpop.f32.mrf.mxu0 }
 0x3e5   : > { %v5173_v14 = vadd.f32 %v5172_v9, %v4994_v17  ;;  %v5239_v0 = vadd.f32 %v5238_v20, %v5208_v11 }
 0x3e7   : > { %5174 = vadd.xlane.f32.xlu0 %v5173_v14  ;;  %v5240_v31 = vadd.f32 %v5239_v0, %v5209_v23 }
 0x3eb   : > { %5241 = vadd.xlane.f32.xlu0 %v5240_v31 }
 0x470   : > { %v5175_v1 = vpop.xlane.xlu0 %5174 }
 0x471   : > { %5177 = vst.msk [vmem:[%s1258_s20] sm:$0xff] %vm5176_vm0, %v5175_v1 }
 0x474   : > { %v5242_v24 = vpop.xlane.xlu0 %5241 }
 0x475   : > { %5243 = vst.msk [vmem:[%s1262_s24] sm:$0xff] %vm5176_vm0, %v5242_v24 }
 0x476 PF: > { %p12_p10 = scmp.ge.s32.totalorder %s6024_s19, 4   ;;  %s7703_s15 = smov %s5974_s16 }
 0x477   : > { %s7704_s16 = smov %s6033_s22  ;;  %s7705_s17 = smov %s6024_s19 }
 0x478   :  { %14 = sbr.rel (!%p12_p10) target bundleno = 2 (0x2), region = 110 }

// kernel: discriminator_forward.10
= control target key start
LH: loop header
LB: loop body
LE: loop exit
PB: predicated region body
PF: predicated region fallthrough
CT: control target
= control target key end

     0   :  { %s676_s12 = smov 0   ;;  %s972_s0 = inlined_call_operand.vmem [shape: bf16[8,8192], index: 0, kind: input, shape index: {}]   ;;  %s973_s1 = inlined_call_operand.vmem [shape: f32[8,1], index: 1, kind: input, shape index: {}]   ;;  %s974_s2 = inlined_call_operand.vmem [shape: f32[8,1], index: 2, kind: input, shape index: {}]   ;;  %s975_s3 = inlined_call_operand.vmem [shape: bf16[8,8192], index: 3, kind: output, shape index: {}]  }
   0x1 LB: > { %s594_s13 = sadd.s32 4294967295, %s653_s12   ;;  %p598_p0 = scmp.ge.s32.totalorder %s653_s12, 1  ;;  %s653_s12 = sphi %s676_s12, %s13_s12  }
   0x2   : > { %p138_p1 = scmp.lt.s32.totalorder %s653_s12, 3 }
   0x4   : > { %p139_p2 = pnand %p598_p0, %p138_p1 }
   0x5   : > { %s599_s18 = sshll.u32 (!%p139_p2), %s594_s13, 5 }
   0x6   : > { %142 = sbr.rel (%p139_p2) target bundleno = 187 (0xbb), region = 32  ;;  %p163_p3 = scmp.lt.s32.totalorder (!%p139_p2), %s599_s18, 63 }
   0xb   : > { %v222_v0 = vld [vmem:[%s973_s1] sm:$0xff]  ;;  %v655_v1 = vmov 0   ;;  %s991_s18 = smov (!%p163_p3, %s599_s18), 63 }
   0xc   : > { %646 = vset.pattern.permute.xlu0 %v655_v1  ;;  %v260_v2 = vld [vmem:[%s974_s2] sm:$0xff]  ;;  %s600_s19 = sshll.u32 %s991_s18, 2 }
   0xd   : > { %225 = vperm.xlu0 %646, %v222_v0   ;;  %s698_s22 = scalar_lea.vmem %s972_s0, %s600_s19  ;;  %s931_s25 = scalar_lea.vmem %s975_s3, %s600_s19 }
   0xe   : > { %v174_v3 = vld [vmem:[%s698_s22] sm:$0xff]  ;;  %v175_v4 = vld [vmem:[%s698_s22 + $0x8] sm:$0xff]  ;;  %v176_v5 = vld [vmem:[%s698_s22 + $0x10] sm:$0xff] }
   0xf   : > { %v177_v6 = vld [vmem:[%s698_s22 + $0x18] sm:$0xff]  ;;  %v178_v7 = vld [vmem:[%s698_s22 + $0x20] sm:$0xff]  ;;  %v179_v8 = vld [vmem:[%s698_s22 + $0x28] sm:$0xff]  ;;  %v190_v11 = vunpack.c.l.bf16 %v174_v3  ;;  %v191_v12 = vunpack.c.h.bf16 %v174_v3  ;;  %v192_v13 = vunpack.c.l.bf16 %v175_v4  ;;  %v193_v14 = vunpack.c.h.bf16 %v175_v4 }
  0x10   : > { %v180_v9 = vld [vmem:[%s698_s22 + $0x30] sm:$0xff]  ;;  %v181_v10 = vld [vmem:[%s698_s22 + $0x38] sm:$0xff]  ;;  %v182_v15 = vld [vmem:[%s698_s22 + $0x40] sm:$0xff]  ;;  %v194_v17 = vunpack.c.l.bf16 %v176_v5  ;;  %v195_v18 = vunpack.c.h.bf16 %v176_v5  ;;  %v196_v19 = vunpack.c.l.bf16 %v177_v6  ;;  %v197_v20 = vunpack.c.h.bf16 %v177_v6 }
  0x11   : > { %263 = vperm.xlu0 %646, %v260_v2   ;;  %v183_v16 = vld [vmem:[%s698_s22 + $0x48] sm:$0xff]  ;;  %v184_v21 = vld [vmem:[%s698_s22 + $0x50] sm:$0xff]  ;;  %v185_v22 = vld [vmem:[%s698_s22 + $0x58] sm:$0xff]  ;;  %v198_v23 = vunpack.c.l.bf16 %v178_v7  ;;  %v199_v24 = vunpack.c.h.bf16 %v178_v7  ;;  %v200_v25 = vunpack.c.l.bf16 %v179_v8  ;;  %v201_v26 = vunpack.c.h.bf16 %v179_v8 }
  0x12   : > { %v186_v27 = vld [vmem:[%s698_s22 + $0x60] sm:$0xff]  ;;  %v187_v28 = vld [vmem:[%s698_s22 + $0x68] sm:$0xff]  ;;  %v202_v29 = vunpack.c.l.bf16 %v180_v9  ;;  %v203_v30 = vunpack.c.h.bf16 %v180_v9  ;;  %v204_v31 = vunpack.c.l.bf16 %v181_v10  ;;  %v205_v32 = vunpack.c.h.bf16 %v181_v10  ;;  %v188_v33 = vld [vmem:[%s698_s22 + $0x70] sm:$0xff] }
  0x13   : > { %v189_v34 = vld [vmem:[%s698_s22 + $0x78] sm:$0xff]  ;;  %v206_v35 = vunpack.c.l.bf16 %v182_v15  ;;  %v207_v36 = vunpack.c.h.bf16 %v182_v15  ;;  %v208_v37 = vunpack.c.l.bf16 %v183_v16  ;;  %v209_v38 = vunpack.c.h.bf16 %v183_v16 }
  0x14   : > { %v210_v40 = vunpack.c.l.bf16 %v184_v21  ;;  %v211_v41 = vunpack.c.h.bf16 %v184_v21  ;;  %v212_v42 = vunpack.c.l.bf16 %v185_v22  ;;  %v213_v43 = vunpack.c.h.bf16 %v185_v22 }
  0x15   : > { %v214_v44 = vunpack.c.l.bf16 %v186_v27  ;;  %v215_v45 = vunpack.c.h.bf16 %v186_v27  ;;  %v216_v46 = vunpack.c.l.bf16 %v187_v28  ;;  %v217_v47 = vunpack.c.h.bf16 %v187_v28 }
  0x16   : > { %v218_v48 = vunpack.c.l.bf16 %v188_v33  ;;  %v219_v49 = vunpack.c.h.bf16 %v188_v33  ;;  %v220_v50 = vunpack.c.l.bf16 %v189_v34  ;;  %v221_v51 = vunpack.c.h.bf16 %v189_v34 }
  0x88   : > { %v226_v39 = vpop.permute.xlu0 %225 }
  0x89   : > { %v228_v52 = vmul.f32 %v226_v39, %v190_v11  ;;  %v229_v53 = vmul.f32 %v226_v39, %v191_v12  ;;  %v230_v54 = vmul.f32 %v226_v39, %v192_v13  ;;  %v231_v55 = vmul.f32 %v226_v39, %v193_v14 }
  0x8a   : > { %v232_v56 = vmul.f32 %v226_v39, %v194_v17  ;;  %v233_v57 = vmul.f32 %v226_v39, %v195_v18  ;;  %v234_v58 = vmul.f32 %v226_v39, %v196_v19  ;;  %v235_v59 = vmul.f32 %v226_v39, %v197_v20 }
  0x8b   : > { %v236_v60 = vmul.f32 %v226_v39, %v198_v23  ;;  %v237_v61 = vmul.f32 %v226_v39, %v199_v24  ;;  %v238_v62 = vmul.f32 %v226_v39, %v200_v25  ;;  %v239_v63 = vmul.f32 %v226_v39, %v201_v26 }
  0x8c   : > { %v240_v0 = vmul.f32 %v226_v39, %v202_v29  ;;  %v241_v1 = vmul.f32 %v226_v39, %v203_v30  ;;  %v242_v2 = vmul.f32 %v226_v39, %v204_v31  ;;  %v243_v3 = vmul.f32 %v226_v39, %v205_v32  ;;  %v264_v8 = vpop.permute.xlu0 %263 }
  0x8d   : > { %v244_v4 = vmul.f32 %v226_v39, %v206_v35  ;;  %v245_v5 = vmul.f32 %v226_v39, %v207_v36  ;;  %v246_v6 = vmul.f32 %v226_v39, %v208_v37  ;;  %v247_v7 = vmul.f32 %v226_v39, %v209_v38 }
  0x8e   : > { %v248_v9 = vmul.f32 %v226_v39, %v210_v40  ;;  %v249_v10 = vmul.f32 %v226_v39, %v211_v41  ;;  %v250_v11 = vmul.f32 %v226_v39, %v212_v42  ;;  %v251_v12 = vmul.f32 %v226_v39, %v213_v43 }
  0x8f   : > { %v252_v13 = vmul.f32 %v226_v39, %v214_v44  ;;  %v253_v14 = vmul.f32 %v226_v39, %v215_v45  ;;  %v254_v15 = vmul.f32 %v226_v39, %v216_v46  ;;  %v255_v16 = vmul.f32 %v226_v39, %v217_v47 }
  0x90   : > { %v256_v17 = vmul.f32 %v226_v39, %v218_v48  ;;  %v257_v18 = vmul.f32 %v226_v39, %v219_v49  ;;  %v258_v19 = vmul.f32 %v226_v39, %v220_v50  ;;  %v259_v20 = vmul.f32 %v226_v39, %v221_v51 }
  0x91   : > { %v716_v21 = vadd.f32 %v264_v8, %v228_v52  ;;  %v718_v22 = vadd.f32 %v264_v8, %v229_v53  ;;  %v720_v23 = vadd.f32 %v264_v8, %v230_v54  ;;  %v722_v24 = vadd.f32 %v264_v8, %v231_v55 }
  0x92   : > { %v724_v25 = vadd.f32 %v264_v8, %v232_v56  ;;  %v726_v26 = vadd.f32 %v264_v8, %v233_v57  ;;  %v728_v27 = vadd.f32 %v264_v8, %v234_v58  ;;  %v730_v28 = vadd.f32 %v264_v8, %v235_v59 }
  0x93   : > { %v732_v29 = vadd.f32 %v264_v8, %v236_v60  ;;  %v734_v30 = vadd.f32 %v264_v8, %v237_v61  ;;  %v736_v31 = vadd.f32 %v264_v8, %v238_v62  ;;  %v738_v32 = vadd.f32 %v264_v8, %v239_v63 }
  0x94   : > { %v740_v33 = vadd.f32 %v264_v8, %v240_v0  ;;  %v742_v34 = vadd.f32 %v264_v8, %v241_v1  ;;  %v744_v35 = vadd.f32 %v264_v8, %v242_v2  ;;  %v746_v36 = vadd.f32 %v264_v8, %v243_v3 }
  0x95   : > { %v748_v37 = vadd.f32 %v264_v8, %v244_v4  ;;  %v750_v38 = vadd.f32 %v264_v8, %v245_v5  ;;  %v752_v39 = vadd.f32 %v264_v8, %v246_v6  ;;  %v754_v40 = vadd.f32 %v264_v8, %v247_v7 }
  0x96   : > { %v756_v41 = vadd.f32 %v264_v8, %v248_v9  ;;  %v758_v42 = vadd.f32 %v264_v8, %v249_v10  ;;  %v760_v43 = vadd.f32 %v264_v8, %v250_v11  ;;  %v762_v44 = vadd.f32 %v264_v8, %v251_v12 }
  0x97   : > { %v764_v45 = vadd.f32 %v264_v8, %v252_v13  ;;  %v766_v46 = vadd.f32 %v264_v8, %v253_v14  ;;  %v768_v47 = vadd.f32 %v264_v8, %v254_v15  ;;  %v770_v48 = vadd.f32 %v264_v8, %v255_v16 }
  0x98   : > { %v772_v49 = vadd.f32 %v264_v8, %v256_v17  ;;  %v774_v50 = vadd.f32 %v264_v8, %v257_v18  ;;  %vm298_vm0 = vcmp.ge.f32.partialorder %v716_v21, 0.0  ;;  %vm299_vm1 = vcmp.ge.f32.partialorder %v718_v22, 0.0 }
  0x99   : > { %vm300_vm2 = vcmp.ge.f32.partialorder %v720_v23, 0.0  ;;  %vm301_vm3 = vcmp.ge.f32.partialorder %v722_v24, 0.0  ;;  %vm302_vm4 = vcmp.ge.f32.partialorder %v724_v25, 0.0  ;;  %vm303_vm5 = vcmp.ge.f32.partialorder %v726_v26, 0.0 }
  0x9a   : > { %vm304_vm6 = vcmp.ge.f32.partialorder %v728_v27, 0.0  ;;  %vm305_vm7 = vcmp.ge.f32.partialorder %v730_v28, 0.0  ;;  %vm306_vm8 = vcmp.ge.f32.partialorder %v732_v29, 0.0  ;;  %v786_v51 = vadd.f32 %v264_v8, %v258_v19 }
  0x9b   : > { %v330_v52 = vmul.f32 0.2, %v716_v21  ;;  %v331_v53 = vmul.f32 0.2, %v718_v22  ;;  %v332_v54 = vmul.f32 0.2, %v720_v23  ;;  %v795_v55 = vadd.f32 %v264_v8, %v259_v20 }
  0x9c   : > { %vm313_vm15 = vcmp.ge.f32.partialorder %v746_v36, 0.0  ;;  %vm314_vm10 = vcmp.ge.f32.partialorder %v748_v37, 0.0  ;;  %v333_v56 = vmul.f32 0.2, %v722_v24  ;;  %v334_v57 = vmul.f32 0.2, %v724_v25 }
  0x9d   : > { %v335_v58 = vmul.f32 0.2, %v726_v26  ;;  %vm319_vm14 = vcmp.ge.f32.partialorder %v758_v42, 0.0  ;;  %v336_v59 = vmul.f32 0.2, %v728_v27  ;;  %v814_v62 = vsel %vm298_vm0, %v716_v21, %v330_v52 }
  0x9e   : > { %v337_v60 = vmul.f32 0.2, %v730_v28  ;;  %v338_v61 = vmul.f32 0.2, %v732_v29  ;;  %vm323_vm9 = vcmp.ge.f32.partialorder %v766_v46, 0.0  ;;  %v826_v2 = vsel %vm299_vm1, %v718_v22, %v331_v53 }
  0x9f   : > { %v339_v63 = vmul.f32 0.2, %v734_v30  ;;  %v340_v0 = vmul.f32 0.2, %v736_v31  ;;  %v341_v1 = vmul.f32 0.2, %v738_v32  ;;  %v364_v6 = vsel %vm300_vm2, %v720_v23, %v332_v54 }
  0xa0   : > { %vm325_vm11 = vcmp.ge.f32.partialorder %v770_v48, 0.0  ;;  %vm326_vm13 = vcmp.ge.f32.partialorder %v772_v49, 0.0  ;;  %vm327_vm12 = vcmp.ge.f32.partialorder %v774_v50, 0.0  ;;  %v342_v3 = vmul.f32 0.2, %v740_v33 }
  0xa1   : > { %v343_v4 = vmul.f32 0.2, %v742_v34  ;;  %v344_v5 = vmul.f32 0.2, %v744_v35  ;;  %vm328_vm1 = vcmp.ge.f32.partialorder %v786_v51, 0.0  ;;  %vm329_vm0 = vcmp.ge.f32.partialorder %v795_v55, 0.0 }
  0xa2   : > { %v345_v7 = vmul.f32 0.2, %v746_v36  ;;  %v346_v8 = vmul.f32 0.2, %v748_v37  ;;  %v347_v9 = vmul.f32 0.2, %v750_v38  ;;  %v365_v10 = vsel %vm301_vm3, %v722_v24, %v333_v56 }
  0xa3   : > { %v348_v11 = vmul.f32 0.2, %v752_v39  ;;  %v349_v12 = vmul.f32 0.2, %v754_v40  ;;  %v350_v13 = vmul.f32 0.2, %v756_v41  ;;  %v366_v14 = vsel %vm302_vm4, %v724_v25, %v334_v57 }
  0xa4   : > { %v351_v15 = vmul.f32 0.2, %v758_v42  ;;  %v352_v16 = vmul.f32 0.2, %v760_v43  ;;  %v353_v17 = vmul.f32 0.2, %v762_v44  ;;  %v367_v18 = vsel %vm303_vm5, %v726_v26, %v335_v58 }
  0xa5   : > { %v354_v19 = vmul.f32 0.2, %v764_v45  ;;  %v355_v20 = vmul.f32 0.2, %v766_v46  ;;  %v356_v21 = vmul.f32 0.2, %v768_v47  ;;  %v368_v22 = vsel %vm304_vm6, %v728_v27, %v336_v59 }
  0xa6   : > { %v357_v23 = vmul.f32 0.2, %v770_v48  ;;  %v358_v24 = vmul.f32 0.2, %v772_v49  ;;  %v359_v25 = vmul.f32 0.2, %v774_v50  ;;  %v369_v26 = vsel %vm305_vm7, %v730_v28, %v337_v60 }
  0xa7   : > { %v360_v52 = vmul.f32 0.2, %v786_v51  ;;  %v361_v53 = vmul.f32 0.2, %v795_v55  ;;  %v370_v54 = vsel %vm306_vm8, %v732_v29, %v338_v61  ;;  %vm976_vm2 = vcmp.ge.f32.partialorder %v734_v30, 0.0 }
  0xa8   : > { %v371_v27 = vsel %vm976_vm2, %v734_v30, %v339_v63  ;;  %vm977_vm3 = vcmp.ge.f32.partialorder %v736_v31, 0.0  ;;  %vm978_vm4 = vcmp.ge.f32.partialorder %v738_v32, 0.0  ;;  %vm979_vm5 = vcmp.ge.f32.partialorder %v740_v33, 0.0 }
  0xa9   : > { %v372_v56 = vsel %vm977_vm3, %v736_v31, %v340_v0  ;;  %v373_v28 = vsel %vm978_vm4, %v738_v32, %v341_v1  ;;  %v374_v57 = vsel %vm979_vm5, %v740_v33, %v342_v3  ;;  %vm980_vm6 = vcmp.ge.f32.partialorder %v742_v34, 0.0 }
  0xaa   : > { %v375_v29 = vsel %vm980_vm6, %v742_v34, %v343_v4  ;;  %vm981_vm7 = vcmp.ge.f32.partialorder %v744_v35, 0.0  ;;  %v377_v31 = vsel %vm313_vm15, %v746_v36, %v345_v7  ;;  %v378_v32 = vsel %vm314_vm10, %v748_v37, %v346_v8 }
  0xab   : > { %v376_v30 = vsel %vm981_vm7, %v744_v35, %v344_v5  ;;  %vm982_vm8 = vcmp.ge.f32.partialorder %v750_v38, 0.0  ;;  %vm983_vm2 = vcmp.ge.f32.partialorder %v752_v39, 0.0  ;;  %vm984_vm3 = vcmp.ge.f32.partialorder %v754_v40, 0.0 }
  0xac   : > { %v379_v33 = vsel %vm982_vm8, %v750_v38, %v347_v9  ;;  %v380_v34 = vsel %vm983_vm2, %v752_v39, %v348_v11  ;;  %v381_v35 = vsel %vm984_vm3, %v754_v40, %v349_v12  ;;  %vm985_vm4 = vcmp.ge.f32.partialorder %v756_v41, 0.0 }
  0xad   : > { %v382_v36 = vsel %vm985_vm4, %v756_v41, %v350_v13  ;;  %v383_v37 = vsel %vm319_vm14, %v758_v42, %v351_v15  ;;  %vm986_vm10 = vcmp.ge.f32.partialorder %v760_v43, 0.0  ;;  %vm987_vm15 = vcmp.ge.f32.partialorder %v762_v44, 0.0 }
  0xae   : > { %v384_v38 = vsel %vm986_vm10, %v760_v43, %v352_v16  ;;  %v385_v39 = vsel %vm987_vm15, %v762_v44, %v353_v17  ;;  %vm988_vm5 = vcmp.ge.f32.partialorder %v764_v45, 0.0  ;;  %v387_v41 = vsel %vm323_vm9, %v766_v46, %v355_v20 }
  0xaf   : > { %v386_v40 = vsel %vm988_vm5, %v764_v45, %v354_v19  ;;  %vm989_vm14 = vcmp.ge.f32.partialorder %v768_v47, 0.0  ;;  %v389_v43 = vsel %vm325_vm11, %v770_v48, %v357_v23  ;;  %v390_v44 = vsel %vm326_vm13, %v772_v49, %v358_v24 }
  0xb0   : > { %v388_v42 = vsel %vm989_vm14, %v768_v47, %v356_v21  ;;  %v391_v45 = vsel %vm327_vm12, %v774_v50, %v359_v25  ;;  %v392_v46 = vsel %vm328_vm1, %v786_v51, %v360_v52  ;;  %v393_v47 = vsel %vm329_vm0, %v795_v55, %v361_v53 }
  0xb1   : > { %v621_v48 = vpack.c.bf16 %v826_v2, %v814_v62  ;;  %v622_v58 = vpack.c.bf16 %v365_v10, %v364_v6  ;;  %v623_v59 = vpack.c.bf16 %v367_v18, %v366_v14  ;;  %v624_v49 = vpack.c.bf16 %v369_v26, %v368_v22 }
  0xb2   : > { %v625_v60 = vpack.c.bf16 %v371_v27, %v370_v54  ;;  %v626_v50 = vpack.c.bf16 %v373_v28, %v372_v56  ;;  %v627_v61 = vpack.c.bf16 %v375_v29, %v374_v57  ;;  %v628_v63 = vpack.c.bf16 %v377_v31, %v376_v30 }
  0xb3   : > { %v629_v51 = vpack.c.bf16 %v379_v33, %v378_v32  ;;  %v630_v0 = vpack.c.bf16 %v381_v35, %v380_v34  ;;  %522 = vst [vmem:[%s931_s25] sm:$0xff] %v621_v48  ;;  %523 = vst [vmem:[%s931_s25 + $0x8] sm:$0xff] %v622_v58  ;;  %v631_v55 = vpack.c.bf16 %v383_v37, %v382_v36 }
  0xb4   : > { %v632_v62 = vpack.c.bf16 %v385_v39, %v384_v38  ;;  %v633_v1 = vpack.c.bf16 %v387_v41, %v386_v40  ;;  %v634_v2 = vpack.c.bf16 %v389_v43, %v388_v42  ;;  %524 = vst [vmem:[%s931_s25 + $0x10] sm:$0xff] %v623_v59  ;;  %525 = vst [vmem:[%s931_s25 + $0x18] sm:$0xff] %v624_v49 }
  0xb5   : > { %526 = vst [vmem:[%s931_s25 + $0x20] sm:$0xff] %v625_v60  ;;  %527 = vst [vmem:[%s931_s25 + $0x28] sm:$0xff] %v626_v50  ;;  %v635_v3 = vpack.c.bf16 %v391_v45, %v390_v44  ;;  %v636_v4 = vpack.c.bf16 %v393_v47, %v392_v46 }
  0xb6   : > { %528 = vst [vmem:[%s931_s25 + $0x30] sm:$0xff] %v627_v61  ;;  %529 = vst [vmem:[%s931_s25 + $0x38] sm:$0xff] %v628_v63 }
  0xb7   : > { %530 = vst [vmem:[%s931_s25 + $0x40] sm:$0xff] %v629_v51  ;;  %531 = vst [vmem:[%s931_s25 + $0x48] sm:$0xff] %v630_v0 }
  0xb8   : > { %532 = vst [vmem:[%s931_s25 + $0x50] sm:$0xff] %v631_v55  ;;  %533 = vst [vmem:[%s931_s25 + $0x58] sm:$0xff] %v632_v62 }
  0xb9   : > { %534 = vst [vmem:[%s931_s25 + $0x60] sm:$0xff] %v633_v1  ;;  %535 = vst [vmem:[%s931_s25 + $0x68] sm:$0xff] %v634_v2 }
  0xba   : > { %536 = vst [vmem:[%s931_s25 + $0x70] sm:$0xff] %v635_v3  ;;  %537 = vst [vmem:[%s931_s25 + $0x78] sm:$0xff] %v636_v4 }
  0xbb PF: > { %s13_s12 = sadd.s32 1, %s653_s12  }
  0xbc   : > { %p10_p4 = scmp.ge.s32.totalorder %s13_s12, 4  }
  0xbe   :  { %12 = sbr.rel (!%p10_p4) target bundleno = 1 (0x1), region = 62 }

// kernel: discriminator_forward.11
= control target key start
LH: loop header
LB: loop body
LE: loop exit
PB: predicated region body
PF: predicated region fallthrough
CT: control target
= control target key end

     0   :  { %vm1992_vm0 = vcmask 7168   ;;  %s3202_s1 = inlined_call_operand.vmem [shape: bf16[512,1024], index: 1, kind: input, shape index: {}]   ;;  %s3203_s0 = inlined_call_operand.vmem [shape: bf16[16,512], index: 0, kind: input, shape index: {}]   ;;  %s3204_s2 = inlined_call_operand.vmem [shape: bf16[16,1024], index: 2, kind: output, shape index: {0}]   ;;  %s3205_s3 = inlined_call_operand.vmem [shape: f32[1,16,1], index: 3, kind: output, shape index: {1}]   ;;  %s3206_s4 = inlined_call_operand.vmem [shape: f32[1,16,1], index: 4, kind: output, shape index: {2}]  }
   0x1   :  { %v74_v0 = vld [vmem:[%s3202_s1 + $0x1c0] sm:$0xff]  ;;  %v2458_v59 = vld [vmem:[%s3203_s0 + $0xc] ss:$16 sps:$4 sm:$0xff]  }
   0x2   :  { %v78_v1 = vld [vmem:[%s3202_s1 + $0x1e0] sm:$0xff]  ;;  %1649 = vmatprep.mubr.bf16.mxu1 %v2458_v59 }
   0x3   :  { %v202_v2 = vld [vmem:[%s3202_s1 + $0x5c0] sm:$0xff]  ;;  %v2104_v3 = vcombine.high %v74_v0, %v78_v1  ;;  %v2103_v5 = vcombine.low %v74_v0, %v78_v1 }
   0x4   :  { %v206_v4 = vld [vmem:[%s3202_s1 + $0x5e0] sm:$0xff] }
   0x5   :  { %v66_v6 = vld [vmem:[%s3202_s1 + $0x180] sm:$0xff]  ;;  %v2232_v8 = vcombine.high %v202_v2, %v206_v4  ;;  %v2231_v9 = vcombine.low %v202_v2, %v206_v4  ;;  %1574 = vmatprep.subr.bf16.mxu0 %v2104_v3 }
   0x6   :  { %v70_v7 = vld [vmem:[%s3202_s1 + $0x1a0] sm:$0xff]  ;;  %1575 = vmatpush1.bf16.msra.mxu0 %v2103_v5 }
   0x7   :  { %v2096_v10 = vcombine.high %v66_v6, %v70_v7  ;;  %v194_v11 = vld [vmem:[%s3202_s1 + $0x580] sm:$0xff]  ;;  %1617 = vmatprep.subr.bf16.mxu1 %v2232_v8  ;;  %v2095_v18 = vcombine.low %v66_v6, %v70_v7 }
   0x8   :  { %v198_v12 = vld [vmem:[%s3202_s1 + $0x5a0] sm:$0xff]  ;;  %1618 = vmatpush1.bf16.msra.mxu1 %v2231_v9 }
   0x9   :  { %v58_v13 = vld [vmem:[%s3202_s1 + $0x140] sm:$0xff]  ;;  %v2224_v14 = vcombine.high %v194_v11, %v198_v12  ;;  %1576 = vmatprep.subr.bf16.mxu0 %v2096_v10  ;;  %v2223_v19 = vcombine.low %v194_v11, %v198_v12 }
   0xa   :  { %v62_v15 = vld [vmem:[%s3202_s1 + $0x160] sm:$0xff]  ;;  %1577 = vmatpush1.bf16.msra.mxu0 %v2095_v18 }
   0xb   :  { %v186_v16 = vld [vmem:[%s3202_s1 + $0x540] sm:$0xff]  ;;  %v2088_v20 = vcombine.high %v58_v13, %v62_v15  ;;  %1619 = vmatprep.subr.bf16.mxu1 %v2224_v14  ;;  %v2087_v26 = vcombine.low %v58_v13, %v62_v15 }
   0xc   :  { %v190_v17 = vld [vmem:[%s3202_s1 + $0x560] sm:$0xff]  ;;  %1620 = vmatpush1.bf16.msra.mxu1 %v2223_v19 }
   0xd   :  { %v2216_v21 = vcombine.high %v186_v16, %v190_v17  ;;  %v50_v22 = vld [vmem:[%s3202_s1 + $0x100] sm:$0xff]  ;;  %1578 = vmatprep.subr.bf16.mxu0 %v2088_v20  ;;  %v2215_v27 = vcombine.low %v186_v16, %v190_v17 }
   0xe   :  { %v54_v23 = vld [vmem:[%s3202_s1 + $0x120] sm:$0xff]  ;;  %1579 = vmatpush1.bf16.msra.mxu0 %v2087_v26 }
   0xf   :  { %v178_v24 = vld [vmem:[%s3202_s1 + $0x500] sm:$0xff]  ;;  %v2080_v28 = vcombine.high %v50_v22, %v54_v23  ;;  %1621 = vmatprep.subr.bf16.mxu1 %v2216_v21  ;;  %v2079_v34 = vcombine.low %v50_v22, %v54_v23 }
  0x10   :  { %v182_v25 = vld [vmem:[%s3202_s1 + $0x520] sm:$0xff]  ;;  %1622 = vmatpush1.bf16.msra.mxu1 %v2215_v27 }
  0x11   :  { %v2208_v29 = vcombine.high %v178_v24, %v182_v25  ;;  %v42_v30 = vld [vmem:[%s3202_s1 + $0xc0] sm:$0xff]  ;;  %1580 = vmatprep.subr.bf16.mxu0 %v2080_v28  ;;  %v2207_v35 = vcombine.low %v178_v24, %v182_v25 }
  0x12   :  { %v46_v31 = vld [vmem:[%s3202_s1 + $0xe0] sm:$0xff]  ;;  %1581 = vmatpush1.bf16.msra.mxu0 %v2079_v34 }
  0x13   :  { %v170_v32 = vld [vmem:[%s3202_s1 + $0x4c0] sm:$0xff]  ;;  %v2072_v36 = vcombine.high %v42_v30, %v46_v31  ;;  %1623 = vmatprep.subr.bf16.mxu1 %v2208_v29  ;;  %v2071_v42 = vcombine.low %v42_v30, %v46_v31 }
  0x14   :  { %v174_v33 = vld [vmem:[%s3202_s1 + $0x4e0] sm:$0xff]  ;;  %1624 = vmatpush1.bf16.msra.mxu1 %v2207_v35 }
  0x15   :  { %v2200_v37 = vcombine.high %v170_v32, %v174_v33  ;;  %v34_v38 = vld [vmem:[%s3202_s1 + $0x80] sm:$0xff]  ;;  %1582 = vmatprep.subr.bf16.mxu0 %v2072_v36  ;;  %v2199_v43 = vcombine.low %v170_v32, %v174_v33 }
  0x16   :  { %v38_v39 = vld [vmem:[%s3202_s1 + $0xa0] sm:$0xff]  ;;  %1583 = vmatpush1.bf16.msra.mxu0 %v2071_v42 }
  0x17   :  { %v162_v40 = vld [vmem:[%s3202_s1 + $0x480] sm:$0xff]  ;;  %v2064_v44 = vcombine.high %v34_v38, %v38_v39  ;;  %1625 = vmatprep.subr.bf16.mxu1 %v2200_v37  ;;  %v2063_v50 = vcombine.low %v34_v38, %v38_v39 }
  0x18   :  { %v166_v41 = vld [vmem:[%s3202_s1 + $0x4a0] sm:$0xff]  ;;  %1626 = vmatpush1.bf16.msra.mxu1 %v2199_v43 }
  0x19   :  { %v2192_v45 = vcombine.high %v162_v40, %v166_v41  ;;  %v26_v46 = vld [vmem:[%s3202_s1 + $0x40] sm:$0xff]  ;;  %1584 = vmatprep.subr.bf16.mxu0 %v2064_v44  ;;  %v2191_v52 = vcombine.low %v162_v40, %v166_v41 }
  0x1a   :  { %v30_v47 = vld [vmem:[%s3202_s1 + $0x60] sm:$0xff]  ;;  %1585 = vmatpush1.bf16.msra.mxu0 %v2063_v50 }
  0x1b   :  { %v154_v48 = vld [vmem:[%s3202_s1 + $0x440] sm:$0xff]  ;;  %v2056_v53 = vcombine.high %v26_v46, %v30_v47  ;;  %1627 = vmatprep.subr.bf16.mxu1 %v2192_v45  ;;  %v2055_v60 = vcombine.low %v26_v46, %v30_v47 }
  0x1c   :  { %v158_v49 = vld [vmem:[%s3202_s1 + $0x460] sm:$0xff]  ;;  %1628 = vmatpush1.bf16.msra.mxu1 %v2191_v52 }
  0x1d   :  { %v18_v51 = vld [vmem:[%s3202_s1] sm:$0xff]  ;;  %v2184_v55 = vcombine.high %v154_v48, %v158_v49  ;;  %1586 = vmatprep.subr.bf16.mxu0 %v2056_v53  ;;  %v2183_v61 = vcombine.low %v154_v48, %v158_v49 }
  0x1e   :  { %v22_v54 = vld [vmem:[%s3202_s1 + $0x20] sm:$0xff]  ;;  %1587 = vmatpush1.bf16.msra.mxu0 %v2055_v60 }
  0x1f   :  { %v2447_v56 = vld [vmem:[%s3203_s0 + $0x4] ss:$16 sps:$4 sm:$0xff]   ;;  %v2048_v62 = vcombine.high %v18_v51, %v22_v54  ;;  %1629 = vmatprep.subr.bf16.mxu1 %v2184_v55  ;;  %v2047_v4 = vcombine.low %v18_v51, %v22_v54 }
  0x20   :  { %v146_v57 = vld [vmem:[%s3202_s1 + $0x400] sm:$0xff]  ;;  %1606 = vmatprep.mubr.bf16.mxu0 %v2447_v56  ;;  %1630 = vmatpush1.bf16.msra.mxu1 %v2183_v61 }
  0x21   :  { %v150_v58 = vld [vmem:[%s3202_s1 + $0x420] sm:$0xff]  ;;  %1588 = vmatprep.subr.bf16.mxu0 %v2048_v62 }
  0x22   :  { %v2176_v63 = vcombine.high %v146_v57, %v150_v58  ;;  %v138_v0 = vld [vmem:[%s3202_s1 + $0x3c0] sm:$0xff]  ;;  %v2175_v5 = vcombine.low %v146_v57, %v150_v58  ;;  %1589 = vmatpush1.bf16.msra.mxu0 %v2047_v4  ;;  %v203_v4 = vld [vmem:[%s3202_s1 + $0x5c8] sm:$0xff] }
  0x23   :  { %v142_v1 = vld [vmem:[%s3202_s1 + $0x3e0] sm:$0xff] }
  0x24   :  { %v266_v2 = vld [vmem:[%s3202_s1 + $0x7c0] sm:$0xff]  ;;  %v2168_v6 = vcombine.high %v138_v0, %v142_v1  ;;  %1631 = vmatprep.subr.bf16.mxu1 %v2176_v63  ;;  %v2167_v12 = vcombine.low %v138_v0, %v142_v1 }
  0x25   :  { %v270_v3 = vld [vmem:[%s3202_s1 + $0x7e0] sm:$0xff]  ;;  %1632 = vmatpush1.bf16.msra.mxu1 %v2175_v5  ;;  %v207_v5 = vld [vmem:[%s3202_s1 + $0x5e8] sm:$0xff] }
  0x26   :  { %v2296_v7 = vcombine.high %v266_v2, %v270_v3  ;;  %v130_v8 = vld [vmem:[%s3202_s1 + $0x380] sm:$0xff]  ;;  %1590 = vmatprep.subr.bf16.mxu0 %v2168_v6  ;;  %v2295_v13 = vcombine.low %v266_v2, %v270_v3  ;;  %v75_v2 = vld [vmem:[%s3202_s1 + $0x1c8] sm:$0xff] }
  0x27   :  { %v134_v9 = vld [vmem:[%s3202_s1 + $0x3a0] sm:$0xff]  ;;  %1591 = vmatpush2.bf16.msra.mxu0 %v2167_v12  ;;  %v79_v3 = vld [vmem:[%s3202_s1 + $0x1e8] sm:$0xff] }
  0x28   :  { %v258_v10 = vld [vmem:[%s3202_s1 + $0x780] sm:$0xff]  ;;  %v2160_v14 = vcombine.high %v130_v8, %v134_v9  ;;  %1633 = vmatprep.subr.bf16.mxu1 %v2296_v7  ;;  %v2159_v20 = vcombine.low %v130_v8, %v134_v9  ;;  %v2106_v8 = vcombine.high %v75_v2, %v79_v3  ;;  %v2234_v9 = vcombine.high %v203_v4, %v207_v5 }
  0x29   :  { %v262_v11 = vld [vmem:[%s3202_s1 + $0x7a0] sm:$0xff]  ;;  %1634 = vmatpush2.bf16.msra.mxu1 %v2295_v13  ;;  %v195_v13 = vld [vmem:[%s3202_s1 + $0x588] sm:$0xff] }
  0x2a   :  { %v2288_v15 = vcombine.high %v258_v10, %v262_v11  ;;  %v122_v16 = vld [vmem:[%s3202_s1 + $0x340] sm:$0xff]  ;;  %1592 = vmatprep.subr.bf16.mxu0 %v2160_v14  ;;  %v2287_v21 = vcombine.low %v258_v10, %v262_v11  ;;  %v67_v10 = vld [vmem:[%s3202_s1 + $0x188] sm:$0xff] }
  0x2b   :  { %v126_v17 = vld [vmem:[%s3202_s1 + $0x360] sm:$0xff]  ;;  %1593 = vmatpush2.bf16.msra.mxu0 %v2159_v20  ;;  %v71_v11 = vld [vmem:[%s3202_s1 + $0x1a8] sm:$0xff] }
  0x2c   :  { %v250_v18 = vld [vmem:[%s3202_s1 + $0x740] sm:$0xff]  ;;  %v2152_v22 = vcombine.high %v122_v16, %v126_v17  ;;  %1635 = vmatprep.subr.bf16.mxu1 %v2288_v15  ;;  %v2151_v28 = vcombine.low %v122_v16, %v126_v17  ;;  %v199_v14 = vld [vmem:[%s3202_s1 + $0x5a8] sm:$0xff]  ;;  %v2105_v16 = vcombine.low %v75_v2, %v79_v3  ;;  %v2233_v17 = vcombine.low %v203_v4, %v207_v5 }
  0x2d   :  { %v254_v19 = vld [vmem:[%s3202_s1 + $0x760] sm:$0xff]  ;;  %1636 = vmatpush2.bf16.msra.mxu1 %v2287_v21  ;;  %v2590_v15 = vld [vmem:[%s3203_s0 + $0x8] ss:$16 sps:$4 sm:$0xff]  }
  0x2e   :  { %v2280_v23 = vcombine.high %v250_v18, %v254_v19  ;;  %v114_v24 = vld [vmem:[%s3202_s1 + $0x300] sm:$0xff]  ;;  %1594 = vmatprep.subr.bf16.mxu0 %v2152_v22  ;;  %v2279_v29 = vcombine.low %v250_v18, %v254_v19  ;;  %v2098_v18 = vcombine.high %v67_v10, %v71_v11  ;;  %v2226_v19 = vcombine.high %v195_v13, %v199_v14  ;;  %v59_v20 = vld [vmem:[%s3202_s1 + $0x148] sm:$0xff] }
  0x2f   :  { %v118_v25 = vld [vmem:[%s3202_s1 + $0x320] sm:$0xff]  ;;  %1595 = vmatpush2.bf16.msra.mxu0 %v2151_v28  ;;  %v63_v21 = vld [vmem:[%s3202_s1 + $0x168] sm:$0xff] }
  0x30   :  { %v242_v26 = vld [vmem:[%s3202_s1 + $0x700] sm:$0xff]  ;;  %v2144_v30 = vcombine.high %v114_v24, %v118_v25  ;;  %1637 = vmatprep.subr.bf16.mxu1 %v2280_v23  ;;  %v2143_v36 = vcombine.low %v114_v24, %v118_v25  ;;  %v187_v22 = vld [vmem:[%s3202_s1 + $0x548] sm:$0xff]  ;;  %v2097_v24 = vcombine.low %v67_v10, %v71_v11  ;;  %v2225_v25 = vcombine.low %v195_v13, %v199_v14 }
  0x31   :  { %v246_v27 = vld [vmem:[%s3202_s1 + $0x720] sm:$0xff]  ;;  %1638 = vmatpush2.bf16.msra.mxu1 %v2279_v29  ;;  %v191_v23 = vld [vmem:[%s3202_s1 + $0x568] sm:$0xff] }
  0x32   :  { %v2272_v31 = vcombine.high %v242_v26, %v246_v27  ;;  %v106_v32 = vld [vmem:[%s3202_s1 + $0x2c0] sm:$0xff]  ;;  %1596 = vmatprep.subr.bf16.mxu0 %v2144_v30  ;;  %v2271_v37 = vcombine.low %v242_v26, %v246_v27  ;;  %v2090_v26 = vcombine.high %v59_v20, %v63_v21  ;;  %v2218_v27 = vcombine.high %v187_v22, %v191_v23  ;;  %v51_v28 = vld [vmem:[%s3202_s1 + $0x108] sm:$0xff] }
  0x33   :  { %v110_v33 = vld [vmem:[%s3202_s1 + $0x2e0] sm:$0xff]  ;;  %1597 = vmatpush2.bf16.msra.mxu0 %v2143_v36  ;;  %v55_v29 = vld [vmem:[%s3202_s1 + $0x128] sm:$0xff] }
  0x34   :  { %v234_v34 = vld [vmem:[%s3202_s1 + $0x6c0] sm:$0xff]  ;;  %v2136_v38 = vcombine.high %v106_v32, %v110_v33  ;;  %1639 = vmatprep.subr.bf16.mxu1 %v2272_v31  ;;  %v2135_v44 = vcombine.low %v106_v32, %v110_v33  ;;  %v179_v30 = vld [vmem:[%s3202_s1 + $0x508] sm:$0xff]  ;;  %v2089_v32 = vcombine.low %v59_v20, %v63_v21  ;;  %v2217_v33 = vcombine.low %v187_v22, %v191_v23 }
  0x35   :  { %v238_v35 = vld [vmem:[%s3202_s1 + $0x6e0] sm:$0xff]  ;;  %1640 = vmatpush2.bf16.msra.mxu1 %v2271_v37  ;;  %v183_v31 = vld [vmem:[%s3202_s1 + $0x528] sm:$0xff] }
  0x36   :  { %v2264_v39 = vcombine.high %v234_v34, %v238_v35  ;;  %v98_v40 = vld [vmem:[%s3202_s1 + $0x280] sm:$0xff]  ;;  %1598 = vmatprep.subr.bf16.mxu0 %v2136_v38  ;;  %v2263_v45 = vcombine.low %v234_v34, %v238_v35  ;;  %v2082_v34 = vcombine.high %v51_v28, %v55_v29  ;;  %v2210_v35 = vcombine.high %v179_v30, %v183_v31  ;;  %v43_v36 = vld [vmem:[%s3202_s1 + $0xc8] sm:$0xff] }
  0x37   :  { %v102_v41 = vld [vmem:[%s3202_s1 + $0x2a0] sm:$0xff]  ;;  %1599 = vmatpush2.bf16.msra.mxu0 %v2135_v44  ;;  %v47_v37 = vld [vmem:[%s3202_s1 + $0xe8] sm:$0xff] }
  0x38   :  { %v226_v42 = vld [vmem:[%s3202_s1 + $0x680] sm:$0xff]  ;;  %v2128_v46 = vcombine.high %v98_v40, %v102_v41  ;;  %1641 = vmatprep.subr.bf16.mxu1 %v2264_v39  ;;  %v2127_v52 = vcombine.low %v98_v40, %v102_v41  ;;  %v171_v38 = vld [vmem:[%s3202_s1 + $0x4c8] sm:$0xff]  ;;  %v2081_v40 = vcombine.low %v51_v28, %v55_v29  ;;  %v2209_v41 = vcombine.low %v179_v30, %v183_v31 }
  0x39   :  { %v230_v43 = vld [vmem:[%s3202_s1 + $0x6a0] sm:$0xff]  ;;  %1642 = vmatpush2.bf16.msra.mxu1 %v2263_v45  ;;  %v175_v39 = vld [vmem:[%s3202_s1 + $0x4e8] sm:$0xff] }
  0x3a   :  { %v2256_v47 = vcombine.high %v226_v42, %v230_v43  ;;  %v90_v48 = vld [vmem:[%s3202_s1 + $0x240] sm:$0xff]  ;;  %1600 = vmatprep.subr.bf16.mxu0 %v2128_v46  ;;  %v2255_v53 = vcombine.low %v226_v42, %v230_v43  ;;  %v2074_v42 = vcombine.high %v43_v36, %v47_v37  ;;  %v2202_v43 = vcombine.high %v171_v38, %v175_v39  ;;  %v35_v44 = vld [vmem:[%s3202_s1 + $0x88] sm:$0xff] }
  0x3b   :  { %v94_v49 = vld [vmem:[%s3202_s1 + $0x260] sm:$0xff]  ;;  %1601 = vmatpush2.bf16.msra.mxu0 %v2127_v52  ;;  %v39_v45 = vld [vmem:[%s3202_s1 + $0xa8] sm:$0xff] }
  0x3c   :  { %v218_v50 = vld [vmem:[%s3202_s1 + $0x640] sm:$0xff]  ;;  %v2120_v54 = vcombine.high %v90_v48, %v94_v49  ;;  %1643 = vmatprep.subr.bf16.mxu1 %v2256_v47  ;;  %v2119_v62 = vcombine.low %v90_v48, %v94_v49  ;;  %v163_v46 = vld [vmem:[%s3202_s1 + $0x488] sm:$0xff]  ;;  %v2073_v48 = vcombine.low %v43_v36, %v47_v37  ;;  %v2201_v49 = vcombine.low %v171_v38, %v175_v39 }
  0x3d   :  { %v222_v51 = vld [vmem:[%s3202_s1 + $0x660] sm:$0xff]  ;;  %1644 = vmatpush2.bf16.msra.mxu1 %v2255_v53  ;;  %v167_v47 = vld [vmem:[%s3202_s1 + $0x4a8] sm:$0xff] }
  0x3e   :  { %v2248_v55 = vcombine.high %v218_v50, %v222_v51  ;;  %v82_v57 = vld [vmem:[%s3202_s1 + $0x200] sm:$0xff]  ;;  %1602 = vmatprep.subr.bf16.mxu0 %v2120_v54  ;;  %v2247_v63 = vcombine.low %v218_v50, %v222_v51  ;;  %v2066_v50 = vcombine.high %v35_v44, %v39_v45  ;;  %v2194_v51 = vcombine.high %v163_v46, %v167_v47  ;;  %v27_v52 = vld [vmem:[%s3202_s1 + $0x48] sm:$0xff] }
  0x3f   :  { %v86_v58 = vld [vmem:[%s3202_s1 + $0x220] sm:$0xff]  ;;  %1603 = vmatpush2.bf16.msra.mxu0 %v2119_v62  ;;  %v31_v53 = vld [vmem:[%s3202_s1 + $0x68] sm:$0xff] }
  0x40   :  { %v210_v60 = vld [vmem:[%s3202_s1 + $0x600] sm:$0xff]  ;;  %v2112_v0 = vcombine.high %v82_v57, %v86_v58  ;;  %1645 = vmatprep.subr.bf16.mxu1 %v2248_v55  ;;  %v2111_v6 = vcombine.low %v82_v57, %v86_v58  ;;  %v155_v54 = vld [vmem:[%s3202_s1 + $0x448] sm:$0xff]  ;;  %v2065_v57 = vcombine.low %v35_v44, %v39_v45  ;;  %v2193_v58 = vcombine.low %v163_v46, %v167_v47 }
  0x41   :  { %v214_v61 = vld [vmem:[%s3202_s1 + $0x620] sm:$0xff]  ;;  %1646 = vmatpush2.bf16.msra.mxu1 %v2247_v63  ;;  %v159_v55 = vld [vmem:[%s3202_s1 + $0x468] sm:$0xff]  ;;  %v2057_v2 = vcombine.low %v27_v52, %v31_v53 }
  0x42   :  { %v2240_v1 = vcombine.high %v210_v60, %v214_v61  ;;  %1604 = vmatprep.subr.bf16.mxu0 %v2112_v0  ;;  %v2239_v7 = vcombine.low %v210_v60, %v214_v61  ;;  %v2579_v12 = vld [vmem:[%s3203_s0] ss:$16 sps:$4 sm:$0xff]   ;;  %v2058_v60 = vcombine.high %v27_v52, %v31_v53  ;;  %v2186_v61 = vcombine.high %v155_v54, %v159_v55  ;;  %v19_v62 = vld [vmem:[%s3202_s1 + $0x8] sm:$0xff] }
  0x43   :  { %1605 = vmatpush2.bf16.msra.mxu0 %v2111_v6  ;;  %v23_v63 = vld [vmem:[%s3202_s1 + $0x28] sm:$0xff]  ;;  %v2185_v3 = vcombine.low %v155_v54, %v159_v55 }
  0x44   :  { %1647 = vmatprep.subr.bf16.mxu1 %v2240_v1  ;;  %1660 = vmatprep.subr.bf16.mxu0 %v2106_v8  ;;  %v147_v0 = vld [vmem:[%s3202_s1 + $0x408] sm:$0xff]  ;;  %v2050_v4 = vcombine.high %v19_v62, %v23_v63  ;;  %v2049_v10 = vcombine.low %v19_v62, %v23_v63 }
  0x45   :  { %1648 = vmatpush2.bf16.msra.mxu1 %v2239_v7  ;;  %v151_v1 = vld [vmem:[%s3202_s1 + $0x428] sm:$0xff] }
  0x46   :  { %1703 = vmatprep.subr.bf16.mxu1 %v2234_v9  ;;  %1607 = vmatmul.mubr.bf16.vlgmr.msra.gmra.mxu0 %v2579_v12  ;;  %v2178_v5 = vcombine.high %v147_v0, %v151_v1  ;;  %v139_v6 = vld [vmem:[%s3202_s1 + $0x3c8] sm:$0xff]  ;;  %v2177_v11 = vcombine.low %v147_v0, %v151_v1 }
  0x47   :  { %1661 = vmatpush1.bf16.msra.mxu0 %v2105_v16  ;;  %1692 = vmatprep.mubr.bf16.mxu0 %v2447_v56  ;;  %v143_v7 = vld [vmem:[%s3202_s1 + $0x3e8] sm:$0xff] }
  0x48   :  { %1650 = vmatmul.mubr.bf16.vlgmr.msra.gmra.mxu1 %v2590_v15  ;;  %1662 = vmatprep.subr.bf16.mxu0 %v2098_v18  ;;  %v267_v8 = vld [vmem:[%s3202_s1 + $0x7c8] sm:$0xff]  ;;  %v2170_v13 = vcombine.high %v139_v6, %v143_v7  ;;  %v2169_v20 = vcombine.low %v139_v6, %v143_v7 }
  0x49   :  { %1704 = vmatpush1.bf16.msra.mxu1 %v2233_v17  ;;  %1735 = vmatprep.mubr.bf16.mxu1 %v2458_v59  ;;  %v271_v9 = vld [vmem:[%s3202_s1 + $0x7e8] sm:$0xff] }
  0x4a   :  { %1705 = vmatprep.subr.bf16.mxu1 %v2226_v19  ;;  %v2298_v14 = vcombine.high %v267_v8, %v271_v9  ;;  %v131_v16 = vld [vmem:[%s3202_s1 + $0x388] sm:$0xff]  ;;  %v2297_v21 = vcombine.low %v267_v8, %v271_v9 }
  0x4b   :  { %1663 = vmatpush1.bf16.msra.mxu0 %v2097_v24  ;;  %v135_v17 = vld [vmem:[%s3202_s1 + $0x3a8] sm:$0xff] }
  0x4c   :  { %1664 = vmatprep.subr.bf16.mxu0 %v2090_v26  ;;  %v259_v18 = vld [vmem:[%s3202_s1 + $0x788] sm:$0xff]  ;;  %v2162_v22 = vcombine.high %v131_v16, %v135_v17  ;;  %v2161_v28 = vcombine.low %v131_v16, %v135_v17 }
  0x4d   :  { %1706 = vmatpush1.bf16.msra.mxu1 %v2225_v25  ;;  %v263_v19 = vld [vmem:[%s3202_s1 + $0x7a8] sm:$0xff] }
  0x4e   :  { %1707 = vmatprep.subr.bf16.mxu1 %v2218_v27  ;;  %v2290_v23 = vcombine.high %v259_v18, %v263_v19  ;;  %v123_v24 = vld [vmem:[%s3202_s1 + $0x348] sm:$0xff]  ;;  %v2289_v29 = vcombine.low %v259_v18, %v263_v19 }
  0x4f   :  { %1665 = vmatpush1.bf16.msra.mxu0 %v2089_v32  ;;  %v127_v25 = vld [vmem:[%s3202_s1 + $0x368] sm:$0xff] }
  0x50   :  { %1666 = vmatprep.subr.bf16.mxu0 %v2082_v34  ;;  %v251_v26 = vld [vmem:[%s3202_s1 + $0x748] sm:$0xff]  ;;  %v2154_v30 = vcombine.high %v123_v24, %v127_v25  ;;  %v2153_v36 = vcombine.low %v123_v24, %v127_v25 }
  0x51   :  { %1708 = vmatpush1.bf16.msra.mxu1 %v2217_v33  ;;  %v255_v27 = vld [vmem:[%s3202_s1 + $0x768] sm:$0xff] }
  0x52   :  { %1709 = vmatprep.subr.bf16.mxu1 %v2210_v35  ;;  %v2282_v31 = vcombine.high %v251_v26, %v255_v27  ;;  %v115_v32 = vld [vmem:[%s3202_s1 + $0x308] sm:$0xff]  ;;  %v2281_v37 = vcombine.low %v251_v26, %v255_v27 }
  0x53   :  { %1667 = vmatpush1.bf16.msra.mxu0 %v2081_v40  ;;  %v119_v33 = vld [vmem:[%s3202_s1 + $0x328] sm:$0xff] }
  0x54   :  { %1668 = vmatprep.subr.bf16.mxu0 %v2074_v42  ;;  %v243_v34 = vld [vmem:[%s3202_s1 + $0x708] sm:$0xff]  ;;  %v2146_v38 = vcombine.high %v115_v32, %v119_v33  ;;  %v2145_v44 = vcombine.low %v115_v32, %v119_v33 }
  0x55   :  { %1710 = vmatpush1.bf16.msra.mxu1 %v2209_v41  ;;  %v247_v35 = vld [vmem:[%s3202_s1 + $0x728] sm:$0xff] }
  0x56   :  { %1711 = vmatprep.subr.bf16.mxu1 %v2202_v43  ;;  %v2274_v39 = vcombine.high %v243_v34, %v247_v35  ;;  %v107_v40 = vld [vmem:[%s3202_s1 + $0x2c8] sm:$0xff]  ;;  %v2273_v45 = vcombine.low %v243_v34, %v247_v35 }
  0x57   :  { %1669 = vmatpush1.bf16.msra.mxu0 %v2073_v48  ;;  %v111_v41 = vld [vmem:[%s3202_s1 + $0x2e8] sm:$0xff] }
  0x58   :  { %1670 = vmatprep.subr.bf16.mxu0 %v2066_v50  ;;  %v235_v42 = vld [vmem:[%s3202_s1 + $0x6c8] sm:$0xff]  ;;  %v2138_v46 = vcombine.high %v107_v40, %v111_v41  ;;  %v2137_v52 = vcombine.low %v107_v40, %v111_v41 }
  0x59   :  { %1712 = vmatpush1.bf16.msra.mxu1 %v2201_v49  ;;  %v239_v43 = vld [vmem:[%s3202_s1 + $0x6e8] sm:$0xff] }
  0x5a   :  { %1713 = vmatprep.subr.bf16.mxu1 %v2194_v51  ;;  %v2266_v47 = vcombine.high %v235_v42, %v239_v43  ;;  %v99_v48 = vld [vmem:[%s3202_s1 + $0x288] sm:$0xff]  ;;  %v2265_v53 = vcombine.low %v235_v42, %v239_v43 }
  0x5b   :  { %1671 = vmatpush1.bf16.msra.mxu0 %v2065_v57  ;;  %v103_v49 = vld [vmem:[%s3202_s1 + $0x2a8] sm:$0xff] }
  0x5c   :  { %1672 = vmatprep.subr.bf16.mxu0 %v2058_v60  ;;  %v227_v50 = vld [vmem:[%s3202_s1 + $0x688] sm:$0xff]  ;;  %v2130_v54 = vcombine.high %v99_v48, %v103_v49  ;;  %v2129_v62 = vcombine.low %v99_v48, %v103_v49 }
  0x5d   :  { %1714 = vmatpush1.bf16.msra.mxu1 %v2193_v58  ;;  %v231_v51 = vld [vmem:[%s3202_s1 + $0x6a8] sm:$0xff] }
  0x5e   :  { %1715 = vmatprep.subr.bf16.mxu1 %v2186_v61  ;;  %v2258_v55 = vcombine.high %v227_v50, %v231_v51  ;;  %v91_v57 = vld [vmem:[%s3202_s1 + $0x248] sm:$0xff]  ;;  %v2257_v63 = vcombine.low %v227_v50, %v231_v51  ;;  %v36_v50 = vld [vmem:[%s3202_s1 + $0x90] sm:$0xff] }
  0x5f   :  { %1673 = vmatpush1.bf16.msra.mxu0 %v2057_v2  ;;  %v95_v58 = vld [vmem:[%s3202_s1 + $0x268] sm:$0xff]  ;;  %v40_v51 = vld [vmem:[%s3202_s1 + $0xb0] sm:$0xff] }
  0x60   :  { %1674 = vmatprep.subr.bf16.mxu0 %v2050_v4  ;;  %v219_v60 = vld [vmem:[%s3202_s1 + $0x648] sm:$0xff]  ;;  %v2122_v0 = vcombine.high %v91_v57, %v95_v58  ;;  %v2121_v6 = vcombine.low %v91_v57, %v95_v58  ;;  %v2068_v57 = vcombine.high %v36_v50, %v40_v51 }
  0x61   :  { %1716 = vmatpush1.bf16.msra.mxu1 %v2185_v3  ;;  %v223_v61 = vld [vmem:[%s3202_s1 + $0x668] sm:$0xff] }
  0x62   :  { %1717 = vmatprep.subr.bf16.mxu1 %v2178_v5  ;;  %v2250_v1 = vcombine.high %v219_v60, %v223_v61  ;;  %v83_v2 = vld [vmem:[%s3202_s1 + $0x208] sm:$0xff]  ;;  %v2249_v7 = vcombine.low %v219_v60, %v223_v61  ;;  %v28_v60 = vld [vmem:[%s3202_s1 + $0x50] sm:$0xff] }
  0x63   :  { %1675 = vmatpush1.bf16.msra.mxu0 %v2049_v10  ;;  %v87_v3 = vld [vmem:[%s3202_s1 + $0x228] sm:$0xff]  ;;  %v76_v10 = vld [vmem:[%s3202_s1 + $0x1d0] sm:$0xff] }
  0x64   :  { %1676 = vmatprep.subr.bf16.mxu0 %v2170_v13  ;;  %v211_v4 = vld [vmem:[%s3202_s1 + $0x608] sm:$0xff]  ;;  %v2114_v8 = vcombine.high %v83_v2, %v87_v3  ;;  %v204_v13 = vld [vmem:[%s3202_s1 + $0x5d0] sm:$0xff]  ;;  %v2113_v16 = vcombine.low %v83_v2, %v87_v3 }
  0x65   :  { %1718 = vmatpush1.bf16.msra.mxu1 %v2177_v11  ;;  %v215_v5 = vld [vmem:[%s3202_s1 + $0x628] sm:$0xff]  ;;  %v80_v11 = vld [vmem:[%s3202_s1 + $0x1f0] sm:$0xff] }
  0x66   :  { %1719 = vmatprep.subr.bf16.mxu1 %v2298_v14  ;;  %v2242_v9 = vcombine.high %v211_v4, %v215_v5  ;;  %v208_v14 = vld [vmem:[%s3202_s1 + $0x5f0] sm:$0xff]  ;;  %v2241_v17 = vcombine.low %v211_v4, %v215_v5  ;;  %v2108_v18 = vcombine.high %v76_v10, %v80_v11  ;;  %v2107_v24 = vcombine.low %v76_v10, %v80_v11 }
  0x67   :  { %1677 = vmatpush2.bf16.msra.mxu0 %v2169_v20  ;;  %v2236_v19 = vcombine.high %v204_v13, %v208_v14  ;;  %v68_v20 = vld [vmem:[%s3202_s1 + $0x190] sm:$0xff]  ;;  %v2235_v25 = vcombine.low %v204_v13, %v208_v14 }
  0x68   :  { %1678 = vmatprep.subr.bf16.mxu0 %v2162_v22  ;;  %v196_v22 = vld [vmem:[%s3202_s1 + $0x590] sm:$0xff] }
  0x69   :  { %1720 = vmatpush2.bf16.msra.mxu1 %v2297_v21  ;;  %v72_v21 = vld [vmem:[%s3202_s1 + $0x1b0] sm:$0xff] }
  0x6a   :  { %1721 = vmatprep.subr.bf16.mxu1 %v2290_v23  ;;  %v200_v23 = vld [vmem:[%s3202_s1 + $0x5b0] sm:$0xff]  ;;  %v2100_v26 = vcombine.high %v68_v20, %v72_v21  ;;  %v2099_v32 = vcombine.low %v68_v20, %v72_v21 }
  0x6b   :  { %1679 = vmatpush2.bf16.msra.mxu0 %v2161_v28  ;;  %v2228_v27 = vcombine.high %v196_v22, %v200_v23  ;;  %v60_v28 = vld [vmem:[%s3202_s1 + $0x150] sm:$0xff]  ;;  %v2227_v33 = vcombine.low %v196_v22, %v200_v23 }
  0x6c   :  { %1680 = vmatprep.subr.bf16.mxu0 %v2154_v30  ;;  %v188_v30 = vld [vmem:[%s3202_s1 + $0x550] sm:$0xff] }
  0x6d   :  { %1722 = vmatpush2.bf16.msra.mxu1 %v2289_v29  ;;  %v64_v29 = vld [vmem:[%s3202_s1 + $0x170] sm:$0xff] }
  0x6e   :  { %1723 = vmatprep.subr.bf16.mxu1 %v2282_v31  ;;  %v192_v31 = vld [vmem:[%s3202_s1 + $0x570] sm:$0xff]  ;;  %v2092_v34 = vcombine.high %v60_v28, %v64_v29  ;;  %v2091_v40 = vcombine.low %v60_v28, %v64_v29 }
  0x6f   :  { %1681 = vmatpush2.bf16.msra.mxu0 %v2153_v36  ;;  %v2220_v35 = vcombine.high %v188_v30, %v192_v31  ;;  %v52_v36 = vld [vmem:[%s3202_s1 + $0x110] sm:$0xff]  ;;  %v2219_v41 = vcombine.low %v188_v30, %v192_v31 }
  0x70   :  { %1682 = vmatprep.subr.bf16.mxu0 %v2146_v38  ;;  %v180_v38 = vld [vmem:[%s3202_s1 + $0x510] sm:$0xff] }
  0x71   :  { %1724 = vmatpush2.bf16.msra.mxu1 %v2281_v37  ;;  %v56_v37 = vld [vmem:[%s3202_s1 + $0x130] sm:$0xff] }
  0x72   :  { %1725 = vmatprep.subr.bf16.mxu1 %v2274_v39  ;;  %v184_v39 = vld [vmem:[%s3202_s1 + $0x530] sm:$0xff]  ;;  %v2084_v42 = vcombine.high %v52_v36, %v56_v37 }
  0x73   :  { %1683 = vmatpush2.bf16.msra.mxu0 %v2145_v44  ;;  %v2212_v43 = vcombine.high %v180_v38, %v184_v39  ;;  %v48_v44 = vld [vmem:[%s3202_s1 + $0xf0] sm:$0xff] }
  0x74   :  { %1684 = vmatprep.subr.bf16.mxu0 %v2138_v46  ;;  %v2083_v46 = vcombine.low %v52_v36, %v56_v37  ;;  %v32_v61 = vld [vmem:[%s3202_s1 + $0x70] sm:$0xff] }
  0x75   :  { %1726 = vmatpush2.bf16.msra.mxu1 %v2273_v45  ;;  %v176_v45 = vld [vmem:[%s3202_s1 + $0x4f0] sm:$0xff]  ;;  %v2060_v2 = vcombine.high %v28_v60, %v32_v61 }
  0x76   :  { %1727 = vmatprep.subr.bf16.mxu1 %v2266_v47  ;;  %v2211_v47 = vcombine.low %v180_v38, %v184_v39  ;;  %v20_v4 = vld [vmem:[%s3202_s1 + $0x10] sm:$0xff] }
  0x77   :  { %1685 = vmatpush2.bf16.msra.mxu0 %v2137_v52  ;;  %v164_v52 = vld [vmem:[%s3202_s1 + $0x490] sm:$0xff] }
  0x78   :  { %1686 = vmatprep.subr.bf16.mxu0 %v2130_v54  ;;  %v24_v5 = vld [vmem:[%s3202_s1 + $0x30] sm:$0xff] }
  0x79   :  { %1728 = vmatpush2.bf16.msra.mxu1 %v2265_v53  ;;  %v168_v53 = vld [vmem:[%s3202_s1 + $0x4b0] sm:$0xff]  ;;  %v2052_v10 = vcombine.high %v20_v4, %v24_v5 }
  0x7a   :  { %1729 = vmatprep.subr.bf16.mxu1 %v2258_v55  ;;  %v2196_v58 = vcombine.high %v164_v52, %v168_v53  ;;  %v140_v13 = vld [vmem:[%s3202_s1 + $0x3d0] sm:$0xff] }
  0x7b   :  { %1687 = vmatpush2.bf16.msra.mxu0 %v2129_v62  ;;  %v156_v62 = vld [vmem:[%s3202_s1 + $0x450] sm:$0xff] }
  0x7c   :  { %1688 = vmatprep.subr.bf16.mxu0 %v2122_v0  ;;  %v2067_v0 = vcombine.low %v36_v50, %v40_v51  ;;  %v144_v14 = vld [vmem:[%s3202_s1 + $0x3f0] sm:$0xff] }
  0x7d   :  { %1730 = vmatpush2.bf16.msra.mxu1 %v2257_v63  ;;  %v160_v63 = vld [vmem:[%s3202_s1 + $0x470] sm:$0xff]  ;;  %v2172_v20 = vcombine.high %v140_v13, %v144_v14 }
  0x7e   :  { %1731 = vmatprep.subr.bf16.mxu1 %v2250_v1  ;;  %v2195_v1 = vcombine.low %v164_v52, %v168_v53  ;;  %v2188_v3 = vcombine.high %v156_v62, %v160_v63  ;;  %v132_v22 = vld [vmem:[%s3202_s1 + $0x390] sm:$0xff] }
  0x7f   :  { %1689 = vmatpush2.bf16.msra.mxu0 %v2121_v6  ;;  %v148_v6 = vld [vmem:[%s3202_s1 + $0x410] sm:$0xff] }
  0x80   :  { %1690 = vmatprep.subr.bf16.mxu0 %v2114_v8  ;;  %v2059_v8 = vcombine.low %v28_v60, %v32_v61  ;;  %v136_v23 = vld [vmem:[%s3202_s1 + $0x3b0] sm:$0xff] }
  0x81   :  { %1732 = vmatpush2.bf16.msra.mxu1 %v2249_v7  ;;  %v152_v7 = vld [vmem:[%s3202_s1 + $0x430] sm:$0xff]  ;;  %v2164_v28 = vcombine.high %v132_v22, %v136_v23 }
  0x82   :  { %1733 = vmatprep.subr.bf16.mxu1 %v2242_v9  ;;  %v2187_v9 = vcombine.low %v156_v62, %v160_v63  ;;  %v2180_v11 = vcombine.high %v148_v6, %v152_v7  ;;  %v124_v30 = vld [vmem:[%s3202_s1 + $0x350] sm:$0xff] }
  0x83   :  { %1691 = vmatpush2.bf16.msra.mxu0 %v2113_v16  ;;  %v268_v16 = vld [vmem:[%s3202_s1 + $0x7d0] sm:$0xff] }
  0x84   :  { %1746 = vmatprep.subr.bf16.mxu0 %v2108_v18  ;;  %v2051_v18 = vcombine.low %v20_v4, %v24_v5  ;;  %v128_v31 = vld [vmem:[%s3202_s1 + $0x370] sm:$0xff] }
  0x85   :  { %1734 = vmatpush2.bf16.msra.mxu1 %v2241_v17  ;;  %v272_v17 = vld [vmem:[%s3202_s1 + $0x7f0] sm:$0xff]  ;;  %v2156_v36 = vcombine.high %v124_v30, %v128_v31 }
  0x86   :  { %1789 = vmatprep.subr.bf16.mxu1 %v2236_v19  ;;  %1693 = vmatmul.mubr.bf16.vlgmr.msra.gmra.mxu0 %v2579_v12  ;;  %v2179_v19 = vcombine.low %v148_v6, %v152_v7  ;;  %v2300_v21 = vcombine.high %v268_v16, %v272_v17  ;;  %v116_v38 = vld [vmem:[%s3202_s1 + $0x310] sm:$0xff] }
  0x87   :  { %1747 = vmatpush1.bf16.msra.mxu0 %v2107_v24  ;;  %1778 = vmatprep.mubr.bf16.mxu0 %v2447_v56  ;;  %v44_v56 = vld [vmem:[%s3202_s1 + $0xd0] sm:$0xff] }
  0x88   :  { %1736 = vmatmul.mubr.bf16.vlgmr.msra.gmra.mxu1 %v2590_v15  ;;  %1748 = vmatprep.subr.bf16.mxu0 %v2100_v26  ;;  %v2076_v48 = vcombine.high %v44_v56, %v48_v44  ;;  %v2075_v54 = vcombine.low %v44_v56, %v48_v44  ;;  %v260_v24 = vld [vmem:[%s3202_s1 + $0x790] sm:$0xff]  ;;  %v2171_v26 = vcombine.low %v140_v13, %v144_v14 }
  0x89   :  { %1790 = vmatpush1.bf16.msra.mxu1 %v2235_v25  ;;  %1821 = vmatprep.mubr.bf16.mxu1 %v2458_v59  ;;  %v172_v59 = vld [vmem:[%s3202_s1 + $0x4d0] sm:$0xff] }
  0x8a   :  { %1791 = vmatprep.subr.bf16.mxu1 %v2228_v27  ;;  %v2204_v49 = vcombine.high %v172_v59, %v176_v45  ;;  %v2203_v55 = vcombine.low %v172_v59, %v176_v45  ;;  %v264_v25 = vld [vmem:[%s3202_s1 + $0x7b0] sm:$0xff]  ;;  %v2299_v27 = vcombine.low %v268_v16, %v272_v17  ;;  %v77_v16 = vld [vmem:[%s3202_s1 + $0x1d8] sm:$0xff] }
  0x8b   :  { %1749 = vmatpush1.bf16.msra.mxu0 %v2099_v32  ;;  %v2292_v29 = vcombine.high %v260_v24, %v264_v25  ;;  %v252_v32 = vld [vmem:[%s3202_s1 + $0x750] sm:$0xff]  ;;  %v81_v17 = vld [vmem:[%s3202_s1 + $0x1f8] sm:$0xff] }
  0x8c   :  { %1750 = vmatprep.subr.bf16.mxu0 %v2092_v34  ;;  %v2163_v34 = vcombine.low %v132_v22, %v136_v23  ;;  %v120_v39 = vld [vmem:[%s3202_s1 + $0x330] sm:$0xff]  ;;  %v2110_v22 = vcombine.high %v77_v16, %v81_v17 }
  0x8d   :  { %1792 = vmatpush1.bf16.msra.mxu1 %v2227_v33  ;;  %v256_v33 = vld [vmem:[%s3202_s1 + $0x770] sm:$0xff]  ;;  %v2148_v56 = vcombine.high %v116_v38, %v120_v39 }
  0x8e   :  { %1793 = vmatprep.subr.bf16.mxu1 %v2220_v35  ;;  %v2291_v35 = vcombine.low %v260_v24, %v264_v25  ;;  %v2284_v37 = vcombine.high %v252_v32, %v256_v33  ;;  %v108_v59 = vld [vmem:[%s3202_s1 + $0x2d0] sm:$0xff]  ;;  %v69_v24 = vld [vmem:[%s3202_s1 + $0x198] sm:$0xff] }
  0x8f   :  { %1751 = vmatpush1.bf16.msra.mxu0 %v2091_v40  ;;  %v244_v40 = vld [vmem:[%s3202_s1 + $0x710] sm:$0xff]  ;;  %v73_v25 = vld [vmem:[%s3202_s1 + $0x1b8] sm:$0xff] }
  0x90   :  { %1752 = vmatprep.subr.bf16.mxu0 %v2084_v42  ;;  %v2155_v42 = vcombine.low %v124_v30, %v128_v31  ;;  %v112_v45 = vld [vmem:[%s3202_s1 + $0x2f0] sm:$0xff]  ;;  %v2102_v30 = vcombine.high %v69_v24, %v73_v25 }
  0x91   :  { %1794 = vmatpush1.bf16.msra.mxu1 %v2219_v41  ;;  %v248_v41 = vld [vmem:[%s3202_s1 + $0x730] sm:$0xff]  ;;  %v2140_v50 = vcombine.high %v108_v59, %v112_v45 }
  0x92   :  { %1795 = vmatprep.subr.bf16.mxu1 %v2212_v43  ;;  %v2283_v43 = vcombine.low %v252_v32, %v256_v33  ;;  %v2276_v44 = vcombine.high %v244_v40, %v248_v41  ;;  %v100_v52 = vld [vmem:[%s3202_s1 + $0x290] sm:$0xff]  ;;  %v61_v32 = vld [vmem:[%s3202_s1 + $0x158] sm:$0xff] }
  0x93   :  { %1753 = vmatpush1.bf16.msra.mxu0 %v2083_v46  ;;  %v236_v46 = vld [vmem:[%s3202_s1 + $0x6d0] sm:$0xff]  ;;  %v65_v33 = vld [vmem:[%s3202_s1 + $0x178] sm:$0xff] }
  0x94   :  { %1754 = vmatprep.subr.bf16.mxu0 %v2076_v48  ;;  %v2147_v48 = vcombine.low %v116_v38, %v120_v39  ;;  %v104_v53 = vld [vmem:[%s3202_s1 + $0x2b0] sm:$0xff]  ;;  %v2094_v38 = vcombine.high %v61_v32, %v65_v33 }
  0x95   :  { %1796 = vmatpush1.bf16.msra.mxu1 %v2211_v47  ;;  %v240_v47 = vld [vmem:[%s3202_s1 + $0x6f0] sm:$0xff]  ;;  %v2132_v60 = vcombine.high %v100_v52, %v104_v53 }
  0x96   :  { %1797 = vmatprep.subr.bf16.mxu1 %v2204_v49  ;;  %v2275_v49 = vcombine.low %v244_v40, %v248_v41  ;;  %v2268_v51 = vcombine.high %v236_v46, %v240_v47  ;;  %v92_v62 = vld [vmem:[%s3202_s1 + $0x250] sm:$0xff]  ;;  %v57_v40 = vld [vmem:[%s3202_s1 + $0x138] sm:$0xff] }
  0x97   :  { %1755 = vmatpush1.bf16.msra.mxu0 %v2075_v54  ;;  %v228_v54 = vld [vmem:[%s3202_s1 + $0x690] sm:$0xff]  ;;  %v181_v41 = vld [vmem:[%s3202_s1 + $0x518] sm:$0xff] }
  0x98   :  { %1756 = vmatprep.subr.bf16.mxu0 %v2068_v57  ;;  %v2139_v57 = vcombine.low %v108_v59, %v112_v45  ;;  %v96_v63 = vld [vmem:[%s3202_s1 + $0x270] sm:$0xff] }
  0x99   :  { %1798 = vmatpush1.bf16.msra.mxu1 %v2203_v55  ;;  %v232_v55 = vld [vmem:[%s3202_s1 + $0x6b0] sm:$0xff]  ;;  %v2124_v4 = vcombine.high %v92_v62, %v96_v63 }
  0x9a   :  { %1799 = vmatprep.subr.bf16.mxu1 %v2196_v58  ;;  %v2267_v58 = vcombine.low %v236_v46, %v240_v47  ;;  %v2260_v61 = vcombine.high %v228_v54, %v232_v55  ;;  %v84_v6 = vld [vmem:[%s3202_s1 + $0x210] sm:$0xff]  ;;  %v45_v46 = vld [vmem:[%s3202_s1 + $0xd8] sm:$0xff] }
  0x9b   :  { %1757 = vmatpush1.bf16.msra.mxu0 %v2067_v0  ;;  %v220_v0 = vld [vmem:[%s3202_s1 + $0x650] sm:$0xff]  ;;  %v49_v47 = vld [vmem:[%s3202_s1 + $0xf8] sm:$0xff] }
  0x9c   :  { %1758 = vmatprep.subr.bf16.mxu0 %v2060_v2  ;;  %v2131_v2 = vcombine.low %v100_v52, %v104_v53  ;;  %v88_v7 = vld [vmem:[%s3202_s1 + $0x230] sm:$0xff]  ;;  %v2078_v52 = vcombine.high %v45_v46, %v49_v47 }
  0x9d   :  { %1800 = vmatpush1.bf16.msra.mxu1 %v2195_v1  ;;  %v224_v1 = vld [vmem:[%s3202_s1 + $0x670] sm:$0xff]  ;;  %v2116_v13 = vcombine.high %v84_v6, %v88_v7 }
  0x9e   :  { %1801 = vmatprep.subr.bf16.mxu1 %v2188_v3  ;;  %v2259_v3 = vcombine.low %v228_v54, %v232_v55  ;;  %v2252_v5 = vcombine.high %v220_v0, %v224_v1  ;;  %v37_v54 = vld [vmem:[%s3202_s1 + $0x98] sm:$0xff] }
  0x9f   :  { %1759 = vmatpush1.bf16.msra.mxu0 %v2059_v8  ;;  %v212_v8 = vld [vmem:[%s3202_s1 + $0x610] sm:$0xff]  ;;  %v41_v55 = vld [vmem:[%s3202_s1 + $0xb8] sm:$0xff] }
  0xa0   :  { %1760 = vmatprep.subr.bf16.mxu0 %v2052_v10  ;;  %v2123_v10 = vcombine.low %v92_v62, %v96_v63  ;;  %v2070_v62 = vcombine.high %v37_v54, %v41_v55 }
  0xa1   :  { %1802 = vmatpush1.bf16.msra.mxu1 %v2187_v9  ;;  %v216_v9 = vld [vmem:[%s3202_s1 + $0x630] sm:$0xff] }
  0xa2   :  { %1803 = vmatprep.subr.bf16.mxu1 %v2180_v11  ;;  %v2251_v11 = vcombine.low %v220_v0, %v224_v1  ;;  %v2244_v14 = vcombine.high %v212_v8, %v216_v9  ;;  %v29_v0 = vld [vmem:[%s3202_s1 + $0x58] sm:$0xff] }
  0xa3   :  { %1761 = vmatpush1.bf16.msra.mxu0 %v2051_v18  ;;  %v205_v18 = vld [vmem:[%s3202_s1 + $0x5d8] sm:$0xff] }
  0xa4   :  { %1762 = vmatprep.subr.bf16.mxu0 %v2172_v20  ;;  %v2115_v20 = vcombine.low %v84_v6, %v88_v7  ;;  %v33_v1 = vld [vmem:[%s3202_s1 + $0x78] sm:$0xff] }
  0xa5   :  { %1804 = vmatpush1.bf16.msra.mxu1 %v2179_v19  ;;  %v209_v19 = vld [vmem:[%s3202_s1 + $0x5f8] sm:$0xff]  ;;  %v2062_v6 = vcombine.high %v29_v0, %v33_v1 }
  0xa6   :  { %1805 = vmatprep.subr.bf16.mxu1 %v2300_v21  ;;  %v2243_v21 = vcombine.low %v212_v8, %v216_v9  ;;  %v2238_v23 = vcombine.high %v205_v18, %v209_v19  ;;  %v21_v8 = vld [vmem:[%s3202_s1 + $0x18] sm:$0xff] }
  0xa7   :  { %1763 = vmatpush2.bf16.msra.mxu0 %v2171_v26  ;;  %v197_v26 = vld [vmem:[%s3202_s1 + $0x598] sm:$0xff] }
  0xa8   :  { %1764 = vmatprep.subr.bf16.mxu0 %v2164_v28  ;;  %v2109_v28 = vcombine.low %v77_v16, %v81_v17  ;;  %v25_v9 = vld [vmem:[%s3202_s1 + $0x38] sm:$0xff] }
  0xa9   :  { %1806 = vmatpush2.bf16.msra.mxu1 %v2299_v27  ;;  %v201_v27 = vld [vmem:[%s3202_s1 + $0x5b8] sm:$0xff]  ;;  %v2054_v16 = vcombine.high %v21_v8, %v25_v9 }
  0xaa   :  { %1807 = vmatprep.subr.bf16.mxu1 %v2292_v29  ;;  %v2237_v29 = vcombine.low %v205_v18, %v209_v19  ;;  %v2230_v31 = vcombine.high %v197_v26, %v201_v27  ;;  %v141_v18 = vld [vmem:[%s3202_s1 + $0x3d8] sm:$0xff] }
  0xab   :  { %1765 = vmatpush2.bf16.msra.mxu0 %v2163_v34  ;;  %v189_v34 = vld [vmem:[%s3202_s1 + $0x558] sm:$0xff] }
  0xac   :  { %1766 = vmatprep.subr.bf16.mxu0 %v2156_v36  ;;  %v2101_v36 = vcombine.low %v69_v24, %v73_v25  ;;  %v145_v19 = vld [vmem:[%s3202_s1 + $0x3f8] sm:$0xff] }
  0xad   :  { %1808 = vmatpush2.bf16.msra.mxu1 %v2291_v35  ;;  %v193_v35 = vld [vmem:[%s3202_s1 + $0x578] sm:$0xff]  ;;  %v2174_v24 = vcombine.high %v141_v18, %v145_v19 }
  0xae   :  { %1809 = vmatprep.subr.bf16.mxu1 %v2284_v37  ;;  %v2229_v37 = vcombine.low %v197_v26, %v201_v27  ;;  %v2222_v39 = vcombine.high %v189_v34, %v193_v35  ;;  %v133_v26 = vld [vmem:[%s3202_s1 + $0x398] sm:$0xff] }
  0xaf   :  { %1767 = vmatpush2.bf16.msra.mxu0 %v2155_v42  ;;  %v185_v42 = vld [vmem:[%s3202_s1 + $0x538] sm:$0xff] }
  0xb0   :  { %1768 = vmatprep.subr.bf16.mxu0 %v2148_v56  ;;  %v2093_v56 = vcombine.low %v61_v32, %v65_v33  ;;  %v2214_v45 = vcombine.high %v181_v41, %v185_v42  ;;  %v137_v27 = vld [vmem:[%s3202_s1 + $0x3b8] sm:$0xff] }
  0xb1   :  { %1810 = vmatpush2.bf16.msra.mxu1 %v2283_v43  ;;  %v2326_v43 = vld [vmem:[%s3203_s0 + $0xc] ss:$16 sps:$4 sm:$0xff]   ;;  %v2166_v32 = vcombine.high %v133_v26, %v137_v27 }
  0xb2   :  { %1811 = vmatprep.subr.bf16.mxu1 %v2276_v44  ;;  %v2221_v44 = vcombine.low %v189_v34, %v193_v35  ;;  %v125_v34 = vld [vmem:[%s3202_s1 + $0x358] sm:$0xff] }
  0xb3   :  { %1769 = vmatpush2.bf16.msra.mxu0 %v2147_v48  ;;  %v173_v48 = vld [vmem:[%s3202_s1 + $0x4d8] sm:$0xff] }
  0xb4   :  { %1770 = vmatprep.subr.bf16.mxu0 %v2140_v50  ;;  %v129_v35 = vld [vmem:[%s3202_s1 + $0x378] sm:$0xff] }
  0xb5   :  { %1812 = vmatpush2.bf16.msra.mxu1 %v2275_v49  ;;  %v177_v49 = vld [vmem:[%s3202_s1 + $0x4f8] sm:$0xff] }
  0xb6   :  { %1813 = vmatprep.subr.bf16.mxu1 %v2268_v51  ;;  %v2213_v51 = vcombine.low %v181_v41, %v185_v42  ;;  %v2206_v53 = vcombine.high %v173_v48, %v177_v49  ;;  %v121_v41 = vld [vmem:[%s3202_s1 + $0x338] sm:$0xff] }
  0xb7   :  { %1771 = vmatpush2.bf16.msra.mxu0 %v2139_v57  ;;  %v165_v57 = vld [vmem:[%s3202_s1 + $0x498] sm:$0xff] }
  0xb8   :  { %1772 = vmatprep.subr.bf16.mxu0 %v2132_v60  ;;  %v2077_v60 = vcombine.low %v45_v46, %v49_v47  ;;  %v245_v42 = vld [vmem:[%s3202_s1 + $0x718] sm:$0xff] }
  0xb9   :  { %1814 = vmatpush2.bf16.msra.mxu1 %v2267_v58  ;;  %v169_v58 = vld [vmem:[%s3202_s1 + $0x4b8] sm:$0xff] }
  0xba   :  { %1815 = vmatprep.subr.bf16.mxu1 %v2260_v61  ;;  %v2205_v61 = vcombine.low %v173_v48, %v177_v49  ;;  %v2198_v63 = vcombine.high %v165_v57, %v169_v58  ;;  %v109_v46 = vld [vmem:[%s3202_s1 + $0x2d8] sm:$0xff] }
  0xbb   :  { %1773 = vmatpush2.bf16.msra.mxu0 %v2131_v2  ;;  %v157_v2 = vld [vmem:[%s3202_s1 + $0x458] sm:$0xff] }
  0xbc   :  { %1774 = vmatprep.subr.bf16.mxu0 %v2124_v4  ;;  %v2069_v4 = vcombine.low %v37_v54, %v41_v55  ;;  %v113_v47 = vld [vmem:[%s3202_s1 + $0x2f8] sm:$0xff] }
  0xbd   :  { %1816 = vmatpush2.bf16.msra.mxu1 %v2259_v3  ;;  %v161_v3 = vld [vmem:[%s3202_s1 + $0x478] sm:$0xff] }
  0xbe   :  { %1817 = vmatprep.subr.bf16.mxu1 %v2252_v5  ;;  %v2197_v5 = vcombine.low %v165_v57, %v169_v58  ;;  %v2190_v7 = vcombine.high %v157_v2, %v161_v3  ;;  %v237_v48 = vld [vmem:[%s3202_s1 + $0x6d8] sm:$0xff] }
  0xbf   :  { %1775 = vmatpush2.bf16.msra.mxu0 %v2123_v10  ;;  %v149_v10 = vld [vmem:[%s3202_s1 + $0x418] sm:$0xff] }
  0xc0   :  { %1776 = vmatprep.subr.bf16.mxu0 %v2116_v13  ;;  %v2061_v13 = vcombine.low %v29_v0, %v33_v1  ;;  %v241_v49 = vld [vmem:[%s3202_s1 + $0x6f8] sm:$0xff] }
  0xc1   :  { %1818 = vmatpush2.bf16.msra.mxu1 %v2251_v11  ;;  %v153_v11 = vld [vmem:[%s3202_s1 + $0x438] sm:$0xff] }
  0xc2   :  { %1819 = vmatprep.subr.bf16.mxu1 %v2244_v14  ;;  %v2189_v14 = vcombine.low %v157_v2, %v161_v3  ;;  %v2182_v17 = vcombine.high %v149_v10, %v153_v11  ;;  %v101_v54 = vld [vmem:[%s3202_s1 + $0x298] sm:$0xff] }
  0xc3   :  { %1777 = vmatpush2.bf16.msra.mxu0 %v2115_v20  ;;  %v269_v20 = vld [vmem:[%s3202_s1 + $0x7d8] sm:$0xff] }
  0xc4   :  { %1832 = vmatprep.subr.bf16.mxu0 %v2110_v22  ;;  %v2053_v22 = vcombine.low %v21_v8, %v25_v9  ;;  %v105_v55 = vld [vmem:[%s3202_s1 + $0x2b8] sm:$0xff] }
  0xc5   :  { %1820 = vmatpush2.bf16.msra.mxu1 %v2243_v21  ;;  %v273_v21 = vld [vmem:[%s3202_s1 + $0x7f8] sm:$0xff] }
  0xc6   :  { %1875 = vmatprep.subr.bf16.mxu1 %v2238_v23  ;;  %1779 = vmatmul.mubr.bf16.vlgmr.msra.gmra.mxu0 %v2579_v12  ;;  %v53_v12 = vld [vmem:[%s3202_s1 + $0x118] sm:$0xff]  ;;  %v2181_v23 = vcombine.low %v149_v10, %v153_v11  ;;  %v2302_v25 = vcombine.high %v269_v20, %v273_v21 }
  0xc7   :  { %1833 = vmatpush1.bf16.msra.mxu0 %v2109_v28  ;;  %v2086_v59 = vcombine.high %v53_v12, %v57_v40  ;;  %v2085_v50 = vcombine.low %v53_v12, %v57_v40  ;;  %v261_v28 = vld [vmem:[%s3202_s1 + $0x798] sm:$0xff]  ;;  %v2158_v12 = vcombine.high %v125_v34, %v129_v35 }
  0xc8   :  { %1822 = vmatmul.mubr.bf16.vlgmr.msra.gmra.mxu1 %v2590_v15  ;;  %1834 = vmatprep.subr.bf16.mxu0 %v2102_v30  ;;  %v2325_v15 = vld [vmem:[%s3203_s0 + $0x4] ss:$16 sps:$4 sm:$0xff]   ;;  %v2173_v30 = vcombine.low %v141_v18, %v145_v19  ;;  %v229_v57 = vld [vmem:[%s3202_s1 + $0x698] sm:$0xff] }
  0xc9   :  { %1876 = vmatpush1.bf16.msra.mxu1 %v2237_v29  ;;  %1864 = vmatprep.mubr.bf16.mxu0 %v2325_v15  ;;  %v265_v29 = vld [vmem:[%s3202_s1 + $0x7b8] sm:$0xff] }
  0xca   :  { %1877 = vmatprep.subr.bf16.mxu1 %v2230_v31  ;;  %1907 = vmatprep.mubr.bf16.mxu1 %v2326_v43  ;;  %v2301_v31 = vcombine.low %v269_v20, %v273_v21  ;;  %v2294_v33 = vcombine.high %v261_v28, %v265_v29  ;;  %v117_v15 = vld [vmem:[%s3202_s1 + $0x318] sm:$0xff]  ;;  %v2327_v21 = vld [vmem:[%s3203_s0] ss:$16 sps:$4 sm:$0xff]  }
  0xcb   :  { %1835 = vmatpush1.bf16.msra.mxu0 %v2101_v36  ;;  %v253_v36 = vld [vmem:[%s3202_s1 + $0x758] sm:$0xff] }
  0xcc   :  { %1836 = vmatprep.subr.bf16.mxu0 %v2094_v38  ;;  %v2165_v38 = vcombine.low %v133_v26, %v137_v27  ;;  %v249_v43 = vld [vmem:[%s3202_s1 + $0x738] sm:$0xff] }
  0xcd   :  { %1878 = vmatpush1.bf16.msra.mxu1 %v2229_v37  ;;  %v257_v37 = vld [vmem:[%s3202_s1 + $0x778] sm:$0xff] }
  0xce   :  { %1879 = vmatprep.subr.bf16.mxu1 %v2222_v39  ;;  %v2293_v39 = vcombine.low %v261_v28, %v265_v29  ;;  %v2286_v40 = vcombine.high %v253_v36, %v257_v37  ;;  %v233_v58 = vld [vmem:[%s3202_s1 + $0x6b8] sm:$0xff] }
  0xcf   :  { %1837 = vmatpush1.bf16.msra.mxu0 %v2093_v56  ;;  %v2157_v56 = vcombine.low %v125_v34, %v129_v35  ;;  %v93_v0 = vld [vmem:[%s3202_s1 + $0x258] sm:$0xff] }
  0xd0   :  { %1838 = vmatprep.subr.bf16.mxu0 %v2086_v59  ;;  %v2150_v59 = vcombine.high %v117_v15, %v121_v41  ;;  %v97_v1 = vld [vmem:[%s3202_s1 + $0x278] sm:$0xff] }
  0xd1   :  { %1880 = vmatpush1.bf16.msra.mxu1 %v2221_v44  ;;  %v2285_v44 = vcombine.low %v253_v36, %v257_v37  ;;  %v221_v2 = vld [vmem:[%s3202_s1 + $0x658] sm:$0xff] }
  0xd2   :  { %1881 = vmatprep.subr.bf16.mxu1 %v2214_v45  ;;  %v2278_v45 = vcombine.high %v245_v42, %v249_v43  ;;  %v225_v3 = vld [vmem:[%s3202_s1 + $0x678] sm:$0xff] }
  0xd3   :  { %1839 = vmatpush1.bf16.msra.mxu0 %v2085_v50  ;;  %v2149_v50 = vcombine.low %v117_v15, %v121_v41  ;;  %v85_v8 = vld [vmem:[%s3202_s1 + $0x218] sm:$0xff] }
  0xd4   :  { %1840 = vmatprep.subr.bf16.mxu0 %v2078_v52  ;;  %v2142_v52 = vcombine.high %v109_v46, %v113_v47  ;;  %v89_v9 = vld [vmem:[%s3202_s1 + $0x238] sm:$0xff] }
  0xd5   :  { %1882 = vmatpush1.bf16.msra.mxu1 %v2213_v51  ;;  %v2277_v51 = vcombine.low %v245_v42, %v249_v43  ;;  %v213_v10 = vld [vmem:[%s3202_s1 + $0x618] sm:$0xff]  ;;  %v2117_v18 = vcombine.low %v85_v8, %v89_v9 }
  0xd6   :  { %1883 = vmatprep.subr.bf16.mxu1 %v2206_v53  ;;  %v2270_v53 = vcombine.high %v237_v48, %v241_v49  ;;  %v217_v11 = vld [vmem:[%s3202_s1 + $0x638] sm:$0xff] }
  0xd7   :  { %1841 = vmatpush1.bf16.msra.mxu0 %v2077_v60  ;;  %v2141_v60 = vcombine.low %v109_v46, %v113_v47  ;;  %v2245_v19 = vcombine.low %v213_v10, %v217_v11 }
  0xd8   :  { %1842 = vmatprep.subr.bf16.mxu0 %v2070_v62  ;;  %v2134_v62 = vcombine.high %v101_v54, %v105_v55 }
  0xd9   :  { %1884 = vmatpush1.bf16.msra.mxu1 %v2205_v61  ;;  %v2269_v61 = vcombine.low %v237_v48, %v241_v49 }
  0xda   :  { %1885 = vmatprep.subr.bf16.mxu1 %v2198_v63  ;;  %v2262_v63 = vcombine.high %v229_v57, %v233_v58 }
  0xdb   :  { %1843 = vmatpush1.bf16.msra.mxu0 %v2069_v4  ;;  %v2133_v4 = vcombine.low %v101_v54, %v105_v55 }
  0xdc   :  { %1844 = vmatprep.subr.bf16.mxu0 %v2062_v6  ;;  %v2126_v6 = vcombine.high %v93_v0, %v97_v1 }
  0xdd   :  { %1886 = vmatpush1.bf16.msra.mxu1 %v2197_v5  ;;  %v2261_v5 = vcombine.low %v229_v57, %v233_v58 }
  0xde   :  { %1887 = vmatprep.subr.bf16.mxu1 %v2190_v7  ;;  %v2254_v7 = vcombine.high %v221_v2, %v225_v3 }
  0xdf   :  { %1845 = vmatpush1.bf16.msra.mxu0 %v2061_v13  ;;  %v2125_v13 = vcombine.low %v93_v0, %v97_v1 }
  0xe0   :  { %1846 = vmatprep.subr.bf16.mxu0 %v2054_v16  ;;  %v2118_v16 = vcombine.high %v85_v8, %v89_v9 }
  0xe1   :  { %1888 = vmatpush1.bf16.msra.mxu1 %v2189_v14  ;;  %v2253_v14 = vcombine.low %v221_v2, %v225_v3 }
  0xe2   :  { %1889 = vmatprep.subr.bf16.mxu1 %v2182_v17  ;;  %v2246_v17 = vcombine.high %v213_v10, %v217_v11 }
  0xe3   :  { %1847 = vmatpush1.bf16.msra.mxu0 %v2053_v22 }
  0xe4   :  { %1848 = vmatprep.subr.bf16.mxu0 %v2174_v24 }
  0xe5   :  { %1890 = vmatpush1.bf16.msra.mxu1 %v2181_v23  ;;  %v2328_v23 = vld [vmem:[%s3203_s0 + $0x8] ss:$16 sps:$4 sm:$0xff]  }
  0xe6   :  { %1891 = vmatprep.subr.bf16.mxu1 %v2302_v25 }
  0xe7   :  { %1849 = vmatpush2.bf16.msra.mxu0 %v2173_v30 }
  0xe8   :  { %1850 = vmatprep.subr.bf16.mxu0 %v2166_v32 }
  0xe9   :  { %1892 = vmatpush2.bf16.msra.mxu1 %v2301_v31 }
  0xea   :  { %1893 = vmatprep.subr.bf16.mxu1 %v2294_v33 }
  0xeb   :  { %1851 = vmatpush2.bf16.msra.mxu0 %v2165_v38 }
  0xec   :  { %1852 = vmatprep.subr.bf16.mxu0 %v2158_v12 }
  0xed   :  { %1894 = vmatpush2.bf16.msra.mxu1 %v2293_v39 }
  0xee   :  { %1895 = vmatprep.subr.bf16.mxu1 %v2286_v40 }
  0xef   :  { %1853 = vmatpush2.bf16.msra.mxu0 %v2157_v56 }
  0xf0   :  { %1854 = vmatprep.subr.bf16.mxu0 %v2150_v59 }
  0xf1   :  { %1896 = vmatpush2.bf16.msra.mxu1 %v2285_v44 }
  0xf2   :  { %1897 = vmatprep.subr.bf16.mxu1 %v2278_v45 }
  0xf3   :  { %1855 = vmatpush2.bf16.msra.mxu0 %v2149_v50 }
  0xf4   :  { %1856 = vmatprep.subr.bf16.mxu0 %v2142_v52 }
  0xf5   :  { %1898 = vmatpush2.bf16.msra.mxu1 %v2277_v51 }
  0xf6   :  { %1899 = vmatprep.subr.bf16.mxu1 %v2270_v53 }
  0xf7   :  { %1857 = vmatpush2.bf16.msra.mxu0 %v2141_v60 }
  0xf8   :  { %1858 = vmatprep.subr.bf16.mxu0 %v2134_v62 }
  0xf9   :  { %1900 = vmatpush2.bf16.msra.mxu1 %v2269_v61 }
  0xfa   :  { %1901 = vmatprep.subr.bf16.mxu1 %v2262_v63 }
  0xfb   :  { %1859 = vmatpush2.bf16.msra.mxu0 %v2133_v4 }
  0xfc   :  { %1860 = vmatprep.subr.bf16.mxu0 %v2126_v6 }
  0xfd   :  { %1902 = vmatpush2.bf16.msra.mxu1 %v2261_v5 }
  0xfe   :  { %1903 = vmatprep.subr.bf16.mxu1 %v2254_v7 }
  0xff   :  { %1861 = vmatpush2.bf16.msra.mxu0 %v2125_v13 }
 0x100   :  { %1862 = vmatprep.subr.bf16.mxu0 %v2118_v16 }
 0x101   :  { %1904 = vmatpush2.bf16.msra.mxu1 %v2253_v14 }
 0x102   :  { %1905 = vmatprep.subr.bf16.mxu1 %v2246_v17 }
 0x103   :  { %1863 = vmatpush2.bf16.msra.mxu0 %v2117_v18 }
 0x105   :  { %1906 = vmatpush2.bf16.msra.mxu1 %v2245_v19 }
 0x106   :  { %v1608_v20 = vpop.f32.mrf.mxu0  ;;  %1865 = vmatmul.mubr.bf16.vlgmr.msra.gmra.mxu0 %v2327_v21 }
 0x108   :  { %v1651_v22 = vpop.f32.mrf.mxu1  ;;  %1908 = vmatmul.mubr.bf16.vlgmr.msra.gmra.mxu1 %v2328_v23  ;;  %v1610_v25 = vpop.f32.mrf.mxu0 }
 0x109   :  { %v1652_v24 = vadd.f32 %v1651_v22, %v1608_v20 }
 0x10a   :  { %v1653_v26 = vpop.f32.mrf.mxu1  ;;  %v1612_v29 = vpop.f32.mrf.mxu0 }
 0x10b   :  { %v1995_v27 = vmul.f32 %v1652_v24, %v1652_v24  ;;  %v1654_v28 = vadd.f32 %v1653_v26, %v1610_v25 }
 0x10c   :  { %v1655_v30 = vpop.f32.mrf.mxu1  ;;  %v1614_v35 = vpop.f32.mrf.mxu0 }
 0x10d   :  { %v2311_v31 = vpack.c.bf16 %v1654_v28, %v1652_v24  ;;  %v1974_v32 = vadd.f32 %v1654_v28, %v1652_v24  ;;  %v1996_v33 = vmul.f32 %v1654_v28, %v1654_v28  ;;  %v1656_v34 = vadd.f32 %v1655_v30, %v1612_v29 }
 0x10e   :  { %v1657_v36 = vpop.f32.mrf.mxu1 }
 0x10f   :  { %1966 = vst [vmem:[%s3204_s2] sm:$0xff] %v2311_v31  ;;  %v2011_v37 = vadd.f32 %v1996_v33, %v1995_v27  ;;  %v1658_v38 = vadd.f32 %v1657_v36, %v1614_v35  ;;  %v2003_v39 = vmul.f32 %v1656_v34, %v1656_v34 }
 0x111   :  { %v2315_v12 = vpack.c.bf16 %v1658_v38, %v1656_v34  ;;  %v1983_v40 = vadd.f32 %v1658_v38, %v1656_v34  ;;  %v2004_v15 = vmul.f32 %v1658_v38, %v1658_v38 }
 0x113   :  { %1970 = vst [vmem:[%s3204_s2 + $0x20] sm:$0xff] %v2315_v12  ;;  %v2020_v41 = vadd.f32 %v2004_v15, %v2003_v39 }
 0x146   :  { %v1694_v42 = vpop.f32.mrf.mxu0 }
 0x148   :  { %v1737_v43 = vpop.f32.mrf.mxu1  ;;  %v1696_v44 = vpop.f32.mrf.mxu0 }
 0x149   :  { %v1738_v56 = vadd.f32 %v1737_v43, %v1694_v42 }
 0x14a   :  { %v1739_v59 = vpop.f32.mrf.mxu1  ;;  %v1698_v48 = vpop.f32.mrf.mxu0 }
 0x14b   :  { %v1975_v45 = vadd.f32 %v1974_v32, %v1738_v56  ;;  %v1997_v46 = vmul.f32 %v1738_v56, %v1738_v56  ;;  %v1740_v47 = vadd.f32 %v1739_v59, %v1696_v44 }
 0x14c   :  { %v1741_v49 = vpop.f32.mrf.mxu1  ;;  %v1700_v54 = vpop.f32.mrf.mxu0 }
 0x14d   :  { %v2012_v50 = vadd.f32 %v2011_v37, %v1997_v46  ;;  %v2312_v51 = vpack.c.bf16 %v1740_v47, %v1738_v56  ;;  %v1976_v52 = vadd.f32 %v1975_v45, %v1740_v47  ;;  %v1998_v53 = vmul.f32 %v1740_v47, %v1740_v47 }
 0x14e   :  { %v1742_v55 = vadd.f32 %v1741_v49, %v1698_v48  ;;  %v1743_v57 = vpop.f32.mrf.mxu1 }
 0x14f   :  { %1967 = vst [vmem:[%s3204_s2 + $0x8] sm:$0xff] %v2312_v51  ;;  %v2013_v58 = vadd.f32 %v2012_v50, %v1998_v53  ;;  %v1744_v60 = vadd.f32 %v1743_v57, %v1700_v54 }
 0x150   :  { %v1984_v61 = vadd.f32 %v1983_v40, %v1742_v55  ;;  %v2005_v62 = vmul.f32 %v1742_v55, %v1742_v55 }
 0x151   :  { %v2316_v63 = vpack.c.bf16 %v1744_v60, %v1742_v55  ;;  %v2006_v0 = vmul.f32 %v1744_v60, %v1744_v60 }
 0x152   :  { %v2021_v1 = vadd.f32 %v2020_v41, %v2005_v62  ;;  %v1985_v2 = vadd.f32 %v1984_v61, %v1744_v60 }
 0x153   :  { %1971 = vst [vmem:[%s3204_s2 + $0x28] sm:$0xff] %v2316_v63 }
 0x154   :  { %v2022_v3 = vadd.f32 %v2021_v1, %v2006_v0 }
 0x186   :  { %v1780_v4 = vpop.f32.mrf.mxu0 }
 0x188   :  { %v1823_v5 = vpop.f32.mrf.mxu1  ;;  %v1782_v6 = vpop.f32.mrf.mxu0 }
 0x189   :  { %v1824_v8 = vadd.f32 %v1823_v5, %v1780_v4 }
 0x18a   :  { %v1825_v7 = vpop.f32.mrf.mxu1  ;;  %v1784_v10 = vpop.f32.mrf.mxu0 }
 0x18b   :  { %v1826_v9 = vadd.f32 %v1825_v7, %v1782_v6  ;;  %v1999_v20 = vmul.f32 %v1824_v8, %v1824_v8  ;;  %v1977_v21 = vadd.f32 %v1976_v52, %v1824_v8 }
 0x18c   :  { %v1827_v11 = vpop.f32.mrf.mxu1  ;;  %v1786_v14 = vpop.f32.mrf.mxu0 }
 0x18d   :  { %v2313_v13 = vpack.c.bf16 %v1826_v9, %v1824_v8  ;;  %v1828_v17 = vadd.f32 %v1827_v11, %v1784_v10  ;;  %v2000_v24 = vmul.f32 %v1826_v9, %v1826_v9  ;;  %v2014_v27 = vadd.f32 %v2013_v58, %v1999_v20 }
 0x18e   :  { %v1829_v16 = vpop.f32.mrf.mxu1  ;;  %v1978_v30 = vadd.f32 %v1977_v21, %v1826_v9 }
 0x18f   :  { %1968 = vst [vmem:[%s3204_s2 + $0x10] sm:$0xff] %v2313_v13  ;;  %v1830_v18 = vadd.f32 %v1829_v16, %v1786_v14  ;;  %v2007_v22 = vmul.f32 %v1828_v17, %v1828_v17  ;;  %v1986_v25 = vadd.f32 %v1985_v2, %v1828_v17  ;;  %v2015_v12 = vadd.f32 %v2014_v27, %v2000_v24 }
 0x191   :  { %v2317_v19 = vpack.c.bf16 %v1830_v18, %v1828_v17  ;;  %v2023_v31 = vadd.f32 %v2022_v3, %v2007_v22  ;;  %v2008_v33 = vmul.f32 %v1830_v18, %v1830_v18  ;;  %v1987_v38 = vadd.f32 %v1986_v25, %v1830_v18 }
 0x193   :  { %1972 = vst [vmem:[%s3204_s2 + $0x30] sm:$0xff] %v2317_v19  ;;  %v2024_v47 = vadd.f32 %v2023_v31, %v2008_v33 }
 0x1c6   :  { %v1866_v23 = vpop.f32.mrf.mxu0 }
 0x1c8   :  { %v1909_v26 = vpop.f32.mrf.mxu1  ;;  %v1868_v29 = vpop.f32.mrf.mxu0 }
 0x1c9   :  { %v1910_v28 = vadd.f32 %v1909_v26, %v1866_v23 }
 0x1ca   :  { %v1911_v32 = vpop.f32.mrf.mxu1  ;;  %v1870_v35 = vpop.f32.mrf.mxu0 }
 0x1cb   :  { %v1912_v34 = vadd.f32 %v1911_v32, %v1868_v29  ;;  %v1979_v36 = vadd.f32 %v1978_v30, %v1910_v28  ;;  %v2001_v37 = vmul.f32 %v1910_v28, %v1910_v28 }
 0x1cc   :  { %v1913_v39 = vpop.f32.mrf.mxu1  ;;  %v1872_v41 = vpop.f32.mrf.mxu0 }
 0x1cd   :  { %v2314_v40 = vpack.c.bf16 %v1912_v34, %v1910_v28  ;;  %v1914_v15 = vadd.f32 %v1913_v39, %v1870_v35  ;;  %v1980_v42 = vadd.f32 %v1979_v36, %v1912_v34  ;;  %v2002_v43 = vmul.f32 %v1912_v34, %v1912_v34 }
 0x1ce   :  { %v1915_v56 = vpop.f32.mrf.mxu1  ;;  %v2016_v44 = vadd.f32 %v2015_v12, %v2001_v37 }
 0x1cf   :  { %1969 = vst [vmem:[%s3204_s2 + $0x18] sm:$0xff] %v2314_v40  ;;  %v2009_v59 = vmul.f32 %v1914_v15, %v1914_v15  ;;  %v1916_v45 = vadd.f32 %v1915_v56, %v1872_v41  ;;  %1981 = vadd.xlane.f32.xlu0 %v1980_v42  ;;  %v1988_v46 = vadd.f32 %v1987_v38, %v1914_v15 }
 0x1d0   :  { %v2017_v48 = vadd.f32 %v2016_v44, %v2002_v43 }
 0x1d1   :  { %v2318_v49 = vpack.c.bf16 %v1916_v45, %v1914_v15  ;;  %v1989_v50 = vadd.f32 %v1988_v46, %v1916_v45  ;;  %v2010_v51 = vmul.f32 %v1916_v45, %v1916_v45  ;;  %v2025_v52 = vadd.f32 %v2024_v47, %v2009_v59 }
 0x1d2   :  { %2018 = vadd.xlane.f32.xlu1 %v2017_v48 }
 0x1d3   :  { %1973 = vst [vmem:[%s3204_s2 + $0x38] sm:$0xff] %v2318_v49  ;;  %1990 = vadd.xlane.f32.xlu0 %v1989_v50  ;;  %v2026_v53 = vadd.f32 %v2025_v52, %v2010_v51 }
 0x1d6   :  { %2027 = vadd.xlane.f32.xlu1 %v2026_v53 }
 0x258   :  { %v1982_v54 = vpop.xlane.xlu0 %1981 }
 0x259   :  { %1993 = vst.msk [vmem:[%s3205_s3] sm:$0xff] %vm1992_vm0, %v1982_v54 }
 0x25b   :  { %v2019_v55 = vpop.xlane.xlu1 %2018 }
 0x25c   :  { %2029 = vst.msk [vmem:[%s3206_s4] sm:$0xff] %vm1992_vm0, %v2019_v55  ;;  %v1991_v57 = vpop.xlane.xlu0 %1990 }
 0x25d   :  { %1994 = vst.msk [vmem:[%s3205_s3 + $0x8] sm:$0xff] %vm1992_vm0, %v1991_v57 }
 0x25f   :  { %v2028_v58 = vpop.xlane.xlu1 %2027 }
 0x260   :  { %2030 = vst.msk [vmem:[%s3206_s4 + $0x8] sm:$0xff] %vm1992_vm0, %v2028_v58 }

// kernel: discriminator_forward.12
= control target key start
LH: loop header
LB: loop body
LE: loop exit
PB: predicated region body
PF: predicated region fallthrough
CT: control target
= control target key end

     0   :  { %v221_v0 = vmov 0   ;;  %s330_s2 = inlined_call_operand.vmem [shape: f32[16,1], index: 2, kind: input, shape index: {}]   ;;  %s331_s1 = inlined_call_operand.vmem [shape: f32[16,1], index: 1, kind: input, shape index: {}]   ;;  %s332_s0 = inlined_call_operand.vmem [shape: bf16[16,1024], index: 0, kind: input, shape index: {}]   ;;  %s333_s3 = inlined_call_operand.vmem [shape: bf16[16,1024], index: 3, kind: output, shape index: {}]  }
   0x1   :  { %220 = vset.pattern.permute.xlu1 %v221_v0  ;;  %219 = vset.pattern.permute.xlu0 %v221_v0  ;;  %v66_v1 = vld [vmem:[%s330_s2] sm:$0xff]  ;;  %v67_v3 = vld [vmem:[%s330_s2 + $0x8] sm:$0xff]  ;;  %v16_v7 = vld [vmem:[%s332_s0 + $0x10] sm:$0xff] }
   0x2   :  { %v38_v2 = vld [vmem:[%s331_s1] sm:$0xff]  ;;  %70 = vperm.xlu1 %220, %v66_v1   ;;  %v39_v4 = vld [vmem:[%s331_s1 + $0x8] sm:$0xff]  ;;  %v17_v8 = vld [vmem:[%s332_s0 + $0x18] sm:$0xff]  ;;  %v26_v17 = vunpack.c.l.bf16 %v16_v7  ;;  %v27_v18 = vunpack.c.h.bf16 %v16_v7 }
   0x3   :  { %42 = vperm.xlu0 %219, %v38_v2   ;;  %v14_v5 = vld [vmem:[%s332_s0] sm:$0xff]  ;;  %v15_v6 = vld [vmem:[%s332_s0 + $0x8] sm:$0xff]  ;;  %v277_v15 = vld [vmem:[%s332_s0 + $0x30] sm:$0xff]  ;;  %v28_v19 = vunpack.c.l.bf16 %v17_v8  ;;  %v29_v20 = vunpack.c.h.bf16 %v17_v8 }
   0x4   :  { %v18_v9 = vld [vmem:[%s332_s0 + $0x20] sm:$0xff]  ;;  %v272_v10 = vld [vmem:[%s332_s0 + $0x28] sm:$0xff]  ;;  %v22_v11 = vunpack.c.l.bf16 %v14_v5  ;;  %v23_v12 = vunpack.c.h.bf16 %v14_v5  ;;  %v24_v13 = vunpack.c.l.bf16 %v15_v6  ;;  %v25_v14 = vunpack.c.h.bf16 %v15_v6  ;;  %v282_v16 = vld [vmem:[%s332_s0 + $0x38] sm:$0xff] }
   0x5   :  { %v30_v21 = vunpack.c.l.bf16 %v18_v9  ;;  %v31_v22 = vunpack.c.h.bf16 %v18_v9  ;;  %v32_v23 = vunpack.c.l.bf16 %v272_v10  ;;  %v33_v24 = vunpack.c.h.bf16 %v272_v10 }
   0x6   :  { %75 = vperm.xlu1 %220, %v67_v3   ;;  %v34_v26 = vunpack.c.l.bf16 %v277_v15  ;;  %v35_v27 = vunpack.c.h.bf16 %v277_v15  ;;  %v36_v28 = vunpack.c.l.bf16 %v282_v16  ;;  %v37_v29 = vunpack.c.h.bf16 %v282_v16 }
   0x7   :  { %47 = vperm.xlu0 %219, %v39_v4  }
  0x7d   :  { %v71_v34 = vpop.permute.xlu1 %70 }
  0x7e   :  { %v43_v25 = vpop.permute.xlu0 %42 }
  0x7f   :  { %v50_v30 = vmul.f32 %v43_v25, %v22_v11  ;;  %v51_v31 = vmul.f32 %v43_v25, %v23_v12  ;;  %v52_v32 = vmul.f32 %v43_v25, %v24_v13  ;;  %v53_v33 = vmul.f32 %v43_v25, %v25_v14 }
  0x80   :  { %v54_v35 = vmul.f32 %v43_v25, %v26_v17  ;;  %v55_v36 = vmul.f32 %v43_v25, %v27_v18  ;;  %v56_v37 = vmul.f32 %v43_v25, %v28_v19  ;;  %v57_v38 = vmul.f32 %v43_v25, %v29_v20 }
  0x81   :  { %v78_v39 = vadd.f32 %v71_v34, %v50_v30  ;;  %v79_v40 = vadd.f32 %v71_v34, %v51_v31  ;;  %v80_v41 = vadd.f32 %v71_v34, %v52_v32  ;;  %v81_v42 = vadd.f32 %v71_v34, %v53_v33  ;;  %v76_v8 = vpop.permute.xlu1 %75 }
  0x82   :  { %v82_v43 = vadd.f32 %v71_v34, %v54_v35  ;;  %v83_v44 = vadd.f32 %v71_v34, %v55_v36  ;;  %v84_v45 = vadd.f32 %v71_v34, %v56_v37  ;;  %v85_v46 = vadd.f32 %v71_v34, %v57_v38  ;;  %v48_v47 = vpop.permute.xlu0 %47 }
  0x83   :  { %vm94_vm0 = vcmp.ge.f32.partialorder %v78_v39, 0.0  ;;  %vm95_vm1 = vcmp.ge.f32.partialorder %v79_v40, 0.0  ;;  %vm96_vm2 = vcmp.ge.f32.partialorder %v80_v41, 0.0  ;;  %vm97_vm3 = vcmp.ge.f32.partialorder %v81_v42, 0.0 }
  0x84   :  { %vm98_vm4 = vcmp.ge.f32.partialorder %v82_v43, 0.0  ;;  %vm99_vm5 = vcmp.ge.f32.partialorder %v83_v44, 0.0  ;;  %vm100_vm6 = vcmp.ge.f32.partialorder %v84_v45, 0.0  ;;  %vm101_vm7 = vcmp.ge.f32.partialorder %v85_v46, 0.0 }
  0x85   :  { %v110_v48 = vmul.f32 0.2, %v78_v39  ;;  %v111_v49 = vmul.f32 0.2, %v79_v40  ;;  %v112_v50 = vmul.f32 0.2, %v80_v41  ;;  %v58_v51 = vmul.f32 %v48_v47, %v30_v21 }
  0x86   :  { %v113_v52 = vmul.f32 0.2, %v81_v42  ;;  %v114_v53 = vmul.f32 0.2, %v82_v43  ;;  %v115_v54 = vmul.f32 0.2, %v83_v44  ;;  %v59_v55 = vmul.f32 %v48_v47, %v31_v22 }
  0x87   :  { %v116_v56 = vmul.f32 0.2, %v84_v45  ;;  %v117_v57 = vmul.f32 0.2, %v85_v46  ;;  %v126_v58 = vsel %vm94_vm0, %v78_v39, %v110_v48  ;;  %v127_v59 = vsel %vm95_vm1, %v79_v40, %v111_v49 }
  0x88   :  { %v128_v60 = vsel %vm96_vm2, %v80_v41, %v112_v50  ;;  %v129_v61 = vsel %vm97_vm3, %v81_v42, %v113_v52  ;;  %v130_v62 = vsel %vm98_vm4, %v82_v43, %v114_v53  ;;  %v131_v63 = vsel %vm99_vm5, %v83_v44, %v115_v54 }
  0x89   :  { %v132_v0 = vsel %vm100_vm6, %v84_v45, %v116_v56  ;;  %v133_v1 = vsel %vm101_vm7, %v85_v46, %v117_v57  ;;  %v210_v2 = vpack.c.bf16 %v127_v59, %v126_v58  ;;  %v211_v3 = vpack.c.bf16 %v129_v61, %v128_v60 }
  0x8a   :  { %v212_v4 = vpack.c.bf16 %v131_v63, %v130_v62  ;;  %v213_v5 = vpack.c.bf16 %v133_v1, %v132_v0  ;;  %v60_v6 = vmul.f32 %v48_v47, %v32_v23  ;;  %v61_v7 = vmul.f32 %v48_v47, %v33_v24 }
  0x8b   :  { %190 = vst [vmem:[%s333_s3] sm:$0xff] %v210_v2  ;;  %191 = vst [vmem:[%s333_s3 + $0x8] sm:$0xff] %v211_v3  ;;  %v62_v9 = vmul.f32 %v48_v47, %v34_v26  ;;  %v63_v10 = vmul.f32 %v48_v47, %v35_v27  ;;  %v64_v11 = vmul.f32 %v48_v47, %v36_v28 }
  0x8c   :  { %v65_v12 = vmul.f32 %v48_v47, %v37_v29  ;;  %192 = vst [vmem:[%s333_s3 + $0x10] sm:$0xff] %v212_v4  ;;  %193 = vst [vmem:[%s333_s3 + $0x18] sm:$0xff] %v213_v5  ;;  %v86_v13 = vadd.f32 %v76_v8, %v58_v51  ;;  %v87_v14 = vadd.f32 %v76_v8, %v59_v55 }
  0x8d   :  { %v88_v15 = vadd.f32 %v76_v8, %v60_v6  ;;  %v89_v16 = vadd.f32 %v76_v8, %v61_v7  ;;  %v90_v17 = vadd.f32 %v76_v8, %v62_v9  ;;  %v91_v18 = vadd.f32 %v76_v8, %v63_v10 }
  0x8e   :  { %v92_v19 = vadd.f32 %v76_v8, %v64_v11  ;;  %v93_v20 = vadd.f32 %v76_v8, %v65_v12  ;;  %vm102_vm8 = vcmp.ge.f32.partialorder %v86_v13, 0.0  ;;  %vm103_vm9 = vcmp.ge.f32.partialorder %v87_v14, 0.0 }
  0x8f   :  { %vm104_vm10 = vcmp.ge.f32.partialorder %v88_v15, 0.0  ;;  %vm105_vm11 = vcmp.ge.f32.partialorder %v89_v16, 0.0  ;;  %vm106_vm12 = vcmp.ge.f32.partialorder %v90_v17, 0.0  ;;  %vm107_vm13 = vcmp.ge.f32.partialorder %v91_v18, 0.0 }
  0x90   :  { %vm108_vm14 = vcmp.ge.f32.partialorder %v92_v19, 0.0  ;;  %vm109_vm15 = vcmp.ge.f32.partialorder %v93_v20, 0.0  ;;  %v118_v21 = vmul.f32 0.2, %v86_v13  ;;  %v119_v22 = vmul.f32 0.2, %v87_v14 }
  0x91   :  { %v120_v23 = vmul.f32 0.2, %v88_v15  ;;  %v121_v24 = vmul.f32 0.2, %v89_v16  ;;  %v122_v25 = vmul.f32 0.2, %v90_v17 }
  0x92   :  { %v123_v26 = vmul.f32 0.2, %v91_v18  ;;  %v124_v27 = vmul.f32 0.2, %v92_v19  ;;  %v125_v28 = vmul.f32 0.2, %v93_v20  ;;  %v134_v29 = vsel %vm102_vm8, %v86_v13, %v118_v21 }
  0x93   :  { %v135_v30 = vsel %vm103_vm9, %v87_v14, %v119_v22  ;;  %v136_v31 = vsel %vm104_vm10, %v88_v15, %v120_v23  ;;  %v137_v32 = vsel %vm105_vm11, %v89_v16, %v121_v24  ;;  %v138_v33 = vsel %vm106_vm12, %v90_v17, %v122_v25 }
  0x94   :  { %v139_v34 = vsel %vm107_vm13, %v91_v18, %v123_v26  ;;  %v140_v35 = vsel %vm108_vm14, %v92_v19, %v124_v27  ;;  %v141_v36 = vsel %vm109_vm15, %v93_v20, %v125_v28  ;;  %v214_v37 = vpack.c.bf16 %v135_v30, %v134_v29 }
  0x95   :  { %v215_v38 = vpack.c.bf16 %v137_v32, %v136_v31  ;;  %v216_v39 = vpack.c.bf16 %v139_v34, %v138_v33  ;;  %v217_v40 = vpack.c.bf16 %v141_v36, %v140_v35 }
  0x96   :  { %194 = vst [vmem:[%s333_s3 + $0x20] sm:$0xff] %v214_v37 }
  0x97   :  { %195 = vst [vmem:[%s333_s3 + $0x28] sm:$0xff] %v215_v38  ;;  %196 = vst [vmem:[%s333_s3 + $0x30] sm:$0xff] %v216_v39 }
  0x98   :  { %197 = vst [vmem:[%s333_s3 + $0x38] sm:$0xff] %v217_v40 }

// kernel: discriminator_forward.14
= control target key start
LH: loop header
LB: loop body
LE: loop exit
PB: predicated region body
PF: predicated region fallthrough
CT: control target
= control target key end

     0   :  { %v145_v0 = vmov 0   ;;  %s202_s1 = inlined_call_operand.vmem [shape: f32[32,1], index: 1, kind: input, shape index: {}]   ;;  %s203_s2 = inlined_call_operand.vmem [shape: f32[32,1], index: 2, kind: input, shape index: {}]   ;;  %s204_s0 = inlined_call_operand.vmem [shape: bf16[32,128], index: 0, kind: input, shape index: {}]   ;;  %s205_s3 = inlined_call_operand.vmem [shape: bf16[32,128], index: 3, kind: output, shape index: {}]  }
   0x1   :  { %144 = vset.pattern.permute.xlu1 %v145_v0  ;;  %143 = vset.pattern.permute.xlu0 %v145_v0  ;;  %v24_v1 = vld [vmem:[%s202_s1 + $0x10] sm:$0xff]  ;;  %v22_v2 = vld [vmem:[%s202_s1] sm:$0xff]  ;;  %v25_v3 = vld [vmem:[%s202_s1 + $0x18] sm:$0xff] }
   0x2   :  { %38 = vperm.xlu1 %144, %v24_v1   ;;  %28 = vperm.xlu0 %143, %v22_v2   ;;  %v23_v4 = vld [vmem:[%s202_s1 + $0x8] sm:$0xff]  ;;  %v50_v6 = vld [vmem:[%s203_s2] sm:$0xff]  ;;  %v53_v7 = vld [vmem:[%s203_s2 + $0x18] sm:$0xff] }
   0x3   :  { %v51_v5 = vld [vmem:[%s203_s2 + $0x8] sm:$0xff]  ;;  %v52_v8 = vld [vmem:[%s203_s2 + $0x10] sm:$0xff]  ;;  %v123_v11 = vld [vmem:[%s204_s0] sm:$0xff]  }
   0x4   :  { %v140_v12 = vld [vmem:[%s204_s0 + $0x8] sm:$0xff]   ;;  %v124_v13 = vunpack.c.l.bf16 %v123_v11  ;;  %v125_v14 = vunpack.c.h.bf16 %v123_v11 }
   0x5   :  { %v128_v17 = vunpack.c.l.bf16 %v140_v12  ;;  %v129_v18 = vunpack.c.h.bf16 %v140_v12 }
   0x6   :  { %43 = vperm.xlu1 %144, %v25_v3   ;;  %33 = vperm.xlu0 %143, %v23_v4  }
   0xa   :  { %61 = vperm.xlu1 %144, %v51_v5   ;;  %56 = vperm.xlu0 %143, %v50_v6  }
   0xe   :  { %71 = vperm.xlu1 %144, %v53_v7   ;;  %66 = vperm.xlu0 %143, %v52_v8  }
  0x7d   :  { %v39_v9 = vpop.permute.xlu1 %38  ;;  %v29_v10 = vpop.permute.xlu0 %28 }
  0x7e   :  { %v46_v19 = vmul.f32 %v124_v13, %v29_v10  ;;  %v48_v25 = vmul.f32 %v128_v17, %v39_v9 }
  0x81   :  { %v44_v15 = vpop.permute.xlu1 %43  ;;  %v34_v16 = vpop.permute.xlu0 %33 }
  0x82   :  { %v47_v20 = vmul.f32 %v125_v14, %v34_v16  ;;  %v49_v26 = vmul.f32 %v129_v18, %v44_v15 }
  0x85   :  { %v62_v21 = vpop.permute.xlu1 %61  ;;  %v57_v22 = vpop.permute.xlu0 %56 }
  0x86   :  { %v75_v23 = vadd.f32 %v62_v21, %v47_v20  ;;  %v74_v24 = vadd.f32 %v57_v22, %v46_v19 }
  0x88   :  { %vm79_vm0 = vcmp.ge.f32.partialorder %v75_v23, 0.0  ;;  %v83_v27 = vmul.f32 0.2, %v75_v23  ;;  %vm78_vm1 = vcmp.ge.f32.partialorder %v74_v24, 0.0  ;;  %v82_v28 = vmul.f32 0.2, %v74_v24 }
  0x89   :  { %v72_v29 = vpop.permute.xlu1 %71  ;;  %v67_v30 = vpop.permute.xlu0 %66 }
  0x8a   :  { %v87_v31 = vsel %vm79_vm0, %v75_v23, %v83_v27  ;;  %v86_v32 = vsel %vm78_vm1, %v74_v24, %v82_v28  ;;  %v77_v33 = vadd.f32 %v72_v29, %v49_v26  ;;  %v76_v34 = vadd.f32 %v67_v30, %v48_v25 }
  0x8b   :  { %v133_v35 = vpack.c.bf16 %v87_v31, %v86_v32 }
  0x8c   :  { %vm81_vm2 = vcmp.ge.f32.partialorder %v77_v33, 0.0  ;;  %v85_v36 = vmul.f32 0.2, %v77_v33  ;;  %vm80_vm3 = vcmp.ge.f32.partialorder %v76_v34, 0.0  ;;  %v84_v37 = vmul.f32 0.2, %v76_v34 }
  0x8d   :  { %134 = vst [vmem:[%s205_s3] sm:$0xff] %v133_v35  }
  0x8e   :  { %v89_v38 = vsel %vm81_vm2, %v77_v33, %v85_v36  ;;  %v88_v39 = vsel %vm80_vm3, %v76_v34, %v84_v37 }
  0x8f   :  { %v138_v40 = vpack.c.bf16 %v89_v38, %v88_v39 }
  0x91   :  { %141 = vst [vmem:[%s205_s3 + $0x8] sm:$0xff] %v138_v40  }

// kernel: discriminator_forward.13
= control target key start
LH: loop header
LB: loop body
LE: loop exit
PB: predicated region body
PF: predicated region fallthrough
CT: control target
= control target key end

     0   :  { %vm847_vm0 = vcmask 7168   ;;  %s1458_s1 = inlined_call_operand.vmem [shape: bf16[1024,128], index: 1, kind: input, shape index: {}]   ;;  %s1459_s0 = inlined_call_operand.vmem [shape: bf16[32,1024], index: 0, kind: input, shape index: {}]   ;;  %s1460_s2 = inlined_call_operand.vmem [shape: bf16[32,128], index: 2, kind: output, shape index: {0}]   ;;  %s1461_s3 = inlined_call_operand.vmem [shape: f32[1,32,1], index: 3, kind: output, shape index: {1}]   ;;  %s1462_s4 = inlined_call_operand.vmem [shape: f32[1,32,1], index: 4, kind: output, shape index: {2}]  }
   0x1   :  { %v1091_v0 = vld [vmem:[%s1458_s1 + $0x78] sm:$0xff]   ;;  %v1095_v4 = vld [vmem:[%s1458_s1 + $0x70] sm:$0xff]   ;;  %v1099_v8 = vld [vmem:[%s1458_s1 + $0x68] sm:$0xff]  }
   0x2   :  { %v1092_v1 = vld [vmem:[%s1458_s1 + $0xf8] sm:$0xff]   ;;  %979 = vmatprep.subr.bf16.mxu0 %v1091_v0  ;;  %v1096_v5 = vld [vmem:[%s1458_s1 + $0xf0] sm:$0xff]   ;;  %v1100_v9 = vld [vmem:[%s1458_s1 + $0xe8] sm:$0xff]  }
   0x3   :  { %v1093_v2 = vld [vmem:[%s1458_s1 + $0x38] sm:$0xff]   ;;  %1007 = vmatprep.subr.bf16.mxu1 %v1092_v1  ;;  %v1097_v6 = vld [vmem:[%s1458_s1 + $0x30] sm:$0xff]   ;;  %v1101_v10 = vld [vmem:[%s1458_s1 + $0x28] sm:$0xff]  }
   0x4   :  { %v1094_v3 = vld [vmem:[%s1458_s1 + $0xb8] sm:$0xff]   ;;  %980 = vmatpush3.bf16.msra.mxu0 %v1093_v2  ;;  %v1098_v7 = vld [vmem:[%s1458_s1 + $0xb0] sm:$0xff]   ;;  %v1102_v11 = vld [vmem:[%s1458_s1 + $0xa8] sm:$0xff]  }
   0x5   :  { %1008 = vmatpush3.bf16.msra.mxu1 %v1094_v3  ;;  %981 = vmatprep.subr.bf16.mxu0 %v1095_v4  ;;  %v1103_v12 = vld [vmem:[%s1458_s1 + $0x60] sm:$0xff]   ;;  %v1107_v16 = vld [vmem:[%s1458_s1 + $0x58] sm:$0xff]   ;;  %v1111_v20 = vld [vmem:[%s1458_s1 + $0x50] sm:$0xff]  }
   0x6   :  { %1009 = vmatprep.subr.bf16.mxu1 %v1096_v5  ;;  %v1104_v13 = vld [vmem:[%s1458_s1 + $0xe0] sm:$0xff]   ;;  %v1108_v17 = vld [vmem:[%s1458_s1 + $0xd8] sm:$0xff]   ;;  %v1112_v21 = vld [vmem:[%s1458_s1 + $0xd0] sm:$0xff]  }
   0x7   :  { %v1105_v14 = vld [vmem:[%s1458_s1 + $0x20] sm:$0xff]   ;;  %v1109_v18 = vld [vmem:[%s1458_s1 + $0x18] sm:$0xff]   ;;  %v1113_v22 = vld [vmem:[%s1458_s1 + $0x10] sm:$0xff]  }
   0x8   :  { %982 = vmatpush3.bf16.msra.mxu0 %v1097_v6  ;;  %v1106_v15 = vld [vmem:[%s1458_s1 + $0xa0] sm:$0xff]   ;;  %v1110_v19 = vld [vmem:[%s1458_s1 + $0x98] sm:$0xff]   ;;  %v1114_v23 = vld [vmem:[%s1458_s1 + $0x90] sm:$0xff]  }
   0x9   :  { %1010 = vmatpush3.bf16.msra.mxu1 %v1098_v7  ;;  %983 = vmatprep.subr.bf16.mxu0 %v1099_v8  ;;  %v1115_v24 = vld [vmem:[%s1458_s1 + $0x48] sm:$0xff]   ;;  %v1119_v28 = vld [vmem:[%s1458_s1 + $0x40] sm:$0xff]   ;;  %v1123_v40 = vld [vmem:[%s1458_s1 + $0x178] sm:$0xff]  }
   0xa   :  { %1011 = vmatprep.subr.bf16.mxu1 %v1100_v9  ;;  %v1116_v25 = vld [vmem:[%s1458_s1 + $0xc8] sm:$0xff]   ;;  %v1120_v29 = vld [vmem:[%s1458_s1 + $0xc0] sm:$0xff]   ;;  %v1124_v41 = vld [vmem:[%s1458_s1 + $0x1f8] sm:$0xff]  }
   0xb   :  { %v1117_v26 = vld [vmem:[%s1458_s1 + $0x8] sm:$0xff]   ;;  %v1121_v30 = vld [vmem:[%s1458_s1] sm:$0xff]   ;;  %v1125_v42 = vld [vmem:[%s1458_s1 + $0x138] sm:$0xff]  }
   0xc   :  { %984 = vmatpush3.bf16.msra.mxu0 %v1101_v10  ;;  %v1118_v27 = vld [vmem:[%s1458_s1 + $0x88] sm:$0xff]   ;;  %v1122_v31 = vld [vmem:[%s1458_s1 + $0x80] sm:$0xff]   ;;  %v1126_v43 = vld [vmem:[%s1458_s1 + $0x1b8] sm:$0xff]  }
   0xd   :  { %1012 = vmatpush3.bf16.msra.mxu1 %v1102_v11  ;;  %985 = vmatprep.subr.bf16.mxu0 %v1103_v12  ;;  %v15_v32 = vld [vmem:[%s1459_s0] sm:$0xff]  ;;  %v16_v34 = vld [vmem:[%s1459_s0 + $0x8] sm:$0xff]  ;;  %v1127_v44 = vld [vmem:[%s1458_s1 + $0x170] sm:$0xff]  }
   0xe   :  { %1013 = vmatprep.subr.bf16.mxu1 %v1104_v13  ;;  %v19_v33 = vld [vmem:[%s1459_s0 + $0x20] sm:$0xff]  ;;  %v20_v37 = vld [vmem:[%s1459_s0 + $0x28] sm:$0xff]  ;;  %v1128_v45 = vld [vmem:[%s1458_s1 + $0x1f0] sm:$0xff]  }
   0xf   :  { %v880_v35 = vcombine.low %v15_v32, %v19_v33  ;;  %v881_v36 = vcombine.high %v15_v32, %v19_v33  ;;  %v882_v38 = vcombine.low %v16_v34, %v20_v37  ;;  %v883_v39 = vcombine.high %v16_v34, %v20_v37  ;;  %v1129_v46 = vld [vmem:[%s1458_s1 + $0x130] sm:$0xff]   ;;  %v1131_v48 = vld [vmem:[%s1458_s1 + $0x168] sm:$0xff]   ;;  %v1135_v52 = vld [vmem:[%s1458_s1 + $0x160] sm:$0xff]  }
  0x10   :  { %986 = vmatpush3.bf16.msra.mxu0 %v1105_v14  ;;  %v1130_v47 = vld [vmem:[%s1458_s1 + $0x1b0] sm:$0xff]   ;;  %v1132_v49 = vld [vmem:[%s1458_s1 + $0x1e8] sm:$0xff]   ;;  %v1136_v53 = vld [vmem:[%s1458_s1 + $0x1e0] sm:$0xff]  }
  0x11   :  { %1014 = vmatpush3.bf16.msra.mxu1 %v1106_v15  ;;  %987 = vmatprep.subr.bf16.mxu0 %v1107_v16  ;;  %v1133_v50 = vld [vmem:[%s1458_s1 + $0x128] sm:$0xff]   ;;  %v1137_v54 = vld [vmem:[%s1458_s1 + $0x120] sm:$0xff]   ;;  %v1139_v56 = vld [vmem:[%s1458_s1 + $0x158] sm:$0xff]  }
  0x12   :  { %1015 = vmatprep.subr.bf16.mxu1 %v1108_v17  ;;  %655 = vmatprep.mubr.bf16.mxu0 %v881_v36  ;;  %v1134_v51 = vld [vmem:[%s1458_s1 + $0x1a8] sm:$0xff]   ;;  %v1138_v55 = vld [vmem:[%s1458_s1 + $0x1a0] sm:$0xff]   ;;  %v1140_v57 = vld [vmem:[%s1458_s1 + $0x1d8] sm:$0xff]  }
  0x13   :  { %704 = vmatprep.mubr.bf16.mxu1 %v883_v39  ;;  %v23_v58 = vld [vmem:[%s1459_s0 + $0x40] sm:$0xff]  ;;  %v24_v61 = vld [vmem:[%s1459_s0 + $0x48] sm:$0xff]  ;;  %v1141_v1 = vld [vmem:[%s1458_s1 + $0x118] sm:$0xff]  }
  0x14   :  { %988 = vmatpush3.bf16.msra.mxu0 %v1109_v18  ;;  %v27_v59 = vld [vmem:[%s1459_s0 + $0x60] sm:$0xff]  ;;  %v28_v62 = vld [vmem:[%s1459_s0 + $0x68] sm:$0xff]  ;;  %v1142_v3 = vld [vmem:[%s1458_s1 + $0x198] sm:$0xff]  }
  0x15   :  { %1016 = vmatpush3.bf16.msra.mxu1 %v1110_v19  ;;  %989 = vmatprep.subr.bf16.mxu0 %v1111_v20  ;;  %v889_v60 = vcombine.high %v23_v58, %v27_v59  ;;  %v888_v63 = vcombine.low %v23_v58, %v27_v59  ;;  %v891_v0 = vcombine.high %v24_v61, %v28_v62  ;;  %v1143_v4 = vld [vmem:[%s1458_s1 + $0x150] sm:$0xff]   ;;  %v1147_v8 = vld [vmem:[%s1458_s1 + $0x148] sm:$0xff]   ;;  %v1151_v12 = vld [vmem:[%s1458_s1 + $0x140] sm:$0xff]  }
  0x16   :  { %1017 = vmatprep.subr.bf16.mxu1 %v1112_v21  ;;  %v890_v2 = vcombine.low %v24_v61, %v28_v62  ;;  %v1144_v5 = vld [vmem:[%s1458_s1 + $0x1d0] sm:$0xff]   ;;  %v1148_v9 = vld [vmem:[%s1458_s1 + $0x1c8] sm:$0xff]   ;;  %v1152_v13 = vld [vmem:[%s1458_s1 + $0x1c0] sm:$0xff]  }
  0x17   :  { %v1145_v6 = vld [vmem:[%s1458_s1 + $0x110] sm:$0xff]   ;;  %v1149_v10 = vld [vmem:[%s1458_s1 + $0x108] sm:$0xff]   ;;  %v1153_v14 = vld [vmem:[%s1458_s1 + $0x100] sm:$0xff]  }
  0x18   :  { %990 = vmatpush3.bf16.msra.mxu0 %v1113_v22  ;;  %v1146_v7 = vld [vmem:[%s1458_s1 + $0x190] sm:$0xff]   ;;  %v1150_v11 = vld [vmem:[%s1458_s1 + $0x188] sm:$0xff]   ;;  %v1154_v15 = vld [vmem:[%s1458_s1 + $0x180] sm:$0xff]  }
  0x19   :  { %1018 = vmatpush3.bf16.msra.mxu1 %v1114_v23  ;;  %991 = vmatprep.subr.bf16.mxu0 %v1115_v24  ;;  %v17_v16 = vld [vmem:[%s1459_s0 + $0x10] sm:$0xff]  ;;  %v18_v18 = vld [vmem:[%s1459_s0 + $0x18] sm:$0xff] }
  0x1a   :  { %1019 = vmatprep.subr.bf16.mxu1 %v1116_v25  ;;  %v21_v17 = vld [vmem:[%s1459_s0 + $0x30] sm:$0xff]  ;;  %v22_v19 = vld [vmem:[%s1459_s0 + $0x38] sm:$0xff] }
  0x1b   :  { %v884_v20 = vcombine.low %v17_v16, %v21_v17  ;;  %v885_v21 = vcombine.high %v17_v16, %v21_v17  ;;  %v886_v22 = vcombine.low %v18_v18, %v22_v19  ;;  %v887_v23 = vcombine.high %v18_v18, %v22_v19  ;;  %v25_v24 = vld [vmem:[%s1459_s0 + $0x50] sm:$0xff] }
  0x1c   :  { %992 = vmatpush3.bf16.msra.mxu0 %v1117_v26  ;;  %v29_v25 = vld [vmem:[%s1459_s0 + $0x70] sm:$0xff]  ;;  %v26_v26 = vld [vmem:[%s1459_s0 + $0x58] sm:$0xff] }
  0x1d   :  { %1020 = vmatpush3.bf16.msra.mxu1 %v1118_v27  ;;  %993 = vmatprep.subr.bf16.mxu0 %v1119_v28  ;;  %v893_v27 = vcombine.high %v25_v24, %v29_v25  ;;  %v30_v28 = vld [vmem:[%s1459_s0 + $0x78] sm:$0xff] }
  0x1e   :  { %1021 = vmatprep.subr.bf16.mxu1 %v1120_v29  ;;  %v895_v29 = vcombine.high %v26_v26, %v30_v28 }
  0x20   :  { %994 = vmatpush3.bf16.msra.mxu0 %v1121_v30  ;;  %v892_v30 = vcombine.low %v25_v24, %v29_v25 }
  0x21   :  { %1022 = vmatpush3.bf16.msra.mxu1 %v1122_v31  ;;  %1035 = vmatprep.subr.bf16.mxu0 %v1123_v40  ;;  %v894_v31 = vcombine.low %v26_v26, %v30_v28 }
  0x22   :  { %1063 = vmatprep.subr.bf16.mxu1 %v1124_v41 }
  0x23   :  { %656 = vmatmul.mubr.bf16.vlgmr.msra.gmra.mxu0 %v880_v35 }
  0x24   :  { %705 = vmatmul.mubr.bf16.vlgmr.msra.gmra.mxu1 %v882_v38  ;;  %1036 = vmatpush3.bf16.msra.mxu0 %v1125_v42 }
  0x25   :  { %1064 = vmatpush3.bf16.msra.mxu1 %v1126_v43  ;;  %1037 = vmatprep.subr.bf16.mxu0 %v1127_v44 }
  0x26   :  { %1065 = vmatprep.subr.bf16.mxu1 %v1128_v45  ;;  %663 = vmatprep.mubr.bf16.mxu0 %v889_v60 }
  0x27   :  { %712 = vmatprep.mubr.bf16.mxu1 %v891_v0 }
  0x28   :  { %1038 = vmatpush3.bf16.msra.mxu0 %v1129_v46 }
  0x29   :  { %1066 = vmatpush3.bf16.msra.mxu1 %v1130_v47  ;;  %1039 = vmatprep.subr.bf16.mxu0 %v1131_v48 }
  0x2a   :  { %1067 = vmatprep.subr.bf16.mxu1 %v1132_v49 }
  0x2b   :  { %664 = vmatmul.mubr.bf16.gmra.mxu0 %v888_v63 }
  0x2c   :  { %1040 = vmatpush3.bf16.msra.mxu0 %v1133_v50  ;;  %713 = vmatmul.mubr.bf16.gmra.mxu1 %v890_v2 }
  0x2d   :  { %1068 = vmatpush3.bf16.msra.mxu1 %v1134_v51  ;;  %1041 = vmatprep.subr.bf16.mxu0 %v1135_v52 }
  0x2e   :  { %1069 = vmatprep.subr.bf16.mxu1 %v1136_v53  ;;  %753 = vmatprep.mubr.bf16.mxu0 %v885_v21 }
  0x2f   :  { %802 = vmatprep.mubr.bf16.mxu1 %v887_v23 }
  0x30   :  { %1042 = vmatpush3.bf16.msra.mxu0 %v1137_v54 }
  0x31   :  { %1070 = vmatpush3.bf16.msra.mxu1 %v1138_v55  ;;  %1043 = vmatprep.subr.bf16.mxu0 %v1139_v56 }
  0x32   :  { %1071 = vmatprep.subr.bf16.mxu1 %v1140_v57 }
  0x34   :  { %1044 = vmatpush3.bf16.msra.mxu0 %v1141_v1 }
  0x35   :  { %1072 = vmatpush3.bf16.msra.mxu1 %v1142_v3  ;;  %1045 = vmatprep.subr.bf16.mxu0 %v1143_v4 }
  0x36   :  { %1073 = vmatprep.subr.bf16.mxu1 %v1144_v5 }
  0x38   :  { %1046 = vmatpush3.bf16.msra.mxu0 %v1145_v6 }
  0x39   :  { %1074 = vmatpush3.bf16.msra.mxu1 %v1146_v7  ;;  %1047 = vmatprep.subr.bf16.mxu0 %v1147_v8 }
  0x3a   :  { %1075 = vmatprep.subr.bf16.mxu1 %v1148_v9 }
  0x3c   :  { %1048 = vmatpush3.bf16.msra.mxu0 %v1149_v10 }
  0x3d   :  { %1076 = vmatpush3.bf16.msra.mxu1 %v1150_v11  ;;  %1049 = vmatprep.subr.bf16.mxu0 %v1151_v12 }
  0x3e   :  { %1077 = vmatprep.subr.bf16.mxu1 %v1152_v13 }
  0x40   :  { %1050 = vmatpush3.bf16.msra.mxu0 %v1153_v14 }
  0x41   :  { %1078 = vmatpush3.bf16.msra.mxu1 %v1154_v15 }
  0x43   :  { %754 = vmatmul.mubr.bf16.vlgmr.msra.gmra.mxu0 %v884_v20 }
  0x44   :  { %803 = vmatmul.mubr.bf16.vlgmr.msra.gmra.mxu1 %v886_v22  ;;  %761 = vmatprep.mubr.bf16.mxu0 %v893_v27 }
  0x45   :  { %810 = vmatprep.mubr.bf16.mxu1 %v895_v29 }
  0x4b   :  { %762 = vmatmul.mubr.bf16.gmra.mxu0 %v892_v30 }
  0x4c   :  { %811 = vmatmul.mubr.bf16.gmra.mxu1 %v894_v31 }
  0xe3   :  { %v995_v32 = vpop.f32.mrf.mxu0 }
  0xe4   :  { %v1023_v33 = vpop.f32.mrf.mxu1 }
  0xe5   :  { %v996_v34 = vpop.f32.mrf.mxu0 }
  0xe6   :  { %v1024_v35 = vpop.f32.mrf.mxu1  ;;  %v997_v48 = vadd.f32 %v996_v34, %v995_v32 }
  0xe7   :  { %v998_v36 = vpop.f32.mrf.mxu0  ;;  %v1025_v49 = vadd.f32 %v1024_v35, %v1023_v33 }
  0xe8   :  { %v1026_v37 = vpop.f32.mrf.mxu1 }
  0xe9   :  { %v999_v38 = vpop.f32.mrf.mxu0  ;;  %v707_v54 = vadd.f32 %v1025_v49, %v997_v48 }
  0xea   :  { %v1027_v39 = vpop.f32.mrf.mxu1  ;;  %v1000_v55 = vadd.f32 %v999_v38, %v998_v36 }
  0xeb   :  { %v1001_v40 = vpop.f32.mrf.mxu0  ;;  %v1028_v56 = vadd.f32 %v1027_v39, %v1026_v37 }
  0xec   :  { %v1029_v41 = vpop.f32.mrf.mxu1 }
  0xed   :  { %v1002_v42 = vpop.f32.mrf.mxu0  ;;  %v710_v2 = vadd.f32 %v1028_v56, %v1000_v55 }
  0xee   :  { %v1030_v43 = vpop.f32.mrf.mxu1  ;;  %v1003_v62 = vadd.f32 %v1002_v42, %v1001_v40 }
  0xef   :  { %v1004_v44 = vpop.f32.mrf.mxu0  ;;  %v1031_v63 = vadd.f32 %v1030_v43, %v1029_v41 }
  0xf0   :  { %v1032_v45 = vpop.f32.mrf.mxu1 }
  0xf1   :  { %v1005_v46 = vpop.f32.mrf.mxu0  ;;  %v715_v9 = vadd.f32 %v1031_v63, %v1003_v62 }
  0xf2   :  { %v1033_v47 = vpop.f32.mrf.mxu1  ;;  %v1006_v10 = vadd.f32 %v1005_v46, %v1004_v44 }
  0xf3   :  { %v1034_v11 = vadd.f32 %v1033_v47, %v1032_v45 }
  0xf5   :  { %v718_v25 = vadd.f32 %v1034_v11, %v1006_v10 }
 0x103   :  { %v1051_v50 = vpop.f32.mrf.mxu0 }
 0x104   :  { %v1079_v51 = vpop.f32.mrf.mxu1 }
 0x105   :  { %v1052_v52 = vpop.f32.mrf.mxu0 }
 0x106   :  { %v1080_v53 = vpop.f32.mrf.mxu1  ;;  %v1053_v57 = vadd.f32 %v1052_v52, %v1051_v50 }
 0x107   :  { %v1054_v58 = vpop.f32.mrf.mxu0  ;;  %v1081_v61 = vadd.f32 %v1080_v53, %v1079_v51 }
 0x108   :  { %v1082_v59 = vpop.f32.mrf.mxu1  ;;  %v756_v60 = vadd.f32 %v1053_v57, %v707_v54 }
 0x109   :  { %v1055_v0 = vpop.f32.mrf.mxu0 }
 0x10a   :  { %v1083_v1 = vpop.f32.mrf.mxu1  ;;  %v805_v3 = vadd.f32 %v1081_v61, %v756_v60  ;;  %v1056_v4 = vadd.f32 %v1055_v0, %v1054_v58 }
 0x10b   :  { %v1057_v5 = vpop.f32.mrf.mxu0  ;;  %v1084_v8 = vadd.f32 %v1083_v1, %v1082_v59 }
 0x10c   :  { %v1085_v6 = vpop.f32.mrf.mxu1  ;;  %v759_v7 = vadd.f32 %v1056_v4, %v710_v2  ;;  %839 = vadd.xlane.f32.xlu0 %v805_v3  ;;  %v852_v17 = vmul.f32 %v805_v3, %v805_v3 }
 0x10d   :  { %v1058_v12 = vpop.f32.mrf.mxu0 }
 0x10e   :  { %v1086_v13 = vpop.f32.mrf.mxu1  ;;  %v808_v14 = vadd.f32 %v1084_v8, %v759_v7  ;;  %v1059_v15 = vadd.f32 %v1058_v12, %v1057_v5 }
 0x10f   :  { %v1087_v16 = vadd.f32 %v1086_v13, %v1085_v6  ;;  %v1060_v18 = vpop.f32.mrf.mxu0 }
 0x110   :  { %v1088_v19 = vpop.f32.mrf.mxu1  ;;  %v971_v20 = vpack.c.bf16 %v808_v14, %v805_v3  ;;  %v764_v21 = vadd.f32 %v1059_v15, %v715_v9  ;;  %856 = vadd.xlane.f32.xlu0 %v852_v17  ;;  %v853_v22 = vmul.f32 %v808_v14, %v808_v14 }
 0x111   :  { %v1061_v23 = vpop.f32.mrf.mxu0 }
 0x112   :  { %v1089_v24 = vpop.f32.mrf.mxu1  ;;  %972 = vst [vmem:[%s1460_s2] sm:$0xff] %v971_v20   ;;  %v813_v26 = vadd.f32 %v1087_v16, %v764_v21  ;;  %v1062_v27 = vadd.f32 %v1061_v23, %v1060_v18  ;;  %858 = vadd.xlane.f32.xlu1 %v853_v22 }
 0x113   :  { %v1090_v29 = vadd.f32 %v1089_v24, %v1088_v19 }
 0x114   :  { %v767_v28 = vadd.f32 %v1062_v27, %v718_v25  ;;  %841 = vadd.xlane.f32.xlu0 %v808_v14  ;;  %v854_v31 = vmul.f32 %v813_v26, %v813_v26 }
 0x116   :  { %v816_v30 = vadd.f32 %v1090_v29, %v767_v28  ;;  %843 = vadd.xlane.f32.xlu1 %v813_v26 }
 0x118   :  { %v976_v32 = vpack.c.bf16 %v816_v30, %v813_v26  ;;  %860 = vadd.xlane.f32.xlu0 %v854_v31  ;;  %v855_v33 = vmul.f32 %v816_v30, %v816_v30 }
 0x11a   :  { %978 = vst [vmem:[%s1460_s2 + $0x8] sm:$0xff] %v976_v32   ;;  %845 = vadd.xlane.f32.xlu1 %v816_v30 }
 0x11e   :  { %862 = vadd.xlane.f32.xlu1 %v855_v33 }
 0x195   :  { %v840_v34 = vpop.xlane.xlu0 %839 }
 0x196   :  { %848 = vst.msk [vmem:[%s1461_s3] sm:$0xff] %vm847_vm0, %v840_v34 }
 0x199   :  { %v857_v35 = vpop.xlane.xlu0 %856 }
 0x19a   :  { %864 = vst.msk [vmem:[%s1462_s4] sm:$0xff] %vm847_vm0, %v857_v35 }
 0x19b   :  { %v859_v36 = vpop.xlane.xlu1 %858 }
 0x19c   :  { %865 = vst.msk [vmem:[%s1462_s4 + $0x8] sm:$0xff] %vm847_vm0, %v859_v36 }
 0x19d   :  { %v842_v37 = vpop.xlane.xlu0 %841 }
 0x19e   :  { %849 = vst.msk [vmem:[%s1461_s3 + $0x8] sm:$0xff] %vm847_vm0, %v842_v37 }
 0x19f   :  { %v844_v38 = vpop.xlane.xlu1 %843 }
 0x1a0   :  { %850 = vst.msk [vmem:[%s1461_s3 + $0x10] sm:$0xff] %vm847_vm0, %v844_v38 }
 0x1a1   :  { %v861_v39 = vpop.xlane.xlu0 %860 }
 0x1a2   :  { %866 = vst.msk [vmem:[%s1462_s4 + $0x10] sm:$0xff] %vm847_vm0, %v861_v39 }
 0x1a3   :  { %v846_v40 = vpop.xlane.xlu1 %845 }
 0x1a4   :  { %851 = vst.msk [vmem:[%s1461_s3 + $0x18] sm:$0xff] %vm847_vm0, %v846_v40 }
 0x1a7   :  { %v863_v41 = vpop.xlane.xlu1 %862 }
 0x1a8   :  { %867 = vst.msk [vmem:[%s1462_s4 + $0x18] sm:$0xff] %vm847_vm0, %v863_v41 }

// kernel: discriminator_forward.15
= control target key start
LH: loop header
LB: loop body
LE: loop exit
PB: predicated region body
PF: predicated region fallthrough
CT: control target
= control target key end

     0   :  { %v1931_v1 = vmov 0   ;;  %v281_v24 = vlaneseq  ;;  %v1932_v25 = vmov 1966171168   ;;  %s2387_s1 = inlined_call_operand.vmem [shape: bf16[2048,128], index: 1, kind: input, shape index: {}]   ;;  %s2388_s2 = inlined_call_operand.<no memory space> [shape: f32[1,1], index: 2, kind: input, shape index: {}]   ;;  %s2389_s0 = inlined_call_operand.vmem [shape: bf16[1,2048], index: 0, kind: input, shape index: {}]   ;;  %s2390_s3 = inlined_call_operand.vmem [shape: f32[1,128], index: 3, kind: output, shape index: {}]  }
   0x1   :  { %v1801_v0 = vld [vmem:[%s2387_s1 + $0x78] sm:$0xff]   ;;  %1800 = vset.pattern.permute.xlu0 %v1931_v1  ;;  %v8_v2 = vstv %s2388_s2  ;;  %v1805_v6 = vld [vmem:[%s2387_s1 + $0x70] sm:$0xff]   ;;  %v1809_v10 = vld [vmem:[%s2387_s1 + $0x68] sm:$0xff]   ;;  %v289_v26 = vunpack.c.l.s4 %v1932_v25 }
   0x2   :  { %v1802_v3 = vld [vmem:[%s2387_s1 + $0xf8] sm:$0xff]   ;;  %9 = vst [vmem:[#allocation2] sm:$0x1] %v8_v2  ;;  %1622 = vmatprep.subr.bf16.mxu0 %v1801_v0  ;;  %v1806_v7 = vld [vmem:[%s2387_s1 + $0xf0] sm:$0xff]   ;;  %v1810_v11 = vld [vmem:[%s2387_s1 + $0xe8] sm:$0xff]   ;;  %v2034_v31 = vshrl.u32 %v281_v24, 7 }
   0x3   :  { %v1803_v4 = vld [vmem:[%s2387_s1 + $0x38] sm:$0xff]   ;;  %1644 = vmatprep.subr.bf16.mxu1 %v1802_v3  ;;  %v1807_v8 = vld [vmem:[%s2387_s1 + $0x30] sm:$0xff]   ;;  %v1811_v12 = vld [vmem:[%s2387_s1 + $0x28] sm:$0xff]   ;;  %v290_v32 = vunpack.c.0.s8 %v289_v26 }
   0x4   :  { %v1804_v5 = vld [vmem:[%s2387_s1 + $0xb8] sm:$0xff]   ;;  %1623 = vmatpush3.bf16.msra.mxu0 %v1803_v4  ;;  %v1808_v9 = vld [vmem:[%s2387_s1 + $0xb0] sm:$0xff]   ;;  %v1812_v13 = vld [vmem:[%s2387_s1 + $0xa8] sm:$0xff]  }
   0x5   :  { %1645 = vmatpush3.bf16.msra.mxu1 %v1804_v5  ;;  %1624 = vmatprep.subr.bf16.mxu0 %v1805_v6  ;;  %v1813_v14 = vld [vmem:[%s2387_s1 + $0x60] sm:$0xff]   ;;  %v1817_v18 = vld [vmem:[%s2387_s1 + $0x58] sm:$0xff]   ;;  %v1821_v22 = vld [vmem:[%s2387_s1 + $0x50] sm:$0xff]   ;;  %v2049_v37 = vsub.s32 %v290_v32, %v2034_v31 }
   0x6   :  { %1646 = vmatprep.subr.bf16.mxu1 %v1806_v7  ;;  %v1814_v15 = vld [vmem:[%s2387_s1 + $0xe0] sm:$0xff]   ;;  %v1818_v19 = vld [vmem:[%s2387_s1 + $0xd8] sm:$0xff]   ;;  %v1822_v23 = vld [vmem:[%s2387_s1 + $0xd0] sm:$0xff]  }
   0x7   :  { %v1815_v16 = vld [vmem:[%s2387_s1 + $0x20] sm:$0xff]   ;;  %v1819_v20 = vld [vmem:[%s2387_s1 + $0x18] sm:$0xff]   ;;  %v1823_v27 = vld [vmem:[%s2387_s1 + $0x10] sm:$0xff]  }
   0x8   :  { %1625 = vmatpush3.bf16.msra.mxu0 %v1807_v8  ;;  %v1816_v17 = vld [vmem:[%s2387_s1 + $0xa0] sm:$0xff]   ;;  %v1820_v21 = vld [vmem:[%s2387_s1 + $0x98] sm:$0xff]   ;;  %v1824_v28 = vld [vmem:[%s2387_s1 + $0x90] sm:$0xff]  }
   0x9   :  { %1647 = vmatpush3.bf16.msra.mxu1 %v1808_v9  ;;  %1626 = vmatprep.subr.bf16.mxu0 %v1809_v10  ;;  %v1825_v29 = vld [vmem:[%s2387_s1 + $0x48] sm:$0xff]   ;;  %v1829_v35 = vld [vmem:[%s2387_s1 + $0x40] sm:$0xff]   ;;  %v1835_v43 = vld [vmem:[%s2387_s1 + $0x178] sm:$0xff]  }
   0xa   :  { %1648 = vmatprep.subr.bf16.mxu1 %v1810_v11  ;;  %v1826_v30 = vld [vmem:[%s2387_s1 + $0xc8] sm:$0xff]   ;;  %v1830_v36 = vld [vmem:[%s2387_s1 + $0xc0] sm:$0xff]   ;;  %v1836_v44 = vld [vmem:[%s2387_s1 + $0x1f8] sm:$0xff]  }
   0xb   :  { %v1827_v33 = vld [vmem:[%s2387_s1 + $0x8] sm:$0xff]   ;;  %v1831_v38 = vld [vmem:[%s2387_s1] sm:$0xff]   ;;  %v1837_v49 = vld [vmem:[%s2387_s1 + $0x138] sm:$0xff]  }
   0xc   :  { %1627 = vmatpush3.bf16.msra.mxu0 %v1811_v12  ;;  %v1828_v34 = vld [vmem:[%s2387_s1 + $0x88] sm:$0xff]   ;;  %v1832_v39 = vld [vmem:[%s2387_s1 + $0x80] sm:$0xff]   ;;  %v1839_v52 = vld [vmem:[%s2387_s1 + $0x170] sm:$0xff]  }
   0xd   :  { %1649 = vmatpush3.bf16.msra.mxu1 %v1812_v13  ;;  %1628 = vmatprep.subr.bf16.mxu0 %v1813_v14  ;;  %v17_v40 = vld [vmem:[%s2389_s0] sm:$0xff]  ;;  %v1838_v54 = vld [vmem:[%s2387_s1 + $0x1b8] sm:$0xff]   ;;  %v1840_v56 = vld [vmem:[%s2387_s1 + $0x1f0] sm:$0xff]  }
   0xe   :  { %1650 = vmatprep.subr.bf16.mxu1 %v1814_v15  ;;  %v287_v41 = vcombine.high %v17_v40, %v17_v40  ;;  %v294_v42 = vrot.slane %v17_v40, %v2049_v37  ;;  %v1841_v57 = vld [vmem:[%s2387_s1 + $0x130] sm:$0xff]   ;;  %v1843_v59 = vld [vmem:[%s2387_s1 + $0x168] sm:$0xff]   ;;  %v1847_v63 = vld [vmem:[%s2387_s1 + $0x160] sm:$0xff]  }
   0xf   :  { %v1842_v60 = vld [vmem:[%s2387_s1 + $0x1b0] sm:$0xff]   ;;  %v1844_v61 = vld [vmem:[%s2387_s1 + $0x1e8] sm:$0xff]   ;;  %v1848_v1 = vld [vmem:[%s2387_s1 + $0x1e0] sm:$0xff]  }
  0x10   :  { %1629 = vmatpush3.bf16.msra.mxu0 %v1815_v16  ;;  %v302_v45 = vcombine.high %v294_v42, %v294_v42  ;;  %v310_v46 = vrot.slane %v294_v42, %v2049_v37  ;;  %v2069_v47 = vrot.slane %v287_v41, %v2049_v37  ;;  %v1845_v62 = vld [vmem:[%s2387_s1 + $0x128] sm:$0xff]   ;;  %v1849_v2 = vld [vmem:[%s2387_s1 + $0x120] sm:$0xff]   ;;  %v1851_v3 = vld [vmem:[%s2387_s1 + $0x158] sm:$0xff]  }
  0x11   :  { %1651 = vmatpush3.bf16.msra.mxu1 %v1816_v17  ;;  %1630 = vmatprep.subr.bf16.mxu0 %v1817_v18  ;;  %v1846_v0 = vld [vmem:[%s2387_s1 + $0x1a8] sm:$0xff]   ;;  %v1850_v4 = vld [vmem:[%s2387_s1 + $0x1a0] sm:$0xff]   ;;  %v1852_v5 = vld [vmem:[%s2387_s1 + $0x1d8] sm:$0xff]  }
  0x12   :  { %1652 = vmatprep.subr.bf16.mxu1 %v1818_v19  ;;  %v324_v48 = vrot.slane %v302_v45, %v2049_v37  ;;  %v303_v50 = vcombine.high %v2069_v47, %v2069_v47  ;;  %v332_v51 = vcombine.high %v310_v46, %v310_v46  ;;  %v1853_v6 = vld [vmem:[%s2387_s1 + $0x118] sm:$0xff]   ;;  %v2129_v7 = vld [vmem:[%s2389_s0 + $0x8] sm:$0xff]  ;;  %v1855_v8 = vld [vmem:[%s2387_s1 + $0x150] sm:$0xff]  }
  0x13   :  { %v1854_v9 = vld [vmem:[%s2387_s1 + $0x198] sm:$0xff]   ;;  %v1856_v10 = vld [vmem:[%s2387_s1 + $0x1d0] sm:$0xff]   ;;  %v1859_v12 = vld [vmem:[%s2387_s1 + $0x148] sm:$0xff]   ;;  %v2151_v14 = vrot.slane %v2129_v7, %v2049_v37 }
  0x14   :  { %1631 = vmatpush3.bf16.msra.mxu0 %v1819_v20  ;;  %1201 = vmatprep.mubr.bf16.mxu0 %v324_v48  ;;  %v334_v53 = vcombine.high %v324_v48, %v324_v48  ;;  %v331_v55 = vrot.slane %v303_v50, %v2049_v37  ;;  %v1857_v11 = vld [vmem:[%s2387_s1 + $0x110] sm:$0xff]   ;;  %v1860_v15 = vld [vmem:[%s2387_s1 + $0x1c8] sm:$0xff]   ;;  %v1863_v17 = vld [vmem:[%s2387_s1 + $0x140] sm:$0xff]   ;;  %v336_v50 = vcombine.high %v2129_v7, %v2129_v7 }
  0x15   :  { %1653 = vmatpush3.bf16.msra.mxu1 %v1820_v21  ;;  %1632 = vmatprep.subr.bf16.mxu0 %v1821_v22  ;;  %v1858_v13 = vld [vmem:[%s2387_s1 + $0x190] sm:$0xff]   ;;  %v1861_v16 = vld [vmem:[%s2387_s1 + $0x108] sm:$0xff]   ;;  %v351_v19 = vcombine.high %v2151_v14, %v2151_v14  ;;  %v1864_v20 = vld [vmem:[%s2387_s1 + $0x1c0] sm:$0xff]   ;;  %v317_v22 = vrot.slane %v2069_v47, %v2049_v37 }
  0x16   :  { %1654 = vmatprep.subr.bf16.mxu1 %v1822_v23  ;;  %1241 = vmatprep.mubr.bf16.mxu1 %v334_v53  ;;  %v335_v58 = vcombine.high %v331_v55, %v331_v55  ;;  %v1862_v18 = vld [vmem:[%s2387_s1 + $0x188] sm:$0xff]   ;;  %v1865_v21 = vld [vmem:[%s2387_s1 + $0x100] sm:$0xff]   ;;  %v1867_v23 = vld [vmem:[%s2387_s1 + $0x278] sm:$0xff]  }
  0x17   :  { %v1866_v24 = vld [vmem:[%s2387_s1 + $0x180] sm:$0xff]   ;;  %v373_v25 = vrot.slane %v351_v19, %v2049_v37  ;;  %v1868_v26 = vld [vmem:[%s2387_s1 + $0x2f8] sm:$0xff]   ;;  %v1878_v41 = vld [vmem:[%s2387_s1 + $0x2a8] sm:$0xff]  }
  0x18   :  { %1633 = vmatpush3.bf16.msra.mxu0 %v1823_v27  ;;  %v1869_v27 = vld [vmem:[%s2387_s1 + $0x238] sm:$0xff]   ;;  %v1879_v40 = vld [vmem:[%s2387_s1 + $0x260] sm:$0xff]   ;;  %v1887_v48 = vld [vmem:[%s2387_s1 + $0x250] sm:$0xff]  }
  0x19   :  { %1655 = vmatpush3.bf16.msra.mxu1 %v1824_v28  ;;  %1634 = vmatprep.subr.bf16.mxu0 %v1825_v29  ;;  %v333_v28 = vcombine.high %v317_v22, %v317_v22  ;;  %v1871_v29 = vld [vmem:[%s2387_s1 + $0x270] sm:$0xff]   ;;  %v383_v32 = vcombine.high %v373_v25, %v373_v25  ;;  %v1880_v42 = vld [vmem:[%s2387_s1 + $0x2e0] sm:$0xff]   ;;  %v1885_v47 = vld [vmem:[%s2387_s1 + $0x218] sm:$0xff]  }
  0x1a   :  { %1656 = vmatprep.subr.bf16.mxu1 %v1826_v30  ;;  %v1870_v30 = vld [vmem:[%s2387_s1 + $0x2b8] sm:$0xff]   ;;  %v1882_v45 = vld [vmem:[%s2387_s1 + $0x2a0] sm:$0xff]   ;;  %v1891_v53 = vld [vmem:[%s2387_s1 + $0x248] sm:$0xff]  }
  0x1b   :  { %v1902_v7 = vld [vmem:[%s2387_s1 + $0x3b8] sm:$0xff]   ;;  %v1913_v19 = vld [vmem:[%s2387_s1 + $0x320] sm:$0xff]  }
  0x1c   :  { %1635 = vmatpush3.bf16.msra.mxu0 %v1827_v33  ;;  %v1872_v33 = vld [vmem:[%s2387_s1 + $0x2f0] sm:$0xff]  }
  0x1d   :  { %1657 = vmatpush3.bf16.msra.mxu1 %v1828_v34  ;;  %1636 = vmatprep.subr.bf16.mxu0 %v1829_v35  ;;  %v1873_v34 = vld [vmem:[%s2387_s1 + $0x230] sm:$0xff]   ;;  %v1875_v35 = vld [vmem:[%s2387_s1 + $0x268] sm:$0xff]  }
  0x1e   :  { %1658 = vmatprep.subr.bf16.mxu1 %v1830_v36  ;;  %v1874_v36 = vld [vmem:[%s2387_s1 + $0x2b0] sm:$0xff]  }
  0x20   :  { %1637 = vmatpush3.bf16.msra.mxu0 %v1831_v38  ;;  %v1876_v38 = vld [vmem:[%s2387_s1 + $0x2e8] sm:$0xff]  }
  0x21   :  { %1659 = vmatpush3.bf16.msra.mxu1 %v1832_v39  ;;  %1666 = vmatprep.subr.bf16.mxu0 %v1835_v43  ;;  %v1877_v39 = vld [vmem:[%s2387_s1 + $0x228] sm:$0xff]   ;;  %v1881_v43 = vld [vmem:[%s2387_s1 + $0x220] sm:$0xff]  }
  0x22   :  { %1688 = vmatprep.subr.bf16.mxu1 %v1836_v44  ;;  %v1883_v44 = vld [vmem:[%s2387_s1 + $0x258] sm:$0xff]  }
  0x23   :  { %1202 = vmatmul.mubr.bf16.vlgmr.msra.gmra.mxu0 %v310_v46  ;;  %v1884_v46 = vld [vmem:[%s2387_s1 + $0x2d8] sm:$0xff]  }
  0x24   :  { %1667 = vmatpush3.bf16.msra.mxu0 %v1837_v49  ;;  %1242 = vmatmul.mubr.bf16.vlgmr.msra.gmra.mxu1 %v332_v51  ;;  %v1886_v49 = vld [vmem:[%s2387_s1 + $0x298] sm:$0xff]   ;;  %v1888_v51 = vld [vmem:[%s2387_s1 + $0x2d0] sm:$0xff]  }
  0x25   :  { %1668 = vmatprep.subr.bf16.mxu0 %v1839_v52  ;;  %1689 = vmatpush3.bf16.msra.mxu1 %v1838_v54  ;;  %v1889_v52 = vld [vmem:[%s2387_s1 + $0x210] sm:$0xff]  }
  0x26   :  { %1281 = vmatprep.mubr.bf16.mxu0 %v331_v55  ;;  %1690 = vmatprep.subr.bf16.mxu1 %v1840_v56  ;;  %v1890_v54 = vld [vmem:[%s2387_s1 + $0x290] sm:$0xff]   ;;  %v1892_v55 = vld [vmem:[%s2387_s1 + $0x2c8] sm:$0xff]   ;;  %v2260_v56 = vrot.slane %v336_v50, %v2049_v37 }
  0x27   :  { %1321 = vmatprep.mubr.bf16.mxu1 %v335_v58  ;;  %v1895_v58 = vld [vmem:[%s2387_s1 + $0x240] sm:$0xff]  }
  0x28   :  { %1669 = vmatpush3.bf16.msra.mxu0 %v1841_v57  ;;  %v1893_v57 = vld [vmem:[%s2387_s1 + $0x208] sm:$0xff]  }
  0x29   :  { %1670 = vmatprep.subr.bf16.mxu0 %v1843_v59  ;;  %1691 = vmatpush3.bf16.msra.mxu1 %v1842_v60  ;;  %v1894_v59 = vld [vmem:[%s2387_s1 + $0x288] sm:$0xff]   ;;  %v1896_v60 = vld [vmem:[%s2387_s1 + $0x2c0] sm:$0xff]  }
  0x2a   :  { %1692 = vmatprep.subr.bf16.mxu1 %v1844_v61  ;;  %v352_v61 = vcombine.high %v2260_v56, %v2260_v56 }
  0x2c   :  { %1671 = vmatpush3.bf16.msra.mxu0 %v1845_v62  ;;  %v1897_v62 = vld [vmem:[%s2387_s1 + $0x200] sm:$0xff]  }
  0x2d   :  { %1672 = vmatprep.subr.bf16.mxu0 %v1847_v63  ;;  %1693 = vmatpush3.bf16.msra.mxu1 %v1846_v0  ;;  %v359_v63 = vrot.slane %v2151_v14, %v2049_v37  ;;  %v1899_v0 = vld [vmem:[%s2387_s1 + $0x378] sm:$0xff]   ;;  %v1908_v14 = vld [vmem:[%s2387_s1 + $0x3e8] sm:$0xff]  }
  0x2e   :  { %1694 = vmatprep.subr.bf16.mxu1 %v1848_v1  ;;  %v1898_v1 = vld [vmem:[%s2387_s1 + $0x280] sm:$0xff]  }
  0x30   :  { %1673 = vmatpush3.bf16.msra.mxu0 %v1849_v2  ;;  %v1900_v2 = vld [vmem:[%s2387_s1 + $0x3f8] sm:$0xff]  }
  0x31   :  { %1674 = vmatprep.subr.bf16.mxu0 %v1851_v3  ;;  %1695 = vmatpush3.bf16.msra.mxu1 %v1850_v4  ;;  %v380_v3 = vrot.slane %v352_v61, %v2049_v37  ;;  %v1901_v4 = vld [vmem:[%s2387_s1 + $0x338] sm:$0xff]  }
  0x32   :  { %1696 = vmatprep.subr.bf16.mxu1 %v1852_v5  ;;  %v381_v5 = vcombine.high %v359_v63, %v359_v63 }
  0x34   :  { %1675 = vmatpush3.bf16.msra.mxu0 %v1853_v6  ;;  %v1903_v6 = vld [vmem:[%s2387_s1 + $0x370] sm:$0xff]  }
  0x35   :  { %1676 = vmatprep.subr.bf16.mxu0 %v1855_v8  ;;  %1697 = vmatpush3.bf16.msra.mxu1 %v1854_v9  ;;  %v1904_v8 = vld [vmem:[%s2387_s1 + $0x3f0] sm:$0xff]   ;;  %v275_v9 = vld [vmem:[#allocation2] sm:$0x1] }
  0x36   :  { %1698 = vmatprep.subr.bf16.mxu1 %v1856_v10  ;;  %v384_v10 = vcombine.high %v380_v3, %v380_v3  ;;  %278 = vperm.xlu0 %1800, %v275_v9  }
  0x38   :  { %1677 = vmatpush3.bf16.msra.mxu0 %v1857_v11  ;;  %v1905_v11 = vld [vmem:[%s2387_s1 + $0x330] sm:$0xff]  }
  0x39   :  { %1678 = vmatprep.subr.bf16.mxu0 %v1859_v12  ;;  %1699 = vmatpush3.bf16.msra.mxu1 %v1858_v13  ;;  %v1907_v12 = vld [vmem:[%s2387_s1 + $0x368] sm:$0xff]   ;;  %v1906_v13 = vld [vmem:[%s2387_s1 + $0x3b0] sm:$0xff]  }
  0x3a   :  { %1700 = vmatprep.subr.bf16.mxu1 %v1860_v15  ;;  %v1909_v15 = vld [vmem:[%s2387_s1 + $0x328] sm:$0xff]  }
  0x3c   :  { %1679 = vmatpush3.bf16.msra.mxu0 %v1861_v16  ;;  %v1911_v16 = vld [vmem:[%s2387_s1 + $0x360] sm:$0xff]  }
  0x3d   :  { %1680 = vmatprep.subr.bf16.mxu0 %v1863_v17  ;;  %1701 = vmatpush3.bf16.msra.mxu1 %v1862_v18  ;;  %v1910_v17 = vld [vmem:[%s2387_s1 + $0x3a8] sm:$0xff]   ;;  %v1912_v18 = vld [vmem:[%s2387_s1 + $0x3e0] sm:$0xff]  }
  0x3e   :  { %1702 = vmatprep.subr.bf16.mxu1 %v1864_v20  ;;  %v1915_v20 = vld [vmem:[%s2387_s1 + $0x358] sm:$0xff]  }
  0x40   :  { %1681 = vmatpush3.bf16.msra.mxu0 %v1865_v21  ;;  %v1914_v21 = vld [vmem:[%s2387_s1 + $0x3a0] sm:$0xff]  }
  0x41   :  { %1710 = vmatprep.subr.bf16.mxu0 %v1867_v23  ;;  %1703 = vmatpush3.bf16.msra.mxu1 %v1866_v24  ;;  %v1917_v23 = vld [vmem:[%s2387_s1 + $0x318] sm:$0xff]   ;;  %v1919_v24 = vld [vmem:[%s2387_s1 + $0x350] sm:$0xff]  }
  0x42   :  { %1732 = vmatprep.subr.bf16.mxu1 %v1868_v26  ;;  %v1920_v26 = vld [vmem:[%s2387_s1 + $0x3d0] sm:$0xff]  }
  0x43   :  { %1282 = vmatmul.mubr.bf16.vlgmr.msra.gmra.mxu0 %v317_v22  ;;  %v1916_v22 = vld [vmem:[%s2387_s1 + $0x3d8] sm:$0xff]  }
  0x44   :  { %1711 = vmatpush3.bf16.msra.mxu0 %v1869_v27  ;;  %1361 = vmatprep.mubr.bf16.mxu0 %v373_v25  ;;  %v1918_v25 = vld [vmem:[%s2387_s1 + $0x398] sm:$0xff]   ;;  %v1921_v27 = vld [vmem:[%s2387_s1 + $0x310] sm:$0xff]  }
  0x45   :  { %1322 = vmatmul.mubr.bf16.vlgmr.msra.gmra.mxu1 %v333_v28  ;;  %1712 = vmatprep.subr.bf16.mxu0 %v1871_v29  ;;  %v1923_v28 = vld [vmem:[%s2387_s1 + $0x348] sm:$0xff]   ;;  %v1922_v29 = vld [vmem:[%s2387_s1 + $0x390] sm:$0xff]  }
  0x46   :  { %1733 = vmatpush3.bf16.msra.mxu1 %v1870_v30  ;;  %1401 = vmatprep.mubr.bf16.mxu1 %v383_v32  ;;  %v1924_v30 = vld [vmem:[%s2387_s1 + $0x3c8] sm:$0xff]  }
  0x47   :  { %1734 = vmatprep.subr.bf16.mxu1 %v1872_v33  ;;  %v1925_v32 = vld [vmem:[%s2387_s1 + $0x308] sm:$0xff]   ;;  %v1927_v33 = vld [vmem:[%s2387_s1 + $0x340] sm:$0xff]  }
  0x48   :  { %1713 = vmatpush3.bf16.msra.mxu0 %v1873_v34  ;;  %v1926_v34 = vld [vmem:[%s2387_s1 + $0x388] sm:$0xff]  }
  0x49   :  { %1714 = vmatprep.subr.bf16.mxu0 %v1875_v35  ;;  %v1928_v35 = vld [vmem:[%s2387_s1 + $0x3c0] sm:$0xff]  }
  0x4a   :  { %1735 = vmatpush3.bf16.msra.mxu1 %v1874_v36  ;;  %v1929_v36 = vld [vmem:[%s2387_s1 + $0x300] sm:$0xff]  }
  0x4b   :  { %1736 = vmatprep.subr.bf16.mxu1 %v1876_v38  ;;  %v366_v38 = vrot.slane %v2260_v56, %v2049_v37 }
  0x4c   :  { %1715 = vmatpush3.bf16.msra.mxu0 %v1877_v39  ;;  %v1930_v39 = vld [vmem:[%s2387_s1 + $0x380] sm:$0xff]  }
  0x4d   :  { %1716 = vmatprep.subr.bf16.mxu0 %v1879_v40  ;;  %v382_v40 = vcombine.high %v366_v38, %v366_v38 }
  0x4e   :  { %1737 = vmatpush3.bf16.msra.mxu1 %v1878_v41  ;;  %v283_v41 = vsub.s32 0, %v2034_v31 }
  0x4f   :  { %1738 = vmatprep.subr.bf16.mxu1 %v1880_v42 }
  0x50   :  { %1717 = vmatpush3.bf16.msra.mxu0 %v1881_v43 }
  0x51   :  { %1718 = vmatprep.subr.bf16.mxu0 %v1883_v44 }
  0x52   :  { %1739 = vmatpush3.bf16.msra.mxu1 %v1882_v45 }
  0x53   :  { %1740 = vmatprep.subr.bf16.mxu1 %v1884_v46 }
  0x54   :  { %1719 = vmatpush3.bf16.msra.mxu0 %v1885_v47 }
  0x55   :  { %1720 = vmatprep.subr.bf16.mxu0 %v1887_v48 }
  0x56   :  { %1741 = vmatpush3.bf16.msra.mxu1 %v1886_v49 }
  0x57   :  { %1742 = vmatprep.subr.bf16.mxu1 %v1888_v51 }
  0x58   :  { %1721 = vmatpush3.bf16.msra.mxu0 %v1889_v52 }
  0x59   :  { %1722 = vmatprep.subr.bf16.mxu0 %v1891_v53 }
  0x5a   :  { %1743 = vmatpush3.bf16.msra.mxu1 %v1890_v54 }
  0x5b   :  { %1744 = vmatprep.subr.bf16.mxu1 %v1892_v55 }
  0x5c   :  { %1723 = vmatpush3.bf16.msra.mxu0 %v1893_v57 }
  0x5d   :  { %1724 = vmatprep.subr.bf16.mxu0 %v1895_v58 }
  0x5e   :  { %1745 = vmatpush3.bf16.msra.mxu1 %v1894_v59 }
  0x5f   :  { %1746 = vmatprep.subr.bf16.mxu1 %v1896_v60 }
  0x60   :  { %1725 = vmatpush3.bf16.msra.mxu0 %v1897_v62 }
  0x61   :  { %1754 = vmatprep.subr.bf16.mxu0 %v1899_v0 }
  0x62   :  { %1747 = vmatpush3.bf16.msra.mxu1 %v1898_v1 }
  0x63   :  { %1362 = vmatmul.mubr.bf16.vlgmr.msra.gmra.mxu0 %v359_v63  ;;  %1776 = vmatprep.subr.bf16.mxu1 %v1900_v2 }
  0x64   :  { %1755 = vmatpush3.bf16.msra.mxu0 %v1901_v4  ;;  %1441 = vmatprep.mubr.bf16.mxu0 %v380_v3 }
  0x65   :  { %1402 = vmatmul.mubr.bf16.vlgmr.msra.gmra.mxu1 %v381_v5  ;;  %1756 = vmatprep.subr.bf16.mxu0 %v1903_v6 }
  0x66   :  { %1777 = vmatpush3.bf16.msra.mxu1 %v1902_v7  ;;  %1481 = vmatprep.mubr.bf16.mxu1 %v384_v10 }
  0x67   :  { %1778 = vmatprep.subr.bf16.mxu1 %v1904_v8 }
  0x68   :  { %1757 = vmatpush3.bf16.msra.mxu0 %v1905_v11 }
  0x69   :  { %1758 = vmatprep.subr.bf16.mxu0 %v1907_v12 }
  0x6a   :  { %1779 = vmatpush3.bf16.msra.mxu1 %v1906_v13 }
  0x6b   :  { %1780 = vmatprep.subr.bf16.mxu1 %v1908_v14 }
  0x6c   :  { %1759 = vmatpush3.bf16.msra.mxu0 %v1909_v15 }
  0x6d   :  { %1760 = vmatprep.subr.bf16.mxu0 %v1911_v16 }
  0x6e   :  { %1781 = vmatpush3.bf16.msra.mxu1 %v1910_v17 }
  0x6f   :  { %1782 = vmatprep.subr.bf16.mxu1 %v1912_v18 }
  0x70   :  { %1761 = vmatpush3.bf16.msra.mxu0 %v1913_v19 }
  0x71   :  { %1762 = vmatprep.subr.bf16.mxu0 %v1915_v20 }
  0x72   :  { %1783 = vmatpush3.bf16.msra.mxu1 %v1914_v21 }
  0x73   :  { %1784 = vmatprep.subr.bf16.mxu1 %v1916_v22 }
  0x74   :  { %1763 = vmatpush3.bf16.msra.mxu0 %v1917_v23 }
  0x75   :  { %1764 = vmatprep.subr.bf16.mxu0 %v1919_v24 }
  0x76   :  { %1785 = vmatpush3.bf16.msra.mxu1 %v1918_v25 }
  0x77   :  { %1786 = vmatprep.subr.bf16.mxu1 %v1920_v26 }
  0x78   :  { %1765 = vmatpush3.bf16.msra.mxu0 %v1921_v27 }
  0x79   :  { %1766 = vmatprep.subr.bf16.mxu0 %v1923_v28 }
  0x7a   :  { %1787 = vmatpush3.bf16.msra.mxu1 %v1922_v29 }
  0x7b   :  { %1788 = vmatprep.subr.bf16.mxu1 %v1924_v30 }
  0x7c   :  { %1767 = vmatpush3.bf16.msra.mxu0 %v1925_v32 }
  0x7d   :  { %1768 = vmatprep.subr.bf16.mxu0 %v1927_v33 }
  0x7e   :  { %1789 = vmatpush3.bf16.msra.mxu1 %v1926_v34 }
  0x7f   :  { %1790 = vmatprep.subr.bf16.mxu1 %v1928_v35 }
  0x80   :  { %1769 = vmatpush3.bf16.msra.mxu0 %v1929_v36 }
  0x82   :  { %1791 = vmatpush3.bf16.msra.mxu1 %v1930_v39 }
  0x83   :  { %1442 = vmatmul.mubr.bf16.vlgmr.msra.gmra.mxu0 %v366_v38 }
  0x85   :  { %1482 = vmatmul.mubr.bf16.vlgmr.msra.gmra.mxu1 %v382_v40 }
  0xb1   :  { %v279_v42 = vpop.permute.xlu0 %278 }
  0xb2   :  { %v284_v44 = vrot.slane %v279_v42, %v283_v41 }
  0xe3   :  { %v1638_v43 = vpop.f32.mrf.mxu0 }
  0xe4   :  { %v1660_v45 = vpop.f32.mrf.mxu1 }
  0xe5   :  { %v1639_v46 = vpop.f32.mrf.mxu0 }
  0xe6   :  { %v1640_v47 = vadd.f32 %v1639_v46, %v1638_v43  ;;  %v1661_v37 = vpop.f32.mrf.mxu1 }
  0xe7   :  { %v1641_v48 = vpop.f32.mrf.mxu0  ;;  %v1662_v50 = vadd.f32 %v1661_v37, %v1660_v45 }
  0xe8   :  { %v1204_v49 = vadd.f32 %v1640_v47, %v284_v44  ;;  %v1663_v51 = vpop.f32.mrf.mxu1 }
  0xe9   :  { %v1642_v52 = vpop.f32.mrf.mxu0 }
  0xea   :  { %v1244_v53 = vadd.f32 %v1662_v50, %v1204_v49  ;;  %v1664_v54 = vpop.f32.mrf.mxu1 }
 0x103   :  { %v1682_v55 = vpop.f32.mrf.mxu0 }
 0x105   :  { %v1704_v56 = vpop.f32.mrf.mxu1  ;;  %v1683_v57 = vpop.f32.mrf.mxu0 }
 0x106   :  { %v1684_v6 = vadd.f32 %v1683_v57, %v1682_v55 }
 0x107   :  { %v1705_v58 = vpop.f32.mrf.mxu1  ;;  %v1685_v59 = vpop.f32.mrf.mxu0 }
 0x108   :  { %v1284_v7 = vadd.f32 %v1684_v6, %v1244_v53  ;;  %v1706_v8 = vadd.f32 %v1705_v58, %v1704_v56 }
 0x109   :  { %v1707_v31 = vpop.f32.mrf.mxu1  ;;  %v1686_v60 = vpop.f32.mrf.mxu0 }
 0x10a   :  { %v1324_v10 = vadd.f32 %v1706_v8, %v1284_v7 }
 0x10b   :  { %v1708_v61 = vpop.f32.mrf.mxu1 }
 0x123   :  { %v1726_v62 = vpop.f32.mrf.mxu0 }
 0x125   :  { %v1748_v63 = vpop.f32.mrf.mxu1  ;;  %v1727_v0 = vpop.f32.mrf.mxu0 }
 0x126   :  { %v1728_v9 = vadd.f32 %v1727_v0, %v1726_v62 }
 0x127   :  { %v1749_v1 = vpop.f32.mrf.mxu1  ;;  %v1729_v2 = vpop.f32.mrf.mxu0 }
 0x128   :  { %v1364_v11 = vadd.f32 %v1728_v9, %v1324_v10  ;;  %v1750_v12 = vadd.f32 %v1749_v1, %v1748_v63 }
 0x129   :  { %v1751_v3 = vpop.f32.mrf.mxu1  ;;  %v1730_v4 = vpop.f32.mrf.mxu0 }
 0x12a   :  { %v1404_v16 = vadd.f32 %v1750_v12, %v1364_v11 }
 0x12b   :  { %v1752_v5 = vpop.f32.mrf.mxu1 }
 0x143   :  { %v1770_v13 = vpop.f32.mrf.mxu0 }
 0x145   :  { %v1792_v14 = vpop.f32.mrf.mxu1  ;;  %v1771_v15 = vpop.f32.mrf.mxu0 }
 0x146   :  { %v1772_v17 = vadd.f32 %v1771_v15, %v1770_v13 }
 0x147   :  { %v1793_v18 = vpop.f32.mrf.mxu1  ;;  %v1773_v19 = vpop.f32.mrf.mxu0 }
 0x148   :  { %v1444_v20 = vadd.f32 %v1772_v17, %v1404_v16  ;;  %v1794_v21 = vadd.f32 %v1793_v18, %v1792_v14 }
 0x149   :  { %v1795_v22 = vpop.f32.mrf.mxu1  ;;  %v1774_v23 = vpop.f32.mrf.mxu0 }
 0x14a   :  { %v1484_v24 = vadd.f32 %v1794_v21, %v1444_v20 }
 0x14b   :  { %v1796_v25 = vpop.f32.mrf.mxu1 }
 0x14c   :  { %1489 = vst [vmem:[%s2390_s3] sm:$0x1] %v1484_v24 }

</bundles_post_ra>
